<compile_context>
chip_gen: v5e
topology: v5e:2x2
jax: 0.10.0
libtpu: 0.0.40
codegen_flags: <defaults>
</compile_context>

<pallas_src>
import jax
import jax.numpy as jnp
from jax import lax
from jax.experimental import pallas as pl
from jax.experimental.pallas import tpu as pltpu


def _round_up(x, m):
    return ((x + m - 1) // m) * m


# ---------------------------------------------------------------------------
# Fused Pallas kernel (one (image, row-band) tile per grid step)
# ---------------------------------------------------------------------------
def _make_fused_kernel(H, W, TR):
    Wt = W + 4        # h1/h2/tap row width incl. the +-2 conv3 column halo
    NRI = TR + 12     # input band rows (6-row halo on each side)
    NRO = TR + 4      # tap rows computed per band (+-2 row conv3 halo)

    def kernel(x_ref, w1_ref, b1_ref, w2_ref, b2_ref, w3_ref, b3_ref,
               o_ref, s_ref):
        # ---- in-kernel width-im2col: S[r*9+kw, :] = x_band[r, kw:kw+Wt] ----
        for r in range(NRI):
            row = x_ref[r:r + 1, :]                              # (1, W+12)
            for kw in range(9):
                s_ref[r * 9 + kw:r * 9 + kw + 1, :] = row[:, kw:kw + Wt]

        # Column-validity mask: conv3 must see zeros outside the image.
        lane = lax.broadcasted_iota(jnp.int32, (1, Wt), 1)
        col_mask = ((lane >= 2) & (lane < W + 2)).astype(jnp.float32)

        row0 = pl.program_id(1) * TR - 2      # global image row of tap row 0

        # Initialise the output block with the conv3 bias.
        o_ref[...] = jnp.zeros((TR, W), jnp.float32) + b3_ref[0]

        # ---- per tap row: conv1 -> ReLU -> conv2 -> ReLU -> conv3 taps, then
        #      immediately accumulate the 5x5 shifted contributions.
        for li in range(NRO):
            xrow = s_ref[li * 9:li * 9 + 81, :]                  # (81, Wt)
            h1 = jnp.dot(w1_ref[...], xrow,
                         preferred_element_type=jnp.float32)      # (64, Wt)
            h1 = jnp.maximum(h1 + b1_ref[...], 0.0)
            h2 = jnp.dot(w2_ref[...], h1,
                         preferred_element_type=jnp.float32)      # (32, Wt)
            h2 = jnp.maximum(h2 + b2_ref[...], 0.0)
            taps = jnp.dot(w3_ref[...], h2,
                           preferred_element_type=jnp.float32)    # (25, Wt)

            # Zero taps that fall outside the real image (conv3 zero padding).
            g = row0 + li
            row_ok = jnp.logical_and(g >= 0, g < H).astype(jnp.float32)
            taps = taps * (col_mask * row_ok)

            # conv3 shift-and-accumulate: tap row li feeds output rows li-kh.
            for kh in range(5):
                r_out = li - kh
                if 0 <= r_out < TR:
                    contrib = taps[kh * 5:kh * 5 + 1, 0:W]
                    for kw in range(1, 5):
                        contrib = contrib + taps[kh * 5 + kw:kh * 5 + kw + 1,
                                                 kw:kw + W]
                    o_ref[r_out:r_out + 1, :] += contrib

    return kernel


# ---------------------------------------------------------------------------
# Forward pass
# ---------------------------------------------------------------------------
def srcnn_forward(x_nchw, params, *, row_tile=32):
    N, C, H, W = x_nchw.shape
    assert C == 1, "SRCNN expects a single input channel"

    # ---- choose the row-band size --------------------------------------
    TR = min(_round_up(H, 8), _round_up(max(row_tile, 8), 8))
    if H > 8:  # expose >= 2 bands when possible (v7x megacore)
        TR = min(TR, _round_up(pl.cdiv(H, 2), 8))

    def _vmem_bytes(tr):
        wt = W + 4
        s = (tr + 12) * 9 * wt            # width-im2col scratch
        xin = 2 * (tr + 12) * (W + 12)    # double-buffered input band
        out = 2 * tr * W                  # double-buffered output block
        return 4 * (s + xin + out)

    while TR > 8 and _vmem_bytes(TR) > 36 * 1024 * 1024:
        TR -= 8

    RT = pl.cdiv(H, TR)
    HP = RT * TR
    Wt = W + 4

    # ---- XLA-side prep (tiny: the input is a single channel) -----------
    x = x_nchw.reshape(N, H, W).astype(jnp.float32)
    xp = jnp.pad(x, ((0, 0), (6, 6 + HP - H), (6, 6)))        # (N, HP+12, W+12)
    x_bands = jnp.stack(
        [xp[:, t * TR:t * TR + TR + 12, :] for t in range(RT)],
        axis=1)                                               # (N, RT, TR+12, W+12)

    w1 = params["w1"].reshape(64, 81).astype(jnp.float32)       # [c, kh*9+kw]
    b1 = params["b1"].reshape(64, 1).astype(jnp.float32)
    w2 = params["w2"].reshape(32, 64).astype(jnp.float32)
    b2 = params["b2"].reshape(32, 1).astype(jnp.float32)
    w3t = params["w3"].reshape(32, 25).T.astype(jnp.float32)    # [kh*5+kw, ci]
    b3 = params["b3"].reshape(1).astype(jnp.float32)

    kernel = _make_fused_kernel(H, W, TR)

    flops = (2 * N * RT * (TR + 4) * Wt * (81 * 64 + 64 * 32 + 32 * 25)
             + 25 * N * RT * TR * W)
    bytes_accessed = (x_bands.size * 4 + N * HP * W * 4
                      + (w1.size + w2.size + w3t.size + 64 + 32 + 1) * 4)

    out = pl.pallas_call(
        kernel,
        out_shape=jax.ShapeDtypeStruct((N, HP, W), jnp.float32),
        grid=(N, RT),
        in_specs=[
            pl.BlockSpec((None, None, TR + 12, W + 12),
                         lambda n, t: (n, t, 0, 0)),
            pl.BlockSpec((64, 81), lambda n, t: (0, 0)),
            pl.BlockSpec((64, 1), lambda n, t: (0, 0)),
            pl.BlockSpec((32, 64), lambda n, t: (0, 0)),
            pl.BlockSpec((32, 1), lambda n, t: (0, 0)),
            pl.BlockSpec((25, 32), lambda n, t: (0, 0)),
            pl.BlockSpec(memory_space=pltpu.MemorySpace.SMEM),
        ],
        out_specs=pl.BlockSpec((None, TR, W), lambda n, t: (n, t, 0)),
        scratch_shapes=[pltpu.VMEM(((TR + 12) * 9, Wt), jnp.float32)],
        compiler_params=pltpu.CompilerParams(
            dimension_semantics=("parallel", "parallel"),
            vmem_limit_bytes=48 * 1024 * 1024),
        cost_estimate=pl.CostEstimate(flops=flops, transcendentals=0,
                                      bytes_accessed=bytes_accessed),
    )(x_bands, w1, b1, w2, b2, w3t, b3)

    return out[:, :H, :].reshape(N, 1, H, W)                    # NCHW


# ---------------------------------------------------------------------------
# Pure-JAX reference (for correctness check)
# ---------------------------------------------------------------------------
def srcnn_ref(x, params):
    def conv(inp, w, b, pad):
        dn = lax.conv_dimension_numbers(inp.shape, w.shape,
                                        ("NCHW", "OIHW", "NCHW"))
        o = lax.conv_general_dilated(inp, w, (1, 1), [(pad, pad), (pad, pad)],
                                     dimension_numbers=dn)
        return o + b.reshape(1, -1, 1, 1)

    h = jax.nn.relu(conv(x, params["w1"], params["b1"], 4))
    h = jax.nn.relu(conv(h, params["w2"], params["b2"], 0))
    return conv(h, params["w3"], params["b3"], 2)


# ---------------------------------------------------------------------------
def init_params(key):
    # Deterministic synthetic init matching nn.Conv2d parameter shapes (OIHW).
    ks = jax.random.split(key, 6)

    def u(k, shape, fan_in):
        bound = 1.0 / jnp.sqrt(float(fan_in))
        return jax.random.uniform(k, shape, jnp.float32, -bound, bound)

    return {
        "w1": u(ks[0], (64, 1, 9, 9), 1 * 9 * 9),
        "b1": u(ks[1], (64,), 1 * 9 * 9),
        "w2": u(ks[2], (32, 64, 1, 1), 64 * 1 * 1),
        "b2": u(ks[3], (32,), 64 * 1 * 1),
        "w3": u(ks[4], (1, 32, 5, 5), 32 * 5 * 5),
        "b3": u(ks[5], (1,), 32 * 5 * 5),
    }


if __name__ == "__main__":
    key = jax.random.PRNGKey(0)
    kx, kp = jax.random.split(key)
    params = init_params(kp)

    fwd = jax.jit(srcnn_forward)

    # Main small test (batch=2, 1 channel, 16x16) -> 2 row bands x 2 images.
    x = jax.random.normal(kx, (2, 1, 16, 16), jnp.float32)
    out = jax.block_until_ready(fwd(x, params))
    ref = jax.block_until_ready(srcnn_ref(x, params))
    assert out.shape == (2, 1, 16, 16), out.shape
    err = float(jnp.max(jnp.abs(out - ref)))
    assert jnp.allclose(out, ref, atol=3e-4, rtol=3e-4), err

    # Asymmetric shape: exercises the padded-row masking (HP > H) and bands.
    x2 = jax.random.normal(jax.random.PRNGKey(1), (1, 1, 24, 20), jnp.float32)
    out2 = jax.block_until_ready(fwd(x2, params))
    ref2 = jax.block_until_ready(srcnn_ref(x2, params))
    err2 = float(jnp.max(jnp.abs(out2 - ref2)))
    assert jnp.allclose(out2, ref2, atol=3e-4, rtol=3e-4), err2

    print("KERNEL_OK")
</pallas_src>

<mosaic_0001>
module attributes {stable_mosaic.version = 11 : i64} {
  func.func @kernel(%arg0: i32, %arg1: i32, %arg2: memref<1x1x20x28xf32, #tpu.memory_space<vmem>>, %arg3: memref<64x81xf32, #tpu.memory_space<vmem>>, %arg4: memref<64x1xf32, #tpu.memory_space<vmem>>, %arg5: memref<32x64xf32, #tpu.memory_space<vmem>>, %arg6: memref<32x1xf32, #tpu.memory_space<vmem>>, %arg7: memref<25x32xf32, #tpu.memory_space<vmem>>, %arg8: memref<1xf32, #tpu.memory_space<smem>>, %arg9: memref<1x8x16xf32, #tpu.memory_space<vmem>>, %arg10: memref<180x20xf32, #tpu.memory_space<vmem>>) attributes {dimension_semantics = [#tpu.dimension_semantics<parallel>, #tpu.dimension_semantics<parallel>], iteration_bounds = array<i64: 2, 2>, scalar_prefetch = 0 : i64, scratch_operands = 1 : i64, tpu.core_type = #tpu.core_type<tc>, window_params = [{transform_indices = @transform_0, window_bounds = array<i64: 1, 1, 20, 28>}, {pipeline_mode = #tpu.pipeline_mode<synchronous>, transform_indices = @transform_1, window_bounds = array<i64: 64, 81>}, {pipeline_mode = #tpu.pipeline_mode<synchronous>, transform_indices = @transform_2, window_bounds = array<i64: 64, 1>}, {pipeline_mode = #tpu.pipeline_mode<synchronous>, transform_indices = @transform_3, window_bounds = array<i64: 32, 64>}, {pipeline_mode = #tpu.pipeline_mode<synchronous>, transform_indices = @transform_4, window_bounds = array<i64: 32, 1>}, {pipeline_mode = #tpu.pipeline_mode<synchronous>, transform_indices = @transform_5, window_bounds = array<i64: 25, 32>}, {transform_indices = @transform_6, window_bounds = array<i64: 1>}, {transform_indices = @transform_7, window_bounds = array<i64: 1, 8, 16>}]} {
    %c0 = arith.constant 0 : index
    %c0_0 = arith.constant 0 : index
    %c0_1 = arith.constant 0 : index
    %c0_2 = arith.constant 0 : index
    %0 = vector.load %arg2[%c0, %c0_0, %c0_1, %c0_2] : memref<1x1x20x28xf32, #tpu.memory_space<vmem>>, vector<1x1x1x28xf32>
    %1 = vector.shape_cast %0 : vector<1x1x1x28xf32> to vector<1x28xf32>
    %2 = vector.extract_strided_slice %1 {offsets = [0, 0], sizes = [1, 20], strides = [1, 1]} : vector<1x28xf32> to vector<1x20xf32>
    %c0_3 = arith.constant 0 : index
    %c0_4 = arith.constant 0 : index
    %3 = vector.load %arg10[%c0_3, %c0_4] : memref<180x20xf32, #tpu.memory_space<vmem>>, vector<1x20xf32>
    tpu.vector_store %arg10[%c0_3, %c0_4], %2 {strides = array<i32>} : memref<180x20xf32, #tpu.memory_space<vmem>>, vector<1x20xf32>,
    %4 = vector.extract_strided_slice %1 {offsets = [0, 1], sizes = [1, 20], strides = [1, 1]} : vector<1x28xf32> to vector<1x20xf32>
    %c1 = arith.constant 1 : index
    %c0_5 = arith.constant 0 : index
    %5 = vector.load %arg10[%c1, %c0_5] : memref<180x20xf32, #tpu.memory_space<vmem>>, vector<1x20xf32>
    tpu.vector_store %arg10[%c1, %c0_5], %4 {strides = array<i32>} : memref<180x20xf32, #tpu.memory_space<vmem>>, vector<1x20xf32>,
    %6 = vector.extract_strided_slice %1 {offsets = [0, 2], sizes = [1, 20], strides = [1, 1]} : vector<1x28xf32> to vector<1x20xf32>
    %c2 = arith.constant 2 : index
    %c0_6 = arith.constant 0 : index
    %7 = vector.load %arg10[%c2, %c0_6] : memref<180x20xf32, #tpu.memory_space<vmem>>, vector<1x20xf32>
    tpu.vector_store %arg10[%c2, %c0_6], %6 {strides = array<i32>} : memref<180x20xf32, #tpu.memory_space<vmem>>, vector<1x20xf32>,
    %8 = vector.extract_strided_slice %1 {offsets = [0, 3], sizes = [1, 20], strides = [1, 1]} : vector<1x28xf32> to vector<1x20xf32>
    %c3 = arith.constant 3 : index
    %c0_7 = arith.constant 0 : index
    %9 = vector.load %arg10[%c3, %c0_7] : memref<180x20xf32, #tpu.memory_space<vmem>>, vector<1x20xf32>
    tpu.vector_store %arg10[%c3, %c0_7], %8 {strides = array<i32>} : memref<180x20xf32, #tpu.memory_space<vmem>>, vector<1x20xf32>,
    %10 = vector.extract_strided_slice %1 {offsets = [0, 4], sizes = [1, 20], strides = [1, 1]} : vector<1x28xf32> to vector<1x20xf32>
    %c4 = arith.constant 4 : index
    %c0_8 = arith.constant 0 : index
    %11 = vector.load %arg10[%c4, %c0_8] : memref<180x20xf32, #tpu.memory_space<vmem>>, vector<1x20xf32>
    tpu.vector_store %arg10[%c4, %c0_8], %10 {strides = array<i32>} : memref<180x20xf32, #tpu.memory_space<vmem>>, vector<1x20xf32>,
    %12 = vector.extract_strided_slice %1 {offsets = [0, 5], sizes = [1, 20], strides = [1, 1]} : vector<1x28xf32> to vector<1x20xf32>
    %c5 = arith.constant 5 : index
    %c0_9 = arith.constant 0 : index
    %13 = vector.load %arg10[%c5, %c0_9] : memref<180x20xf32, #tpu.memory_space<vmem>>, vector<1x20xf32>
    tpu.vector_store %arg10[%c5, %c0_9], %12 {strides = array<i32>} : memref<180x20xf32, #tpu.memory_space<vmem>>, vector<1x20xf32>,
    %14 = vector.extract_strided_slice %1 {offsets = [0, 6], sizes = [1, 20], strides = [1, 1]} : vector<1x28xf32> to vector<1x20xf32>
    %c6 = arith.constant 6 : index
    %c0_10 = arith.constant 0 : index
    %15 = vector.load %arg10[%c6, %c0_10] : memref<180x20xf32, #tpu.memory_space<vmem>>, vector<1x20xf32>
    tpu.vector_store %arg10[%c6, %c0_10], %14 {strides = array<i32>} : memref<180x20xf32, #tpu.memory_space<vmem>>, vector<1x20xf32>,
    %16 = vector.extract_strided_slice %1 {offsets = [0, 7], sizes = [1, 20], strides = [1, 1]} : vector<1x28xf32> to vector<1x20xf32>
    %c7 = arith.constant 7 : index
    %c0_11 = arith.constant 0 : index
    %17 = vector.load %arg10[%c7, %c0_11] : memref<180x20xf32, #tpu.memory_space<vmem>>, vector<1x20xf32>
    tpu.vector_store %arg10[%c7, %c0_11], %16 {strides = array<i32>} : memref<180x20xf32, #tpu.memory_space<vmem>>, vector<1x20xf32>,
    %18 = vector.extract_strided_slice %1 {offsets = [0, 8], sizes = [1, 20], strides = [1, 1]} : vector<1x28xf32> to vector<1x20xf32>
    %c8 = arith.constant 8 : index
    %c0_12 = arith.constant 0 : index
    %19 = vector.load %arg10[%c8, %c0_12] : memref<180x20xf32, #tpu.memory_space<vmem>>, vector<1x20xf32>
    tpu.vector_store %arg10[%c8, %c0_12], %18 {strides = array<i32>} : memref<180x20xf32, #tpu.memory_space<vmem>>, vector<1x20xf32>,
    %c0_13 = arith.constant 0 : index
    %c0_14 = arith.constant 0 : index
    %c1_15 = arith.constant 1 : index
    %c0_16 = arith.constant 0 : index
    %20 = vector.load %arg2[%c0_13, %c0_14, %c1_15, %c0_16] : memref<1x1x20x28xf32, #tpu.memory_space<vmem>>, vector<1x1x1x28xf32>
    %21 = vector.shape_cast %20 : vector<1x1x1x28xf32> to vector<1x28xf32>
    %22 = vector.extract_strided_slice %21 {offsets = [0, 0], sizes = [1, 20], strides = [1, 1]} : vector<1x28xf32> to vector<1x20xf32>
    %c9 = arith.constant 9 : index
    %c0_17 = arith.constant 0 : index
    %23 = vector.load %arg10[%c9, %c0_17] : memref<180x20xf32, #tpu.memory_space<vmem>>, vector<1x20xf32>
    tpu.vector_store %arg10[%c9, %c0_17], %22 {strides = array<i32>} : memref<180x20xf32, #tpu.memory_space<vmem>>, vector<1x20xf32>,
    %24 = vector.extract_strided_slice %21 {offsets = [0, 1], sizes = [1, 20], strides = [1, 1]} : vector<1x28xf32> to vector<1x20xf32>
    %c10 = arith.constant 10 : index
    %c0_18 = arith.constant 0 : index
    %25 = vector.load %arg10[%c10, %c0_18] : memref<180x20xf32, #tpu.memory_space<vmem>>, vector<1x20xf32>
    tpu.vector_store %arg10[%c10, %c0_18], %24 {strides = array<i32>} : memref<180x20xf32, #tpu.memory_space<vmem>>, vector<1x20xf32>,
    %26 = vector.extract_strided_slice %21 {offsets = [0, 2], sizes = [1, 20], strides = [1, 1]} : vector<1x28xf32> to vector<1x20xf32>
    %c11 = arith.constant 11 : index
    %c0_19 = arith.constant 0 : index
    %27 = vector.load %arg10[%c11, %c0_19] : memref<180x20xf32, #tpu.memory_space<vmem>>, vector<1x20xf32>
    tpu.vector_store %arg10[%c11, %c0_19], %26 {strides = array<i32>} : memref<180x20xf32, #tpu.memory_space<vmem>>, vector<1x20xf32>,
    %28 = vector.extract_strided_slice %21 {offsets = [0, 3], sizes = [1, 20], strides = [1, 1]} : vector<1x28xf32> to vector<1x20xf32>
    %c12 = arith.constant 12 : index
    %c0_20 = arith.constant 0 : index
    %29 = vector.load %arg10[%c12, %c0_20] : memref<180x20xf32, #tpu.memory_space<vmem>>, vector<1x20xf32>
    tpu.vector_store %arg10[%c12, %c0_20], %28 {strides = array<i32>} : memref<180x20xf32, #tpu.memory_space<vmem>>, vector<1x20xf32>,
    %30 = vector.extract_strided_slice %21 {offsets = [0, 4], sizes = [1, 20], strides = [1, 1]} : vector<1x28xf32> to vector<1x20xf32>
    %c13 = arith.constant 13 : index
    %c0_21 = arith.constant 0 : index
    %31 = vector.load %arg10[%c13, %c0_21] : memref<180x20xf32, #tpu.memory_space<vmem>>, vector<1x20xf32>
    tpu.vector_store %arg10[%c13, %c0_21], %30 {strides = array<i32>} : memref<180x20xf32, #tpu.memory_space<vmem>>, vector<1x20xf32>,
    %32 = vector.extract_strided_slice %21 {offsets = [0, 5], sizes = [1, 20], strides = [1, 1]} : vector<1x28xf32> to vector<1x20xf32>
    %c14 = arith.constant 14 : index
    %c0_22 = arith.constant 0 : index
    %33 = vector.load %arg10[%c14, %c0_22] : memref<180x20xf32, #tpu.memory_space<vmem>>, vector<1x20xf32>
    tpu.vector_store %arg10[%c14, %c0_22], %32 {strides = array<i32>} : memref<180x20xf32, #tpu.memory_space<vmem>>, vector<1x20xf32>,
    %34 = vector.extract_strided_slice %21 {offsets = [0, 6], sizes = [1, 20], strides = [1, 1]} : vector<1x28xf32> to vector<1x20xf32>
    %c15 = arith.constant 15 : index
    %c0_23 = arith.constant 0 : index
    %35 = vector.load %arg10[%c15, %c0_23] : memref<180x20xf32, #tpu.memory_space<vmem>>, vector<1x20xf32>
    tpu.vector_store %arg10[%c15, %c0_23], %34 {strides = array<i32>} : memref<180x20xf32, #tpu.memory_space<vmem>>, vector<1x20xf32>,
    %36 = vector.extract_strided_slice %21 {offsets = [0, 7], sizes = [1, 20], strides = [1, 1]} : vector<1x28xf32> to vector<1x20xf32>
    %c16 = arith.constant 16 : index
    %c0_24 = arith.constant 0 : index
    %37 = vector.load %arg10[%c16, %c0_24] : memref<180x20xf32, #tpu.memory_space<vmem>>, vector<1x20xf32>
    tpu.vector_store %arg10[%c16, %c0_24], %36 {strides = array<i32>} : memref<180x20xf32, #tpu.memory_space<vmem>>, vector<1x20xf32>,
    %38 = vector.extract_strided_slice %21 {offsets = [0, 8], sizes = [1, 20], strides = [1, 1]} : vector<1x28xf32> to vector<1x20xf32>
    %c17 = arith.constant 17 : index
    %c0_25 = arith.constant 0 : index
    %39 = vector.load %arg10[%c17, %c0_25] : memref<180x20xf32, #tpu.memory_space<vmem>>, vector<1x20xf32>
    tpu.vector_store %arg10[%c17, %c0_25], %38 {strides = array<i32>} : memref<180x20xf32, #tpu.memory_space<vmem>>, vector<1x20xf32>,
    %c0_26 = arith.constant 0 : index
    %c0_27 = arith.constant 0 : index
    %c2_28 = arith.constant 2 : index
    %c0_29 = arith.constant 0 : index
    %40 = vector.load %arg2[%c0_26, %c0_27, %c2_28, %c0_29] : memref<1x1x20x28xf32, #tpu.memory_space<vmem>>, vector<1x1x1x28xf32>
    %41 = vector.shape_cast %40 : vector<1x1x1x28xf32> to vector<1x28xf32>
    %42 = vector.extract_strided_slice %41 {offsets = [0, 0], sizes = [1, 20], strides = [1, 1]} : vector<1x28xf32> to vector<1x20xf32>
    %c18 = arith.constant 18 : index
    %c0_30 = arith.constant 0 : index
    %43 = vector.load %arg10[%c18, %c0_30] : memref<180x20xf32, #tpu.memory_space<vmem>>, vector<1x20xf32>
    tpu.vector_store %arg10[%c18, %c0_30], %42 {strides = array<i32>} : memref<180x20xf32, #tpu.memory_space<vmem>>, vector<1x20xf32>,
    %44 = vector.extract_strided_slice %41 {offsets = [0, 1], sizes = [1, 20], strides = [1, 1]} : vector<1x28xf32> to vector<1x20xf32>
    %c19 = arith.constant 19 : index
    %c0_31 = arith.constant 0 : index
    %45 = vector.load %arg10[%c19, %c0_31] : memref<180x20xf32, #tpu.memory_space<vmem>>, vector<1x20xf32>
    tpu.vector_store %arg10[%c19, %c0_31], %44 {strides = array<i32>} : memref<180x20xf32, #tpu.memory_space<vmem>>, vector<1x20xf32>,
    %46 = vector.extract_strided_slice %41 {offsets = [0, 2], sizes = [1, 20], strides = [1, 1]} : vector<1x28xf32> to vector<1x20xf32>
    %c20 = arith.constant 20 : index
    %c0_32 = arith.constant 0 : index
    %47 = vector.load %arg10[%c20, %c0_32] : memref<180x20xf32, #tpu.memory_space<vmem>>, vector<1x20xf32>
    tpu.vector_store %arg10[%c20, %c0_32], %46 {strides = array<i32>} : memref<180x20xf32, #tpu.memory_space<vmem>>, vector<1x20xf32>,
    %48 = vector.extract_strided_slice %41 {offsets = [0, 3], sizes = [1, 20], strides = [1, 1]} : vector<1x28xf32> to vector<1x20xf32>
    %c21 = arith.constant 21 : index
    %c0_33 = arith.constant 0 : index
    %49 = vector.load %arg10[%c21, %c0_33] : memref<180x20xf32, #tpu.memory_space<vmem>>, vector<1x20xf32>
    tpu.vector_store %arg10[%c21, %c0_33], %48 {strides = array<i32>} : memref<180x20xf32, #tpu.memory_space<vmem>>, vector<1x20xf32>,
    %50 = vector.extract_strided_slice %41 {offsets = [0, 4], sizes = [1, 20], strides = [1, 1]} : vector<1x28xf32> to vector<1x20xf32>
    %c22 = arith.constant 22 : index
    %c0_34 = arith.constant 0 : index
    %51 = vector.load %arg10[%c22, %c0_34] : memref<180x20xf32, #tpu.memory_space<vmem>>, vector<1x20xf32>
    tpu.vector_store %arg10[%c22, %c0_34], %50 {strides = array<i32>} : memref<180x20xf32, #tpu.memory_space<vmem>>, vector<1x20xf32>,
    %52 = vector.extract_strided_slice %41 {offsets = [0, 5], sizes = [1, 20], strides = [1, 1]} : vector<1x28xf32> to vector<1x20xf32>
    %c23 = arith.constant 23 : index
    %c0_35 = arith.constant 0 : index
    %53 = vector.load %arg10[%c23, %c0_35] : memref<180x20xf32, #tpu.memory_space<vmem>>, vector<1x20xf32>
    tpu.vector_store %arg10[%c23, %c0_35], %52 {strides = array<i32>} : memref<180x20xf32, #tpu.memory_space<vmem>>, vector<1x20xf32>,
    %54 = vector.extract_strided_slice %41 {offsets = [0, 6], sizes = [1, 20], strides = [1, 1]} : vector<1x28xf32> to vector<1x20xf32>
    %c24 = arith.constant 24 : index
    %c0_36 = arith.constant 0 : index
    %55 = vector.load %arg10[%c24, %c0_36] : memref<180x20xf32, #tpu.memory_space<vmem>>, vector<1x20xf32>
    tpu.vector_store %arg10[%c24, %c0_36], %54 {strides = array<i32>} : memref<180x20xf32, #tpu.memory_space<vmem>>, vector<1x20xf32>,
    %56 = vector.extract_strided_slice %41 {offsets = [0, 7], sizes = [1, 20], strides = [1, 1]} : vector<1x28xf32> to vector<1x20xf32>
    %c25 = arith.constant 25 : index
    %c0_37 = arith.constant 0 : index
    %57 = vector.load %arg10[%c25, %c0_37] : memref<180x20xf32, #tpu.memory_space<vmem>>, vector<1x20xf32>
    tpu.vector_store %arg10[%c25, %c0_37], %56 {strides = array<i32>} : memref<180x20xf32, #tpu.memory_space<vmem>>, vector<1x20xf32>,
    %58 = vector.extract_strided_slice %41 {offsets = [0, 8], sizes = [1, 20], strides = [1, 1]} : vector<1x28xf32> to vector<1x20xf32>
    %c26 = arith.constant 26 : index
    %c0_38 = arith.constant 0 : index
    %59 = vector.load %arg10[%c26, %c0_38] : memref<180x20xf32, #tpu.memory_space<vmem>>, vector<1x20xf32>
    tpu.vector_store %arg10[%c26, %c0_38], %58 {strides = array<i32>} : memref<180x20xf32, #tpu.memory_space<vmem>>, vector<1x20xf32>,
    %c0_39 = arith.constant 0 : index
    %c0_40 = arith.constant 0 : index
    %c3_41 = arith.constant 3 : index
    %c0_42 = arith.constant 0 : index
    %60 = vector.load %arg2[%c0_39, %c0_40, %c3_41, %c0_42] : memref<1x1x20x28xf32, #tpu.memory_space<vmem>>, vector<1x1x1x28xf32>
    %61 = vector.shape_cast %60 : vector<1x1x1x28xf32> to vector<1x28xf32>
    %62 = vector.extract_strided_slice %61 {offsets = [0, 0], sizes = [1, 20], strides = [1, 1]} : vector<1x28xf32> to vector<1x20xf32>
    %c27 = arith.constant 27 : index
    %c0_43 = arith.constant 0 : index
    %63 = vector.load %arg10[%c27, %c0_43] : memref<180x20xf32, #tpu.memory_space<vmem>>, vector<1x20xf32>
    tpu.vector_store %arg10[%c27, %c0_43], %62 {strides = array<i32>} : memref<180x20xf32, #tpu.memory_space<vmem>>, vector<1x20xf32>,
    %64 = vector.extract_strided_slice %61 {offsets = [0, 1], sizes = [1, 20], strides = [1, 1]} : vector<1x28xf32> to vector<1x20xf32>
    %c28 = arith.constant 28 : index
    %c0_44 = arith.constant 0 : index
    %65 = vector.load %arg10[%c28, %c0_44] : memref<180x20xf32, #tpu.memory_space<vmem>>, vector<1x20xf32>
    tpu.vector_store %arg10[%c28, %c0_44], %64 {strides = array<i32>} : memref<180x20xf32, #tpu.memory_space<vmem>>, vector<1x20xf32>,
    %66 = vector.extract_strided_slice %61 {offsets = [0, 2], sizes = [1, 20], strides = [1, 1]} : vector<1x28xf32> to vector<1x20xf32>
    %c29 = arith.constant 29 : index
    %c0_45 = arith.constant 0 : index
    %67 = vector.load %arg10[%c29, %c0_45] : memref<180x20xf32, #tpu.memory_space<vmem>>, vector<1x20xf32>
    tpu.vector_store %arg10[%c29, %c0_45], %66 {strides = array<i32>} : memref<180x20xf32, #tpu.memory_space<vmem>>, vector<1x20xf32>,
    %68 = vector.extract_strided_slice %61 {offsets = [0, 3], sizes = [1, 20], strides = [1, 1]} : vector<1x28xf32> to vector<1x20xf32>
    %c30 = arith.constant 30 : index
    %c0_46 = arith.constant 0 : index
    %69 = vector.load %arg10[%c30, %c0_46] : memref<180x20xf32, #tpu.memory_space<vmem>>, vector<1x20xf32>
    tpu.vector_store %arg10[%c30, %c0_46], %68 {strides = array<i32>} : memref<180x20xf32, #tpu.memory_space<vmem>>, vector<1x20xf32>,
    %70 = vector.extract_strided_slice %61 {offsets = [0, 4], sizes = [1, 20], strides = [1, 1]} : vector<1x28xf32> to vector<1x20xf32>
    %c31 = arith.constant 31 : index
    %c0_47 = arith.constant 0 : index
    %71 = vector.load %arg10[%c31, %c0_47] : memref<180x20xf32, #tpu.memory_space<vmem>>, vector<1x20xf32>
    tpu.vector_store %arg10[%c31, %c0_47], %70 {strides = array<i32>} : memref<180x20xf32, #tpu.memory_space<vmem>>, vector<1x20xf32>,
    %72 = vector.extract_strided_slice %61 {offsets = [0, 5], sizes = [1, 20], strides = [1, 1]} : vector<1x28xf32> to vector<1x20xf32>
    %c32 = arith.constant 32 : index
    %c0_48 = arith.constant 0 : index
    %73 = vector.load %arg10[%c32, %c0_48] : memref<180x20xf32, #tpu.memory_space<vmem>>, vector<1x20xf32>
    tpu.vector_store %arg10[%c32, %c0_48], %72 {strides = array<i32>} : memref<180x20xf32, #tpu.memory_space<vmem>>, vector<1x20xf32>,
    %74 = vector.extract_strided_slice %61 {offsets = [0, 6], sizes = [1, 20], strides = [1, 1]} : vector<1x28xf32> to vector<1x20xf32>
    %c33 = arith.constant 33 : index
    %c0_49 = arith.constant 0 : index
    %75 = vector.load %arg10[%c33, %c0_49] : memref<180x20xf32, #tpu.memory_space<vmem>>, vector<1x20xf32>
    tpu.vector_store %arg10[%c33, %c0_49], %74 {strides = array<i32>} : memref<180x20xf32, #tpu.memory_space<vmem>>, vector<1x20xf32>,
    %76 = vector.extract_strided_slice %61 {offsets = [0, 7], sizes = [1, 20], strides = [1, 1]} : vector<1x28xf32> to vector<1x20xf32>
    %c34 = arith.constant 34 : index
    %c0_50 = arith.constant 0 : index
    %77 = vector.load %arg10[%c34, %c0_50] : memref<180x20xf32, #tpu.memory_space<vmem>>, vector<1x20xf32>
    tpu.vector_store %arg10[%c34, %c0_50], %76 {strides = array<i32>} : memref<180x20xf32, #tpu.memory_space<vmem>>, vector<1x20xf32>,
    %78 = vector.extract_strided_slice %61 {offsets = [0, 8], sizes = [1, 20], strides = [1, 1]} : vector<1x28xf32> to vector<1x20xf32>
    %c35 = arith.constant 35 : index
    %c0_51 = arith.constant 0 : index
    %79 = vector.load %arg10[%c35, %c0_51] : memref<180x20xf32, #tpu.memory_space<vmem>>, vector<1x20xf32>
    tpu.vector_store %arg10[%c35, %c0_51], %78 {strides = array<i32>} : memref<180x20xf32, #tpu.memory_space<vmem>>, vector<1x20xf32>,
    %c0_52 = arith.constant 0 : index
    %c0_53 = arith.constant 0 : index
    %c4_54 = arith.constant 4 : index
    %c0_55 = arith.constant 0 : index
    %80 = vector.load %arg2[%c0_52, %c0_53, %c4_54, %c0_55] : memref<1x1x20x28xf32, #tpu.memory_space<vmem>>, vector<1x1x1x28xf32>
    %81 = vector.shape_cast %80 : vector<1x1x1x28xf32> to vector<1x28xf32>
    %82 = vector.extract_strided_slice %81 {offsets = [0, 0], sizes = [1, 20], strides = [1, 1]} : vector<1x28xf32> to vector<1x20xf32>
    %c36 = arith.constant 36 : index
    %c0_56 = arith.constant 0 : index
    %83 = vector.load %arg10[%c36, %c0_56] : memref<180x20xf32, #tpu.memory_space<vmem>>, vector<1x20xf32>
    tpu.vector_store %arg10[%c36, %c0_56], %82 {strides = array<i32>} : memref<180x20xf32, #tpu.memory_space<vmem>>, vector<1x20xf32>,
    %84 = vector.extract_strided_slice %81 {offsets = [0, 1], sizes = [1, 20], strides = [1, 1]} : vector<1x28xf32> to vector<1x20xf32>
    %c37 = arith.constant 37 : index
    %c0_57 = arith.constant 0 : index
    %85 = vector.load %arg10[%c37, %c0_57] : memref<180x20xf32, #tpu.memory_space<vmem>>, vector<1x20xf32>
    tpu.vector_store %arg10[%c37, %c0_57], %84 {strides = array<i32>} : memref<180x20xf32, #tpu.memory_space<vmem>>, vector<1x20xf32>,
    %86 = vector.extract_strided_slice %81 {offsets = [0, 2], sizes = [1, 20], strides = [1, 1]} : vector<1x28xf32> to vector<1x20xf32>
    %c38 = arith.constant 38 : index
    %c0_58 = arith.constant 0 : index
    %87 = vector.load %arg10[%c38, %c0_58] : memref<180x20xf32, #tpu.memory_space<vmem>>, vector<1x20xf32>
    tpu.vector_store %arg10[%c38, %c0_58], %86 {strides = array<i32>} : memref<180x20xf32, #tpu.memory_space<vmem>>, vector<1x20xf32>,
    %88 = vector.extract_strided_slice %81 {offsets = [0, 3], sizes = [1, 20], strides = [1, 1]} : vector<1x28xf32> to vector<1x20xf32>
    %c39 = arith.constant 39 : index
    %c0_59 = arith.constant 0 : index
    %89 = vector.load %arg10[%c39, %c0_59] : memref<180x20xf32, #tpu.memory_space<vmem>>, vector<1x20xf32>
    tpu.vector_store %arg10[%c39, %c0_59], %88 {strides = array<i32>} : memref<180x20xf32, #tpu.memory_space<vmem>>, vector<1x20xf32>,
    %90 = vector.extract_strided_slice %81 {offsets = [0, 4], sizes = [1, 20], strides = [1, 1]} : vector<1x28xf32> to vector<1x20xf32>
    %c40 = arith.constant 40 : index
    %c0_60 = arith.constant 0 : index
    %91 = vector.load %arg10[%c40, %c0_60] : memref<180x20xf32, #tpu.memory_space<vmem>>, vector<1x20xf32>
    tpu.vector_store %arg10[%c40, %c0_60], %90 {strides = array<i32>} : memref<180x20xf32, #tpu.memory_space<vmem>>, vector<1x20xf32>,
    %92 = vector.extract_strided_slice %81 {offsets = [0, 5], sizes = [1, 20], strides = [1, 1]} : vector<1x28xf32> to vector<1x20xf32>
    %c41 = arith.constant 41 : index
    %c0_61 = arith.constant 0 : index
    %93 = vector.load %arg10[%c41, %c0_61] : memref<180x20xf32, #tpu.memory_space<vmem>>, vector<1x20xf32>
    tpu.vector_store %arg10[%c41, %c0_61], %92 {strides = array<i32>} : memref<180x20xf32, #tpu.memory_space<vmem>>, vector<1x20xf32>,
    %94 = vector.extract_strided_slice %81 {offsets = [0, 6], sizes = [1, 20], strides = [1, 1]} : vector<1x28xf32> to vector<1x20xf32>
    %c42 = arith.constant 42 : index
    %c0_62 = arith.constant 0 : index
    %95 = vector.load %arg10[%c42, %c0_62] : memref<180x20xf32, #tpu.memory_space<vmem>>, vector<1x20xf32>
    tpu.vector_store %arg10[%c42, %c0_62], %94 {strides = array<i32>} : memref<180x20xf32, #tpu.memory_space<vmem>>, vector<1x20xf32>,
    %96 = vector.extract_strided_slice %81 {offsets = [0, 7], sizes = [1, 20], strides = [1, 1]} : vector<1x28xf32> to vector<1x20xf32>
    %c43 = arith.constant 43 : index
    %c0_63 = arith.constant 0 : index
    %97 = vector.load %arg10[%c43, %c0_63] : memref<180x20xf32, #tpu.memory_space<vmem>>, vector<1x20xf32>
    tpu.vector_store %arg10[%c43, %c0_63], %96 {strides = array<i32>} : memref<180x20xf32, #tpu.memory_space<vmem>>, vector<1x20xf32>,
    %98 = vector.extract_strided_slice %81 {offsets = [0, 8], sizes = [1, 20], strides = [1, 1]} : vector<1x28xf32> to vector<1x20xf32>
    %c44 = arith.constant 44 : index
    %c0_64 = arith.constant 0 : index
    %99 = vector.load %arg10[%c44, %c0_64] : memref<180x20xf32, #tpu.memory_space<vmem>>, vector<1x20xf32>
    tpu.vector_store %arg10[%c44, %c0_64], %98 {strides = array<i32>} : memref<180x20xf32, #tpu.memory_space<vmem>>, vector<1x20xf32>,
    %c0_65 = arith.constant 0 : index
    %c0_66 = arith.constant 0 : index
    %c5_67 = arith.constant 5 : index
    %c0_68 = arith.constant 0 : index
    %100 = vector.load %arg2[%c0_65, %c0_66, %c5_67, %c0_68] : memref<1x1x20x28xf32, #tpu.memory_space<vmem>>, vector<1x1x1x28xf32>
    %101 = vector.shape_cast %100 : vector<1x1x1x28xf32> to vector<1x28xf32>
    %102 = vector.extract_strided_slice %101 {offsets = [0, 0], sizes = [1, 20], strides = [1, 1]} : vector<1x28xf32> to vector<1x20xf32>
    %c45 = arith.constant 45 : index
    %c0_69 = arith.constant 0 : index
    %103 = vector.load %arg10[%c45, %c0_69] : memref<180x20xf32, #tpu.memory_space<vmem>>, vector<1x20xf32>
    tpu.vector_store %arg10[%c45, %c0_69], %102 {strides = array<i32>} : memref<180x20xf32, #tpu.memory_space<vmem>>, vector<1x20xf32>,
    %104 = vector.extract_strided_slice %101 {offsets = [0, 1], sizes = [1, 20], strides = [1, 1]} : vector<1x28xf32> to vector<1x20xf32>
    %c46 = arith.constant 46 : index
    %c0_70 = arith.constant 0 : index
    %105 = vector.load %arg10[%c46, %c0_70] : memref<180x20xf32, #tpu.memory_space<vmem>>, vector<1x20xf32>
    tpu.vector_store %arg10[%c46, %c0_70], %104 {strides = array<i32>} : memref<180x20xf32, #tpu.memory_space<vmem>>, vector<1x20xf32>,
    %106 = vector.extract_strided_slice %101 {offsets = [0, 2], sizes = [1, 20], strides = [1, 1]} : vector<1x28xf32> to vector<1x20xf32>
    %c47 = arith.constant 47 : index
    %c0_71 = arith.constant 0 : index
    %107 = vector.load %arg10[%c47, %c0_71] : memref<180x20xf32, #tpu.memory_space<vmem>>, vector<1x20xf32>
    tpu.vector_store %arg10[%c47, %c0_71], %106 {strides = array<i32>} : memref<180x20xf32, #tpu.memory_space<vmem>>, vector<1x20xf32>,
    %108 = vector.extract_strided_slice %101 {offsets = [0, 3], sizes = [1, 20], strides = [1, 1]} : vector<1x28xf32> to vector<1x20xf32>
    %c48 = arith.constant 48 : index
    %c0_72 = arith.constant 0 : index
    %109 = vector.load %arg10[%c48, %c0_72] : memref<180x20xf32, #tpu.memory_space<vmem>>, vector<1x20xf32>
    tpu.vector_store %arg10[%c48, %c0_72], %108 {strides = array<i32>} : memref<180x20xf32, #tpu.memory_space<vmem>>, vector<1x20xf32>,
    %110 = vector.extract_strided_slice %101 {offsets = [0, 4], sizes = [1, 20], strides = [1, 1]} : vector<1x28xf32> to vector<1x20xf32>
    %c49 = arith.constant 49 : index
    %c0_73 = arith.constant 0 : index
    %111 = vector.load %arg10[%c49, %c0_73] : memref<180x20xf32, #tpu.memory_space<vmem>>, vector<1x20xf32>
    tpu.vector_store %arg10[%c49, %c0_73], %110 {strides = array<i32>} : memref<180x20xf32, #tpu.memory_space<vmem>>, vector<1x20xf32>,
    %112 = vector.extract_strided_slice %101 {offsets = [0, 5], sizes = [1, 20], strides = [1, 1]} : vector<1x28xf32> to vector<1x20xf32>
    %c50 = arith.constant 50 : index
    %c0_74 = arith.constant 0 : index
    %113 = vector.load %arg10[%c50, %c0_74] : memref<180x20xf32, #tpu.memory_space<vmem>>, vector<1x20xf32>
    tpu.vector_store %arg10[%c50, %c0_74], %112 {strides = array<i32>} : memref<180x20xf32, #tpu.memory_space<vmem>>, vector<1x20xf32>,
    %114 = vector.extract_strided_slice %101 {offsets = [0, 6], sizes = [1, 20], strides = [1, 1]} : vector<1x28xf32> to vector<1x20xf32>
    %c51 = arith.constant 51 : index
    %c0_75 = arith.constant 0 : index
    %115 = vector.load %arg10[%c51, %c0_75] : memref<180x20xf32, #tpu.memory_space<vmem>>, vector<1x20xf32>
    tpu.vector_store %arg10[%c51, %c0_75], %114 {strides = array<i32>} : memref<180x20xf32, #tpu.memory_space<vmem>>, vector<1x20xf32>,
    %116 = vector.extract_strided_slice %101 {offsets = [0, 7], sizes = [1, 20], strides = [1, 1]} : vector<1x28xf32> to vector<1x20xf32>
    %c52 = arith.constant 52 : index
    %c0_76 = arith.constant 0 : index
    %117 = vector.load %arg10[%c52, %c0_76] : memref<180x20xf32, #tpu.memory_space<vmem>>, vector<1x20xf32>
    tpu.vector_store %arg10[%c52, %c0_76], %116 {strides = array<i32>} : memref<180x20xf32, #tpu.memory_space<vmem>>, vector<1x20xf32>,
    %118 = vector.extract_strided_slice %101 {offsets = [0, 8], sizes = [1, 20], strides = [1, 1]} : vector<1x28xf32> to vector<1x20xf32>
    %c53 = arith.constant 53 : index
    %c0_77 = arith.constant 0 : index
    %119 = vector.load %arg10[%c53, %c0_77] : memref<180x20xf32, #tpu.memory_space<vmem>>, vector<1x20xf32>
    tpu.vector_store %arg10[%c53, %c0_77], %118 {strides = array<i32>} : memref<180x20xf32, #tpu.memory_space<vmem>>, vector<1x20xf32>,
    %c0_78 = arith.constant 0 : index
    %c0_79 = arith.constant 0 : index
    %c6_80 = arith.constant 6 : index
    %c0_81 = arith.constant 0 : index
    %120 = vector.load %arg2[%c0_78, %c0_79, %c6_80, %c0_81] : memref<1x1x20x28xf32, #tpu.memory_space<vmem>>, vector<1x1x1x28xf32>
    %121 = vector.shape_cast %120 : vector<1x1x1x28xf32> to vector<1x28xf32>
    %122 = vector.extract_strided_slice %121 {offsets = [0, 0], sizes = [1, 20], strides = [1, 1]} : vector<1x28xf32> to vector<1x20xf32>
    %c54 = arith.constant 54 : index
    %c0_82 = arith.constant 0 : index
    %123 = vector.load %arg10[%c54, %c0_82] : memref<180x20xf32, #tpu.memory_space<vmem>>, vector<1x20xf32>
    tpu.vector_store %arg10[%c54, %c0_82], %122 {strides = array<i32>} : memref<180x20xf32, #tpu.memory_space<vmem>>, vector<1x20xf32>,
    %124 = vector.extract_strided_slice %121 {offsets = [0, 1], sizes = [1, 20], strides = [1, 1]} : vector<1x28xf32> to vector<1x20xf32>
    %c55 = arith.constant 55 : index
    %c0_83 = arith.constant 0 : index
    %125 = vector.load %arg10[%c55, %c0_83] : memref<180x20xf32, #tpu.memory_space<vmem>>, vector<1x20xf32>
    tpu.vector_store %arg10[%c55, %c0_83], %124 {strides = array<i32>} : memref<180x20xf32, #tpu.memory_space<vmem>>, vector<1x20xf32>,
    %126 = vector.extract_strided_slice %121 {offsets = [0, 2], sizes = [1, 20], strides = [1, 1]} : vector<1x28xf32> to vector<1x20xf32>
    %c56 = arith.constant 56 : index
    %c0_84 = arith.constant 0 : index
    %127 = vector.load %arg10[%c56, %c0_84] : memref<180x20xf32, #tpu.memory_space<vmem>>, vector<1x20xf32>
    tpu.vector_store %arg10[%c56, %c0_84], %126 {strides = array<i32>} : memref<180x20xf32, #tpu.memory_space<vmem>>, vector<1x20xf32>,
    %128 = vector.extract_strided_slice %121 {offsets = [0, 3], sizes = [1, 20], strides = [1, 1]} : vector<1x28xf32> to vector<1x20xf32>
    %c57 = arith.constant 57 : index
    %c0_85 = arith.constant 0 : index
    %129 = vector.load %arg10[%c57, %c0_85] : memref<180x20xf32, #tpu.memory_space<vmem>>, vector<1x20xf32>
    tpu.vector_store %arg10[%c57, %c0_85], %128 {strides = array<i32>} : memref<180x20xf32, #tpu.memory_space<vmem>>, vector<1x20xf32>,
    %130 = vector.extract_strided_slice %121 {offsets = [0, 4], sizes = [1, 20], strides = [1, 1]} : vector<1x28xf32> to vector<1x20xf32>
    %c58 = arith.constant 58 : index
    %c0_86 = arith.constant 0 : index
    %131 = vector.load %arg10[%c58, %c0_86] : memref<180x20xf32, #tpu.memory_space<vmem>>, vector<1x20xf32>
    tpu.vector_store %arg10[%c58, %c0_86], %130 {strides = array<i32>} : memref<180x20xf32, #tpu.memory_space<vmem>>, vector<1x20xf32>,
    %132 = vector.extract_strided_slice %121 {offsets = [0, 5], sizes = [1, 20], strides = [1, 1]} : vector<1x28xf32> to vector<1x20xf32>
    %c59 = arith.constant 59 : index
    %c0_87 = arith.constant 0 : index
    %133 = vector.load %arg10[%c59, %c0_87] : memref<180x20xf32, #tpu.memory_space<vmem>>, vector<1x20xf32>
    tpu.vector_store %arg10[%c59, %c0_87], %132 {strides = array<i32>} : memref<180x20xf32, #tpu.memory_space<vmem>>, vector<1x20xf32>,
    %134 = vector.extract_strided_slice %121 {offsets = [0, 6], sizes = [1, 20], strides = [1, 1]} : vector<1x28xf32> to vector<1x20xf32>
    %c60 = arith.constant 60 : index
    %c0_88 = arith.constant 0 : index
    %135 = vector.load %arg10[%c60, %c0_88] : memref<180x20xf32, #tpu.memory_space<vmem>>, vector<1x20xf32>
    tpu.vector_store %arg10[%c60, %c0_88], %134 {strides = array<i32>} : memref<180x20xf32, #tpu.memory_space<vmem>>, vector<1x20xf32>,
    %136 = vector.extract_strided_slice %121 {offsets = [0, 7], sizes = [1, 20], strides = [1, 1]} : vector<1x28xf32> to vector<1x20xf32>
    %c61 = arith.constant 61 : index
    %c0_89 = arith.constant 0 : index
    %137 = vector.load %arg10[%c61, %c0_89] : memref<180x20xf32, #tpu.memory_space<vmem>>, vector<1x20xf32>
    tpu.vector_store %arg10[%c61, %c0_89], %136 {strides = array<i32>} : memref<180x20xf32, #tpu.memory_space<vmem>>, vector<1x20xf32>,
    %138 = vector.extract_strided_slice %121 {offsets = [0, 8], sizes = [1, 20], strides = [1, 1]} : vector<1x28xf32> to vector<1x20xf32>
    %c62 = arith.constant 62 : index
    %c0_90 = arith.constant 0 : index
    %139 = vector.load %arg10[%c62, %c0_90] : memref<180x20xf32, #tpu.memory_space<vmem>>, vector<1x20xf32>
    tpu.vector_store %arg10[%c62, %c0_90], %138 {strides = array<i32>} : memref<180x20xf32, #tpu.memory_space<vmem>>, vector<1x20xf32>,
    %c0_91 = arith.constant 0 : index
    %c0_92 = arith.constant 0 : index
    %c7_93 = arith.constant 7 : index
    %c0_94 = arith.constant 0 : index
    %140 = vector.load %arg2[%c0_91, %c0_92, %c7_93, %c0_94] : memref<1x1x20x28xf32, #tpu.memory_space<vmem>>, vector<1x1x1x28xf32>
    %141 = vector.shape_cast %140 : vector<1x1x1x28xf32> to vector<1x28xf32>
    %142 = vector.extract_strided_slice %141 {offsets = [0, 0], sizes = [1, 20], strides = [1, 1]} : vector<1x28xf32> to vector<1x20xf32>
    %c63 = arith.constant 63 : index
    %c0_95 = arith.constant 0 : index
    %143 = vector.load %arg10[%c63, %c0_95] : memref<180x20xf32, #tpu.memory_space<vmem>>, vector<1x20xf32>
    tpu.vector_store %arg10[%c63, %c0_95], %142 {strides = array<i32>} : memref<180x20xf32, #tpu.memory_space<vmem>>, vector<1x20xf32>,
    %144 = vector.extract_strided_slice %141 {offsets = [0, 1], sizes = [1, 20], strides = [1, 1]} : vector<1x28xf32> to vector<1x20xf32>
    %c64 = arith.constant 64 : index
    %c0_96 = arith.constant 0 : index
    %145 = vector.load %arg10[%c64, %c0_96] : memref<180x20xf32, #tpu.memory_space<vmem>>, vector<1x20xf32>
    tpu.vector_store %arg10[%c64, %c0_96], %144 {strides = array<i32>} : memref<180x20xf32, #tpu.memory_space<vmem>>, vector<1x20xf32>,
    %146 = vector.extract_strided_slice %141 {offsets = [0, 2], sizes = [1, 20], strides = [1, 1]} : vector<1x28xf32> to vector<1x20xf32>
    %c65 = arith.constant 65 : index
    %c0_97 = arith.constant 0 : index
    %147 = vector.load %arg10[%c65, %c0_97] : memref<180x20xf32, #tpu.memory_space<vmem>>, vector<1x20xf32>
    tpu.vector_store %arg10[%c65, %c0_97], %146 {strides = array<i32>} : memref<180x20xf32, #tpu.memory_space<vmem>>, vector<1x20xf32>,
    %148 = vector.extract_strided_slice %141 {offsets = [0, 3], sizes = [1, 20], strides = [1, 1]} : vector<1x28xf32> to vector<1x20xf32>
    %c66 = arith.constant 66 : index
    %c0_98 = arith.constant 0 : index
    %149 = vector.load %arg10[%c66, %c0_98] : memref<180x20xf32, #tpu.memory_space<vmem>>, vector<1x20xf32>
    tpu.vector_store %arg10[%c66, %c0_98], %148 {strides = array<i32>} : memref<180x20xf32, #tpu.memory_space<vmem>>, vector<1x20xf32>,
    %150 = vector.extract_strided_slice %141 {offsets = [0, 4], sizes = [1, 20], strides = [1, 1]} : vector<1x28xf32> to vector<1x20xf32>
    %c67 = arith.constant 67 : index
    %c0_99 = arith.constant 0 : index
    %151 = vector.load %arg10[%c67, %c0_99] : memref<180x20xf32, #tpu.memory_space<vmem>>, vector<1x20xf32>
    tpu.vector_store %arg10[%c67, %c0_99], %150 {strides = array<i32>} : memref<180x20xf32, #tpu.memory_space<vmem>>, vector<1x20xf32>,
    %152 = vector.extract_strided_slice %141 {offsets = [0, 5], sizes = [1, 20], strides = [1, 1]} : vector<1x28xf32> to vector<1x20xf32>
    %c68 = arith.constant 68 : index
    %c0_100 = arith.constant 0 : index
    %153 = vector.load %arg10[%c68, %c0_100] : memref<180x20xf32, #tpu.memory_space<vmem>>, vector<1x20xf32>
    tpu.vector_store %arg10[%c68, %c0_100], %152 {strides = array<i32>} : memref<180x20xf32, #tpu.memory_space<vmem>>, vector<1x20xf32>,
    %154 = vector.extract_strided_slice %141 {offsets = [0, 6], sizes = [1, 20], strides = [1, 1]} : vector<1x28xf32> to vector<1x20xf32>
    %c69 = arith.constant 69 : index
    %c0_101 = arith.constant 0 : index
    %155 = vector.load %arg10[%c69, %c0_101] : memref<180x20xf32, #tpu.memory_space<vmem>>, vector<1x20xf32>
    tpu.vector_store %arg10[%c69, %c0_101], %154 {strides = array<i32>} : memref<180x20xf32, #tpu.memory_space<vmem>>, vector<1x20xf32>,
    %156 = vector.extract_strided_slice %141 {offsets = [0, 7], sizes = [1, 20], strides = [1, 1]} : vector<1x28xf32> to vector<1x20xf32>
    %c70 = arith.constant 70 : index
    %c0_102 = arith.constant 0 : index
    %157 = vector.load %arg10[%c70, %c0_102] : memref<180x20xf32, #tpu.memory_space<vmem>>, vector<1x20xf32>
    tpu.vector_store %arg10[%c70, %c0_102], %156 {strides = array<i32>} : memref<180x20xf32, #tpu.memory_space<vmem>>, vector<1x20xf32>,
    %158 = vector.extract_strided_slice %141 {offsets = [0, 8], sizes = [1, 20], strides = [1, 1]} : vector<1x28xf32> to vector<1x20xf32>
    %c71 = arith.constant 71 : index
    %c0_103 = arith.constant 0 : index
    %159 = vector.load %arg10[%c71, %c0_103] : memref<180x20xf32, #tpu.memory_space<vmem>>, vector<1x20xf32>
    tpu.vector_store %arg10[%c71, %c0_103], %158 {strides = array<i32>} : memref<180x20xf32, #tpu.memory_space<vmem>>, vector<1x20xf32>,
    %c0_104 = arith.constant 0 : index
    %c0_105 = arith.constant 0 : index
    %c8_106 = arith.constant 8 : index
    %c0_107 = arith.constant 0 : index
    %160 = vector.load %arg2[%c0_104, %c0_105, %c8_106, %c0_107] : memref<1x1x20x28xf32, #tpu.memory_space<vmem>>, vector<1x1x1x28xf32>
    %161 = vector.shape_cast %160 : vector<1x1x1x28xf32> to vector<1x28xf32>
    %162 = vector.extract_strided_slice %161 {offsets = [0, 0], sizes = [1, 20], strides = [1, 1]} : vector<1x28xf32> to vector<1x20xf32>
    %c72 = arith.constant 72 : index
    %c0_108 = arith.constant 0 : index
    %163 = vector.load %arg10[%c72, %c0_108] : memref<180x20xf32, #tpu.memory_space<vmem>>, vector<1x20xf32>
    tpu.vector_store %arg10[%c72, %c0_108], %162 {strides = array<i32>} : memref<180x20xf32, #tpu.memory_space<vmem>>, vector<1x20xf32>,
    %164 = vector.extract_strided_slice %161 {offsets = [0, 1], sizes = [1, 20], strides = [1, 1]} : vector<1x28xf32> to vector<1x20xf32>
    %c73 = arith.constant 73 : index
    %c0_109 = arith.constant 0 : index
    %165 = vector.load %arg10[%c73, %c0_109] : memref<180x20xf32, #tpu.memory_space<vmem>>, vector<1x20xf32>
    tpu.vector_store %arg10[%c73, %c0_109], %164 {strides = array<i32>} : memref<180x20xf32, #tpu.memory_space<vmem>>, vector<1x20xf32>,
    %166 = vector.extract_strided_slice %161 {offsets = [0, 2], sizes = [1, 20], strides = [1, 1]} : vector<1x28xf32> to vector<1x20xf32>
    %c74 = arith.constant 74 : index
    %c0_110 = arith.constant 0 : index
    %167 = vector.load %arg10[%c74, %c0_110] : memref<180x20xf32, #tpu.memory_space<vmem>>, vector<1x20xf32>
    tpu.vector_store %arg10[%c74, %c0_110], %166 {strides = array<i32>} : memref<180x20xf32, #tpu.memory_space<vmem>>, vector<1x20xf32>,
    %168 = vector.extract_strided_slice %161 {offsets = [0, 3], sizes = [1, 20], strides = [1, 1]} : vector<1x28xf32> to vector<1x20xf32>
    %c75 = arith.constant 75 : index
    %c0_111 = arith.constant 0 : index
    %169 = vector.load %arg10[%c75, %c0_111] : memref<180x20xf32, #tpu.memory_space<vmem>>, vector<1x20xf32>
    tpu.vector_store %arg10[%c75, %c0_111], %168 {strides = array<i32>} : memref<180x20xf32, #tpu.memory_space<vmem>>, vector<1x20xf32>,
    %170 = vector.extract_strided_slice %161 {offsets = [0, 4], sizes = [1, 20], strides = [1, 1]} : vector<1x28xf32> to vector<1x20xf32>
    %c76 = arith.constant 76 : index
    %c0_112 = arith.constant 0 : index
    %171 = vector.load %arg10[%c76, %c0_112] : memref<180x20xf32, #tpu.memory_space<vmem>>, vector<1x20xf32>
    tpu.vector_store %arg10[%c76, %c0_112], %170 {strides = array<i32>} : memref<180x20xf32, #tpu.memory_space<vmem>>, vector<1x20xf32>,
    %172 = vector.extract_strided_slice %161 {offsets = [0, 5], sizes = [1, 20], strides = [1, 1]} : vector<1x28xf32> to vector<1x20xf32>
    %c77 = arith.constant 77 : index
    %c0_113 = arith.constant 0 : index
    %173 = vector.load %arg10[%c77, %c0_113] : memref<180x20xf32, #tpu.memory_space<vmem>>, vector<1x20xf32>
    tpu.vector_store %arg10[%c77, %c0_113], %172 {strides = array<i32>} : memref<180x20xf32, #tpu.memory_space<vmem>>, vector<1x20xf32>,
    %174 = vector.extract_strided_slice %161 {offsets = [0, 6], sizes = [1, 20], strides = [1, 1]} : vector<1x28xf32> to vector<1x20xf32>
    %c78 = arith.constant 78 : index
    %c0_114 = arith.constant 0 : index
    %175 = vector.load %arg10[%c78, %c0_114] : memref<180x20xf32, #tpu.memory_space<vmem>>, vector<1x20xf32>
    tpu.vector_store %arg10[%c78, %c0_114], %174 {strides = array<i32>} : memref<180x20xf32, #tpu.memory_space<vmem>>, vector<1x20xf32>,
    %176 = vector.extract_strided_slice %161 {offsets = [0, 7], sizes = [1, 20], strides = [1, 1]} : vector<1x28xf32> to vector<1x20xf32>
    %c79 = arith.constant 79 : index
    %c0_115 = arith.constant 0 : index
    %177 = vector.load %arg10[%c79, %c0_115] : memref<180x20xf32, #tpu.memory_space<vmem>>, vector<1x20xf32>
    tpu.vector_store %arg10[%c79, %c0_115], %176 {strides = array<i32>} : memref<180x20xf32, #tpu.memory_space<vmem>>, vector<1x20xf32>,
    %178 = vector.extract_strided_slice %161 {offsets = [0, 8], sizes = [1, 20], strides = [1, 1]} : vector<1x28xf32> to vector<1x20xf32>
    %c80 = arith.constant 80 : index
    %c0_116 = arith.constant 0 : index
    %179 = vector.load %arg10[%c80, %c0_116] : memref<180x20xf32, #tpu.memory_space<vmem>>, vector<1x20xf32>
    tpu.vector_store %arg10[%c80, %c0_116], %178 {strides = array<i32>} : memref<180x20xf32, #tpu.memory_space<vmem>>, vector<1x20xf32>,
    %c0_117 = arith.constant 0 : index
    %c0_118 = arith.constant 0 : index
    %c9_119 = arith.constant 9 : index
    %c0_120 = arith.constant 0 : index
    %180 = vector.load %arg2[%c0_117, %c0_118, %c9_119, %c0_120] : memref<1x1x20x28xf32, #tpu.memory_space<vmem>>, vector<1x1x1x28xf32>
    %181 = vector.shape_cast %180 : vector<1x1x1x28xf32> to vector<1x28xf32>
    %182 = vector.extract_strided_slice %181 {offsets = [0, 0], sizes = [1, 20], strides = [1, 1]} : vector<1x28xf32> to vector<1x20xf32>
    %c81 = arith.constant 81 : index
    %c0_121 = arith.constant 0 : index
    %183 = vector.load %arg10[%c81, %c0_121] : memref<180x20xf32, #tpu.memory_space<vmem>>, vector<1x20xf32>
    tpu.vector_store %arg10[%c81, %c0_121], %182 {strides = array<i32>} : memref<180x20xf32, #tpu.memory_space<vmem>>, vector<1x20xf32>,
    %184 = vector.extract_strided_slice %181 {offsets = [0, 1], sizes = [1, 20], strides = [1, 1]} : vector<1x28xf32> to vector<1x20xf32>
    %c82 = arith.constant 82 : index
    %c0_122 = arith.constant 0 : index
    %185 = vector.load %arg10[%c82, %c0_122] : memref<180x20xf32, #tpu.memory_space<vmem>>, vector<1x20xf32>
    tpu.vector_store %arg10[%c82, %c0_122], %184 {strides = array<i32>} : memref<180x20xf32, #tpu.memory_space<vmem>>, vector<1x20xf32>,
    %186 = vector.extract_strided_slice %181 {offsets = [0, 2], sizes = [1, 20], strides = [1, 1]} : vector<1x28xf32> to vector<1x20xf32>
    %c83 = arith.constant 83 : index
    %c0_123 = arith.constant 0 : index
    %187 = vector.load %arg10[%c83, %c0_123] : memref<180x20xf32, #tpu.memory_space<vmem>>, vector<1x20xf32>
    tpu.vector_store %arg10[%c83, %c0_123], %186 {strides = array<i32>} : memref<180x20xf32, #tpu.memory_space<vmem>>, vector<1x20xf32>,
    %188 = vector.extract_strided_slice %181 {offsets = [0, 3], sizes = [1, 20], strides = [1, 1]} : vector<1x28xf32> to vector<1x20xf32>
    %c84 = arith.constant 84 : index
    %c0_124 = arith.constant 0 : index
    %189 = vector.load %arg10[%c84, %c0_124] : memref<180x20xf32, #tpu.memory_space<vmem>>, vector<1x20xf32>
    tpu.vector_store %arg10[%c84, %c0_124], %188 {strides = array<i32>} : memref<180x20xf32, #tpu.memory_space<vmem>>, vector<1x20xf32>,
    %190 = vector.extract_strided_slice %181 {offsets = [0, 4], sizes = [1, 20], strides = [1, 1]} : vector<1x28xf32> to vector<1x20xf32>
    %c85 = arith.constant 85 : index
    %c0_125 = arith.constant 0 : index
    %191 = vector.load %arg10[%c85, %c0_125] : memref<180x20xf32, #tpu.memory_space<vmem>>, vector<1x20xf32>
    tpu.vector_store %arg10[%c85, %c0_125], %190 {strides = array<i32>} : memref<180x20xf32, #tpu.memory_space<vmem>>, vector<1x20xf32>,
    %192 = vector.extract_strided_slice %181 {offsets = [0, 5], sizes = [1, 20], strides = [1, 1]} : vector<1x28xf32> to vector<1x20xf32>
    %c86 = arith.constant 86 : index
    %c0_126 = arith.constant 0 : index
    %193 = vector.load %arg10[%c86, %c0_126] : memref<180x20xf32, #tpu.memory_space<vmem>>, vector<1x20xf32>
    tpu.vector_store %arg10[%c86, %c0_126], %192 {strides = array<i32>} : memref<180x20xf32, #tpu.memory_space<vmem>>, vector<1x20xf32>,
    %194 = vector.extract_strided_slice %181 {offsets = [0, 6], sizes = [1, 20], strides = [1, 1]} : vector<1x28xf32> to vector<1x20xf32>
    %c87 = arith.constant 87 : index
    %c0_127 = arith.constant 0 : index
    %195 = vector.load %arg10[%c87, %c0_127] : memref<180x20xf32, #tpu.memory_space<vmem>>, vector<1x20xf32>
    tpu.vector_store %arg10[%c87, %c0_127], %194 {strides = array<i32>} : memref<180x20xf32, #tpu.memory_space<vmem>>, vector<1x20xf32>,
    %196 = vector.extract_strided_slice %181 {offsets = [0, 7], sizes = [1, 20], strides = [1, 1]} : vector<1x28xf32> to vector<1x20xf32>
    %c88 = arith.constant 88 : index
    %c0_128 = arith.constant 0 : index
    %197 = vector.load %arg10[%c88, %c0_128] : memref<180x20xf32, #tpu.memory_space<vmem>>, vector<1x20xf32>
    tpu.vector_store %arg10[%c88, %c0_128], %196 {strides = array<i32>} : memref<180x20xf32, #tpu.memory_space<vmem>>, vector<1x20xf32>,
    %198 = vector.extract_strided_slice %181 {offsets = [0, 8], sizes = [1, 20], strides = [1, 1]} : vector<1x28xf32> to vector<1x20xf32>
    %c89 = arith.constant 89 : index
    %c0_129 = arith.constant 0 : index
    %199 = vector.load %arg10[%c89, %c0_129] : memref<180x20xf32, #tpu.memory_space<vmem>>, vector<1x20xf32>
    tpu.vector_store %arg10[%c89, %c0_129], %198 {strides = array<i32>} : memref<180x20xf32, #tpu.memory_space<vmem>>, vector<1x20xf32>,
    %c0_130 = arith.constant 0 : index
    %c0_131 = arith.constant 0 : index
    %c10_132 = arith.constant 10 : index
    %c0_133 = arith.constant 0 : index
    %200 = vector.load %arg2[%c0_130, %c0_131, %c10_132, %c0_133] : memref<1x1x20x28xf32, #tpu.memory_space<vmem>>, vector<1x1x1x28xf32>
    %201 = vector.shape_cast %200 : vector<1x1x1x28xf32> to vector<1x28xf32>
    %202 = vector.extract_strided_slice %201 {offsets = [0, 0], sizes = [1, 20], strides = [1, 1]} : vector<1x28xf32> to vector<1x20xf32>
    %c90 = arith.constant 90 : index
    %c0_134 = arith.constant 0 : index
    %203 = vector.load %arg10[%c90, %c0_134] : memref<180x20xf32, #tpu.memory_space<vmem>>, vector<1x20xf32>
    tpu.vector_store %arg10[%c90, %c0_134], %202 {strides = array<i32>} : memref<180x20xf32, #tpu.memory_space<vmem>>, vector<1x20xf32>,
    %204 = vector.extract_strided_slice %201 {offsets = [0, 1], sizes = [1, 20], strides = [1, 1]} : vector<1x28xf32> to vector<1x20xf32>
    %c91 = arith.constant 91 : index
    %c0_135 = arith.constant 0 : index
    %205 = vector.load %arg10[%c91, %c0_135] : memref<180x20xf32, #tpu.memory_space<vmem>>, vector<1x20xf32>
    tpu.vector_store %arg10[%c91, %c0_135], %204 {strides = array<i32>} : memref<180x20xf32, #tpu.memory_space<vmem>>, vector<1x20xf32>,
    %206 = vector.extract_strided_slice %201 {offsets = [0, 2], sizes = [1, 20], strides = [1, 1]} : vector<1x28xf32> to vector<1x20xf32>
    %c92 = arith.constant 92 : index
    %c0_136 = arith.constant 0 : index
    %207 = vector.load %arg10[%c92, %c0_136] : memref<180x20xf32, #tpu.memory_space<vmem>>, vector<1x20xf32>
    tpu.vector_store %arg10[%c92, %c0_136], %206 {strides = array<i32>} : memref<180x20xf32, #tpu.memory_space<vmem>>, vector<1x20xf32>,
    %208 = vector.extract_strided_slice %201 {offsets = [0, 3], sizes = [1, 20], strides = [1, 1]} : vector<1x28xf32> to vector<1x20xf32>
    %c93 = arith.constant 93 : index
    %c0_137 = arith.constant 0 : index
    %209 = vector.load %arg10[%c93, %c0_137] : memref<180x20xf32, #tpu.memory_space<vmem>>, vector<1x20xf32>
    tpu.vector_store %arg10[%c93, %c0_137], %208 {strides = array<i32>} : memref<180x20xf32, #tpu.memory_space<vmem>>, vector<1x20xf32>,
    %210 = vector.extract_strided_slice %201 {offsets = [0, 4], sizes = [1, 20], strides = [1, 1]} : vector<1x28xf32> to vector<1x20xf32>
    %c94 = arith.constant 94 : index
    %c0_138 = arith.constant 0 : index
    %211 = vector.load %arg10[%c94, %c0_138] : memref<180x20xf32, #tpu.memory_space<vmem>>, vector<1x20xf32>
    tpu.vector_store %arg10[%c94, %c0_138], %210 {strides = array<i32>} : memref<180x20xf32, #tpu.memory_space<vmem>>, vector<1x20xf32>,
    %212 = vector.extract_strided_slice %201 {offsets = [0, 5], sizes = [1, 20], strides = [1, 1]} : vector<1x28xf32> to vector<1x20xf32>
    %c95 = arith.constant 95 : index
    %c0_139 = arith.constant 0 : index
    %213 = vector.load %arg10[%c95, %c0_139] : memref<180x20xf32, #tpu.memory_space<vmem>>, vector<1x20xf32>
    tpu.vector_store %arg10[%c95, %c0_139], %212 {strides = array<i32>} : memref<180x20xf32, #tpu.memory_space<vmem>>, vector<1x20xf32>,
    %214 = vector.extract_strided_slice %201 {offsets = [0, 6], sizes = [1, 20], strides = [1, 1]} : vector<1x28xf32> to vector<1x20xf32>
    %c96 = arith.constant 96 : index
    %c0_140 = arith.constant 0 : index
    %215 = vector.load %arg10[%c96, %c0_140] : memref<180x20xf32, #tpu.memory_space<vmem>>, vector<1x20xf32>
    tpu.vector_store %arg10[%c96, %c0_140], %214 {strides = array<i32>} : memref<180x20xf32, #tpu.memory_space<vmem>>, vector<1x20xf32>,
    %216 = vector.extract_strided_slice %201 {offsets = [0, 7], sizes = [1, 20], strides = [1, 1]} : vector<1x28xf32> to vector<1x20xf32>
    %c97 = arith.constant 97 : index
    %c0_141 = arith.constant 0 : index
    %217 = vector.load %arg10[%c97, %c0_141] : memref<180x20xf32, #tpu.memory_space<vmem>>, vector<1x20xf32>
    tpu.vector_store %arg10[%c97, %c0_141], %216 {strides = array<i32>} : memref<180x20xf32, #tpu.memory_space<vmem>>, vector<1x20xf32>,
    %218 = vector.extract_strided_slice %201 {offsets = [0, 8], sizes = [1, 20], strides = [1, 1]} : vector<1x28xf32> to vector<1x20xf32>
    %c98 = arith.constant 98 : index
    %c0_142 = arith.constant 0 : index
    %219 = vector.load %arg10[%c98, %c0_142] : memref<180x20xf32, #tpu.memory_space<vmem>>, vector<1x20xf32>
    tpu.vector_store %arg10[%c98, %c0_142], %218 {strides = array<i32>} : memref<180x20xf32, #tpu.memory_space<vmem>>, vector<1x20xf32>,
    %c0_143 = arith.constant 0 : index
    %c0_144 = arith.constant 0 : index
    %c11_145 = arith.constant 11 : index
    %c0_146 = arith.constant 0 : index
    %220 = vector.load %arg2[%c0_143, %c0_144, %c11_145, %c0_146] : memref<1x1x20x28xf32, #tpu.memory_space<vmem>>, vector<1x1x1x28xf32>
    %221 = vector.shape_cast %220 : vector<1x1x1x28xf32> to vector<1x28xf32>
    %222 = vector.extract_strided_slice %221 {offsets = [0, 0], sizes = [1, 20], strides = [1, 1]} : vector<1x28xf32> to vector<1x20xf32>
    %c99 = arith.constant 99 : index
    %c0_147 = arith.constant 0 : index
    %223 = vector.load %arg10[%c99, %c0_147] : memref<180x20xf32, #tpu.memory_space<vmem>>, vector<1x20xf32>
    tpu.vector_store %arg10[%c99, %c0_147], %222 {strides = array<i32>} : memref<180x20xf32, #tpu.memory_space<vmem>>, vector<1x20xf32>,
    %224 = vector.extract_strided_slice %221 {offsets = [0, 1], sizes = [1, 20], strides = [1, 1]} : vector<1x28xf32> to vector<1x20xf32>
    %c100 = arith.constant 100 : index
    %c0_148 = arith.constant 0 : index
    %225 = vector.load %arg10[%c100, %c0_148] : memref<180x20xf32, #tpu.memory_space<vmem>>, vector<1x20xf32>
    tpu.vector_store %arg10[%c100, %c0_148], %224 {strides = array<i32>} : memref<180x20xf32, #tpu.memory_space<vmem>>, vector<1x20xf32>,
    %226 = vector.extract_strided_slice %221 {offsets = [0, 2], sizes = [1, 20], strides = [1, 1]} : vector<1x28xf32> to vector<1x20xf32>
    %c101 = arith.constant 101 : index
    %c0_149 = arith.constant 0 : index
    %227 = vector.load %arg10[%c101, %c0_149] : memref<180x20xf32, #tpu.memory_space<vmem>>, vector<1x20xf32>
    tpu.vector_store %arg10[%c101, %c0_149], %226 {strides = array<i32>} : memref<180x20xf32, #tpu.memory_space<vmem>>, vector<1x20xf32>,
    %228 = vector.extract_strided_slice %221 {offsets = [0, 3], sizes = [1, 20], strides = [1, 1]} : vector<1x28xf32> to vector<1x20xf32>
    %c102 = arith.constant 102 : index
    %c0_150 = arith.constant 0 : index
    %229 = vector.load %arg10[%c102, %c0_150] : memref<180x20xf32, #tpu.memory_space<vmem>>, vector<1x20xf32>
    tpu.vector_store %arg10[%c102, %c0_150], %228 {strides = array<i32>} : memref<180x20xf32, #tpu.memory_space<vmem>>, vector<1x20xf32>,
    %230 = vector.extract_strided_slice %221 {offsets = [0, 4], sizes = [1, 20], strides = [1, 1]} : vector<1x28xf32> to vector<1x20xf32>
    %c103 = arith.constant 103 : index
    %c0_151 = arith.constant 0 : index
    %231 = vector.load %arg10[%c103, %c0_151] : memref<180x20xf32, #tpu.memory_space<vmem>>, vector<1x20xf32>
    tpu.vector_store %arg10[%c103, %c0_151], %230 {strides = array<i32>} : memref<180x20xf32, #tpu.memory_space<vmem>>, vector<1x20xf32>,
    %232 = vector.extract_strided_slice %221 {offsets = [0, 5], sizes = [1, 20], strides = [1, 1]} : vector<1x28xf32> to vector<1x20xf32>
    %c104 = arith.constant 104 : index
    %c0_152 = arith.constant 0 : index
    %233 = vector.load %arg10[%c104, %c0_152] : memref<180x20xf32, #tpu.memory_space<vmem>>, vector<1x20xf32>
    tpu.vector_store %arg10[%c104, %c0_152], %232 {strides = array<i32>} : memref<180x20xf32, #tpu.memory_space<vmem>>, vector<1x20xf32>,
    %234 = vector.extract_strided_slice %221 {offsets = [0, 6], sizes = [1, 20], strides = [1, 1]} : vector<1x28xf32> to vector<1x20xf32>
    %c105 = arith.constant 105 : index
    %c0_153 = arith.constant 0 : index
    %235 = vector.load %arg10[%c105, %c0_153] : memref<180x20xf32, #tpu.memory_space<vmem>>, vector<1x20xf32>
    tpu.vector_store %arg10[%c105, %c0_153], %234 {strides = array<i32>} : memref<180x20xf32, #tpu.memory_space<vmem>>, vector<1x20xf32>,
    %236 = vector.extract_strided_slice %221 {offsets = [0, 7], sizes = [1, 20], strides = [1, 1]} : vector<1x28xf32> to vector<1x20xf32>
    %c106 = arith.constant 106 : index
    %c0_154 = arith.constant 0 : index
    %237 = vector.load %arg10[%c106, %c0_154] : memref<180x20xf32, #tpu.memory_space<vmem>>, vector<1x20xf32>
    tpu.vector_store %arg10[%c106, %c0_154], %236 {strides = array<i32>} : memref<180x20xf32, #tpu.memory_space<vmem>>, vector<1x20xf32>,
    %238 = vector.extract_strided_slice %221 {offsets = [0, 8], sizes = [1, 20], strides = [1, 1]} : vector<1x28xf32> to vector<1x20xf32>
    %c107 = arith.constant 107 : index
    %c0_155 = arith.constant 0 : index
    %239 = vector.load %arg10[%c107, %c0_155] : memref<180x20xf32, #tpu.memory_space<vmem>>, vector<1x20xf32>
    tpu.vector_store %arg10[%c107, %c0_155], %238 {strides = array<i32>} : memref<180x20xf32, #tpu.memory_space<vmem>>, vector<1x20xf32>,
    %c0_156 = arith.constant 0 : index
    %c0_157 = arith.constant 0 : index
    %c12_158 = arith.constant 12 : index
    %c0_159 = arith.constant 0 : index
    %240 = vector.load %arg2[%c0_156, %c0_157, %c12_158, %c0_159] : memref<1x1x20x28xf32, #tpu.memory_space<vmem>>, vector<1x1x1x28xf32>
    %241 = vector.shape_cast %240 : vector<1x1x1x28xf32> to vector<1x28xf32>
    %242 = vector.extract_strided_slice %241 {offsets = [0, 0], sizes = [1, 20], strides = [1, 1]} : vector<1x28xf32> to vector<1x20xf32>
    %c108 = arith.constant 108 : index
    %c0_160 = arith.constant 0 : index
    %243 = vector.load %arg10[%c108, %c0_160] : memref<180x20xf32, #tpu.memory_space<vmem>>, vector<1x20xf32>
    tpu.vector_store %arg10[%c108, %c0_160], %242 {strides = array<i32>} : memref<180x20xf32, #tpu.memory_space<vmem>>, vector<1x20xf32>,
    %244 = vector.extract_strided_slice %241 {offsets = [0, 1], sizes = [1, 20], strides = [1, 1]} : vector<1x28xf32> to vector<1x20xf32>
    %c109 = arith.constant 109 : index
    %c0_161 = arith.constant 0 : index
    %245 = vector.load %arg10[%c109, %c0_161] : memref<180x20xf32, #tpu.memory_space<vmem>>, vector<1x20xf32>
    tpu.vector_store %arg10[%c109, %c0_161], %244 {strides = array<i32>} : memref<180x20xf32, #tpu.memory_space<vmem>>, vector<1x20xf32>,
    %246 = vector.extract_strided_slice %241 {offsets = [0, 2], sizes = [1, 20], strides = [1, 1]} : vector<1x28xf32> to vector<1x20xf32>
    %c110 = arith.constant 110 : index
    %c0_162 = arith.constant 0 : index
    %247 = vector.load %arg10[%c110, %c0_162] : memref<180x20xf32, #tpu.memory_space<vmem>>, vector<1x20xf32>
    tpu.vector_store %arg10[%c110, %c0_162], %246 {strides = array<i32>} : memref<180x20xf32, #tpu.memory_space<vmem>>, vector<1x20xf32>,
    %248 = vector.extract_strided_slice %241 {offsets = [0, 3], sizes = [1, 20], strides = [1, 1]} : vector<1x28xf32> to vector<1x20xf32>
    %c111 = arith.constant 111 : index
    %c0_163 = arith.constant 0 : index
    %249 = vector.load %arg10[%c111, %c0_163] : memref<180x20xf32, #tpu.memory_space<vmem>>, vector<1x20xf32>
    tpu.vector_store %arg10[%c111, %c0_163], %248 {strides = array<i32>} : memref<180x20xf32, #tpu.memory_space<vmem>>, vector<1x20xf32>,
    %250 = vector.extract_strided_slice %241 {offsets = [0, 4], sizes = [1, 20], strides = [1, 1]} : vector<1x28xf32> to vector<1x20xf32>
    %c112 = arith.constant 112 : index
    %c0_164 = arith.constant 0 : index
    %251 = vector.load %arg10[%c112, %c0_164] : memref<180x20xf32, #tpu.memory_space<vmem>>, vector<1x20xf32>
    tpu.vector_store %arg10[%c112, %c0_164], %250 {strides = array<i32>} : memref<180x20xf32, #tpu.memory_space<vmem>>, vector<1x20xf32>,
    %252 = vector.extract_strided_slice %241 {offsets = [0, 5], sizes = [1, 20], strides = [1, 1]} : vector<1x28xf32> to vector<1x20xf32>
    %c113 = arith.constant 113 : index
    %c0_165 = arith.constant 0 : index
    %253 = vector.load %arg10[%c113, %c0_165] : memref<180x20xf32, #tpu.memory_space<vmem>>, vector<1x20xf32>
    tpu.vector_store %arg10[%c113, %c0_165], %252 {strides = array<i32>} : memref<180x20xf32, #tpu.memory_space<vmem>>, vector<1x20xf32>,
    %254 = vector.extract_strided_slice %241 {offsets = [0, 6], sizes = [1, 20], strides = [1, 1]} : vector<1x28xf32> to vector<1x20xf32>
    %c114 = arith.constant 114 : index
    %c0_166 = arith.constant 0 : index
    %255 = vector.load %arg10[%c114, %c0_166] : memref<180x20xf32, #tpu.memory_space<vmem>>, vector<1x20xf32>
    tpu.vector_store %arg10[%c114, %c0_166], %254 {strides = array<i32>} : memref<180x20xf32, #tpu.memory_space<vmem>>, vector<1x20xf32>,
    %256 = vector.extract_strided_slice %241 {offsets = [0, 7], sizes = [1, 20], strides = [1, 1]} : vector<1x28xf32> to vector<1x20xf32>
    %c115 = arith.constant 115 : index
    %c0_167 = arith.constant 0 : index
    %257 = vector.load %arg10[%c115, %c0_167] : memref<180x20xf32, #tpu.memory_space<vmem>>, vector<1x20xf32>
    tpu.vector_store %arg10[%c115, %c0_167], %256 {strides = array<i32>} : memref<180x20xf32, #tpu.memory_space<vmem>>, vector<1x20xf32>,
    %258 = vector.extract_strided_slice %241 {offsets = [0, 8], sizes = [1, 20], strides = [1, 1]} : vector<1x28xf32> to vector<1x20xf32>
    %c116 = arith.constant 116 : index
    %c0_168 = arith.constant 0 : index
    %259 = vector.load %arg10[%c116, %c0_168] : memref<180x20xf32, #tpu.memory_space<vmem>>, vector<1x20xf32>
    tpu.vector_store %arg10[%c116, %c0_168], %258 {strides = array<i32>} : memref<180x20xf32, #tpu.memory_space<vmem>>, vector<1x20xf32>,
    %c0_169 = arith.constant 0 : index
    %c0_170 = arith.constant 0 : index
    %c13_171 = arith.constant 13 : index
    %c0_172 = arith.constant 0 : index
    %260 = vector.load %arg2[%c0_169, %c0_170, %c13_171, %c0_172] : memref<1x1x20x28xf32, #tpu.memory_space<vmem>>, vector<1x1x1x28xf32>
    %261 = vector.shape_cast %260 : vector<1x1x1x28xf32> to vector<1x28xf32>
    %262 = vector.extract_strided_slice %261 {offsets = [0, 0], sizes = [1, 20], strides = [1, 1]} : vector<1x28xf32> to vector<1x20xf32>
    %c117 = arith.constant 117 : index
    %c0_173 = arith.constant 0 : index
    %263 = vector.load %arg10[%c117, %c0_173] : memref<180x20xf32, #tpu.memory_space<vmem>>, vector<1x20xf32>
    tpu.vector_store %arg10[%c117, %c0_173], %262 {strides = array<i32>} : memref<180x20xf32, #tpu.memory_space<vmem>>, vector<1x20xf32>,
    %264 = vector.extract_strided_slice %261 {offsets = [0, 1], sizes = [1, 20], strides = [1, 1]} : vector<1x28xf32> to vector<1x20xf32>
    %c118 = arith.constant 118 : index
    %c0_174 = arith.constant 0 : index
    %265 = vector.load %arg10[%c118, %c0_174] : memref<180x20xf32, #tpu.memory_space<vmem>>, vector<1x20xf32>
    tpu.vector_store %arg10[%c118, %c0_174], %264 {strides = array<i32>} : memref<180x20xf32, #tpu.memory_space<vmem>>, vector<1x20xf32>,
    %266 = vector.extract_strided_slice %261 {offsets = [0, 2], sizes = [1, 20], strides = [1, 1]} : vector<1x28xf32> to vector<1x20xf32>
    %c119 = arith.constant 119 : index
    %c0_175 = arith.constant 0 : index
    %267 = vector.load %arg10[%c119, %c0_175] : memref<180x20xf32, #tpu.memory_space<vmem>>, vector<1x20xf32>
    tpu.vector_store %arg10[%c119, %c0_175], %266 {strides = array<i32>} : memref<180x20xf32, #tpu.memory_space<vmem>>, vector<1x20xf32>,
    %268 = vector.extract_strided_slice %261 {offsets = [0, 3], sizes = [1, 20], strides = [1, 1]} : vector<1x28xf32> to vector<1x20xf32>
    %c120 = arith.constant 120 : index
    %c0_176 = arith.constant 0 : index
    %269 = vector.load %arg10[%c120, %c0_176] : memref<180x20xf32, #tpu.memory_space<vmem>>, vector<1x20xf32>
    tpu.vector_store %arg10[%c120, %c0_176], %268 {strides = array<i32>} : memref<180x20xf32, #tpu.memory_space<vmem>>, vector<1x20xf32>,
    %270 = vector.extract_strided_slice %261 {offsets = [0, 4], sizes = [1, 20], strides = [1, 1]} : vector<1x28xf32> to vector<1x20xf32>
    %c121 = arith.constant 121 : index
    %c0_177 = arith.constant 0 : index
    %271 = vector.load %arg10[%c121, %c0_177] : memref<180x20xf32, #tpu.memory_space<vmem>>, vector<1x20xf32>
    tpu.vector_store %arg10[%c121, %c0_177], %270 {strides = array<i32>} : memref<180x20xf32, #tpu.memory_space<vmem>>, vector<1x20xf32>,
    %272 = vector.extract_strided_slice %261 {offsets = [0, 5], sizes = [1, 20], strides = [1, 1]} : vector<1x28xf32> to vector<1x20xf32>
    %c122 = arith.constant 122 : index
    %c0_178 = arith.constant 0 : index
    %273 = vector.load %arg10[%c122, %c0_178] : memref<180x20xf32, #tpu.memory_space<vmem>>, vector<1x20xf32>
    tpu.vector_store %arg10[%c122, %c0_178], %272 {strides = array<i32>} : memref<180x20xf32, #tpu.memory_space<vmem>>, vector<1x20xf32>,
    %274 = vector.extract_strided_slice %261 {offsets = [0, 6], sizes = [1, 20], strides = [1, 1]} : vector<1x28xf32> to vector<1x20xf32>
    %c123 = arith.constant 123 : index
    %c0_179 = arith.constant 0 : index
    %275 = vector.load %arg10[%c123, %c0_179] : memref<180x20xf32, #tpu.memory_space<vmem>>, vector<1x20xf32>
    tpu.vector_store %arg10[%c123, %c0_179], %274 {strides = array<i32>} : memref<180x20xf32, #tpu.memory_space<vmem>>, vector<1x20xf32>,
    %276 = vector.extract_strided_slice %261 {offsets = [0, 7], sizes = [1, 20], strides = [1, 1]} : vector<1x28xf32> to vector<1x20xf32>
    %c124 = arith.constant 124 : index
    %c0_180 = arith.constant 0 : index
    %277 = vector.load %arg10[%c124, %c0_180] : memref<180x20xf32, #tpu.memory_space<vmem>>, vector<1x20xf32>
    tpu.vector_store %arg10[%c124, %c0_180], %276 {strides = array<i32>} : memref<180x20xf32, #tpu.memory_space<vmem>>, vector<1x20xf32>,
    %278 = vector.extract_strided_slice %261 {offsets = [0, 8], sizes = [1, 20], strides = [1, 1]} : vector<1x28xf32> to vector<1x20xf32>
    %c125 = arith.constant 125 : index
    %c0_181 = arith.constant 0 : index
    %279 = vector.load %arg10[%c125, %c0_181] : memref<180x20xf32, #tpu.memory_space<vmem>>, vector<1x20xf32>
    tpu.vector_store %arg10[%c125, %c0_181], %278 {strides = array<i32>} : memref<180x20xf32, #tpu.memory_space<vmem>>, vector<1x20xf32>,
    %c0_182 = arith.constant 0 : index
    %c0_183 = arith.constant 0 : index
    %c14_184 = arith.constant 14 : index
    %c0_185 = arith.constant 0 : index
    %280 = vector.load %arg2[%c0_182, %c0_183, %c14_184, %c0_185] : memref<1x1x20x28xf32, #tpu.memory_space<vmem>>, vector<1x1x1x28xf32>
    %281 = vector.shape_cast %280 : vector<1x1x1x28xf32> to vector<1x28xf32>
    %282 = vector.extract_strided_slice %281 {offsets = [0, 0], sizes = [1, 20], strides = [1, 1]} : vector<1x28xf32> to vector<1x20xf32>
    %c126 = arith.constant 126 : index
    %c0_186 = arith.constant 0 : index
    %283 = vector.load %arg10[%c126, %c0_186] : memref<180x20xf32, #tpu.memory_space<vmem>>, vector<1x20xf32>
    tpu.vector_store %arg10[%c126, %c0_186], %282 {strides = array<i32>} : memref<180x20xf32, #tpu.memory_space<vmem>>, vector<1x20xf32>,
    %284 = vector.extract_strided_slice %281 {offsets = [0, 1], sizes = [1, 20], strides = [1, 1]} : vector<1x28xf32> to vector<1x20xf32>
    %c127 = arith.constant 127 : index
    %c0_187 = arith.constant 0 : index
    %285 = vector.load %arg10[%c127, %c0_187] : memref<180x20xf32, #tpu.memory_space<vmem>>, vector<1x20xf32>
    tpu.vector_store %arg10[%c127, %c0_187], %284 {strides = array<i32>} : memref<180x20xf32, #tpu.memory_space<vmem>>, vector<1x20xf32>,
    %286 = vector.extract_strided_slice %281 {offsets = [0, 2], sizes = [1, 20], strides = [1, 1]} : vector<1x28xf32> to vector<1x20xf32>
    %c128 = arith.constant 128 : index
    %c0_188 = arith.constant 0 : index
    %287 = vector.load %arg10[%c128, %c0_188] : memref<180x20xf32, #tpu.memory_space<vmem>>, vector<1x20xf32>
    tpu.vector_store %arg10[%c128, %c0_188], %286 {strides = array<i32>} : memref<180x20xf32, #tpu.memory_space<vmem>>, vector<1x20xf32>,
    %288 = vector.extract_strided_slice %281 {offsets = [0, 3], sizes = [1, 20], strides = [1, 1]} : vector<1x28xf32> to vector<1x20xf32>
    %c129 = arith.constant 129 : index
    %c0_189 = arith.constant 0 : index
    %289 = vector.load %arg10[%c129, %c0_189] : memref<180x20xf32, #tpu.memory_space<vmem>>, vector<1x20xf32>
    tpu.vector_store %arg10[%c129, %c0_189], %288 {strides = array<i32>} : memref<180x20xf32, #tpu.memory_space<vmem>>, vector<1x20xf32>,
    %290 = vector.extract_strided_slice %281 {offsets = [0, 4], sizes = [1, 20], strides = [1, 1]} : vector<1x28xf32> to vector<1x20xf32>
    %c130 = arith.constant 130 : index
    %c0_190 = arith.constant 0 : index
    %291 = vector.load %arg10[%c130, %c0_190] : memref<180x20xf32, #tpu.memory_space<vmem>>, vector<1x20xf32>
    tpu.vector_store %arg10[%c130, %c0_190], %290 {strides = array<i32>} : memref<180x20xf32, #tpu.memory_space<vmem>>, vector<1x20xf32>,
    %292 = vector.extract_strided_slice %281 {offsets = [0, 5], sizes = [1, 20], strides = [1, 1]} : vector<1x28xf32> to vector<1x20xf32>
    %c131 = arith.constant 131 : index
    %c0_191 = arith.constant 0 : index
    %293 = vector.load %arg10[%c131, %c0_191] : memref<180x20xf32, #tpu.memory_space<vmem>>, vector<1x20xf32>
    tpu.vector_store %arg10[%c131, %c0_191], %292 {strides = array<i32>} : memref<180x20xf32, #tpu.memory_space<vmem>>, vector<1x20xf32>,
    %294 = vector.extract_strided_slice %281 {offsets = [0, 6], sizes = [1, 20], strides = [1, 1]} : vector<1x28xf32> to vector<1x20xf32>
    %c132 = arith.constant 132 : index
    %c0_192 = arith.constant 0 : index
    %295 = vector.load %arg10[%c132, %c0_192] : memref<180x20xf32, #tpu.memory_space<vmem>>, vector<1x20xf32>
    tpu.vector_store %arg10[%c132, %c0_192], %294 {strides = array<i32>} : memref<180x20xf32, #tpu.memory_space<vmem>>, vector<1x20xf32>,
    %296 = vector.extract_strided_slice %281 {offsets = [0, 7], sizes = [1, 20], strides = [1, 1]} : vector<1x28xf32> to vector<1x20xf32>
    %c133 = arith.constant 133 : index
    %c0_193 = arith.constant 0 : index
    %297 = vector.load %arg10[%c133, %c0_193] : memref<180x20xf32, #tpu.memory_space<vmem>>, vector<1x20xf32>
    tpu.vector_store %arg10[%c133, %c0_193], %296 {strides = array<i32>} : memref<180x20xf32, #tpu.memory_space<vmem>>, vector<1x20xf32>,
    %298 = vector.extract_strided_slice %281 {offsets = [0, 8], sizes = [1, 20], strides = [1, 1]} : vector<1x28xf32> to vector<1x20xf32>
    %c134 = arith.constant 134 : index
    %c0_194 = arith.constant 0 : index
    %299 = vector.load %arg10[%c134, %c0_194] : memref<180x20xf32, #tpu.memory_space<vmem>>, vector<1x20xf32>
    tpu.vector_store %arg10[%c134, %c0_194], %298 {strides = array<i32>} : memref<180x20xf32, #tpu.memory_space<vmem>>, vector<1x20xf32>,
    %c0_195 = arith.constant 0 : index
    %c0_196 = arith.constant 0 : index
    %c15_197 = arith.constant 15 : index
    %c0_198 = arith.constant 0 : index
    %300 = vector.load %arg2[%c0_195, %c0_196, %c15_197, %c0_198] : memref<1x1x20x28xf32, #tpu.memory_space<vmem>>, vector<1x1x1x28xf32>
    %301 = vector.shape_cast %300 : vector<1x1x1x28xf32> to vector<1x28xf32>
    %302 = vector.extract_strided_slice %301 {offsets = [0, 0], sizes = [1, 20], strides = [1, 1]} : vector<1x28xf32> to vector<1x20xf32>
    %c135 = arith.constant 135 : index
    %c0_199 = arith.constant 0 : index
    %303 = vector.load %arg10[%c135, %c0_199] : memref<180x20xf32, #tpu.memory_space<vmem>>, vector<1x20xf32>
    tpu.vector_store %arg10[%c135, %c0_199], %302 {strides = array<i32>} : memref<180x20xf32, #tpu.memory_space<vmem>>, vector<1x20xf32>,
    %304 = vector.extract_strided_slice %301 {offsets = [0, 1], sizes = [1, 20], strides = [1, 1]} : vector<1x28xf32> to vector<1x20xf32>
    %c136 = arith.constant 136 : index
    %c0_200 = arith.constant 0 : index
    %305 = vector.load %arg10[%c136, %c0_200] : memref<180x20xf32, #tpu.memory_space<vmem>>, vector<1x20xf32>
    tpu.vector_store %arg10[%c136, %c0_200], %304 {strides = array<i32>} : memref<180x20xf32, #tpu.memory_space<vmem>>, vector<1x20xf32>,
    %306 = vector.extract_strided_slice %301 {offsets = [0, 2], sizes = [1, 20], strides = [1, 1]} : vector<1x28xf32> to vector<1x20xf32>
    %c137 = arith.constant 137 : index
    %c0_201 = arith.constant 0 : index
    %307 = vector.load %arg10[%c137, %c0_201] : memref<180x20xf32, #tpu.memory_space<vmem>>, vector<1x20xf32>
    tpu.vector_store %arg10[%c137, %c0_201], %306 {strides = array<i32>} : memref<180x20xf32, #tpu.memory_space<vmem>>, vector<1x20xf32>,
    %308 = vector.extract_strided_slice %301 {offsets = [0, 3], sizes = [1, 20], strides = [1, 1]} : vector<1x28xf32> to vector<1x20xf32>
    %c138 = arith.constant 138 : index
    %c0_202 = arith.constant 0 : index
    %309 = vector.load %arg10[%c138, %c0_202] : memref<180x20xf32, #tpu.memory_space<vmem>>, vector<1x20xf32>
    tpu.vector_store %arg10[%c138, %c0_202], %308 {strides = array<i32>} : memref<180x20xf32, #tpu.memory_space<vmem>>, vector<1x20xf32>,
    %310 = vector.extract_strided_slice %301 {offsets = [0, 4], sizes = [1, 20], strides = [1, 1]} : vector<1x28xf32> to vector<1x20xf32>
    %c139 = arith.constant 139 : index
    %c0_203 = arith.constant 0 : index
    %311 = vector.load %arg10[%c139, %c0_203] : memref<180x20xf32, #tpu.memory_space<vmem>>, vector<1x20xf32>
    tpu.vector_store %arg10[%c139, %c0_203], %310 {strides = array<i32>} : memref<180x20xf32, #tpu.memory_space<vmem>>, vector<1x20xf32>,
    %312 = vector.extract_strided_slice %301 {offsets = [0, 5], sizes = [1, 20], strides = [1, 1]} : vector<1x28xf32> to vector<1x20xf32>
    %c140 = arith.constant 140 : index
    %c0_204 = arith.constant 0 : index
    %313 = vector.load %arg10[%c140, %c0_204] : memref<180x20xf32, #tpu.memory_space<vmem>>, vector<1x20xf32>
    tpu.vector_store %arg10[%c140, %c0_204], %312 {strides = array<i32>} : memref<180x20xf32, #tpu.memory_space<vmem>>, vector<1x20xf32>,
    %314 = vector.extract_strided_slice %301 {offsets = [0, 6], sizes = [1, 20], strides = [1, 1]} : vector<1x28xf32> to vector<1x20xf32>
    %c141 = arith.constant 141 : index
    %c0_205 = arith.constant 0 : index
    %315 = vector.load %arg10[%c141, %c0_205] : memref<180x20xf32, #tpu.memory_space<vmem>>, vector<1x20xf32>
    tpu.vector_store %arg10[%c141, %c0_205], %314 {strides = array<i32>} : memref<180x20xf32, #tpu.memory_space<vmem>>, vector<1x20xf32>,
    %316 = vector.extract_strided_slice %301 {offsets = [0, 7], sizes = [1, 20], strides = [1, 1]} : vector<1x28xf32> to vector<1x20xf32>
    %c142 = arith.constant 142 : index
    %c0_206 = arith.constant 0 : index
    %317 = vector.load %arg10[%c142, %c0_206] : memref<180x20xf32, #tpu.memory_space<vmem>>, vector<1x20xf32>
    tpu.vector_store %arg10[%c142, %c0_206], %316 {strides = array<i32>} : memref<180x20xf32, #tpu.memory_space<vmem>>, vector<1x20xf32>,
    %318 = vector.extract_strided_slice %301 {offsets = [0, 8], sizes = [1, 20], strides = [1, 1]} : vector<1x28xf32> to vector<1x20xf32>
    %c143 = arith.constant 143 : index
    %c0_207 = arith.constant 0 : index
    %319 = vector.load %arg10[%c143, %c0_207] : memref<180x20xf32, #tpu.memory_space<vmem>>, vector<1x20xf32>
    tpu.vector_store %arg10[%c143, %c0_207], %318 {strides = array<i32>} : memref<180x20xf32, #tpu.memory_space<vmem>>, vector<1x20xf32>,
    %c0_208 = arith.constant 0 : index
    %c0_209 = arith.constant 0 : index
    %c16_210 = arith.constant 16 : index
    %c0_211 = arith.constant 0 : index
    %320 = vector.load %arg2[%c0_208, %c0_209, %c16_210, %c0_211] : memref<1x1x20x28xf32, #tpu.memory_space<vmem>>, vector<1x1x1x28xf32>
    %321 = vector.shape_cast %320 : vector<1x1x1x28xf32> to vector<1x28xf32>
    %322 = vector.extract_strided_slice %321 {offsets = [0, 0], sizes = [1, 20], strides = [1, 1]} : vector<1x28xf32> to vector<1x20xf32>
    %c144 = arith.constant 144 : index
    %c0_212 = arith.constant 0 : index
    %323 = vector.load %arg10[%c144, %c0_212] : memref<180x20xf32, #tpu.memory_space<vmem>>, vector<1x20xf32>
    tpu.vector_store %arg10[%c144, %c0_212], %322 {strides = array<i32>} : memref<180x20xf32, #tpu.memory_space<vmem>>, vector<1x20xf32>,
    %324 = vector.extract_strided_slice %321 {offsets = [0, 1], sizes = [1, 20], strides = [1, 1]} : vector<1x28xf32> to vector<1x20xf32>
    %c145 = arith.constant 145 : index
    %c0_213 = arith.constant 0 : index
    %325 = vector.load %arg10[%c145, %c0_213] : memref<180x20xf32, #tpu.memory_space<vmem>>, vector<1x20xf32>
    tpu.vector_store %arg10[%c145, %c0_213], %324 {strides = array<i32>} : memref<180x20xf32, #tpu.memory_space<vmem>>, vector<1x20xf32>,
    %326 = vector.extract_strided_slice %321 {offsets = [0, 2], sizes = [1, 20], strides = [1, 1]} : vector<1x28xf32> to vector<1x20xf32>
    %c146 = arith.constant 146 : index
    %c0_214 = arith.constant 0 : index
    %327 = vector.load %arg10[%c146, %c0_214] : memref<180x20xf32, #tpu.memory_space<vmem>>, vector<1x20xf32>
    tpu.vector_store %arg10[%c146, %c0_214], %326 {strides = array<i32>} : memref<180x20xf32, #tpu.memory_space<vmem>>, vector<1x20xf32>,
    %328 = vector.extract_strided_slice %321 {offsets = [0, 3], sizes = [1, 20], strides = [1, 1]} : vector<1x28xf32> to vector<1x20xf32>
    %c147 = arith.constant 147 : index
    %c0_215 = arith.constant 0 : index
    %329 = vector.load %arg10[%c147, %c0_215] : memref<180x20xf32, #tpu.memory_space<vmem>>, vector<1x20xf32>
    tpu.vector_store %arg10[%c147, %c0_215], %328 {strides = array<i32>} : memref<180x20xf32, #tpu.memory_space<vmem>>, vector<1x20xf32>,
    %330 = vector.extract_strided_slice %321 {offsets = [0, 4], sizes = [1, 20], strides = [1, 1]} : vector<1x28xf32> to vector<1x20xf32>
    %c148 = arith.constant 148 : index
    %c0_216 = arith.constant 0 : index
    %331 = vector.load %arg10[%c148, %c0_216] : memref<180x20xf32, #tpu.memory_space<vmem>>, vector<1x20xf32>
    tpu.vector_store %arg10[%c148, %c0_216], %330 {strides = array<i32>} : memref<180x20xf32, #tpu.memory_space<vmem>>, vector<1x20xf32>,
    %332 = vector.extract_strided_slice %321 {offsets = [0, 5], sizes = [1, 20], strides = [1, 1]} : vector<1x28xf32> to vector<1x20xf32>
    %c149 = arith.constant 149 : index
    %c0_217 = arith.constant 0 : index
    %333 = vector.load %arg10[%c149, %c0_217] : memref<180x20xf32, #tpu.memory_space<vmem>>, vector<1x20xf32>
    tpu.vector_store %arg10[%c149, %c0_217], %332 {strides = array<i32>} : memref<180x20xf32, #tpu.memory_space<vmem>>, vector<1x20xf32>,
    %334 = vector.extract_strided_slice %321 {offsets = [0, 6], sizes = [1, 20], strides = [1, 1]} : vector<1x28xf32> to vector<1x20xf32>
    %c150 = arith.constant 150 : index
    %c0_218 = arith.constant 0 : index
    %335 = vector.load %arg10[%c150, %c0_218] : memref<180x20xf32, #tpu.memory_space<vmem>>, vector<1x20xf32>
    tpu.vector_store %arg10[%c150, %c0_218], %334 {strides = array<i32>} : memref<180x20xf32, #tpu.memory_space<vmem>>, vector<1x20xf32>,
    %336 = vector.extract_strided_slice %321 {offsets = [0, 7], sizes = [1, 20], strides = [1, 1]} : vector<1x28xf32> to vector<1x20xf32>
    %c151 = arith.constant 151 : index
    %c0_219 = arith.constant 0 : index
    %337 = vector.load %arg10[%c151, %c0_219] : memref<180x20xf32, #tpu.memory_space<vmem>>, vector<1x20xf32>
    tpu.vector_store %arg10[%c151, %c0_219], %336 {strides = array<i32>} : memref<180x20xf32, #tpu.memory_space<vmem>>, vector<1x20xf32>,
    %338 = vector.extract_strided_slice %321 {offsets = [0, 8], sizes = [1, 20], strides = [1, 1]} : vector<1x28xf32> to vector<1x20xf32>
    %c152 = arith.constant 152 : index
    %c0_220 = arith.constant 0 : index
    %339 = vector.load %arg10[%c152, %c0_220] : memref<180x20xf32, #tpu.memory_space<vmem>>, vector<1x20xf32>
    tpu.vector_store %arg10[%c152, %c0_220], %338 {strides = array<i32>} : memref<180x20xf32, #tpu.memory_space<vmem>>, vector<1x20xf32>,
    %c0_221 = arith.constant 0 : index
    %c0_222 = arith.constant 0 : index
    %c17_223 = arith.constant 17 : index
    %c0_224 = arith.constant 0 : index
    %340 = vector.load %arg2[%c0_221, %c0_222, %c17_223, %c0_224] : memref<1x1x20x28xf32, #tpu.memory_space<vmem>>, vector<1x1x1x28xf32>
    %341 = vector.shape_cast %340 : vector<1x1x1x28xf32> to vector<1x28xf32>
    %342 = vector.extract_strided_slice %341 {offsets = [0, 0], sizes = [1, 20], strides = [1, 1]} : vector<1x28xf32> to vector<1x20xf32>
    %c153 = arith.constant 153 : index
    %c0_225 = arith.constant 0 : index
    %343 = vector.load %arg10[%c153, %c0_225] : memref<180x20xf32, #tpu.memory_space<vmem>>, vector<1x20xf32>
    tpu.vector_store %arg10[%c153, %c0_225], %342 {strides = array<i32>} : memref<180x20xf32, #tpu.memory_space<vmem>>, vector<1x20xf32>,
    %344 = vector.extract_strided_slice %341 {offsets = [0, 1], sizes = [1, 20], strides = [1, 1]} : vector<1x28xf32> to vector<1x20xf32>
    %c154 = arith.constant 154 : index
    %c0_226 = arith.constant 0 : index
    %345 = vector.load %arg10[%c154, %c0_226] : memref<180x20xf32, #tpu.memory_space<vmem>>, vector<1x20xf32>
    tpu.vector_store %arg10[%c154, %c0_226], %344 {strides = array<i32>} : memref<180x20xf32, #tpu.memory_space<vmem>>, vector<1x20xf32>,
    %346 = vector.extract_strided_slice %341 {offsets = [0, 2], sizes = [1, 20], strides = [1, 1]} : vector<1x28xf32> to vector<1x20xf32>
    %c155 = arith.constant 155 : index
    %c0_227 = arith.constant 0 : index
    %347 = vector.load %arg10[%c155, %c0_227] : memref<180x20xf32, #tpu.memory_space<vmem>>, vector<1x20xf32>
    tpu.vector_store %arg10[%c155, %c0_227], %346 {strides = array<i32>} : memref<180x20xf32, #tpu.memory_space<vmem>>, vector<1x20xf32>,
    %348 = vector.extract_strided_slice %341 {offsets = [0, 3], sizes = [1, 20], strides = [1, 1]} : vector<1x28xf32> to vector<1x20xf32>
    %c156 = arith.constant 156 : index
    %c0_228 = arith.constant 0 : index
    %349 = vector.load %arg10[%c156, %c0_228] : memref<180x20xf32, #tpu.memory_space<vmem>>, vector<1x20xf32>
    tpu.vector_store %arg10[%c156, %c0_228], %348 {strides = array<i32>} : memref<180x20xf32, #tpu.memory_space<vmem>>, vector<1x20xf32>,
    %350 = vector.extract_strided_slice %341 {offsets = [0, 4], sizes = [1, 20], strides = [1, 1]} : vector<1x28xf32> to vector<1x20xf32>
    %c157 = arith.constant 157 : index
    %c0_229 = arith.constant 0 : index
    %351 = vector.load %arg10[%c157, %c0_229] : memref<180x20xf32, #tpu.memory_space<vmem>>, vector<1x20xf32>
    tpu.vector_store %arg10[%c157, %c0_229], %350 {strides = array<i32>} : memref<180x20xf32, #tpu.memory_space<vmem>>, vector<1x20xf32>,
    %352 = vector.extract_strided_slice %341 {offsets = [0, 5], sizes = [1, 20], strides = [1, 1]} : vector<1x28xf32> to vector<1x20xf32>
    %c158 = arith.constant 158 : index
    %c0_230 = arith.constant 0 : index
    %353 = vector.load %arg10[%c158, %c0_230] : memref<180x20xf32, #tpu.memory_space<vmem>>, vector<1x20xf32>
    tpu.vector_store %arg10[%c158, %c0_230], %352 {strides = array<i32>} : memref<180x20xf32, #tpu.memory_space<vmem>>, vector<1x20xf32>,
    %354 = vector.extract_strided_slice %341 {offsets = [0, 6], sizes = [1, 20], strides = [1, 1]} : vector<1x28xf32> to vector<1x20xf32>
    %c159 = arith.constant 159 : index
    %c0_231 = arith.constant 0 : index
    %355 = vector.load %arg10[%c159, %c0_231] : memref<180x20xf32, #tpu.memory_space<vmem>>, vector<1x20xf32>
    tpu.vector_store %arg10[%c159, %c0_231], %354 {strides = array<i32>} : memref<180x20xf32, #tpu.memory_space<vmem>>, vector<1x20xf32>,
    %356 = vector.extract_strided_slice %341 {offsets = [0, 7], sizes = [1, 20], strides = [1, 1]} : vector<1x28xf32> to vector<1x20xf32>
    %c160 = arith.constant 160 : index
    %c0_232 = arith.constant 0 : index
    %357 = vector.load %arg10[%c160, %c0_232] : memref<180x20xf32, #tpu.memory_space<vmem>>, vector<1x20xf32>
    tpu.vector_store %arg10[%c160, %c0_232], %356 {strides = array<i32>} : memref<180x20xf32, #tpu.memory_space<vmem>>, vector<1x20xf32>,
    %358 = vector.extract_strided_slice %341 {offsets = [0, 8], sizes = [1, 20], strides = [1, 1]} : vector<1x28xf32> to vector<1x20xf32>
    %c161 = arith.constant 161 : index
    %c0_233 = arith.constant 0 : index
    %359 = vector.load %arg10[%c161, %c0_233] : memref<180x20xf32, #tpu.memory_space<vmem>>, vector<1x20xf32>
    tpu.vector_store %arg10[%c161, %c0_233], %358 {strides = array<i32>} : memref<180x20xf32, #tpu.memory_space<vmem>>, vector<1x20xf32>,
    %c0_234 = arith.constant 0 : index
    %c0_235 = arith.constant 0 : index
    %c18_236 = arith.constant 18 : index
    %c0_237 = arith.constant 0 : index
    %360 = vector.load %arg2[%c0_234, %c0_235, %c18_236, %c0_237] : memref<1x1x20x28xf32, #tpu.memory_space<vmem>>, vector<1x1x1x28xf32>
    %361 = vector.shape_cast %360 : vector<1x1x1x28xf32> to vector<1x28xf32>
    %362 = vector.extract_strided_slice %361 {offsets = [0, 0], sizes = [1, 20], strides = [1, 1]} : vector<1x28xf32> to vector<1x20xf32>
    %c162 = arith.constant 162 : index
    %c0_238 = arith.constant 0 : index
    %363 = vector.load %arg10[%c162, %c0_238] : memref<180x20xf32, #tpu.memory_space<vmem>>, vector<1x20xf32>
    tpu.vector_store %arg10[%c162, %c0_238], %362 {strides = array<i32>} : memref<180x20xf32, #tpu.memory_space<vmem>>, vector<1x20xf32>,
    %364 = vector.extract_strided_slice %361 {offsets = [0, 1], sizes = [1, 20], strides = [1, 1]} : vector<1x28xf32> to vector<1x20xf32>
    %c163 = arith.constant 163 : index
    %c0_239 = arith.constant 0 : index
    %365 = vector.load %arg10[%c163, %c0_239] : memref<180x20xf32, #tpu.memory_space<vmem>>, vector<1x20xf32>
    tpu.vector_store %arg10[%c163, %c0_239], %364 {strides = array<i32>} : memref<180x20xf32, #tpu.memory_space<vmem>>, vector<1x20xf32>,
    %366 = vector.extract_strided_slice %361 {offsets = [0, 2], sizes = [1, 20], strides = [1, 1]} : vector<1x28xf32> to vector<1x20xf32>
    %c164 = arith.constant 164 : index
    %c0_240 = arith.constant 0 : index
    %367 = vector.load %arg10[%c164, %c0_240] : memref<180x20xf32, #tpu.memory_space<vmem>>, vector<1x20xf32>
    tpu.vector_store %arg10[%c164, %c0_240], %366 {strides = array<i32>} : memref<180x20xf32, #tpu.memory_space<vmem>>, vector<1x20xf32>,
    %368 = vector.extract_strided_slice %361 {offsets = [0, 3], sizes = [1, 20], strides = [1, 1]} : vector<1x28xf32> to vector<1x20xf32>
    %c165 = arith.constant 165 : index
    %c0_241 = arith.constant 0 : index
    %369 = vector.load %arg10[%c165, %c0_241] : memref<180x20xf32, #tpu.memory_space<vmem>>, vector<1x20xf32>
    tpu.vector_store %arg10[%c165, %c0_241], %368 {strides = array<i32>} : memref<180x20xf32, #tpu.memory_space<vmem>>, vector<1x20xf32>,
    %370 = vector.extract_strided_slice %361 {offsets = [0, 4], sizes = [1, 20], strides = [1, 1]} : vector<1x28xf32> to vector<1x20xf32>
    %c166 = arith.constant 166 : index
    %c0_242 = arith.constant 0 : index
    %371 = vector.load %arg10[%c166, %c0_242] : memref<180x20xf32, #tpu.memory_space<vmem>>, vector<1x20xf32>
    tpu.vector_store %arg10[%c166, %c0_242], %370 {strides = array<i32>} : memref<180x20xf32, #tpu.memory_space<vmem>>, vector<1x20xf32>,
    %372 = vector.extract_strided_slice %361 {offsets = [0, 5], sizes = [1, 20], strides = [1, 1]} : vector<1x28xf32> to vector<1x20xf32>
    %c167 = arith.constant 167 : index
    %c0_243 = arith.constant 0 : index
    %373 = vector.load %arg10[%c167, %c0_243] : memref<180x20xf32, #tpu.memory_space<vmem>>, vector<1x20xf32>
    tpu.vector_store %arg10[%c167, %c0_243], %372 {strides = array<i32>} : memref<180x20xf32, #tpu.memory_space<vmem>>, vector<1x20xf32>,
    %374 = vector.extract_strided_slice %361 {offsets = [0, 6], sizes = [1, 20], strides = [1, 1]} : vector<1x28xf32> to vector<1x20xf32>
    %c168 = arith.constant 168 : index
    %c0_244 = arith.constant 0 : index
    %375 = vector.load %arg10[%c168, %c0_244] : memref<180x20xf32, #tpu.memory_space<vmem>>, vector<1x20xf32>
    tpu.vector_store %arg10[%c168, %c0_244], %374 {strides = array<i32>} : memref<180x20xf32, #tpu.memory_space<vmem>>, vector<1x20xf32>,
    %376 = vector.extract_strided_slice %361 {offsets = [0, 7], sizes = [1, 20], strides = [1, 1]} : vector<1x28xf32> to vector<1x20xf32>
    %c169 = arith.constant 169 : index
    %c0_245 = arith.constant 0 : index
    %377 = vector.load %arg10[%c169, %c0_245] : memref<180x20xf32, #tpu.memory_space<vmem>>, vector<1x20xf32>
    tpu.vector_store %arg10[%c169, %c0_245], %376 {strides = array<i32>} : memref<180x20xf32, #tpu.memory_space<vmem>>, vector<1x20xf32>,
    %378 = vector.extract_strided_slice %361 {offsets = [0, 8], sizes = [1, 20], strides = [1, 1]} : vector<1x28xf32> to vector<1x20xf32>
    %c170 = arith.constant 170 : index
    %c0_246 = arith.constant 0 : index
    %379 = vector.load %arg10[%c170, %c0_246] : memref<180x20xf32, #tpu.memory_space<vmem>>, vector<1x20xf32>
    tpu.vector_store %arg10[%c170, %c0_246], %378 {strides = array<i32>} : memref<180x20xf32, #tpu.memory_space<vmem>>, vector<1x20xf32>,
    %c0_247 = arith.constant 0 : index
    %c0_248 = arith.constant 0 : index
    %c19_249 = arith.constant 19 : index
    %c0_250 = arith.constant 0 : index
    %380 = vector.load %arg2[%c0_247, %c0_248, %c19_249, %c0_250] : memref<1x1x20x28xf32, #tpu.memory_space<vmem>>, vector<1x1x1x28xf32>
    %381 = vector.shape_cast %380 : vector<1x1x1x28xf32> to vector<1x28xf32>
    %382 = vector.extract_strided_slice %381 {offsets = [0, 0], sizes = [1, 20], strides = [1, 1]} : vector<1x28xf32> to vector<1x20xf32>
    %c171 = arith.constant 171 : index
    %c0_251 = arith.constant 0 : index
    %383 = vector.load %arg10[%c171, %c0_251] : memref<180x20xf32, #tpu.memory_space<vmem>>, vector<1x20xf32>
    tpu.vector_store %arg10[%c171, %c0_251], %382 {strides = array<i32>} : memref<180x20xf32, #tpu.memory_space<vmem>>, vector<1x20xf32>,
    %384 = vector.extract_strided_slice %381 {offsets = [0, 1], sizes = [1, 20], strides = [1, 1]} : vector<1x28xf32> to vector<1x20xf32>
    %c172 = arith.constant 172 : index
    %c0_252 = arith.constant 0 : index
    %385 = vector.load %arg10[%c172, %c0_252] : memref<180x20xf32, #tpu.memory_space<vmem>>, vector<1x20xf32>
    tpu.vector_store %arg10[%c172, %c0_252], %384 {strides = array<i32>} : memref<180x20xf32, #tpu.memory_space<vmem>>, vector<1x20xf32>,
    %386 = vector.extract_strided_slice %381 {offsets = [0, 2], sizes = [1, 20], strides = [1, 1]} : vector<1x28xf32> to vector<1x20xf32>
    %c173 = arith.constant 173 : index
    %c0_253 = arith.constant 0 : index
    %387 = vector.load %arg10[%c173, %c0_253] : memref<180x20xf32, #tpu.memory_space<vmem>>, vector<1x20xf32>
    tpu.vector_store %arg10[%c173, %c0_253], %386 {strides = array<i32>} : memref<180x20xf32, #tpu.memory_space<vmem>>, vector<1x20xf32>,
    %388 = vector.extract_strided_slice %381 {offsets = [0, 3], sizes = [1, 20], strides = [1, 1]} : vector<1x28xf32> to vector<1x20xf32>
    %c174 = arith.constant 174 : index
    %c0_254 = arith.constant 0 : index
    %389 = vector.load %arg10[%c174, %c0_254] : memref<180x20xf32, #tpu.memory_space<vmem>>, vector<1x20xf32>
    tpu.vector_store %arg10[%c174, %c0_254], %388 {strides = array<i32>} : memref<180x20xf32, #tpu.memory_space<vmem>>, vector<1x20xf32>,
    %390 = vector.extract_strided_slice %381 {offsets = [0, 4], sizes = [1, 20], strides = [1, 1]} : vector<1x28xf32> to vector<1x20xf32>
    %c175 = arith.constant 175 : index
    %c0_255 = arith.constant 0 : index
    %391 = vector.load %arg10[%c175, %c0_255] : memref<180x20xf32, #tpu.memory_space<vmem>>, vector<1x20xf32>
    tpu.vector_store %arg10[%c175, %c0_255], %390 {strides = array<i32>} : memref<180x20xf32, #tpu.memory_space<vmem>>, vector<1x20xf32>,
    %392 = vector.extract_strided_slice %381 {offsets = [0, 5], sizes = [1, 20], strides = [1, 1]} : vector<1x28xf32> to vector<1x20xf32>
    %c176 = arith.constant 176 : index
    %c0_256 = arith.constant 0 : index
    %393 = vector.load %arg10[%c176, %c0_256] : memref<180x20xf32, #tpu.memory_space<vmem>>, vector<1x20xf32>
    tpu.vector_store %arg10[%c176, %c0_256], %392 {strides = array<i32>} : memref<180x20xf32, #tpu.memory_space<vmem>>, vector<1x20xf32>,
    %394 = vector.extract_strided_slice %381 {offsets = [0, 6], sizes = [1, 20], strides = [1, 1]} : vector<1x28xf32> to vector<1x20xf32>
    %c177 = arith.constant 177 : index
    %c0_257 = arith.constant 0 : index
    %395 = vector.load %arg10[%c177, %c0_257] : memref<180x20xf32, #tpu.memory_space<vmem>>, vector<1x20xf32>
    tpu.vector_store %arg10[%c177, %c0_257], %394 {strides = array<i32>} : memref<180x20xf32, #tpu.memory_space<vmem>>, vector<1x20xf32>,
    %396 = vector.extract_strided_slice %381 {offsets = [0, 7], sizes = [1, 20], strides = [1, 1]} : vector<1x28xf32> to vector<1x20xf32>
    %c178 = arith.constant 178 : index
    %c0_258 = arith.constant 0 : index
    %397 = vector.load %arg10[%c178, %c0_258] : memref<180x20xf32, #tpu.memory_space<vmem>>, vector<1x20xf32>
    tpu.vector_store %arg10[%c178, %c0_258], %396 {strides = array<i32>} : memref<180x20xf32, #tpu.memory_space<vmem>>, vector<1x20xf32>,
    %398 = vector.extract_strided_slice %381 {offsets = [0, 8], sizes = [1, 20], strides = [1, 1]} : vector<1x28xf32> to vector<1x20xf32>
    %c179 = arith.constant 179 : index
    %c0_259 = arith.constant 0 : index
    %399 = vector.load %arg10[%c179, %c0_259] : memref<180x20xf32, #tpu.memory_space<vmem>>, vector<1x20xf32>
    tpu.vector_store %arg10[%c179, %c0_259], %398 {strides = array<i32>} : memref<180x20xf32, #tpu.memory_space<vmem>>, vector<1x20xf32>,
    %400 = tpu.iota {dimensions = array<i32: 1>} : vector<1x20xi32>
    %c2_i32 = arith.constant 2 : i32
    %401 = vector.broadcast %c2_i32 : i32 to vector<1x20xi32>
    %402 = arith.cmpi sge, %400, %401 : vector<1x20xi32>
    %c18_i32 = arith.constant 18 : i32
    %403 = vector.broadcast %c18_i32 : i32 to vector<1x20xi32>
    %404 = arith.cmpi slt, %400, %403 : vector<1x20xi32>
    %405 = arith.andi %402, %404 : vector<1x20xi1>
    %406 = arith.extui %405 : vector<1x20xi1> to vector<1x20xi32>
    %407 = arith.sitofp %406 : vector<1x20xi32> to vector<1x20xf32>
    %c8_i32 = arith.constant 8 : i32
    %408 = arith.muli %arg1, %c8_i32 : i32
    %c2_i32_260 = arith.constant 2 : i32
    %409 = arith.subi %408, %c2_i32_260 : i32
    %cst = arith.constant 0.000000e+00 : f32
    %410 = vector.broadcast %cst : f32 to vector<8x16xf32>
    %c0_261 = arith.constant 0 : index
    %411 = memref.load %arg8[%c0_261] : memref<1xf32, #tpu.memory_space<smem>>
    %412 = vector.broadcast %411 : f32 to vector<8x16xf32>
    %413 = arith.addf %410, %412 : vector<8x16xf32>
    %c0_262 = arith.constant 0 : index
    %c0_263 = arith.constant 0 : index
    %c0_264 = arith.constant 0 : index
    %414 = vector.load %arg9[%c0_262, %c0_263, %c0_264] : memref<1x8x16xf32, #tpu.memory_space<vmem>>, vector<1x8x16xf32>
    %415 = vector.shape_cast %414 : vector<1x8x16xf32> to vector<8x16xf32>
    %416 = vector.shape_cast %413 : vector<8x16xf32> to vector<1x8x16xf32>
    tpu.vector_store %arg9[%c0_262, %c0_263, %c0_264], %416 {strides = array<i32>} : memref<1x8x16xf32, #tpu.memory_space<vmem>>, vector<1x8x16xf32>,
    %c0_265 = arith.constant 0 : index
    %c0_266 = arith.constant 0 : index
    %417 = vector.load %arg10[%c0_265, %c0_266] : memref<180x20xf32, #tpu.memory_space<vmem>>, vector<81x20xf32>
    %c0_267 = arith.constant 0 : index
    %c0_268 = arith.constant 0 : index
    %418 = vector.load %arg3[%c0_267, %c0_268] : memref<64x81xf32, #tpu.memory_space<vmem>>, vector<64x81xf32>
    %cst_269 = arith.constant dense<0.000000e+00> : vector<64x20xf32>
    %419 = tpu.matmul %418, %417, %cst_269 {dimension_numbers = #tpu.dot_dimension_numbers<[1], [0], [0], [1], [0, 0, 1, 1], [], []>} : vector<64x81xf32>, vector<81x20xf32>, vector<64x20xf32> -> vector<64x20xf32>
    %c0_270 = arith.constant 0 : index
    %c0_271 = arith.constant 0 : index
    %420 = vector.load %arg4[%c0_270, %c0_271] : memref<64x1xf32, #tpu.memory_space<vmem>>, vector<64x1xf32>
    %421 = vector.broadcast %420 : vector<64x1xf32> to vector<64x20xf32>
    %422 = arith.addf %419, %421 : vector<64x20xf32>
    %cst_272 = arith.constant 0.000000e+00 : f32
    %423 = vector.broadcast %cst_272 : f32 to vector<64x20xf32>
    %424 = arith.maximumf %422, %423 : vector<64x20xf32>
    %c0_273 = arith.constant 0 : index
    %c0_274 = arith.constant 0 : index
    %425 = vector.load %arg5[%c0_273, %c0_274] : memref<32x64xf32, #tpu.memory_space<vmem>>, vector<32x64xf32>
    %cst_275 = arith.constant dense<0.000000e+00> : vector<32x20xf32>
    %426 = tpu.matmul %425, %424, %cst_275 {dimension_numbers = #tpu.dot_dimension_numbers<[1], [0], [0], [1], [0, 0, 1, 1], [], []>} : vector<32x64xf32>, vector<64x20xf32>, vector<32x20xf32> -> vector<32x20xf32>
    %c0_276 = arith.constant 0 : index
    %c0_277 = arith.constant 0 : index
    %427 = vector.load %arg6[%c0_276, %c0_277] : memref<32x1xf32, #tpu.memory_space<vmem>>, vector<32x1xf32>
    %428 = vector.broadcast %427 : vector<32x1xf32> to vector<32x20xf32>
    %429 = arith.addf %426, %428 : vector<32x20xf32>
    %cst_278 = arith.constant 0.000000e+00 : f32
    %430 = vector.broadcast %cst_278 : f32 to vector<32x20xf32>
    %431 = arith.maximumf %429, %430 : vector<32x20xf32>
    %c0_279 = arith.constant 0 : index
    %c0_280 = arith.constant 0 : index
    %432 = vector.load %arg7[%c0_279, %c0_280] : memref<25x32xf32, #tpu.memory_space<vmem>>, vector<25x32xf32>
    %cst_281 = arith.constant dense<0.000000e+00> : vector<25x20xf32>
    %433 = tpu.matmul %432, %431, %cst_281 {dimension_numbers = #tpu.dot_dimension_numbers<[1], [0], [0], [1], [0, 0, 1, 1], [], []>} : vector<25x32xf32>, vector<32x20xf32>, vector<25x20xf32> -> vector<25x20xf32>
    %c0_i32 = arith.constant 0 : i32
    %434 = arith.addi %409, %c0_i32 : i32
    %c0_i32_282 = arith.constant 0 : i32
    %435 = arith.cmpi sge, %434, %c0_i32_282 : i32
    %c16_i32 = arith.constant 16 : i32
    %436 = arith.cmpi slt, %434, %c16_i32 : i32
    %437 = arith.andi %435, %436 : i1
    %438 = arith.extui %437 : i1 to i32
    %439 = arith.sitofp %438 : i32 to f32
    %440 = vector.broadcast %439 : f32 to vector<1x20xf32>
    %441 = arith.mulf %407, %440 : vector<1x20xf32>
    %442 = vector.broadcast %441 : vector<1x20xf32> to vector<25x20xf32>
    %443 = arith.mulf %433, %442 : vector<25x20xf32>
    %444 = vector.extract_strided_slice %443 {offsets = [0, 0], sizes = [1, 16], strides = [1, 1]} : vector<25x20xf32> to vector<1x16xf32>
    %445 = vector.extract_strided_slice %443 {offsets = [1, 1], sizes = [1, 16], strides = [1, 1]} : vector<25x20xf32> to vector<1x16xf32>
    %446 = arith.addf %444, %445 : vector<1x16xf32>
    %447 = vector.extract_strided_slice %443 {offsets = [2, 2], sizes = [1, 16], strides = [1, 1]} : vector<25x20xf32> to vector<1x16xf32>
    %448 = arith.addf %446, %447 : vector<1x16xf32>
    %449 = vector.extract_strided_slice %443 {offsets = [3, 3], sizes = [1, 16], strides = [1, 1]} : vector<25x20xf32> to vector<1x16xf32>
    %450 = arith.addf %448, %449 : vector<1x16xf32>
    %451 = vector.extract_strided_slice %443 {offsets = [4, 4], sizes = [1, 16], strides = [1, 1]} : vector<25x20xf32> to vector<1x16xf32>
    %452 = arith.addf %450, %451 : vector<1x16xf32>
    %c0_283 = arith.constant 0 : index
    %c0_284 = arith.constant 0 : index
    %c0_285 = arith.constant 0 : index
    %453 = vector.load %arg9[%c0_283, %c0_284, %c0_285] : memref<1x8x16xf32, #tpu.memory_space<vmem>>, vector<1x1x16xf32>
    %454 = vector.shape_cast %453 : vector<1x1x16xf32> to vector<1x16xf32>
    %455 = arith.addf %454, %452 : vector<1x16xf32>
    %c0_286 = arith.constant 0 : index
    %c0_287 = arith.constant 0 : index
    %c0_288 = arith.constant 0 : index
    %456 = vector.load %arg9[%c0_286, %c0_287, %c0_288] : memref<1x8x16xf32, #tpu.memory_space<vmem>>, vector<1x1x16xf32>
    %457 = vector.shape_cast %456 : vector<1x1x16xf32> to vector<1x16xf32>
    %458 = vector.shape_cast %455 : vector<1x16xf32> to vector<1x1x16xf32>
    tpu.vector_store %arg9[%c0_286, %c0_287, %c0_288], %458 {strides = array<i32>} : memref<1x8x16xf32, #tpu.memory_space<vmem>>, vector<1x1x16xf32>,
    %c9_289 = arith.constant 9 : index
    %c0_290 = arith.constant 0 : index
    %459 = vector.load %arg10[%c9_289, %c0_290] : memref<180x20xf32, #tpu.memory_space<vmem>>, vector<81x20xf32>
    %c0_291 = arith.constant 0 : index
    %c0_292 = arith.constant 0 : index
    %460 = vector.load %arg3[%c0_291, %c0_292] : memref<64x81xf32, #tpu.memory_space<vmem>>, vector<64x81xf32>
    %cst_293 = arith.constant dense<0.000000e+00> : vector<64x20xf32>
    %461 = tpu.matmul %460, %459, %cst_293 {dimension_numbers = #tpu.dot_dimension_numbers<[1], [0], [0], [1], [0, 0, 1, 1], [], []>} : vector<64x81xf32>, vector<81x20xf32>, vector<64x20xf32> -> vector<64x20xf32>
    %c0_294 = arith.constant 0 : index
    %c0_295 = arith.constant 0 : index
    %462 = vector.load %arg4[%c0_294, %c0_295] : memref<64x1xf32, #tpu.memory_space<vmem>>, vector<64x1xf32>
    %463 = vector.broadcast %462 : vector<64x1xf32> to vector<64x20xf32>
    %464 = arith.addf %461, %463 : vector<64x20xf32>
    %cst_296 = arith.constant 0.000000e+00 : f32
    %465 = vector.broadcast %cst_296 : f32 to vector<64x20xf32>
    %466 = arith.maximumf %464, %465 : vector<64x20xf32>
    %c0_297 = arith.constant 0 : index
    %c0_298 = arith.constant 0 : index
    %467 = vector.load %arg5[%c0_297, %c0_298] : memref<32x64xf32, #tpu.memory_space<vmem>>, vector<32x64xf32>
    %cst_299 = arith.constant dense<0.000000e+00> : vector<32x20xf32>
    %468 = tpu.matmul %467, %466, %cst_299 {dimension_numbers = #tpu.dot_dimension_numbers<[1], [0], [0], [1], [0, 0, 1, 1], [], []>} : vector<32x64xf32>, vector<64x20xf32>, vector<32x20xf32> -> vector<32x20xf32>
    %c0_300 = arith.constant 0 : index
    %c0_301 = arith.constant 0 : index
    %469 = vector.load %arg6[%c0_300, %c0_301] : memref<32x1xf32, #tpu.memory_space<vmem>>, vector<32x1xf32>
    %470 = vector.broadcast %469 : vector<32x1xf32> to vector<32x20xf32>
    %471 = arith.addf %468, %470 : vector<32x20xf32>
    %cst_302 = arith.constant 0.000000e+00 : f32
    %472 = vector.broadcast %cst_302 : f32 to vector<32x20xf32>
    %473 = arith.maximumf %471, %472 : vector<32x20xf32>
    %c0_303 = arith.constant 0 : index
    %c0_304 = arith.constant 0 : index
    %474 = vector.load %arg7[%c0_303, %c0_304] : memref<25x32xf32, #tpu.memory_space<vmem>>, vector<25x32xf32>
    %cst_305 = arith.constant dense<0.000000e+00> : vector<25x20xf32>
    %475 = tpu.matmul %474, %473, %cst_305 {dimension_numbers = #tpu.dot_dimension_numbers<[1], [0], [0], [1], [0, 0, 1, 1], [], []>} : vector<25x32xf32>, vector<32x20xf32>, vector<25x20xf32> -> vector<25x20xf32>
    %c1_i32 = arith.constant 1 : i32
    %476 = arith.addi %409, %c1_i32 : i32
    %c0_i32_306 = arith.constant 0 : i32
    %477 = arith.cmpi sge, %476, %c0_i32_306 : i32
    %c16_i32_307 = arith.constant 16 : i32
    %478 = arith.cmpi slt, %476, %c16_i32_307 : i32
    %479 = arith.andi %477, %478 : i1
    %480 = arith.extui %479 : i1 to i32
    %481 = arith.sitofp %480 : i32 to f32
    %482 = vector.broadcast %481 : f32 to vector<1x20xf32>
    %483 = arith.mulf %407, %482 : vector<1x20xf32>
    %484 = vector.broadcast %483 : vector<1x20xf32> to vector<25x20xf32>
    %485 = arith.mulf %475, %484 : vector<25x20xf32>
    %486 = vector.extract_strided_slice %485 {offsets = [0, 0], sizes = [1, 16], strides = [1, 1]} : vector<25x20xf32> to vector<1x16xf32>
    %487 = vector.extract_strided_slice %485 {offsets = [1, 1], sizes = [1, 16], strides = [1, 1]} : vector<25x20xf32> to vector<1x16xf32>
    %488 = arith.addf %486, %487 : vector<1x16xf32>
    %489 = vector.extract_strided_slice %485 {offsets = [2, 2], sizes = [1, 16], strides = [1, 1]} : vector<25x20xf32> to vector<1x16xf32>
    %490 = arith.addf %488, %489 : vector<1x16xf32>
    %491 = vector.extract_strided_slice %485 {offsets = [3, 3], sizes = [1, 16], strides = [1, 1]} : vector<25x20xf32> to vector<1x16xf32>
    %492 = arith.addf %490, %491 : vector<1x16xf32>
    %493 = vector.extract_strided_slice %485 {offsets = [4, 4], sizes = [1, 16], strides = [1, 1]} : vector<25x20xf32> to vector<1x16xf32>
    %494 = arith.addf %492, %493 : vector<1x16xf32>
    %c0_308 = arith.constant 0 : index
    %c1_309 = arith.constant 1 : index
    %c0_310 = arith.constant 0 : index
    %495 = vector.load %arg9[%c0_308, %c1_309, %c0_310] : memref<1x8x16xf32, #tpu.memory_space<vmem>>, vector<1x1x16xf32>
    %496 = vector.shape_cast %495 : vector<1x1x16xf32> to vector<1x16xf32>
    %497 = arith.addf %496, %494 : vector<1x16xf32>
    %c0_311 = arith.constant 0 : index
    %c1_312 = arith.constant 1 : index
    %c0_313 = arith.constant 0 : index
    %498 = vector.load %arg9[%c0_311, %c1_312, %c0_313] : memref<1x8x16xf32, #tpu.memory_space<vmem>>, vector<1x1x16xf32>
    %499 = vector.shape_cast %498 : vector<1x1x16xf32> to vector<1x16xf32>
    %500 = vector.shape_cast %497 : vector<1x16xf32> to vector<1x1x16xf32>
    tpu.vector_store %arg9[%c0_311, %c1_312, %c0_313], %500 {strides = array<i32>} : memref<1x8x16xf32, #tpu.memory_space<vmem>>, vector<1x1x16xf32>,
    %501 = vector.extract_strided_slice %485 {offsets = [5, 0], sizes = [1, 16], strides = [1, 1]} : vector<25x20xf32> to vector<1x16xf32>
    %502 = vector.extract_strided_slice %485 {offsets = [6, 1], sizes = [1, 16], strides = [1, 1]} : vector<25x20xf32> to vector<1x16xf32>
    %503 = arith.addf %501, %502 : vector<1x16xf32>
    %504 = vector.extract_strided_slice %485 {offsets = [7, 2], sizes = [1, 16], strides = [1, 1]} : vector<25x20xf32> to vector<1x16xf32>
    %505 = arith.addf %503, %504 : vector<1x16xf32>
    %506 = vector.extract_strided_slice %485 {offsets = [8, 3], sizes = [1, 16], strides = [1, 1]} : vector<25x20xf32> to vector<1x16xf32>
    %507 = arith.addf %505, %506 : vector<1x16xf32>
    %508 = vector.extract_strided_slice %485 {offsets = [9, 4], sizes = [1, 16], strides = [1, 1]} : vector<25x20xf32> to vector<1x16xf32>
    %509 = arith.addf %507, %508 : vector<1x16xf32>
    %c0_314 = arith.constant 0 : index
    %c0_315 = arith.constant 0 : index
    %c0_316 = arith.constant 0 : index
    %510 = vector.load %arg9[%c0_314, %c0_315, %c0_316] : memref<1x8x16xf32, #tpu.memory_space<vmem>>, vector<1x1x16xf32>
    %511 = vector.shape_cast %510 : vector<1x1x16xf32> to vector<1x16xf32>
    %512 = arith.addf %511, %509 : vector<1x16xf32>
    %c0_317 = arith.constant 0 : index
    %c0_318 = arith.constant 0 : index
    %c0_319 = arith.constant 0 : index
    %513 = vector.load %arg9[%c0_317, %c0_318, %c0_319] : memref<1x8x16xf32, #tpu.memory_space<vmem>>, vector<1x1x16xf32>
    %514 = vector.shape_cast %513 : vector<1x1x16xf32> to vector<1x16xf32>
    %515 = vector.shape_cast %512 : vector<1x16xf32> to vector<1x1x16xf32>
    tpu.vector_store %arg9[%c0_317, %c0_318, %c0_319], %515 {strides = array<i32>} : memref<1x8x16xf32, #tpu.memory_space<vmem>>, vector<1x1x16xf32>,
    %c18_320 = arith.constant 18 : index
    %c0_321 = arith.constant 0 : index
    %516 = vector.load %arg10[%c18_320, %c0_321] : memref<180x20xf32, #tpu.memory_space<vmem>>, vector<81x20xf32>
    %c0_322 = arith.constant 0 : index
    %c0_323 = arith.constant 0 : index
    %517 = vector.load %arg3[%c0_322, %c0_323] : memref<64x81xf32, #tpu.memory_space<vmem>>, vector<64x81xf32>
    %cst_324 = arith.constant dense<0.000000e+00> : vector<64x20xf32>
    %518 = tpu.matmul %517, %516, %cst_324 {dimension_numbers = #tpu.dot_dimension_numbers<[1], [0], [0], [1], [0, 0, 1, 1], [], []>} : vector<64x81xf32>, vector<81x20xf32>, vector<64x20xf32> -> vector<64x20xf32>
    %c0_325 = arith.constant 0 : index
    %c0_326 = arith.constant 0 : index
    %519 = vector.load %arg4[%c0_325, %c0_326] : memref<64x1xf32, #tpu.memory_space<vmem>>, vector<64x1xf32>
    %520 = vector.broadcast %519 : vector<64x1xf32> to vector<64x20xf32>
    %521 = arith.addf %518, %520 : vector<64x20xf32>
    %cst_327 = arith.constant 0.000000e+00 : f32
    %522 = vector.broadcast %cst_327 : f32 to vector<64x20xf32>
    %523 = arith.maximumf %521, %522 : vector<64x20xf32>
    %c0_328 = arith.constant 0 : index
    %c0_329 = arith.constant 0 : index
    %524 = vector.load %arg5[%c0_328, %c0_329] : memref<32x64xf32, #tpu.memory_space<vmem>>, vector<32x64xf32>
    %cst_330 = arith.constant dense<0.000000e+00> : vector<32x20xf32>
    %525 = tpu.matmul %524, %523, %cst_330 {dimension_numbers = #tpu.dot_dimension_numbers<[1], [0], [0], [1], [0, 0, 1, 1], [], []>} : vector<32x64xf32>, vector<64x20xf32>, vector<32x20xf32> -> vector<32x20xf32>
    %c0_331 = arith.constant 0 : index
    %c0_332 = arith.constant 0 : index
    %526 = vector.load %arg6[%c0_331, %c0_332] : memref<32x1xf32, #tpu.memory_space<vmem>>, vector<32x1xf32>
    %527 = vector.broadcast %526 : vector<32x1xf32> to vector<32x20xf32>
    %528 = arith.addf %525, %527 : vector<32x20xf32>
    %cst_333 = arith.constant 0.000000e+00 : f32
    %529 = vector.broadcast %cst_333 : f32 to vector<32x20xf32>
    %530 = arith.maximumf %528, %529 : vector<32x20xf32>
    %c0_334 = arith.constant 0 : index
    %c0_335 = arith.constant 0 : index
    %531 = vector.load %arg7[%c0_334, %c0_335] : memref<25x32xf32, #tpu.memory_space<vmem>>, vector<25x32xf32>
    %cst_336 = arith.constant dense<0.000000e+00> : vector<25x20xf32>
    %532 = tpu.matmul %531, %530, %cst_336 {dimension_numbers = #tpu.dot_dimension_numbers<[1], [0], [0], [1], [0, 0, 1, 1], [], []>} : vector<25x32xf32>, vector<32x20xf32>, vector<25x20xf32> -> vector<25x20xf32>
    %c2_i32_337 = arith.constant 2 : i32
    %533 = arith.addi %409, %c2_i32_337 : i32
    %c0_i32_338 = arith.constant 0 : i32
    %534 = arith.cmpi sge, %533, %c0_i32_338 : i32
    %c16_i32_339 = arith.constant 16 : i32
    %535 = arith.cmpi slt, %533, %c16_i32_339 : i32
    %536 = arith.andi %534, %535 : i1
    %537 = arith.extui %536 : i1 to i32
    %538 = arith.sitofp %537 : i32 to f32
    %539 = vector.broadcast %538 : f32 to vector<1x20xf32>
    %540 = arith.mulf %407, %539 : vector<1x20xf32>
    %541 = vector.broadcast %540 : vector<1x20xf32> to vector<25x20xf32>
    %542 = arith.mulf %532, %541 : vector<25x20xf32>
    %543 = vector.extract_strided_slice %542 {offsets = [0, 0], sizes = [1, 16], strides = [1, 1]} : vector<25x20xf32> to vector<1x16xf32>
    %544 = vector.extract_strided_slice %542 {offsets = [1, 1], sizes = [1, 16], strides = [1, 1]} : vector<25x20xf32> to vector<1x16xf32>
    %545 = arith.addf %543, %544 : vector<1x16xf32>
    %546 = vector.extract_strided_slice %542 {offsets = [2, 2], sizes = [1, 16], strides = [1, 1]} : vector<25x20xf32> to vector<1x16xf32>
    %547 = arith.addf %545, %546 : vector<1x16xf32>
    %548 = vector.extract_strided_slice %542 {offsets = [3, 3], sizes = [1, 16], strides = [1, 1]} : vector<25x20xf32> to vector<1x16xf32>
    %549 = arith.addf %547, %548 : vector<1x16xf32>
    %550 = vector.extract_strided_slice %542 {offsets = [4, 4], sizes = [1, 16], strides = [1, 1]} : vector<25x20xf32> to vector<1x16xf32>
    %551 = arith.addf %549, %550 : vector<1x16xf32>
    %c0_340 = arith.constant 0 : index
    %c2_341 = arith.constant 2 : index
    %c0_342 = arith.constant 0 : index
    %552 = vector.load %arg9[%c0_340, %c2_341, %c0_342] : memref<1x8x16xf32, #tpu.memory_space<vmem>>, vector<1x1x16xf32>
    %553 = vector.shape_cast %552 : vector<1x1x16xf32> to vector<1x16xf32>
    %554 = arith.addf %553, %551 : vector<1x16xf32>
    %c0_343 = arith.constant 0 : index
    %c2_344 = arith.constant 2 : index
    %c0_345 = arith.constant 0 : index
    %555 = vector.load %arg9[%c0_343, %c2_344, %c0_345] : memref<1x8x16xf32, #tpu.memory_space<vmem>>, vector<1x1x16xf32>
    %556 = vector.shape_cast %555 : vector<1x1x16xf32> to vector<1x16xf32>
    %557 = vector.shape_cast %554 : vector<1x16xf32> to vector<1x1x16xf32>
    tpu.vector_store %arg9[%c0_343, %c2_344, %c0_345], %557 {strides = array<i32>} : memref<1x8x16xf32, #tpu.memory_space<vmem>>, vector<1x1x16xf32>,
    %558 = vector.extract_strided_slice %542 {offsets = [5, 0], sizes = [1, 16], strides = [1, 1]} : vector<25x20xf32> to vector<1x16xf32>
    %559 = vector.extract_strided_slice %542 {offsets = [6, 1], sizes = [1, 16], strides = [1, 1]} : vector<25x20xf32> to vector<1x16xf32>
    %560 = arith.addf %558, %559 : vector<1x16xf32>
    %561 = vector.extract_strided_slice %542 {offsets = [7, 2], sizes = [1, 16], strides = [1, 1]} : vector<25x20xf32> to vector<1x16xf32>
    %562 = arith.addf %560, %561 : vector<1x16xf32>
    %563 = vector.extract_strided_slice %542 {offsets = [8, 3], sizes = [1, 16], strides = [1, 1]} : vector<25x20xf32> to vector<1x16xf32>
    %564 = arith.addf %562, %563 : vector<1x16xf32>
    %565 = vector.extract_strided_slice %542 {offsets = [9, 4], sizes = [1, 16], strides = [1, 1]} : vector<25x20xf32> to vector<1x16xf32>
    %566 = arith.addf %564, %565 : vector<1x16xf32>
    %c0_346 = arith.constant 0 : index
    %c1_347 = arith.constant 1 : index
    %c0_348 = arith.constant 0 : index
    %567 = vector.load %arg9[%c0_346, %c1_347, %c0_348] : memref<1x8x16xf32, #tpu.memory_space<vmem>>, vector<1x1x16xf32>
    %568 = vector.shape_cast %567 : vector<1x1x16xf32> to vector<1x16xf32>
    %569 = arith.addf %568, %566 : vector<1x16xf32>
    %c0_349 = arith.constant 0 : index
    %c1_350 = arith.constant 1 : index
    %c0_351 = arith.constant 0 : index
    %570 = vector.load %arg9[%c0_349, %c1_350, %c0_351] : memref<1x8x16xf32, #tpu.memory_space<vmem>>, vector<1x1x16xf32>
    %571 = vector.shape_cast %570 : vector<1x1x16xf32> to vector<1x16xf32>
    %572 = vector.shape_cast %569 : vector<1x16xf32> to vector<1x1x16xf32>
    tpu.vector_store %arg9[%c0_349, %c1_350, %c0_351], %572 {strides = array<i32>} : memref<1x8x16xf32, #tpu.memory_space<vmem>>, vector<1x1x16xf32>,
    %573 = vector.extract_strided_slice %542 {offsets = [10, 0], sizes = [1, 16], strides = [1, 1]} : vector<25x20xf32> to vector<1x16xf32>
    %574 = vector.extract_strided_slice %542 {offsets = [11, 1], sizes = [1, 16], strides = [1, 1]} : vector<25x20xf32> to vector<1x16xf32>
    %575 = arith.addf %573, %574 : vector<1x16xf32>
    %576 = vector.extract_strided_slice %542 {offsets = [12, 2], sizes = [1, 16], strides = [1, 1]} : vector<25x20xf32> to vector<1x16xf32>
    %577 = arith.addf %575, %576 : vector<1x16xf32>
    %578 = vector.extract_strided_slice %542 {offsets = [13, 3], sizes = [1, 16], strides = [1, 1]} : vector<25x20xf32> to vector<1x16xf32>
    %579 = arith.addf %577, %578 : vector<1x16xf32>
    %580 = vector.extract_strided_slice %542 {offsets = [14, 4], sizes = [1, 16], strides = [1, 1]} : vector<25x20xf32> to vector<1x16xf32>
    %581 = arith.addf %579, %580 : vector<1x16xf32>
    %c0_352 = arith.constant 0 : index
    %c0_353 = arith.constant 0 : index
    %c0_354 = arith.constant 0 : index
    %582 = vector.load %arg9[%c0_352, %c0_353, %c0_354] : memref<1x8x16xf32, #tpu.memory_space<vmem>>, vector<1x1x16xf32>
    %583 = vector.shape_cast %582 : vector<1x1x16xf32> to vector<1x16xf32>
    %584 = arith.addf %583, %581 : vector<1x16xf32>
    %c0_355 = arith.constant 0 : index
    %c0_356 = arith.constant 0 : index
    %c0_357 = arith.constant 0 : index
    %585 = vector.load %arg9[%c0_355, %c0_356, %c0_357] : memref<1x8x16xf32, #tpu.memory_space<vmem>>, vector<1x1x16xf32>
    %586 = vector.shape_cast %585 : vector<1x1x16xf32> to vector<1x16xf32>
    %587 = vector.shape_cast %584 : vector<1x16xf32> to vector<1x1x16xf32>
    tpu.vector_store %arg9[%c0_355, %c0_356, %c0_357], %587 {strides = array<i32>} : memref<1x8x16xf32, #tpu.memory_space<vmem>>, vector<1x1x16xf32>,
    %c27_358 = arith.constant 27 : index
    %c0_359 = arith.constant 0 : index
    %588 = vector.load %arg10[%c27_358, %c0_359] : memref<180x20xf32, #tpu.memory_space<vmem>>, vector<81x20xf32>
    %c0_360 = arith.constant 0 : index
    %c0_361 = arith.constant 0 : index
    %589 = vector.load %arg3[%c0_360, %c0_361] : memref<64x81xf32, #tpu.memory_space<vmem>>, vector<64x81xf32>
    %cst_362 = arith.constant dense<0.000000e+00> : vector<64x20xf32>
    %590 = tpu.matmul %589, %588, %cst_362 {dimension_numbers = #tpu.dot_dimension_numbers<[1], [0], [0], [1], [0, 0, 1, 1], [], []>} : vector<64x81xf32>, vector<81x20xf32>, vector<64x20xf32> -> vector<64x20xf32>
    %c0_363 = arith.constant 0 : index
    %c0_364 = arith.constant 0 : index
    %591 = vector.load %arg4[%c0_363, %c0_364] : memref<64x1xf32, #tpu.memory_space<vmem>>, vector<64x1xf32>
    %592 = vector.broadcast %591 : vector<64x1xf32> to vector<64x20xf32>
    %593 = arith.addf %590, %592 : vector<64x20xf32>
    %cst_365 = arith.constant 0.000000e+00 : f32
    %594 = vector.broadcast %cst_365 : f32 to vector<64x20xf32>
    %595 = arith.maximumf %593, %594 : vector<64x20xf32>
    %c0_366 = arith.constant 0 : index
    %c0_367 = arith.constant 0 : index
    %596 = vector.load %arg5[%c0_366, %c0_367] : memref<32x64xf32, #tpu.memory_space<vmem>>, vector<32x64xf32>
    %cst_368 = arith.constant dense<0.000000e+00> : vector<32x20xf32>
    %597 = tpu.matmul %596, %595, %cst_368 {dimension_numbers = #tpu.dot_dimension_numbers<[1], [0], [0], [1], [0, 0, 1, 1], [], []>} : vector<32x64xf32>, vector<64x20xf32>, vector<32x20xf32> -> vector<32x20xf32>
    %c0_369 = arith.constant 0 : index
    %c0_370 = arith.constant 0 : index
    %598 = vector.load %arg6[%c0_369, %c0_370] : memref<32x1xf32, #tpu.memory_space<vmem>>, vector<32x1xf32>
    %599 = vector.broadcast %598 : vector<32x1xf32> to vector<32x20xf32>
    %600 = arith.addf %597, %599 : vector<32x20xf32>
    %cst_371 = arith.constant 0.000000e+00 : f32
    %601 = vector.broadcast %cst_371 : f32 to vector<32x20xf32>
    %602 = arith.maximumf %600, %601 : vector<32x20xf32>
    %c0_372 = arith.constant 0 : index
    %c0_373 = arith.constant 0 : index
    %603 = vector.load %arg7[%c0_372, %c0_373] : memref<25x32xf32, #tpu.memory_space<vmem>>, vector<25x32xf32>
    %cst_374 = arith.constant dense<0.000000e+00> : vector<25x20xf32>
    %604 = tpu.matmul %603, %602, %cst_374 {dimension_numbers = #tpu.dot_dimension_numbers<[1], [0], [0], [1], [0, 0, 1, 1], [], []>} : vector<25x32xf32>, vector<32x20xf32>, vector<25x20xf32> -> vector<25x20xf32>
    %c3_i32 = arith.constant 3 : i32
    %605 = arith.addi %409, %c3_i32 : i32
    %c0_i32_375 = arith.constant 0 : i32
    %606 = arith.cmpi sge, %605, %c0_i32_375 : i32
    %c16_i32_376 = arith.constant 16 : i32
    %607 = arith.cmpi slt, %605, %c16_i32_376 : i32
    %608 = arith.andi %606, %607 : i1
    %609 = arith.extui %608 : i1 to i32
    %610 = arith.sitofp %609 : i32 to f32
    %611 = vector.broadcast %610 : f32 to vector<1x20xf32>
    %612 = arith.mulf %407, %611 : vector<1x20xf32>
    %613 = vector.broadcast %612 : vector<1x20xf32> to vector<25x20xf32>
    %614 = arith.mulf %604, %613 : vector<25x20xf32>
    %615 = vector.extract_strided_slice %614 {offsets = [0, 0], sizes = [1, 16], strides = [1, 1]} : vector<25x20xf32> to vector<1x16xf32>
    %616 = vector.extract_strided_slice %614 {offsets = [1, 1], sizes = [1, 16], strides = [1, 1]} : vector<25x20xf32> to vector<1x16xf32>
    %617 = arith.addf %615, %616 : vector<1x16xf32>
    %618 = vector.extract_strided_slice %614 {offsets = [2, 2], sizes = [1, 16], strides = [1, 1]} : vector<25x20xf32> to vector<1x16xf32>
    %619 = arith.addf %617, %618 : vector<1x16xf32>
    %620 = vector.extract_strided_slice %614 {offsets = [3, 3], sizes = [1, 16], strides = [1, 1]} : vector<25x20xf32> to vector<1x16xf32>
    %621 = arith.addf %619, %620 : vector<1x16xf32>
    %622 = vector.extract_strided_slice %614 {offsets = [4, 4], sizes = [1, 16], strides = [1, 1]} : vector<25x20xf32> to vector<1x16xf32>
    %623 = arith.addf %621, %622 : vector<1x16xf32>
    %c0_377 = arith.constant 0 : index
    %c3_378 = arith.constant 3 : index
    %c0_379 = arith.constant 0 : index
    %624 = vector.load %arg9[%c0_377, %c3_378, %c0_379] : memref<1x8x16xf32, #tpu.memory_space<vmem>>, vector<1x1x16xf32>
    %625 = vector.shape_cast %624 : vector<1x1x16xf32> to vector<1x16xf32>
    %626 = arith.addf %625, %623 : vector<1x16xf32>
    %c0_380 = arith.constant 0 : index
    %c3_381 = arith.constant 3 : index
    %c0_382 = arith.constant 0 : index
    %627 = vector.load %arg9[%c0_380, %c3_381, %c0_382] : memref<1x8x16xf32, #tpu.memory_space<vmem>>, vector<1x1x16xf32>
    %628 = vector.shape_cast %627 : vector<1x1x16xf32> to vector<1x16xf32>
    %629 = vector.shape_cast %626 : vector<1x16xf32> to vector<1x1x16xf32>
    tpu.vector_store %arg9[%c0_380, %c3_381, %c0_382], %629 {strides = array<i32>} : memref<1x8x16xf32, #tpu.memory_space<vmem>>, vector<1x1x16xf32>,
    %630 = vector.extract_strided_slice %614 {offsets = [5, 0], sizes = [1, 16], strides = [1, 1]} : vector<25x20xf32> to vector<1x16xf32>
    %631 = vector.extract_strided_slice %614 {offsets = [6, 1], sizes = [1, 16], strides = [1, 1]} : vector<25x20xf32> to vector<1x16xf32>
    %632 = arith.addf %630, %631 : vector<1x16xf32>
    %633 = vector.extract_strided_slice %614 {offsets = [7, 2], sizes = [1, 16], strides = [1, 1]} : vector<25x20xf32> to vector<1x16xf32>
    %634 = arith.addf %632, %633 : vector<1x16xf32>
    %635 = vector.extract_strided_slice %614 {offsets = [8, 3], sizes = [1, 16], strides = [1, 1]} : vector<25x20xf32> to vector<1x16xf32>
    %636 = arith.addf %634, %635 : vector<1x16xf32>
    %637 = vector.extract_strided_slice %614 {offsets = [9, 4], sizes = [1, 16], strides = [1, 1]} : vector<25x20xf32> to vector<1x16xf32>
    %638 = arith.addf %636, %637 : vector<1x16xf32>
    %c0_383 = arith.constant 0 : index
    %c2_384 = arith.constant 2 : index
    %c0_385 = arith.constant 0 : index
    %639 = vector.load %arg9[%c0_383, %c2_384, %c0_385] : memref<1x8x16xf32, #tpu.memory_space<vmem>>, vector<1x1x16xf32>
    %640 = vector.shape_cast %639 : vector<1x1x16xf32> to vector<1x16xf32>
    %641 = arith.addf %640, %638 : vector<1x16xf32>
    %c0_386 = arith.constant 0 : index
    %c2_387 = arith.constant 2 : index
    %c0_388 = arith.constant 0 : index
    %642 = vector.load %arg9[%c0_386, %c2_387, %c0_388] : memref<1x8x16xf32, #tpu.memory_space<vmem>>, vector<1x1x16xf32>
    %643 = vector.shape_cast %642 : vector<1x1x16xf32> to vector<1x16xf32>
    %644 = vector.shape_cast %641 : vector<1x16xf32> to vector<1x1x16xf32>
    tpu.vector_store %arg9[%c0_386, %c2_387, %c0_388], %644 {strides = array<i32>} : memref<1x8x16xf32, #tpu.memory_space<vmem>>, vector<1x1x16xf32>,
    %645 = vector.extract_strided_slice %614 {offsets = [10, 0], sizes = [1, 16], strides = [1, 1]} : vector<25x20xf32> to vector<1x16xf32>
    %646 = vector.extract_strided_slice %614 {offsets = [11, 1], sizes = [1, 16], strides = [1, 1]} : vector<25x20xf32> to vector<1x16xf32>
    %647 = arith.addf %645, %646 : vector<1x16xf32>
    %648 = vector.extract_strided_slice %614 {offsets = [12, 2], sizes = [1, 16], strides = [1, 1]} : vector<25x20xf32> to vector<1x16xf32>
    %649 = arith.addf %647, %648 : vector<1x16xf32>
    %650 = vector.extract_strided_slice %614 {offsets = [13, 3], sizes = [1, 16], strides = [1, 1]} : vector<25x20xf32> to vector<1x16xf32>
    %651 = arith.addf %649, %650 : vector<1x16xf32>
    %652 = vector.extract_strided_slice %614 {offsets = [14, 4], sizes = [1, 16], strides = [1, 1]} : vector<25x20xf32> to vector<1x16xf32>
    %653 = arith.addf %651, %652 : vector<1x16xf32>
    %c0_389 = arith.constant 0 : index
    %c1_390 = arith.constant 1 : index
    %c0_391 = arith.constant 0 : index
    %654 = vector.load %arg9[%c0_389, %c1_390, %c0_391] : memref<1x8x16xf32, #tpu.memory_space<vmem>>, vector<1x1x16xf32>
    %655 = vector.shape_cast %654 : vector<1x1x16xf32> to vector<1x16xf32>
    %656 = arith.addf %655, %653 : vector<1x16xf32>
    %c0_392 = arith.constant 0 : index
    %c1_393 = arith.constant 1 : index
    %c0_394 = arith.constant 0 : index
    %657 = vector.load %arg9[%c0_392, %c1_393, %c0_394] : memref<1x8x16xf32, #tpu.memory_space<vmem>>, vector<1x1x16xf32>
    %658 = vector.shape_cast %657 : vector<1x1x16xf32> to vector<1x16xf32>
    %659 = vector.shape_cast %656 : vector<1x16xf32> to vector<1x1x16xf32>
    tpu.vector_store %arg9[%c0_392, %c1_393, %c0_394], %659 {strides = array<i32>} : memref<1x8x16xf32, #tpu.memory_space<vmem>>, vector<1x1x16xf32>,
    %660 = vector.extract_strided_slice %614 {offsets = [15, 0], sizes = [1, 16], strides = [1, 1]} : vector<25x20xf32> to vector<1x16xf32>
    %661 = vector.extract_strided_slice %614 {offsets = [16, 1], sizes = [1, 16], strides = [1, 1]} : vector<25x20xf32> to vector<1x16xf32>
    %662 = arith.addf %660, %661 : vector<1x16xf32>
    %663 = vector.extract_strided_slice %614 {offsets = [17, 2], sizes = [1, 16], strides = [1, 1]} : vector<25x20xf32> to vector<1x16xf32>
    %664 = arith.addf %662, %663 : vector<1x16xf32>
    %665 = vector.extract_strided_slice %614 {offsets = [18, 3], sizes = [1, 16], strides = [1, 1]} : vector<25x20xf32> to vector<1x16xf32>
    %666 = arith.addf %664, %665 : vector<1x16xf32>
    %667 = vector.extract_strided_slice %614 {offsets = [19, 4], sizes = [1, 16], strides = [1, 1]} : vector<25x20xf32> to vector<1x16xf32>
    %668 = arith.addf %666, %667 : vector<1x16xf32>
    %c0_395 = arith.constant 0 : index
    %c0_396 = arith.constant 0 : index
    %c0_397 = arith.constant 0 : index
    %669 = vector.load %arg9[%c0_395, %c0_396, %c0_397] : memref<1x8x16xf32, #tpu.memory_space<vmem>>, vector<1x1x16xf32>
    %670 = vector.shape_cast %669 : vector<1x1x16xf32> to vector<1x16xf32>
    %671 = arith.addf %670, %668 : vector<1x16xf32>
    %c0_398 = arith.constant 0 : index
    %c0_399 = arith.constant 0 : index
    %c0_400 = arith.constant 0 : index
    %672 = vector.load %arg9[%c0_398, %c0_399, %c0_400] : memref<1x8x16xf32, #tpu.memory_space<vmem>>, vector<1x1x16xf32>
    %673 = vector.shape_cast %672 : vector<1x1x16xf32> to vector<1x16xf32>
    %674 = vector.shape_cast %671 : vector<1x16xf32> to vector<1x1x16xf32>
    tpu.vector_store %arg9[%c0_398, %c0_399, %c0_400], %674 {strides = array<i32>} : memref<1x8x16xf32, #tpu.memory_space<vmem>>, vector<1x1x16xf32>,
    %c36_401 = arith.constant 36 : index
    %c0_402 = arith.constant 0 : index
    %675 = vector.load %arg10[%c36_401, %c0_402] : memref<180x20xf32, #tpu.memory_space<vmem>>, vector<81x20xf32>
    %c0_403 = arith.constant 0 : index
    %c0_404 = arith.constant 0 : index
    %676 = vector.load %arg3[%c0_403, %c0_404] : memref<64x81xf32, #tpu.memory_space<vmem>>, vector<64x81xf32>
    %cst_405 = arith.constant dense<0.000000e+00> : vector<64x20xf32>
    %677 = tpu.matmul %676, %675, %cst_405 {dimension_numbers = #tpu.dot_dimension_numbers<[1], [0], [0], [1], [0, 0, 1, 1], [], []>} : vector<64x81xf32>, vector<81x20xf32>, vector<64x20xf32> -> vector<64x20xf32>
    %c0_406 = arith.constant 0 : index
    %c0_407 = arith.constant 0 : index
    %678 = vector.load %arg4[%c0_406, %c0_407] : memref<64x1xf32, #tpu.memory_space<vmem>>, vector<64x1xf32>
    %679 = vector.broadcast %678 : vector<64x1xf32> to vector<64x20xf32>
    %680 = arith.addf %677, %679 : vector<64x20xf32>
    %cst_408 = arith.constant 0.000000e+00 : f32
    %681 = vector.broadcast %cst_408 : f32 to vector<64x20xf32>
    %682 = arith.maximumf %680, %681 : vector<64x20xf32>
    %c0_409 = arith.constant 0 : index
    %c0_410 = arith.constant 0 : index
    %683 = vector.load %arg5[%c0_409, %c0_410] : memref<32x64xf32, #tpu.memory_space<vmem>>, vector<32x64xf32>
    %cst_411 = arith.constant dense<0.000000e+00> : vector<32x20xf32>
    %684 = tpu.matmul %683, %682, %cst_411 {dimension_numbers = #tpu.dot_dimension_numbers<[1], [0], [0], [1], [0, 0, 1, 1], [], []>} : vector<32x64xf32>, vector<64x20xf32>, vector<32x20xf32> -> vector<32x20xf32>
    %c0_412 = arith.constant 0 : index
    %c0_413 = arith.constant 0 : index
    %685 = vector.load %arg6[%c0_412, %c0_413] : memref<32x1xf32, #tpu.memory_space<vmem>>, vector<32x1xf32>
    %686 = vector.broadcast %685 : vector<32x1xf32> to vector<32x20xf32>
    %687 = arith.addf %684, %686 : vector<32x20xf32>
    %cst_414 = arith.constant 0.000000e+00 : f32
    %688 = vector.broadcast %cst_414 : f32 to vector<32x20xf32>
    %689 = arith.maximumf %687, %688 : vector<32x20xf32>
    %c0_415 = arith.constant 0 : index
    %c0_416 = arith.constant 0 : index
    %690 = vector.load %arg7[%c0_415, %c0_416] : memref<25x32xf32, #tpu.memory_space<vmem>>, vector<25x32xf32>
    %cst_417 = arith.constant dense<0.000000e+00> : vector<25x20xf32>
    %691 = tpu.matmul %690, %689, %cst_417 {dimension_numbers = #tpu.dot_dimension_numbers<[1], [0], [0], [1], [0, 0, 1, 1], [], []>} : vector<25x32xf32>, vector<32x20xf32>, vector<25x20xf32> -> vector<25x20xf32>
    %c4_i32 = arith.constant 4 : i32
    %692 = arith.addi %409, %c4_i32 : i32
    %c0_i32_418 = arith.constant 0 : i32
    %693 = arith.cmpi sge, %692, %c0_i32_418 : i32
    %c16_i32_419 = arith.constant 16 : i32
    %694 = arith.cmpi slt, %692, %c16_i32_419 : i32
    %695 = arith.andi %693, %694 : i1
    %696 = arith.extui %695 : i1 to i32
    %697 = arith.sitofp %696 : i32 to f32
    %698 = vector.broadcast %697 : f32 to vector<1x20xf32>
    %699 = arith.mulf %407, %698 : vector<1x20xf32>
    %700 = vector.broadcast %699 : vector<1x20xf32> to vector<25x20xf32>
    %701 = arith.mulf %691, %700 : vector<25x20xf32>
    %702 = vector.extract_strided_slice %701 {offsets = [0, 0], sizes = [1, 16], strides = [1, 1]} : vector<25x20xf32> to vector<1x16xf32>
    %703 = vector.extract_strided_slice %701 {offsets = [1, 1], sizes = [1, 16], strides = [1, 1]} : vector<25x20xf32> to vector<1x16xf32>
    %704 = arith.addf %702, %703 : vector<1x16xf32>
    %705 = vector.extract_strided_slice %701 {offsets = [2, 2], sizes = [1, 16], strides = [1, 1]} : vector<25x20xf32> to vector<1x16xf32>
    %706 = arith.addf %704, %705 : vector<1x16xf32>
    %707 = vector.extract_strided_slice %701 {offsets = [3, 3], sizes = [1, 16], strides = [1, 1]} : vector<25x20xf32> to vector<1x16xf32>
    %708 = arith.addf %706, %707 : vector<1x16xf32>
    %709 = vector.extract_strided_slice %701 {offsets = [4, 4], sizes = [1, 16], strides = [1, 1]} : vector<25x20xf32> to vector<1x16xf32>
    %710 = arith.addf %708, %709 : vector<1x16xf32>
    %c0_420 = arith.constant 0 : index
    %c4_421 = arith.constant 4 : index
    %c0_422 = arith.constant 0 : index
    %711 = vector.load %arg9[%c0_420, %c4_421, %c0_422] : memref<1x8x16xf32, #tpu.memory_space<vmem>>, vector<1x1x16xf32>
    %712 = vector.shape_cast %711 : vector<1x1x16xf32> to vector<1x16xf32>
    %713 = arith.addf %712, %710 : vector<1x16xf32>
    %c0_423 = arith.constant 0 : index
    %c4_424 = arith.constant 4 : index
    %c0_425 = arith.constant 0 : index
    %714 = vector.load %arg9[%c0_423, %c4_424, %c0_425] : memref<1x8x16xf32, #tpu.memory_space<vmem>>, vector<1x1x16xf32>
    %715 = vector.shape_cast %714 : vector<1x1x16xf32> to vector<1x16xf32>
    %716 = vector.shape_cast %713 : vector<1x16xf32> to vector<1x1x16xf32>
    tpu.vector_store %arg9[%c0_423, %c4_424, %c0_425], %716 {strides = array<i32>} : memref<1x8x16xf32, #tpu.memory_space<vmem>>, vector<1x1x16xf32>,
    %717 = vector.extract_strided_slice %701 {offsets = [5, 0], sizes = [1, 16], strides = [1, 1]} : vector<25x20xf32> to vector<1x16xf32>
    %718 = vector.extract_strided_slice %701 {offsets = [6, 1], sizes = [1, 16], strides = [1, 1]} : vector<25x20xf32> to vector<1x16xf32>
    %719 = arith.addf %717, %718 : vector<1x16xf32>
    %720 = vector.extract_strided_slice %701 {offsets = [7, 2], sizes = [1, 16], strides = [1, 1]} : vector<25x20xf32> to vector<1x16xf32>
    %721 = arith.addf %719, %720 : vector<1x16xf32>
    %722 = vector.extract_strided_slice %701 {offsets = [8, 3], sizes = [1, 16], strides = [1, 1]} : vector<25x20xf32> to vector<1x16xf32>
    %723 = arith.addf %721, %722 : vector<1x16xf32>
    %724 = vector.extract_strided_slice %701 {offsets = [9, 4], sizes = [1, 16], strides = [1, 1]} : vector<25x20xf32> to vector<1x16xf32>
    %725 = arith.addf %723, %724 : vector<1x16xf32>
    %c0_426 = arith.constant 0 : index
    %c3_427 = arith.constant 3 : index
    %c0_428 = arith.constant 0 : index
    %726 = vector.load %arg9[%c0_426, %c3_427, %c0_428] : memref<1x8x16xf32, #tpu.memory_space<vmem>>, vector<1x1x16xf32>
    %727 = vector.shape_cast %726 : vector<1x1x16xf32> to vector<1x16xf32>
    %728 = arith.addf %727, %725 : vector<1x16xf32>
    %c0_429 = arith.constant 0 : index
    %c3_430 = arith.constant 3 : index
    %c0_431 = arith.constant 0 : index
    %729 = vector.load %arg9[%c0_429, %c3_430, %c0_431] : memref<1x8x16xf32, #tpu.memory_space<vmem>>, vector<1x1x16xf32>
    %730 = vector.shape_cast %729 : vector<1x1x16xf32> to vector<1x16xf32>
    %731 = vector.shape_cast %728 : vector<1x16xf32> to vector<1x1x16xf32>
    tpu.vector_store %arg9[%c0_429, %c3_430, %c0_431], %731 {strides = array<i32>} : memref<1x8x16xf32, #tpu.memory_space<vmem>>, vector<1x1x16xf32>,
    %732 = vector.extract_strided_slice %701 {offsets = [10, 0], sizes = [1, 16], strides = [1, 1]} : vector<25x20xf32> to vector<1x16xf32>
    %733 = vector.extract_strided_slice %701 {offsets = [11, 1], sizes = [1, 16], strides = [1, 1]} : vector<25x20xf32> to vector<1x16xf32>
    %734 = arith.addf %732, %733 : vector<1x16xf32>
    %735 = vector.extract_strided_slice %701 {offsets = [12, 2], sizes = [1, 16], strides = [1, 1]} : vector<25x20xf32> to vector<1x16xf32>
    %736 = arith.addf %734, %735 : vector<1x16xf32>
    %737 = vector.extract_strided_slice %701 {offsets = [13, 3], sizes = [1, 16], strides = [1, 1]} : vector<25x20xf32> to vector<1x16xf32>
    %738 = arith.addf %736, %737 : vector<1x16xf32>
    %739 = vector.extract_strided_slice %701 {offsets = [14, 4], sizes = [1, 16], strides = [1, 1]} : vector<25x20xf32> to vector<1x16xf32>
    %740 = arith.addf %738, %739 : vector<1x16xf32>
    %c0_432 = arith.constant 0 : index
    %c2_433 = arith.constant 2 : index
    %c0_434 = arith.constant 0 : index
    %741 = vector.load %arg9[%c0_432, %c2_433, %c0_434] : memref<1x8x16xf32, #tpu.memory_space<vmem>>, vector<1x1x16xf32>
    %742 = vector.shape_cast %741 : vector<1x1x16xf32> to vector<1x16xf32>
    %743 = arith.addf %742, %740 : vector<1x16xf32>
    %c0_435 = arith.constant 0 : index
    %c2_436 = arith.constant 2 : index
    %c0_437 = arith.constant 0 : index
    %744 = vector.load %arg9[%c0_435, %c2_436, %c0_437] : memref<1x8x16xf32, #tpu.memory_space<vmem>>, vector<1x1x16xf32>
    %745 = vector.shape_cast %744 : vector<1x1x16xf32> to vector<1x16xf32>
    %746 = vector.shape_cast %743 : vector<1x16xf32> to vector<1x1x16xf32>
    tpu.vector_store %arg9[%c0_435, %c2_436, %c0_437], %746 {strides = array<i32>} : memref<1x8x16xf32, #tpu.memory_space<vmem>>, vector<1x1x16xf32>,
    %747 = vector.extract_strided_slice %701 {offsets = [15, 0], sizes = [1, 16], strides = [1, 1]} : vector<25x20xf32> to vector<1x16xf32>
    %748 = vector.extract_strided_slice %701 {offsets = [16, 1], sizes = [1, 16], strides = [1, 1]} : vector<25x20xf32> to vector<1x16xf32>
    %749 = arith.addf %747, %748 : vector<1x16xf32>
    %750 = vector.extract_strided_slice %701 {offsets = [17, 2], sizes = [1, 16], strides = [1, 1]} : vector<25x20xf32> to vector<1x16xf32>
    %751 = arith.addf %749, %750 : vector<1x16xf32>
    %752 = vector.extract_strided_slice %701 {offsets = [18, 3], sizes = [1, 16], strides = [1, 1]} : vector<25x20xf32> to vector<1x16xf32>
    %753 = arith.addf %751, %752 : vector<1x16xf32>
    %754 = vector.extract_strided_slice %701 {offsets = [19, 4], sizes = [1, 16], strides = [1, 1]} : vector<25x20xf32> to vector<1x16xf32>
    %755 = arith.addf %753, %754 : vector<1x16xf32>
    %c0_438 = arith.constant 0 : index
    %c1_439 = arith.constant 1 : index
    %c0_440 = arith.constant 0 : index
    %756 = vector.load %arg9[%c0_438, %c1_439, %c0_440] : memref<1x8x16xf32, #tpu.memory_space<vmem>>, vector<1x1x16xf32>
    %757 = vector.shape_cast %756 : vector<1x1x16xf32> to vector<1x16xf32>
    %758 = arith.addf %757, %755 : vector<1x16xf32>
    %c0_441 = arith.constant 0 : index
    %c1_442 = arith.constant 1 : index
    %c0_443 = arith.constant 0 : index
    %759 = vector.load %arg9[%c0_441, %c1_442, %c0_443] : memref<1x8x16xf32, #tpu.memory_space<vmem>>, vector<1x1x16xf32>
    %760 = vector.shape_cast %759 : vector<1x1x16xf32> to vector<1x16xf32>
    %761 = vector.shape_cast %758 : vector<1x16xf32> to vector<1x1x16xf32>
    tpu.vector_store %arg9[%c0_441, %c1_442, %c0_443], %761 {strides = array<i32>} : memref<1x8x16xf32, #tpu.memory_space<vmem>>, vector<1x1x16xf32>,
    %762 = vector.extract_strided_slice %701 {offsets = [20, 0], sizes = [1, 16], strides = [1, 1]} : vector<25x20xf32> to vector<1x16xf32>
    %763 = vector.extract_strided_slice %701 {offsets = [21, 1], sizes = [1, 16], strides = [1, 1]} : vector<25x20xf32> to vector<1x16xf32>
    %764 = arith.addf %762, %763 : vector<1x16xf32>
    %765 = vector.extract_strided_slice %701 {offsets = [22, 2], sizes = [1, 16], strides = [1, 1]} : vector<25x20xf32> to vector<1x16xf32>
    %766 = arith.addf %764, %765 : vector<1x16xf32>
    %767 = vector.extract_strided_slice %701 {offsets = [23, 3], sizes = [1, 16], strides = [1, 1]} : vector<25x20xf32> to vector<1x16xf32>
    %768 = arith.addf %766, %767 : vector<1x16xf32>
    %769 = vector.extract_strided_slice %701 {offsets = [24, 4], sizes = [1, 16], strides = [1, 1]} : vector<25x20xf32> to vector<1x16xf32>
    %770 = arith.addf %768, %769 : vector<1x16xf32>
    %c0_444 = arith.constant 0 : index
    %c0_445 = arith.constant 0 : index
    %c0_446 = arith.constant 0 : index
    %771 = vector.load %arg9[%c0_444, %c0_445, %c0_446] : memref<1x8x16xf32, #tpu.memory_space<vmem>>, vector<1x1x16xf32>
    %772 = vector.shape_cast %771 : vector<1x1x16xf32> to vector<1x16xf32>
    %773 = arith.addf %772, %770 : vector<1x16xf32>
    %c0_447 = arith.constant 0 : index
    %c0_448 = arith.constant 0 : index
    %c0_449 = arith.constant 0 : index
    %774 = vector.load %arg9[%c0_447, %c0_448, %c0_449] : memref<1x8x16xf32, #tpu.memory_space<vmem>>, vector<1x1x16xf32>
    %775 = vector.shape_cast %774 : vector<1x1x16xf32> to vector<1x16xf32>
    %776 = vector.shape_cast %773 : vector<1x16xf32> to vector<1x1x16xf32>
    tpu.vector_store %arg9[%c0_447, %c0_448, %c0_449], %776 {strides = array<i32>} : memref<1x8x16xf32, #tpu.memory_space<vmem>>, vector<1x1x16xf32>,
    %c45_450 = arith.constant 45 : index
    %c0_451 = arith.constant 0 : index
    %777 = vector.load %arg10[%c45_450, %c0_451] : memref<180x20xf32, #tpu.memory_space<vmem>>, vector<81x20xf32>
    %c0_452 = arith.constant 0 : index
    %c0_453 = arith.constant 0 : index
    %778 = vector.load %arg3[%c0_452, %c0_453] : memref<64x81xf32, #tpu.memory_space<vmem>>, vector<64x81xf32>
    %cst_454 = arith.constant dense<0.000000e+00> : vector<64x20xf32>
    %779 = tpu.matmul %778, %777, %cst_454 {dimension_numbers = #tpu.dot_dimension_numbers<[1], [0], [0], [1], [0, 0, 1, 1], [], []>} : vector<64x81xf32>, vector<81x20xf32>, vector<64x20xf32> -> vector<64x20xf32>
    %c0_455 = arith.constant 0 : index
    %c0_456 = arith.constant 0 : index
    %780 = vector.load %arg4[%c0_455, %c0_456] : memref<64x1xf32, #tpu.memory_space<vmem>>, vector<64x1xf32>
    %781 = vector.broadcast %780 : vector<64x1xf32> to vector<64x20xf32>
    %782 = arith.addf %779, %781 : vector<64x20xf32>
    %cst_457 = arith.constant 0.000000e+00 : f32
    %783 = vector.broadcast %cst_457 : f32 to vector<64x20xf32>
    %784 = arith.maximumf %782, %783 : vector<64x20xf32>
    %c0_458 = arith.constant 0 : index
    %c0_459 = arith.constant 0 : index
    %785 = vector.load %arg5[%c0_458, %c0_459] : memref<32x64xf32, #tpu.memory_space<vmem>>, vector<32x64xf32>
    %cst_460 = arith.constant dense<0.000000e+00> : vector<32x20xf32>
    %786 = tpu.matmul %785, %784, %cst_460 {dimension_numbers = #tpu.dot_dimension_numbers<[1], [0], [0], [1], [0, 0, 1, 1], [], []>} : vector<32x64xf32>, vector<64x20xf32>, vector<32x20xf32> -> vector<32x20xf32>
    %c0_461 = arith.constant 0 : index
    %c0_462 = arith.constant 0 : index
    %787 = vector.load %arg6[%c0_461, %c0_462] : memref<32x1xf32, #tpu.memory_space<vmem>>, vector<32x1xf32>
    %788 = vector.broadcast %787 : vector<32x1xf32> to vector<32x20xf32>
    %789 = arith.addf %786, %788 : vector<32x20xf32>
    %cst_463 = arith.constant 0.000000e+00 : f32
    %790 = vector.broadcast %cst_463 : f32 to vector<32x20xf32>
    %791 = arith.maximumf %789, %790 : vector<32x20xf32>
    %c0_464 = arith.constant 0 : index
    %c0_465 = arith.constant 0 : index
    %792 = vector.load %arg7[%c0_464, %c0_465] : memref<25x32xf32, #tpu.memory_space<vmem>>, vector<25x32xf32>
    %cst_466 = arith.constant dense<0.000000e+00> : vector<25x20xf32>
    %793 = tpu.matmul %792, %791, %cst_466 {dimension_numbers = #tpu.dot_dimension_numbers<[1], [0], [0], [1], [0, 0, 1, 1], [], []>} : vector<25x32xf32>, vector<32x20xf32>, vector<25x20xf32> -> vector<25x20xf32>
    %c5_i32 = arith.constant 5 : i32
    %794 = arith.addi %409, %c5_i32 : i32
    %c0_i32_467 = arith.constant 0 : i32
    %795 = arith.cmpi sge, %794, %c0_i32_467 : i32
    %c16_i32_468 = arith.constant 16 : i32
    %796 = arith.cmpi slt, %794, %c16_i32_468 : i32
    %797 = arith.andi %795, %796 : i1
    %798 = arith.extui %797 : i1 to i32
    %799 = arith.sitofp %798 : i32 to f32
    %800 = vector.broadcast %799 : f32 to vector<1x20xf32>
    %801 = arith.mulf %407, %800 : vector<1x20xf32>
    %802 = vector.broadcast %801 : vector<1x20xf32> to vector<25x20xf32>
    %803 = arith.mulf %793, %802 : vector<25x20xf32>
    %804 = vector.extract_strided_slice %803 {offsets = [0, 0], sizes = [1, 16], strides = [1, 1]} : vector<25x20xf32> to vector<1x16xf32>
    %805 = vector.extract_strided_slice %803 {offsets = [1, 1], sizes = [1, 16], strides = [1, 1]} : vector<25x20xf32> to vector<1x16xf32>
    %806 = arith.addf %804, %805 : vector<1x16xf32>
    %807 = vector.extract_strided_slice %803 {offsets = [2, 2], sizes = [1, 16], strides = [1, 1]} : vector<25x20xf32> to vector<1x16xf32>
    %808 = arith.addf %806, %807 : vector<1x16xf32>
    %809 = vector.extract_strided_slice %803 {offsets = [3, 3], sizes = [1, 16], strides = [1, 1]} : vector<25x20xf32> to vector<1x16xf32>
    %810 = arith.addf %808, %809 : vector<1x16xf32>
    %811 = vector.extract_strided_slice %803 {offsets = [4, 4], sizes = [1, 16], strides = [1, 1]} : vector<25x20xf32> to vector<1x16xf32>
    %812 = arith.addf %810, %811 : vector<1x16xf32>
    %c0_469 = arith.constant 0 : index
    %c5_470 = arith.constant 5 : index
    %c0_471 = arith.constant 0 : index
    %813 = vector.load %arg9[%c0_469, %c5_470, %c0_471] : memref<1x8x16xf32, #tpu.memory_space<vmem>>, vector<1x1x16xf32>
    %814 = vector.shape_cast %813 : vector<1x1x16xf32> to vector<1x16xf32>
    %815 = arith.addf %814, %812 : vector<1x16xf32>
    %c0_472 = arith.constant 0 : index
    %c5_473 = arith.constant 5 : index
    %c0_474 = arith.constant 0 : index
    %816 = vector.load %arg9[%c0_472, %c5_473, %c0_474] : memref<1x8x16xf32, #tpu.memory_space<vmem>>, vector<1x1x16xf32>
    %817 = vector.shape_cast %816 : vector<1x1x16xf32> to vector<1x16xf32>
    %818 = vector.shape_cast %815 : vector<1x16xf32> to vector<1x1x16xf32>
    tpu.vector_store %arg9[%c0_472, %c5_473, %c0_474], %818 {strides = array<i32>} : memref<1x8x16xf32, #tpu.memory_space<vmem>>, vector<1x1x16xf32>,
    %819 = vector.extract_strided_slice %803 {offsets = [5, 0], sizes = [1, 16], strides = [1, 1]} : vector<25x20xf32> to vector<1x16xf32>
    %820 = vector.extract_strided_slice %803 {offsets = [6, 1], sizes = [1, 16], strides = [1, 1]} : vector<25x20xf32> to vector<1x16xf32>
    %821 = arith.addf %819, %820 : vector<1x16xf32>
    %822 = vector.extract_strided_slice %803 {offsets = [7, 2], sizes = [1, 16], strides = [1, 1]} : vector<25x20xf32> to vector<1x16xf32>
    %823 = arith.addf %821, %822 : vector<1x16xf32>
    %824 = vector.extract_strided_slice %803 {offsets = [8, 3], sizes = [1, 16], strides = [1, 1]} : vector<25x20xf32> to vector<1x16xf32>
    %825 = arith.addf %823, %824 : vector<1x16xf32>
    %826 = vector.extract_strided_slice %803 {offsets = [9, 4], sizes = [1, 16], strides = [1, 1]} : vector<25x20xf32> to vector<1x16xf32>
    %827 = arith.addf %825, %826 : vector<1x16xf32>
    %c0_475 = arith.constant 0 : index
    %c4_476 = arith.constant 4 : index
    %c0_477 = arith.constant 0 : index
    %828 = vector.load %arg9[%c0_475, %c4_476, %c0_477] : memref<1x8x16xf32, #tpu.memory_space<vmem>>, vector<1x1x16xf32>
    %829 = vector.shape_cast %828 : vector<1x1x16xf32> to vector<1x16xf32>
    %830 = arith.addf %829, %827 : vector<1x16xf32>
    %c0_478 = arith.constant 0 : index
    %c4_479 = arith.constant 4 : index
    %c0_480 = arith.constant 0 : index
    %831 = vector.load %arg9[%c0_478, %c4_479, %c0_480] : memref<1x8x16xf32, #tpu.memory_space<vmem>>, vector<1x1x16xf32>
    %832 = vector.shape_cast %831 : vector<1x1x16xf32> to vector<1x16xf32>
    %833 = vector.shape_cast %830 : vector<1x16xf32> to vector<1x1x16xf32>
    tpu.vector_store %arg9[%c0_478, %c4_479, %c0_480], %833 {strides = array<i32>} : memref<1x8x16xf32, #tpu.memory_space<vmem>>, vector<1x1x16xf32>,
    %834 = vector.extract_strided_slice %803 {offsets = [10, 0], sizes = [1, 16], strides = [1, 1]} : vector<25x20xf32> to vector<1x16xf32>
    %835 = vector.extract_strided_slice %803 {offsets = [11, 1], sizes = [1, 16], strides = [1, 1]} : vector<25x20xf32> to vector<1x16xf32>
    %836 = arith.addf %834, %835 : vector<1x16xf32>
    %837 = vector.extract_strided_slice %803 {offsets = [12, 2], sizes = [1, 16], strides = [1, 1]} : vector<25x20xf32> to vector<1x16xf32>
    %838 = arith.addf %836, %837 : vector<1x16xf32>
    %839 = vector.extract_strided_slice %803 {offsets = [13, 3], sizes = [1, 16], strides = [1, 1]} : vector<25x20xf32> to vector<1x16xf32>
    %840 = arith.addf %838, %839 : vector<1x16xf32>
    %841 = vector.extract_strided_slice %803 {offsets = [14, 4], sizes = [1, 16], strides = [1, 1]} : vector<25x20xf32> to vector<1x16xf32>
    %842 = arith.addf %840, %841 : vector<1x16xf32>
    %c0_481 = arith.constant 0 : index
    %c3_482 = arith.constant 3 : index
    %c0_483 = arith.constant 0 : index
    %843 = vector.load %arg9[%c0_481, %c3_482, %c0_483] : memref<1x8x16xf32, #tpu.memory_space<vmem>>, vector<1x1x16xf32>
    %844 = vector.shape_cast %843 : vector<1x1x16xf32> to vector<1x16xf32>
    %845 = arith.addf %844, %842 : vector<1x16xf32>
    %c0_484 = arith.constant 0 : index
    %c3_485 = arith.constant 3 : index
    %c0_486 = arith.constant 0 : index
    %846 = vector.load %arg9[%c0_484, %c3_485, %c0_486] : memref<1x8x16xf32, #tpu.memory_space<vmem>>, vector<1x1x16xf32>
    %847 = vector.shape_cast %846 : vector<1x1x16xf32> to vector<1x16xf32>
    %848 = vector.shape_cast %845 : vector<1x16xf32> to vector<1x1x16xf32>
    tpu.vector_store %arg9[%c0_484, %c3_485, %c0_486], %848 {strides = array<i32>} : memref<1x8x16xf32, #tpu.memory_space<vmem>>, vector<1x1x16xf32>,
    %849 = vector.extract_strided_slice %803 {offsets = [15, 0], sizes = [1, 16], strides = [1, 1]} : vector<25x20xf32> to vector<1x16xf32>
    %850 = vector.extract_strided_slice %803 {offsets = [16, 1], sizes = [1, 16], strides = [1, 1]} : vector<25x20xf32> to vector<1x16xf32>
    %851 = arith.addf %849, %850 : vector<1x16xf32>
    %852 = vector.extract_strided_slice %803 {offsets = [17, 2], sizes = [1, 16], strides = [1, 1]} : vector<25x20xf32> to vector<1x16xf32>
    %853 = arith.addf %851, %852 : vector<1x16xf32>
    %854 = vector.extract_strided_slice %803 {offsets = [18, 3], sizes = [1, 16], strides = [1, 1]} : vector<25x20xf32> to vector<1x16xf32>
    %855 = arith.addf %853, %854 : vector<1x16xf32>
    %856 = vector.extract_strided_slice %803 {offsets = [19, 4], sizes = [1, 16], strides = [1, 1]} : vector<25x20xf32> to vector<1x16xf32>
    %857 = arith.addf %855, %856 : vector<1x16xf32>
    %c0_487 = arith.constant 0 : index
    %c2_488 = arith.constant 2 : index
    %c0_489 = arith.constant 0 : index
    %858 = vector.load %arg9[%c0_487, %c2_488, %c0_489] : memref<1x8x16xf32, #tpu.memory_space<vmem>>, vector<1x1x16xf32>
    %859 = vector.shape_cast %858 : vector<1x1x16xf32> to vector<1x16xf32>
    %860 = arith.addf %859, %857 : vector<1x16xf32>
    %c0_490 = arith.constant 0 : index
    %c2_491 = arith.constant 2 : index
    %c0_492 = arith.constant 0 : index
    %861 = vector.load %arg9[%c0_490, %c2_491, %c0_492] : memref<1x8x16xf32, #tpu.memory_space<vmem>>, vector<1x1x16xf32>
    %862 = vector.shape_cast %861 : vector<1x1x16xf32> to vector<1x16xf32>
    %863 = vector.shape_cast %860 : vector<1x16xf32> to vector<1x1x16xf32>
    tpu.vector_store %arg9[%c0_490, %c2_491, %c0_492], %863 {strides = array<i32>} : memref<1x8x16xf32, #tpu.memory_space<vmem>>, vector<1x1x16xf32>,
    %864 = vector.extract_strided_slice %803 {offsets = [20, 0], sizes = [1, 16], strides = [1, 1]} : vector<25x20xf32> to vector<1x16xf32>
    %865 = vector.extract_strided_slice %803 {offsets = [21, 1], sizes = [1, 16], strides = [1, 1]} : vector<25x20xf32> to vector<1x16xf32>
    %866 = arith.addf %864, %865 : vector<1x16xf32>
    %867 = vector.extract_strided_slice %803 {offsets = [22, 2], sizes = [1, 16], strides = [1, 1]} : vector<25x20xf32> to vector<1x16xf32>
    %868 = arith.addf %866, %867 : vector<1x16xf32>
    %869 = vector.extract_strided_slice %803 {offsets = [23, 3], sizes = [1, 16], strides = [1, 1]} : vector<25x20xf32> to vector<1x16xf32>
    %870 = arith.addf %868, %869 : vector<1x16xf32>
    %871 = vector.extract_strided_slice %803 {offsets = [24, 4], sizes = [1, 16], strides = [1, 1]} : vector<25x20xf32> to vector<1x16xf32>
    %872 = arith.addf %870, %871 : vector<1x16xf32>
    %c0_493 = arith.constant 0 : index
    %c1_494 = arith.constant 1 : index
    %c0_495 = arith.constant 0 : index
    %873 = vector.load %arg9[%c0_493, %c1_494, %c0_495] : memref<1x8x16xf32, #tpu.memory_space<vmem>>, vector<1x1x16xf32>
    %874 = vector.shape_cast %873 : vector<1x1x16xf32> to vector<1x16xf32>
    %875 = arith.addf %874, %872 : vector<1x16xf32>
    %c0_496 = arith.constant 0 : index
    %c1_497 = arith.constant 1 : index
    %c0_498 = arith.constant 0 : index
    %876 = vector.load %arg9[%c0_496, %c1_497, %c0_498] : memref<1x8x16xf32, #tpu.memory_space<vmem>>, vector<1x1x16xf32>
    %877 = vector.shape_cast %876 : vector<1x1x16xf32> to vector<1x16xf32>
    %878 = vector.shape_cast %875 : vector<1x16xf32> to vector<1x1x16xf32>
    tpu.vector_store %arg9[%c0_496, %c1_497, %c0_498], %878 {strides = array<i32>} : memref<1x8x16xf32, #tpu.memory_space<vmem>>, vector<1x1x16xf32>,
    %c54_499 = arith.constant 54 : index
    %c0_500 = arith.constant 0 : index
    %879 = vector.load %arg10[%c54_499, %c0_500] : memref<180x20xf32, #tpu.memory_space<vmem>>, vector<81x20xf32>
    %c0_501 = arith.constant 0 : index
    %c0_502 = arith.constant 0 : index
    %880 = vector.load %arg3[%c0_501, %c0_502] : memref<64x81xf32, #tpu.memory_space<vmem>>, vector<64x81xf32>
    %cst_503 = arith.constant dense<0.000000e+00> : vector<64x20xf32>
    %881 = tpu.matmul %880, %879, %cst_503 {dimension_numbers = #tpu.dot_dimension_numbers<[1], [0], [0], [1], [0, 0, 1, 1], [], []>} : vector<64x81xf32>, vector<81x20xf32>, vector<64x20xf32> -> vector<64x20xf32>
    %c0_504 = arith.constant 0 : index
    %c0_505 = arith.constant 0 : index
    %882 = vector.load %arg4[%c0_504, %c0_505] : memref<64x1xf32, #tpu.memory_space<vmem>>, vector<64x1xf32>
    %883 = vector.broadcast %882 : vector<64x1xf32> to vector<64x20xf32>
    %884 = arith.addf %881, %883 : vector<64x20xf32>
    %cst_506 = arith.constant 0.000000e+00 : f32
    %885 = vector.broadcast %cst_506 : f32 to vector<64x20xf32>
    %886 = arith.maximumf %884, %885 : vector<64x20xf32>
    %c0_507 = arith.constant 0 : index
    %c0_508 = arith.constant 0 : index
    %887 = vector.load %arg5[%c0_507, %c0_508] : memref<32x64xf32, #tpu.memory_space<vmem>>, vector<32x64xf32>
    %cst_509 = arith.constant dense<0.000000e+00> : vector<32x20xf32>
    %888 = tpu.matmul %887, %886, %cst_509 {dimension_numbers = #tpu.dot_dimension_numbers<[1], [0], [0], [1], [0, 0, 1, 1], [], []>} : vector<32x64xf32>, vector<64x20xf32>, vector<32x20xf32> -> vector<32x20xf32>
    %c0_510 = arith.constant 0 : index
    %c0_511 = arith.constant 0 : index
    %889 = vector.load %arg6[%c0_510, %c0_511] : memref<32x1xf32, #tpu.memory_space<vmem>>, vector<32x1xf32>
    %890 = vector.broadcast %889 : vector<32x1xf32> to vector<32x20xf32>
    %891 = arith.addf %888, %890 : vector<32x20xf32>
    %cst_512 = arith.constant 0.000000e+00 : f32
    %892 = vector.broadcast %cst_512 : f32 to vector<32x20xf32>
    %893 = arith.maximumf %891, %892 : vector<32x20xf32>
    %c0_513 = arith.constant 0 : index
    %c0_514 = arith.constant 0 : index
    %894 = vector.load %arg7[%c0_513, %c0_514] : memref<25x32xf32, #tpu.memory_space<vmem>>, vector<25x32xf32>
    %cst_515 = arith.constant dense<0.000000e+00> : vector<25x20xf32>
    %895 = tpu.matmul %894, %893, %cst_515 {dimension_numbers = #tpu.dot_dimension_numbers<[1], [0], [0], [1], [0, 0, 1, 1], [], []>} : vector<25x32xf32>, vector<32x20xf32>, vector<25x20xf32> -> vector<25x20xf32>
    %c6_i32 = arith.constant 6 : i32
    %896 = arith.addi %409, %c6_i32 : i32
    %c0_i32_516 = arith.constant 0 : i32
    %897 = arith.cmpi sge, %896, %c0_i32_516 : i32
    %c16_i32_517 = arith.constant 16 : i32
    %898 = arith.cmpi slt, %896, %c16_i32_517 : i32
    %899 = arith.andi %897, %898 : i1
    %900 = arith.extui %899 : i1 to i32
    %901 = arith.sitofp %900 : i32 to f32
    %902 = vector.broadcast %901 : f32 to vector<1x20xf32>
    %903 = arith.mulf %407, %902 : vector<1x20xf32>
    %904 = vector.broadcast %903 : vector<1x20xf32> to vector<25x20xf32>
    %905 = arith.mulf %895, %904 : vector<25x20xf32>
    %906 = vector.extract_strided_slice %905 {offsets = [0, 0], sizes = [1, 16], strides = [1, 1]} : vector<25x20xf32> to vector<1x16xf32>
    %907 = vector.extract_strided_slice %905 {offsets = [1, 1], sizes = [1, 16], strides = [1, 1]} : vector<25x20xf32> to vector<1x16xf32>
    %908 = arith.addf %906, %907 : vector<1x16xf32>
    %909 = vector.extract_strided_slice %905 {offsets = [2, 2], sizes = [1, 16], strides = [1, 1]} : vector<25x20xf32> to vector<1x16xf32>
    %910 = arith.addf %908, %909 : vector<1x16xf32>
    %911 = vector.extract_strided_slice %905 {offsets = [3, 3], sizes = [1, 16], strides = [1, 1]} : vector<25x20xf32> to vector<1x16xf32>
    %912 = arith.addf %910, %911 : vector<1x16xf32>
    %913 = vector.extract_strided_slice %905 {offsets = [4, 4], sizes = [1, 16], strides = [1, 1]} : vector<25x20xf32> to vector<1x16xf32>
    %914 = arith.addf %912, %913 : vector<1x16xf32>
    %c0_518 = arith.constant 0 : index
    %c6_519 = arith.constant 6 : index
    %c0_520 = arith.constant 0 : index
    %915 = vector.load %arg9[%c0_518, %c6_519, %c0_520] : memref<1x8x16xf32, #tpu.memory_space<vmem>>, vector<1x1x16xf32>
    %916 = vector.shape_cast %915 : vector<1x1x16xf32> to vector<1x16xf32>
    %917 = arith.addf %916, %914 : vector<1x16xf32>
    %c0_521 = arith.constant 0 : index
    %c6_522 = arith.constant 6 : index
    %c0_523 = arith.constant 0 : index
    %918 = vector.load %arg9[%c0_521, %c6_522, %c0_523] : memref<1x8x16xf32, #tpu.memory_space<vmem>>, vector<1x1x16xf32>
    %919 = vector.shape_cast %918 : vector<1x1x16xf32> to vector<1x16xf32>
    %920 = vector.shape_cast %917 : vector<1x16xf32> to vector<1x1x16xf32>
    tpu.vector_store %arg9[%c0_521, %c6_522, %c0_523], %920 {strides = array<i32>} : memref<1x8x16xf32, #tpu.memory_space<vmem>>, vector<1x1x16xf32>,
    %921 = vector.extract_strided_slice %905 {offsets = [5, 0], sizes = [1, 16], strides = [1, 1]} : vector<25x20xf32> to vector<1x16xf32>
    %922 = vector.extract_strided_slice %905 {offsets = [6, 1], sizes = [1, 16], strides = [1, 1]} : vector<25x20xf32> to vector<1x16xf32>
    %923 = arith.addf %921, %922 : vector<1x16xf32>
    %924 = vector.extract_strided_slice %905 {offsets = [7, 2], sizes = [1, 16], strides = [1, 1]} : vector<25x20xf32> to vector<1x16xf32>
    %925 = arith.addf %923, %924 : vector<1x16xf32>
    %926 = vector.extract_strided_slice %905 {offsets = [8, 3], sizes = [1, 16], strides = [1, 1]} : vector<25x20xf32> to vector<1x16xf32>
    %927 = arith.addf %925, %926 : vector<1x16xf32>
    %928 = vector.extract_strided_slice %905 {offsets = [9, 4], sizes = [1, 16], strides = [1, 1]} : vector<25x20xf32> to vector<1x16xf32>
    %929 = arith.addf %927, %928 : vector<1x16xf32>
    %c0_524 = arith.constant 0 : index
    %c5_525 = arith.constant 5 : index
    %c0_526 = arith.constant 0 : index
    %930 = vector.load %arg9[%c0_524, %c5_525, %c0_526] : memref<1x8x16xf32, #tpu.memory_space<vmem>>, vector<1x1x16xf32>
    %931 = vector.shape_cast %930 : vector<1x1x16xf32> to vector<1x16xf32>
    %932 = arith.addf %931, %929 : vector<1x16xf32>
    %c0_527 = arith.constant 0 : index
    %c5_528 = arith.constant 5 : index
    %c0_529 = arith.constant 0 : index
    %933 = vector.load %arg9[%c0_527, %c5_528, %c0_529] : memref<1x8x16xf32, #tpu.memory_space<vmem>>, vector<1x1x16xf32>
    %934 = vector.shape_cast %933 : vector<1x1x16xf32> to vector<1x16xf32>
    %935 = vector.shape_cast %932 : vector<1x16xf32> to vector<1x1x16xf32>
    tpu.vector_store %arg9[%c0_527, %c5_528, %c0_529], %935 {strides = array<i32>} : memref<1x8x16xf32, #tpu.memory_space<vmem>>, vector<1x1x16xf32>,
    %936 = vector.extract_strided_slice %905 {offsets = [10, 0], sizes = [1, 16], strides = [1, 1]} : vector<25x20xf32> to vector<1x16xf32>
    %937 = vector.extract_strided_slice %905 {offsets = [11, 1], sizes = [1, 16], strides = [1, 1]} : vector<25x20xf32> to vector<1x16xf32>
    %938 = arith.addf %936, %937 : vector<1x16xf32>
    %939 = vector.extract_strided_slice %905 {offsets = [12, 2], sizes = [1, 16], strides = [1, 1]} : vector<25x20xf32> to vector<1x16xf32>
    %940 = arith.addf %938, %939 : vector<1x16xf32>
    %941 = vector.extract_strided_slice %905 {offsets = [13, 3], sizes = [1, 16], strides = [1, 1]} : vector<25x20xf32> to vector<1x16xf32>
    %942 = arith.addf %940, %941 : vector<1x16xf32>
    %943 = vector.extract_strided_slice %905 {offsets = [14, 4], sizes = [1, 16], strides = [1, 1]} : vector<25x20xf32> to vector<1x16xf32>
    %944 = arith.addf %942, %943 : vector<1x16xf32>
    %c0_530 = arith.constant 0 : index
    %c4_531 = arith.constant 4 : index
    %c0_532 = arith.constant 0 : index
    %945 = vector.load %arg9[%c0_530, %c4_531, %c0_532] : memref<1x8x16xf32, #tpu.memory_space<vmem>>, vector<1x1x16xf32>
    %946 = vector.shape_cast %945 : vector<1x1x16xf32> to vector<1x16xf32>
    %947 = arith.addf %946, %944 : vector<1x16xf32>
    %c0_533 = arith.constant 0 : index
    %c4_534 = arith.constant 4 : index
    %c0_535 = arith.constant 0 : index
    %948 = vector.load %arg9[%c0_533, %c4_534, %c0_535] : memref<1x8x16xf32, #tpu.memory_space<vmem>>, vector<1x1x16xf32>
    %949 = vector.shape_cast %948 : vector<1x1x16xf32> to vector<1x16xf32>
    %950 = vector.shape_cast %947 : vector<1x16xf32> to vector<1x1x16xf32>
    tpu.vector_store %arg9[%c0_533, %c4_534, %c0_535], %950 {strides = array<i32>} : memref<1x8x16xf32, #tpu.memory_space<vmem>>, vector<1x1x16xf32>,
    %951 = vector.extract_strided_slice %905 {offsets = [15, 0], sizes = [1, 16], strides = [1, 1]} : vector<25x20xf32> to vector<1x16xf32>
    %952 = vector.extract_strided_slice %905 {offsets = [16, 1], sizes = [1, 16], strides = [1, 1]} : vector<25x20xf32> to vector<1x16xf32>
    %953 = arith.addf %951, %952 : vector<1x16xf32>
    %954 = vector.extract_strided_slice %905 {offsets = [17, 2], sizes = [1, 16], strides = [1, 1]} : vector<25x20xf32> to vector<1x16xf32>
    %955 = arith.addf %953, %954 : vector<1x16xf32>
    %956 = vector.extract_strided_slice %905 {offsets = [18, 3], sizes = [1, 16], strides = [1, 1]} : vector<25x20xf32> to vector<1x16xf32>
    %957 = arith.addf %955, %956 : vector<1x16xf32>
    %958 = vector.extract_strided_slice %905 {offsets = [19, 4], sizes = [1, 16], strides = [1, 1]} : vector<25x20xf32> to vector<1x16xf32>
    %959 = arith.addf %957, %958 : vector<1x16xf32>
    %c0_536 = arith.constant 0 : index
    %c3_537 = arith.constant 3 : index
    %c0_538 = arith.constant 0 : index
    %960 = vector.load %arg9[%c0_536, %c3_537, %c0_538] : memref<1x8x16xf32, #tpu.memory_space<vmem>>, vector<1x1x16xf32>
    %961 = vector.shape_cast %960 : vector<1x1x16xf32> to vector<1x16xf32>
    %962 = arith.addf %961, %959 : vector<1x16xf32>
    %c0_539 = arith.constant 0 : index
    %c3_540 = arith.constant 3 : index
    %c0_541 = arith.constant 0 : index
    %963 = vector.load %arg9[%c0_539, %c3_540, %c0_541] : memref<1x8x16xf32, #tpu.memory_space<vmem>>, vector<1x1x16xf32>
    %964 = vector.shape_cast %963 : vector<1x1x16xf32> to vector<1x16xf32>
    %965 = vector.shape_cast %962 : vector<1x16xf32> to vector<1x1x16xf32>
    tpu.vector_store %arg9[%c0_539, %c3_540, %c0_541], %965 {strides = array<i32>} : memref<1x8x16xf32, #tpu.memory_space<vmem>>, vector<1x1x16xf32>,
    %966 = vector.extract_strided_slice %905 {offsets = [20, 0], sizes = [1, 16], strides = [1, 1]} : vector<25x20xf32> to vector<1x16xf32>
    %967 = vector.extract_strided_slice %905 {offsets = [21, 1], sizes = [1, 16], strides = [1, 1]} : vector<25x20xf32> to vector<1x16xf32>
    %968 = arith.addf %966, %967 : vector<1x16xf32>
    %969 = vector.extract_strided_slice %905 {offsets = [22, 2], sizes = [1, 16], strides = [1, 1]} : vector<25x20xf32> to vector<1x16xf32>
    %970 = arith.addf %968, %969 : vector<1x16xf32>
    %971 = vector.extract_strided_slice %905 {offsets = [23, 3], sizes = [1, 16], strides = [1, 1]} : vector<25x20xf32> to vector<1x16xf32>
    %972 = arith.addf %970, %971 : vector<1x16xf32>
    %973 = vector.extract_strided_slice %905 {offsets = [24, 4], sizes = [1, 16], strides = [1, 1]} : vector<25x20xf32> to vector<1x16xf32>
    %974 = arith.addf %972, %973 : vector<1x16xf32>
    %c0_542 = arith.constant 0 : index
    %c2_543 = arith.constant 2 : index
    %c0_544 = arith.constant 0 : index
    %975 = vector.load %arg9[%c0_542, %c2_543, %c0_544] : memref<1x8x16xf32, #tpu.memory_space<vmem>>, vector<1x1x16xf32>
    %976 = vector.shape_cast %975 : vector<1x1x16xf32> to vector<1x16xf32>
    %977 = arith.addf %976, %974 : vector<1x16xf32>
    %c0_545 = arith.constant 0 : index
    %c2_546 = arith.constant 2 : index
    %c0_547 = arith.constant 0 : index
    %978 = vector.load %arg9[%c0_545, %c2_546, %c0_547] : memref<1x8x16xf32, #tpu.memory_space<vmem>>, vector<1x1x16xf32>
    %979 = vector.shape_cast %978 : vector<1x1x16xf32> to vector<1x16xf32>
    %980 = vector.shape_cast %977 : vector<1x16xf32> to vector<1x1x16xf32>
    tpu.vector_store %arg9[%c0_545, %c2_546, %c0_547], %980 {strides = array<i32>} : memref<1x8x16xf32, #tpu.memory_space<vmem>>, vector<1x1x16xf32>,
    %c63_548 = arith.constant 63 : index
    %c0_549 = arith.constant 0 : index
    %981 = vector.load %arg10[%c63_548, %c0_549] : memref<180x20xf32, #tpu.memory_space<vmem>>, vector<81x20xf32>
    %c0_550 = arith.constant 0 : index
    %c0_551 = arith.constant 0 : index
    %982 = vector.load %arg3[%c0_550, %c0_551] : memref<64x81xf32, #tpu.memory_space<vmem>>, vector<64x81xf32>
    %cst_552 = arith.constant dense<0.000000e+00> : vector<64x20xf32>
    %983 = tpu.matmul %982, %981, %cst_552 {dimension_numbers = #tpu.dot_dimension_numbers<[1], [0], [0], [1], [0, 0, 1, 1], [], []>} : vector<64x81xf32>, vector<81x20xf32>, vector<64x20xf32> -> vector<64x20xf32>
    %c0_553 = arith.constant 0 : index
    %c0_554 = arith.constant 0 : index
    %984 = vector.load %arg4[%c0_553, %c0_554] : memref<64x1xf32, #tpu.memory_space<vmem>>, vector<64x1xf32>
    %985 = vector.broadcast %984 : vector<64x1xf32> to vector<64x20xf32>
    %986 = arith.addf %983, %985 : vector<64x20xf32>
    %cst_555 = arith.constant 0.000000e+00 : f32
    %987 = vector.broadcast %cst_555 : f32 to vector<64x20xf32>
    %988 = arith.maximumf %986, %987 : vector<64x20xf32>
    %c0_556 = arith.constant 0 : index
    %c0_557 = arith.constant 0 : index
    %989 = vector.load %arg5[%c0_556, %c0_557] : memref<32x64xf32, #tpu.memory_space<vmem>>, vector<32x64xf32>
    %cst_558 = arith.constant dense<0.000000e+00> : vector<32x20xf32>
    %990 = tpu.matmul %989, %988, %cst_558 {dimension_numbers = #tpu.dot_dimension_numbers<[1], [0], [0], [1], [0, 0, 1, 1], [], []>} : vector<32x64xf32>, vector<64x20xf32>, vector<32x20xf32> -> vector<32x20xf32>
    %c0_559 = arith.constant 0 : index
    %c0_560 = arith.constant 0 : index
    %991 = vector.load %arg6[%c0_559, %c0_560] : memref<32x1xf32, #tpu.memory_space<vmem>>, vector<32x1xf32>
    %992 = vector.broadcast %991 : vector<32x1xf32> to vector<32x20xf32>
    %993 = arith.addf %990, %992 : vector<32x20xf32>
    %cst_561 = arith.constant 0.000000e+00 : f32
    %994 = vector.broadcast %cst_561 : f32 to vector<32x20xf32>
    %995 = arith.maximumf %993, %994 : vector<32x20xf32>
    %c0_562 = arith.constant 0 : index
    %c0_563 = arith.constant 0 : index
    %996 = vector.load %arg7[%c0_562, %c0_563] : memref<25x32xf32, #tpu.memory_space<vmem>>, vector<25x32xf32>
    %cst_564 = arith.constant dense<0.000000e+00> : vector<25x20xf32>
    %997 = tpu.matmul %996, %995, %cst_564 {dimension_numbers = #tpu.dot_dimension_numbers<[1], [0], [0], [1], [0, 0, 1, 1], [], []>} : vector<25x32xf32>, vector<32x20xf32>, vector<25x20xf32> -> vector<25x20xf32>
    %c7_i32 = arith.constant 7 : i32
    %998 = arith.addi %409, %c7_i32 : i32
    %c0_i32_565 = arith.constant 0 : i32
    %999 = arith.cmpi sge, %998, %c0_i32_565 : i32
    %c16_i32_566 = arith.constant 16 : i32
    %1000 = arith.cmpi slt, %998, %c16_i32_566 : i32
    %1001 = arith.andi %999, %1000 : i1
    %1002 = arith.extui %1001 : i1 to i32
    %1003 = arith.sitofp %1002 : i32 to f32
    %1004 = vector.broadcast %1003 : f32 to vector<1x20xf32>
    %1005 = arith.mulf %407, %1004 : vector<1x20xf32>
    %1006 = vector.broadcast %1005 : vector<1x20xf32> to vector<25x20xf32>
    %1007 = arith.mulf %997, %1006 : vector<25x20xf32>
    %1008 = vector.extract_strided_slice %1007 {offsets = [0, 0], sizes = [1, 16], strides = [1, 1]} : vector<25x20xf32> to vector<1x16xf32>
    %1009 = vector.extract_strided_slice %1007 {offsets = [1, 1], sizes = [1, 16], strides = [1, 1]} : vector<25x20xf32> to vector<1x16xf32>
    %1010 = arith.addf %1008, %1009 : vector<1x16xf32>
    %1011 = vector.extract_strided_slice %1007 {offsets = [2, 2], sizes = [1, 16], strides = [1, 1]} : vector<25x20xf32> to vector<1x16xf32>
    %1012 = arith.addf %1010, %1011 : vector<1x16xf32>
    %1013 = vector.extract_strided_slice %1007 {offsets = [3, 3], sizes = [1, 16], strides = [1, 1]} : vector<25x20xf32> to vector<1x16xf32>
    %1014 = arith.addf %1012, %1013 : vector<1x16xf32>
    %1015 = vector.extract_strided_slice %1007 {offsets = [4, 4], sizes = [1, 16], strides = [1, 1]} : vector<25x20xf32> to vector<1x16xf32>
    %1016 = arith.addf %1014, %1015 : vector<1x16xf32>
    %c0_567 = arith.constant 0 : index
    %c7_568 = arith.constant 7 : index
    %c0_569 = arith.constant 0 : index
    %1017 = vector.load %arg9[%c0_567, %c7_568, %c0_569] : memref<1x8x16xf32, #tpu.memory_space<vmem>>, vector<1x1x16xf32>
    %1018 = vector.shape_cast %1017 : vector<1x1x16xf32> to vector<1x16xf32>
    %1019 = arith.addf %1018, %1016 : vector<1x16xf32>
    %c0_570 = arith.constant 0 : index
    %c7_571 = arith.constant 7 : index
    %c0_572 = arith.constant 0 : index
    %1020 = vector.load %arg9[%c0_570, %c7_571, %c0_572] : memref<1x8x16xf32, #tpu.memory_space<vmem>>, vector<1x1x16xf32>
    %1021 = vector.shape_cast %1020 : vector<1x1x16xf32> to vector<1x16xf32>
    %1022 = vector.shape_cast %1019 : vector<1x16xf32> to vector<1x1x16xf32>
    tpu.vector_store %arg9[%c0_570, %c7_571, %c0_572], %1022 {strides = array<i32>} : memref<1x8x16xf32, #tpu.memory_space<vmem>>, vector<1x1x16xf32>,
    %1023 = vector.extract_strided_slice %1007 {offsets = [5, 0], sizes = [1, 16], strides = [1, 1]} : vector<25x20xf32> to vector<1x16xf32>
    %1024 = vector.extract_strided_slice %1007 {offsets = [6, 1], sizes = [1, 16], strides = [1, 1]} : vector<25x20xf32> to vector<1x16xf32>
    %1025 = arith.addf %1023, %1024 : vector<1x16xf32>
    %1026 = vector.extract_strided_slice %1007 {offsets = [7, 2], sizes = [1, 16], strides = [1, 1]} : vector<25x20xf32> to vector<1x16xf32>
    %1027 = arith.addf %1025, %1026 : vector<1x16xf32>
    %1028 = vector.extract_strided_slice %1007 {offsets = [8, 3], sizes = [1, 16], strides = [1, 1]} : vector<25x20xf32> to vector<1x16xf32>
    %1029 = arith.addf %1027, %1028 : vector<1x16xf32>
    %1030 = vector.extract_strided_slice %1007 {offsets = [9, 4], sizes = [1, 16], strides = [1, 1]} : vector<25x20xf32> to vector<1x16xf32>
    %1031 = arith.addf %1029, %1030 : vector<1x16xf32>
    %c0_573 = arith.constant 0 : index
    %c6_574 = arith.constant 6 : index
    %c0_575 = arith.constant 0 : index
    %1032 = vector.load %arg9[%c0_573, %c6_574, %c0_575] : memref<1x8x16xf32, #tpu.memory_space<vmem>>, vector<1x1x16xf32>
    %1033 = vector.shape_cast %1032 : vector<1x1x16xf32> to vector<1x16xf32>
    %1034 = arith.addf %1033, %1031 : vector<1x16xf32>
    %c0_576 = arith.constant 0 : index
    %c6_577 = arith.constant 6 : index
    %c0_578 = arith.constant 0 : index
    %1035 = vector.load %arg9[%c0_576, %c6_577, %c0_578] : memref<1x8x16xf32, #tpu.memory_space<vmem>>, vector<1x1x16xf32>
    %1036 = vector.shape_cast %1035 : vector<1x1x16xf32> to vector<1x16xf32>
    %1037 = vector.shape_cast %1034 : vector<1x16xf32> to vector<1x1x16xf32>
    tpu.vector_store %arg9[%c0_576, %c6_577, %c0_578], %1037 {strides = array<i32>} : memref<1x8x16xf32, #tpu.memory_space<vmem>>, vector<1x1x16xf32>,
    %1038 = vector.extract_strided_slice %1007 {offsets = [10, 0], sizes = [1, 16], strides = [1, 1]} : vector<25x20xf32> to vector<1x16xf32>
    %1039 = vector.extract_strided_slice %1007 {offsets = [11, 1], sizes = [1, 16], strides = [1, 1]} : vector<25x20xf32> to vector<1x16xf32>
    %1040 = arith.addf %1038, %1039 : vector<1x16xf32>
    %1041 = vector.extract_strided_slice %1007 {offsets = [12, 2], sizes = [1, 16], strides = [1, 1]} : vector<25x20xf32> to vector<1x16xf32>
    %1042 = arith.addf %1040, %1041 : vector<1x16xf32>
    %1043 = vector.extract_strided_slice %1007 {offsets = [13, 3], sizes = [1, 16], strides = [1, 1]} : vector<25x20xf32> to vector<1x16xf32>
    %1044 = arith.addf %1042, %1043 : vector<1x16xf32>
    %1045 = vector.extract_strided_slice %1007 {offsets = [14, 4], sizes = [1, 16], strides = [1, 1]} : vector<25x20xf32> to vector<1x16xf32>
    %1046 = arith.addf %1044, %1045 : vector<1x16xf32>
    %c0_579 = arith.constant 0 : index
    %c5_580 = arith.constant 5 : index
    %c0_581 = arith.constant 0 : index
    %1047 = vector.load %arg9[%c0_579, %c5_580, %c0_581] : memref<1x8x16xf32, #tpu.memory_space<vmem>>, vector<1x1x16xf32>
    %1048 = vector.shape_cast %1047 : vector<1x1x16xf32> to vector<1x16xf32>
    %1049 = arith.addf %1048, %1046 : vector<1x16xf32>
    %c0_582 = arith.constant 0 : index
    %c5_583 = arith.constant 5 : index
    %c0_584 = arith.constant 0 : index
    %1050 = vector.load %arg9[%c0_582, %c5_583, %c0_584] : memref<1x8x16xf32, #tpu.memory_space<vmem>>, vector<1x1x16xf32>
    %1051 = vector.shape_cast %1050 : vector<1x1x16xf32> to vector<1x16xf32>
    %1052 = vector.shape_cast %1049 : vector<1x16xf32> to vector<1x1x16xf32>
    tpu.vector_store %arg9[%c0_582, %c5_583, %c0_584], %1052 {strides = array<i32>} : memref<1x8x16xf32, #tpu.memory_space<vmem>>, vector<1x1x16xf32>,
    %1053 = vector.extract_strided_slice %1007 {offsets = [15, 0], sizes = [1, 16], strides = [1, 1]} : vector<25x20xf32> to vector<1x16xf32>
    %1054 = vector.extract_strided_slice %1007 {offsets = [16, 1], sizes = [1, 16], strides = [1, 1]} : vector<25x20xf32> to vector<1x16xf32>
    %1055 = arith.addf %1053, %1054 : vector<1x16xf32>
    %1056 = vector.extract_strided_slice %1007 {offsets = [17, 2], sizes = [1, 16], strides = [1, 1]} : vector<25x20xf32> to vector<1x16xf32>
    %1057 = arith.addf %1055, %1056 : vector<1x16xf32>
    %1058 = vector.extract_strided_slice %1007 {offsets = [18, 3], sizes = [1, 16], strides = [1, 1]} : vector<25x20xf32> to vector<1x16xf32>
    %1059 = arith.addf %1057, %1058 : vector<1x16xf32>
    %1060 = vector.extract_strided_slice %1007 {offsets = [19, 4], sizes = [1, 16], strides = [1, 1]} : vector<25x20xf32> to vector<1x16xf32>
    %1061 = arith.addf %1059, %1060 : vector<1x16xf32>
    %c0_585 = arith.constant 0 : index
    %c4_586 = arith.constant 4 : index
    %c0_587 = arith.constant 0 : index
    %1062 = vector.load %arg9[%c0_585, %c4_586, %c0_587] : memref<1x8x16xf32, #tpu.memory_space<vmem>>, vector<1x1x16xf32>
    %1063 = vector.shape_cast %1062 : vector<1x1x16xf32> to vector<1x16xf32>
    %1064 = arith.addf %1063, %1061 : vector<1x16xf32>
    %c0_588 = arith.constant 0 : index
    %c4_589 = arith.constant 4 : index
    %c0_590 = arith.constant 0 : index
    %1065 = vector.load %arg9[%c0_588, %c4_589, %c0_590] : memref<1x8x16xf32, #tpu.memory_space<vmem>>, vector<1x1x16xf32>
    %1066 = vector.shape_cast %1065 : vector<1x1x16xf32> to vector<1x16xf32>
    %1067 = vector.shape_cast %1064 : vector<1x16xf32> to vector<1x1x16xf32>
    tpu.vector_store %arg9[%c0_588, %c4_589, %c0_590], %1067 {strides = array<i32>} : memref<1x8x16xf32, #tpu.memory_space<vmem>>, vector<1x1x16xf32>,
    %1068 = vector.extract_strided_slice %1007 {offsets = [20, 0], sizes = [1, 16], strides = [1, 1]} : vector<25x20xf32> to vector<1x16xf32>
    %1069 = vector.extract_strided_slice %1007 {offsets = [21, 1], sizes = [1, 16], strides = [1, 1]} : vector<25x20xf32> to vector<1x16xf32>
    %1070 = arith.addf %1068, %1069 : vector<1x16xf32>
    %1071 = vector.extract_strided_slice %1007 {offsets = [22, 2], sizes = [1, 16], strides = [1, 1]} : vector<25x20xf32> to vector<1x16xf32>
    %1072 = arith.addf %1070, %1071 : vector<1x16xf32>
    %1073 = vector.extract_strided_slice %1007 {offsets = [23, 3], sizes = [1, 16], strides = [1, 1]} : vector<25x20xf32> to vector<1x16xf32>
    %1074 = arith.addf %1072, %1073 : vector<1x16xf32>
    %1075 = vector.extract_strided_slice %1007 {offsets = [24, 4], sizes = [1, 16], strides = [1, 1]} : vector<25x20xf32> to vector<1x16xf32>
    %1076 = arith.addf %1074, %1075 : vector<1x16xf32>
    %c0_591 = arith.constant 0 : index
    %c3_592 = arith.constant 3 : index
    %c0_593 = arith.constant 0 : index
    %1077 = vector.load %arg9[%c0_591, %c3_592, %c0_593] : memref<1x8x16xf32, #tpu.memory_space<vmem>>, vector<1x1x16xf32>
    %1078 = vector.shape_cast %1077 : vector<1x1x16xf32> to vector<1x16xf32>
    %1079 = arith.addf %1078, %1076 : vector<1x16xf32>
    %c0_594 = arith.constant 0 : index
    %c3_595 = arith.constant 3 : index
    %c0_596 = arith.constant 0 : index
    %1080 = vector.load %arg9[%c0_594, %c3_595, %c0_596] : memref<1x8x16xf32, #tpu.memory_space<vmem>>, vector<1x1x16xf32>
    %1081 = vector.shape_cast %1080 : vector<1x1x16xf32> to vector<1x16xf32>
    %1082 = vector.shape_cast %1079 : vector<1x16xf32> to vector<1x1x16xf32>
    tpu.vector_store %arg9[%c0_594, %c3_595, %c0_596], %1082 {strides = array<i32>} : memref<1x8x16xf32, #tpu.memory_space<vmem>>, vector<1x1x16xf32>,
    %c72_597 = arith.constant 72 : index
    %c0_598 = arith.constant 0 : index
    %1083 = vector.load %arg10[%c72_597, %c0_598] : memref<180x20xf32, #tpu.memory_space<vmem>>, vector<81x20xf32>
    %c0_599 = arith.constant 0 : index
    %c0_600 = arith.constant 0 : index
    %1084 = vector.load %arg3[%c0_599, %c0_600] : memref<64x81xf32, #tpu.memory_space<vmem>>, vector<64x81xf32>
    %cst_601 = arith.constant dense<0.000000e+00> : vector<64x20xf32>
    %1085 = tpu.matmul %1084, %1083, %cst_601 {dimension_numbers = #tpu.dot_dimension_numbers<[1], [0], [0], [1], [0, 0, 1, 1], [], []>} : vector<64x81xf32>, vector<81x20xf32>, vector<64x20xf32> -> vector<64x20xf32>
    %c0_602 = arith.constant 0 : index
    %c0_603 = arith.constant 0 : index
    %1086 = vector.load %arg4[%c0_602, %c0_603] : memref<64x1xf32, #tpu.memory_space<vmem>>, vector<64x1xf32>
    %1087 = vector.broadcast %1086 : vector<64x1xf32> to vector<64x20xf32>
    %1088 = arith.addf %1085, %1087 : vector<64x20xf32>
    %cst_604 = arith.constant 0.000000e+00 : f32
    %1089 = vector.broadcast %cst_604 : f32 to vector<64x20xf32>
    %1090 = arith.maximumf %1088, %1089 : vector<64x20xf32>
    %c0_605 = arith.constant 0 : index
    %c0_606 = arith.constant 0 : index
    %1091 = vector.load %arg5[%c0_605, %c0_606] : memref<32x64xf32, #tpu.memory_space<vmem>>, vector<32x64xf32>
    %cst_607 = arith.constant dense<0.000000e+00> : vector<32x20xf32>
    %1092 = tpu.matmul %1091, %1090, %cst_607 {dimension_numbers = #tpu.dot_dimension_numbers<[1], [0], [0], [1], [0, 0, 1, 1], [], []>} : vector<32x64xf32>, vector<64x20xf32>, vector<32x20xf32> -> vector<32x20xf32>
    %c0_608 = arith.constant 0 : index
    %c0_609 = arith.constant 0 : index
    %1093 = vector.load %arg6[%c0_608, %c0_609] : memref<32x1xf32, #tpu.memory_space<vmem>>, vector<32x1xf32>
    %1094 = vector.broadcast %1093 : vector<32x1xf32> to vector<32x20xf32>
    %1095 = arith.addf %1092, %1094 : vector<32x20xf32>
    %cst_610 = arith.constant 0.000000e+00 : f32
    %1096 = vector.broadcast %cst_610 : f32 to vector<32x20xf32>
    %1097 = arith.maximumf %1095, %1096 : vector<32x20xf32>
    %c0_611 = arith.constant 0 : index
    %c0_612 = arith.constant 0 : index
    %1098 = vector.load %arg7[%c0_611, %c0_612] : memref<25x32xf32, #tpu.memory_space<vmem>>, vector<25x32xf32>
    %cst_613 = arith.constant dense<0.000000e+00> : vector<25x20xf32>
    %1099 = tpu.matmul %1098, %1097, %cst_613 {dimension_numbers = #tpu.dot_dimension_numbers<[1], [0], [0], [1], [0, 0, 1, 1], [], []>} : vector<25x32xf32>, vector<32x20xf32>, vector<25x20xf32> -> vector<25x20xf32>
    %c8_i32_614 = arith.constant 8 : i32
    %1100 = arith.addi %409, %c8_i32_614 : i32
    %c0_i32_615 = arith.constant 0 : i32
    %1101 = arith.cmpi sge, %1100, %c0_i32_615 : i32
    %c16_i32_616 = arith.constant 16 : i32
    %1102 = arith.cmpi slt, %1100, %c16_i32_616 : i32
    %1103 = arith.andi %1101, %1102 : i1
    %1104 = arith.extui %1103 : i1 to i32
    %1105 = arith.sitofp %1104 : i32 to f32
    %1106 = vector.broadcast %1105 : f32 to vector<1x20xf32>
    %1107 = arith.mulf %407, %1106 : vector<1x20xf32>
    %1108 = vector.broadcast %1107 : vector<1x20xf32> to vector<25x20xf32>
    %1109 = arith.mulf %1099, %1108 : vector<25x20xf32>
    %1110 = vector.extract_strided_slice %1109 {offsets = [5, 0], sizes = [1, 16], strides = [1, 1]} : vector<25x20xf32> to vector<1x16xf32>
    %1111 = vector.extract_strided_slice %1109 {offsets = [6, 1], sizes = [1, 16], strides = [1, 1]} : vector<25x20xf32> to vector<1x16xf32>
    %1112 = arith.addf %1110, %1111 : vector<1x16xf32>
    %1113 = vector.extract_strided_slice %1109 {offsets = [7, 2], sizes = [1, 16], strides = [1, 1]} : vector<25x20xf32> to vector<1x16xf32>
    %1114 = arith.addf %1112, %1113 : vector<1x16xf32>
    %1115 = vector.extract_strided_slice %1109 {offsets = [8, 3], sizes = [1, 16], strides = [1, 1]} : vector<25x20xf32> to vector<1x16xf32>
    %1116 = arith.addf %1114, %1115 : vector<1x16xf32>
    %1117 = vector.extract_strided_slice %1109 {offsets = [9, 4], sizes = [1, 16], strides = [1, 1]} : vector<25x20xf32> to vector<1x16xf32>
    %1118 = arith.addf %1116, %1117 : vector<1x16xf32>
    %c0_617 = arith.constant 0 : index
    %c7_618 = arith.constant 7 : index
    %c0_619 = arith.constant 0 : index
    %1119 = vector.load %arg9[%c0_617, %c7_618, %c0_619] : memref<1x8x16xf32, #tpu.memory_space<vmem>>, vector<1x1x16xf32>
    %1120 = vector.shape_cast %1119 : vector<1x1x16xf32> to vector<1x16xf32>
    %1121 = arith.addf %1120, %1118 : vector<1x16xf32>
    %c0_620 = arith.constant 0 : index
    %c7_621 = arith.constant 7 : index
    %c0_622 = arith.constant 0 : index
    %1122 = vector.load %arg9[%c0_620, %c7_621, %c0_622] : memref<1x8x16xf32, #tpu.memory_space<vmem>>, vector<1x1x16xf32>
    %1123 = vector.shape_cast %1122 : vector<1x1x16xf32> to vector<1x16xf32>
    %1124 = vector.shape_cast %1121 : vector<1x16xf32> to vector<1x1x16xf32>
    tpu.vector_store %arg9[%c0_620, %c7_621, %c0_622], %1124 {strides = array<i32>} : memref<1x8x16xf32, #tpu.memory_space<vmem>>, vector<1x1x16xf32>,
    %1125 = vector.extract_strided_slice %1109 {offsets = [10, 0], sizes = [1, 16], strides = [1, 1]} : vector<25x20xf32> to vector<1x16xf32>
    %1126 = vector.extract_strided_slice %1109 {offsets = [11, 1], sizes = [1, 16], strides = [1, 1]} : vector<25x20xf32> to vector<1x16xf32>
    %1127 = arith.addf %1125, %1126 : vector<1x16xf32>
    %1128 = vector.extract_strided_slice %1109 {offsets = [12, 2], sizes = [1, 16], strides = [1, 1]} : vector<25x20xf32> to vector<1x16xf32>
    %1129 = arith.addf %1127, %1128 : vector<1x16xf32>
    %1130 = vector.extract_strided_slice %1109 {offsets = [13, 3], sizes = [1, 16], strides = [1, 1]} : vector<25x20xf32> to vector<1x16xf32>
    %1131 = arith.addf %1129, %1130 : vector<1x16xf32>
    %1132 = vector.extract_strided_slice %1109 {offsets = [14, 4], sizes = [1, 16], strides = [1, 1]} : vector<25x20xf32> to vector<1x16xf32>
    %1133 = arith.addf %1131, %1132 : vector<1x16xf32>
    %c0_623 = arith.constant 0 : index
    %c6_624 = arith.constant 6 : index
    %c0_625 = arith.constant 0 : index
    %1134 = vector.load %arg9[%c0_623, %c6_624, %c0_625] : memref<1x8x16xf32, #tpu.memory_space<vmem>>, vector<1x1x16xf32>
    %1135 = vector.shape_cast %1134 : vector<1x1x16xf32> to vector<1x16xf32>
    %1136 = arith.addf %1135, %1133 : vector<1x16xf32>
    %c0_626 = arith.constant 0 : index
    %c6_627 = arith.constant 6 : index
    %c0_628 = arith.constant 0 : index
    %1137 = vector.load %arg9[%c0_626, %c6_627, %c0_628] : memref<1x8x16xf32, #tpu.memory_space<vmem>>, vector<1x1x16xf32>
    %1138 = vector.shape_cast %1137 : vector<1x1x16xf32> to vector<1x16xf32>
    %1139 = vector.shape_cast %1136 : vector<1x16xf32> to vector<1x1x16xf32>
    tpu.vector_store %arg9[%c0_626, %c6_627, %c0_628], %1139 {strides = array<i32>} : memref<1x8x16xf32, #tpu.memory_space<vmem>>, vector<1x1x16xf32>,
    %1140 = vector.extract_strided_slice %1109 {offsets = [15, 0], sizes = [1, 16], strides = [1, 1]} : vector<25x20xf32> to vector<1x16xf32>
    %1141 = vector.extract_strided_slice %1109 {offsets = [16, 1], sizes = [1, 16], strides = [1, 1]} : vector<25x20xf32> to vector<1x16xf32>
    %1142 = arith.addf %1140, %1141 : vector<1x16xf32>
    %1143 = vector.extract_strided_slice %1109 {offsets = [17, 2], sizes = [1, 16], strides = [1, 1]} : vector<25x20xf32> to vector<1x16xf32>
    %1144 = arith.addf %1142, %1143 : vector<1x16xf32>
    %1145 = vector.extract_strided_slice %1109 {offsets = [18, 3], sizes = [1, 16], strides = [1, 1]} : vector<25x20xf32> to vector<1x16xf32>
    %1146 = arith.addf %1144, %1145 : vector<1x16xf32>
    %1147 = vector.extract_strided_slice %1109 {offsets = [19, 4], sizes = [1, 16], strides = [1, 1]} : vector<25x20xf32> to vector<1x16xf32>
    %1148 = arith.addf %1146, %1147 : vector<1x16xf32>
    %c0_629 = arith.constant 0 : index
    %c5_630 = arith.constant 5 : index
    %c0_631 = arith.constant 0 : index
    %1149 = vector.load %arg9[%c0_629, %c5_630, %c0_631] : memref<1x8x16xf32, #tpu.memory_space<vmem>>, vector<1x1x16xf32>
    %1150 = vector.shape_cast %1149 : vector<1x1x16xf32> to vector<1x16xf32>
    %1151 = arith.addf %1150, %1148 : vector<1x16xf32>
    %c0_632 = arith.constant 0 : index
    %c5_633 = arith.constant 5 : index
    %c0_634 = arith.constant 0 : index
    %1152 = vector.load %arg9[%c0_632, %c5_633, %c0_634] : memref<1x8x16xf32, #tpu.memory_space<vmem>>, vector<1x1x16xf32>
    %1153 = vector.shape_cast %1152 : vector<1x1x16xf32> to vector<1x16xf32>
    %1154 = vector.shape_cast %1151 : vector<1x16xf32> to vector<1x1x16xf32>
    tpu.vector_store %arg9[%c0_632, %c5_633, %c0_634], %1154 {strides = array<i32>} : memref<1x8x16xf32, #tpu.memory_space<vmem>>, vector<1x1x16xf32>,
    %1155 = vector.extract_strided_slice %1109 {offsets = [20, 0], sizes = [1, 16], strides = [1, 1]} : vector<25x20xf32> to vector<1x16xf32>
    %1156 = vector.extract_strided_slice %1109 {offsets = [21, 1], sizes = [1, 16], strides = [1, 1]} : vector<25x20xf32> to vector<1x16xf32>
    %1157 = arith.addf %1155, %1156 : vector<1x16xf32>
    %1158 = vector.extract_strided_slice %1109 {offsets = [22, 2], sizes = [1, 16], strides = [1, 1]} : vector<25x20xf32> to vector<1x16xf32>
    %1159 = arith.addf %1157, %1158 : vector<1x16xf32>
    %1160 = vector.extract_strided_slice %1109 {offsets = [23, 3], sizes = [1, 16], strides = [1, 1]} : vector<25x20xf32> to vector<1x16xf32>
    %1161 = arith.addf %1159, %1160 : vector<1x16xf32>
    %1162 = vector.extract_strided_slice %1109 {offsets = [24, 4], sizes = [1, 16], strides = [1, 1]} : vector<25x20xf32> to vector<1x16xf32>
    %1163 = arith.addf %1161, %1162 : vector<1x16xf32>
    %c0_635 = arith.constant 0 : index
    %c4_636 = arith.constant 4 : index
    %c0_637 = arith.constant 0 : index
    %1164 = vector.load %arg9[%c0_635, %c4_636, %c0_637] : memref<1x8x16xf32, #tpu.memory_space<vmem>>, vector<1x1x16xf32>
    %1165 = vector.shape_cast %1164 : vector<1x1x16xf32> to vector<1x16xf32>
    %1166 = arith.addf %1165, %1163 : vector<1x16xf32>
    %c0_638 = arith.constant 0 : index
    %c4_639 = arith.constant 4 : index
    %c0_640 = arith.constant 0 : index
    %1167 = vector.load %arg9[%c0_638, %c4_639, %c0_640] : memref<1x8x16xf32, #tpu.memory_space<vmem>>, vector<1x1x16xf32>
    %1168 = vector.shape_cast %1167 : vector<1x1x16xf32> to vector<1x16xf32>
    %1169 = vector.shape_cast %1166 : vector<1x16xf32> to vector<1x1x16xf32>
    tpu.vector_store %arg9[%c0_638, %c4_639, %c0_640], %1169 {strides = array<i32>} : memref<1x8x16xf32, #tpu.memory_space<vmem>>, vector<1x1x16xf32>,
    %c81_641 = arith.constant 81 : index
    %c0_642 = arith.constant 0 : index
    %1170 = vector.load %arg10[%c81_641, %c0_642] : memref<180x20xf32, #tpu.memory_space<vmem>>, vector<81x20xf32>
    %c0_643 = arith.constant 0 : index
    %c0_644 = arith.constant 0 : index
    %1171 = vector.load %arg3[%c0_643, %c0_644] : memref<64x81xf32, #tpu.memory_space<vmem>>, vector<64x81xf32>
    %cst_645 = arith.constant dense<0.000000e+00> : vector<64x20xf32>
    %1172 = tpu.matmul %1171, %1170, %cst_645 {dimension_numbers = #tpu.dot_dimension_numbers<[1], [0], [0], [1], [0, 0, 1, 1], [], []>} : vector<64x81xf32>, vector<81x20xf32>, vector<64x20xf32> -> vector<64x20xf32>
    %c0_646 = arith.constant 0 : index
    %c0_647 = arith.constant 0 : index
    %1173 = vector.load %arg4[%c0_646, %c0_647] : memref<64x1xf32, #tpu.memory_space<vmem>>, vector<64x1xf32>
    %1174 = vector.broadcast %1173 : vector<64x1xf32> to vector<64x20xf32>
    %1175 = arith.addf %1172, %1174 : vector<64x20xf32>
    %cst_648 = arith.constant 0.000000e+00 : f32
    %1176 = vector.broadcast %cst_648 : f32 to vector<64x20xf32>
    %1177 = arith.maximumf %1175, %1176 : vector<64x20xf32>
    %c0_649 = arith.constant 0 : index
    %c0_650 = arith.constant 0 : index
    %1178 = vector.load %arg5[%c0_649, %c0_650] : memref<32x64xf32, #tpu.memory_space<vmem>>, vector<32x64xf32>
    %cst_651 = arith.constant dense<0.000000e+00> : vector<32x20xf32>
    %1179 = tpu.matmul %1178, %1177, %cst_651 {dimension_numbers = #tpu.dot_dimension_numbers<[1], [0], [0], [1], [0, 0, 1, 1], [], []>} : vector<32x64xf32>, vector<64x20xf32>, vector<32x20xf32> -> vector<32x20xf32>
    %c0_652 = arith.constant 0 : index
    %c0_653 = arith.constant 0 : index
    %1180 = vector.load %arg6[%c0_652, %c0_653] : memref<32x1xf32, #tpu.memory_space<vmem>>, vector<32x1xf32>
    %1181 = vector.broadcast %1180 : vector<32x1xf32> to vector<32x20xf32>
    %1182 = arith.addf %1179, %1181 : vector<32x20xf32>
    %cst_654 = arith.constant 0.000000e+00 : f32
    %1183 = vector.broadcast %cst_654 : f32 to vector<32x20xf32>
    %1184 = arith.maximumf %1182, %1183 : vector<32x20xf32>
    %c0_655 = arith.constant 0 : index
    %c0_656 = arith.constant 0 : index
    %1185 = vector.load %arg7[%c0_655, %c0_656] : memref<25x32xf32, #tpu.memory_space<vmem>>, vector<25x32xf32>
    %cst_657 = arith.constant dense<0.000000e+00> : vector<25x20xf32>
    %1186 = tpu.matmul %1185, %1184, %cst_657 {dimension_numbers = #tpu.dot_dimension_numbers<[1], [0], [0], [1], [0, 0, 1, 1], [], []>} : vector<25x32xf32>, vector<32x20xf32>, vector<25x20xf32> -> vector<25x20xf32>
    %c9_i32 = arith.constant 9 : i32
    %1187 = arith.addi %409, %c9_i32 : i32
    %c0_i32_658 = arith.constant 0 : i32
    %1188 = arith.cmpi sge, %1187, %c0_i32_658 : i32
    %c16_i32_659 = arith.constant 16 : i32
    %1189 = arith.cmpi slt, %1187, %c16_i32_659 : i32
    %1190 = arith.andi %1188, %1189 : i1
    %1191 = arith.extui %1190 : i1 to i32
    %1192 = arith.sitofp %1191 : i32 to f32
    %1193 = vector.broadcast %1192 : f32 to vector<1x20xf32>
    %1194 = arith.mulf %407, %1193 : vector<1x20xf32>
    %1195 = vector.broadcast %1194 : vector<1x20xf32> to vector<25x20xf32>
    %1196 = arith.mulf %1186, %1195 : vector<25x20xf32>
    %1197 = vector.extract_strided_slice %1196 {offsets = [10, 0], sizes = [1, 16], strides = [1, 1]} : vector<25x20xf32> to vector<1x16xf32>
    %1198 = vector.extract_strided_slice %1196 {offsets = [11, 1], sizes = [1, 16], strides = [1, 1]} : vector<25x20xf32> to vector<1x16xf32>
    %1199 = arith.addf %1197, %1198 : vector<1x16xf32>
    %1200 = vector.extract_strided_slice %1196 {offsets = [12, 2], sizes = [1, 16], strides = [1, 1]} : vector<25x20xf32> to vector<1x16xf32>
    %1201 = arith.addf %1199, %1200 : vector<1x16xf32>
    %1202 = vector.extract_strided_slice %1196 {offsets = [13, 3], sizes = [1, 16], strides = [1, 1]} : vector<25x20xf32> to vector<1x16xf32>
    %1203 = arith.addf %1201, %1202 : vector<1x16xf32>
    %1204 = vector.extract_strided_slice %1196 {offsets = [14, 4], sizes = [1, 16], strides = [1, 1]} : vector<25x20xf32> to vector<1x16xf32>
    %1205 = arith.addf %1203, %1204 : vector<1x16xf32>
    %c0_660 = arith.constant 0 : index
    %c7_661 = arith.constant 7 : index
    %c0_662 = arith.constant 0 : index
    %1206 = vector.load %arg9[%c0_660, %c7_661, %c0_662] : memref<1x8x16xf32, #tpu.memory_space<vmem>>, vector<1x1x16xf32>
    %1207 = vector.shape_cast %1206 : vector<1x1x16xf32> to vector<1x16xf32>
    %1208 = arith.addf %1207, %1205 : vector<1x16xf32>
    %c0_663 = arith.constant 0 : index
    %c7_664 = arith.constant 7 : index
    %c0_665 = arith.constant 0 : index
    %1209 = vector.load %arg9[%c0_663, %c7_664, %c0_665] : memref<1x8x16xf32, #tpu.memory_space<vmem>>, vector<1x1x16xf32>
    %1210 = vector.shape_cast %1209 : vector<1x1x16xf32> to vector<1x16xf32>
    %1211 = vector.shape_cast %1208 : vector<1x16xf32> to vector<1x1x16xf32>
    tpu.vector_store %arg9[%c0_663, %c7_664, %c0_665], %1211 {strides = array<i32>} : memref<1x8x16xf32, #tpu.memory_space<vmem>>, vector<1x1x16xf32>,
    %1212 = vector.extract_strided_slice %1196 {offsets = [15, 0], sizes = [1, 16], strides = [1, 1]} : vector<25x20xf32> to vector<1x16xf32>
    %1213 = vector.extract_strided_slice %1196 {offsets = [16, 1], sizes = [1, 16], strides = [1, 1]} : vector<25x20xf32> to vector<1x16xf32>
    %1214 = arith.addf %1212, %1213 : vector<1x16xf32>
    %1215 = vector.extract_strided_slice %1196 {offsets = [17, 2], sizes = [1, 16], strides = [1, 1]} : vector<25x20xf32> to vector<1x16xf32>
    %1216 = arith.addf %1214, %1215 : vector<1x16xf32>
    %1217 = vector.extract_strided_slice %1196 {offsets = [18, 3], sizes = [1, 16], strides = [1, 1]} : vector<25x20xf32> to vector<1x16xf32>
    %1218 = arith.addf %1216, %1217 : vector<1x16xf32>
    %1219 = vector.extract_strided_slice %1196 {offsets = [19, 4], sizes = [1, 16], strides = [1, 1]} : vector<25x20xf32> to vector<1x16xf32>
    %1220 = arith.addf %1218, %1219 : vector<1x16xf32>
    %c0_666 = arith.constant 0 : index
    %c6_667 = arith.constant 6 : index
    %c0_668 = arith.constant 0 : index
    %1221 = vector.load %arg9[%c0_666, %c6_667, %c0_668] : memref<1x8x16xf32, #tpu.memory_space<vmem>>, vector<1x1x16xf32>
    %1222 = vector.shape_cast %1221 : vector<1x1x16xf32> to vector<1x16xf32>
    %1223 = arith.addf %1222, %1220 : vector<1x16xf32>
    %c0_669 = arith.constant 0 : index
    %c6_670 = arith.constant 6 : index
    %c0_671 = arith.constant 0 : index
    %1224 = vector.load %arg9[%c0_669, %c6_670, %c0_671] : memref<1x8x16xf32, #tpu.memory_space<vmem>>, vector<1x1x16xf32>
    %1225 = vector.shape_cast %1224 : vector<1x1x16xf32> to vector<1x16xf32>
    %1226 = vector.shape_cast %1223 : vector<1x16xf32> to vector<1x1x16xf32>
    tpu.vector_store %arg9[%c0_669, %c6_670, %c0_671], %1226 {strides = array<i32>} : memref<1x8x16xf32, #tpu.memory_space<vmem>>, vector<1x1x16xf32>,
    %1227 = vector.extract_strided_slice %1196 {offsets = [20, 0], sizes = [1, 16], strides = [1, 1]} : vector<25x20xf32> to vector<1x16xf32>
    %1228 = vector.extract_strided_slice %1196 {offsets = [21, 1], sizes = [1, 16], strides = [1, 1]} : vector<25x20xf32> to vector<1x16xf32>
    %1229 = arith.addf %1227, %1228 : vector<1x16xf32>
    %1230 = vector.extract_strided_slice %1196 {offsets = [22, 2], sizes = [1, 16], strides = [1, 1]} : vector<25x20xf32> to vector<1x16xf32>
    %1231 = arith.addf %1229, %1230 : vector<1x16xf32>
    %1232 = vector.extract_strided_slice %1196 {offsets = [23, 3], sizes = [1, 16], strides = [1, 1]} : vector<25x20xf32> to vector<1x16xf32>
    %1233 = arith.addf %1231, %1232 : vector<1x16xf32>
    %1234 = vector.extract_strided_slice %1196 {offsets = [24, 4], sizes = [1, 16], strides = [1, 1]} : vector<25x20xf32> to vector<1x16xf32>
    %1235 = arith.addf %1233, %1234 : vector<1x16xf32>
    %c0_672 = arith.constant 0 : index
    %c5_673 = arith.constant 5 : index
    %c0_674 = arith.constant 0 : index
    %1236 = vector.load %arg9[%c0_672, %c5_673, %c0_674] : memref<1x8x16xf32, #tpu.memory_space<vmem>>, vector<1x1x16xf32>
    %1237 = vector.shape_cast %1236 : vector<1x1x16xf32> to vector<1x16xf32>
    %1238 = arith.addf %1237, %1235 : vector<1x16xf32>
    %c0_675 = arith.constant 0 : index
    %c5_676 = arith.constant 5 : index
    %c0_677 = arith.constant 0 : index
    %1239 = vector.load %arg9[%c0_675, %c5_676, %c0_677] : memref<1x8x16xf32, #tpu.memory_space<vmem>>, vector<1x1x16xf32>
    %1240 = vector.shape_cast %1239 : vector<1x1x16xf32> to vector<1x16xf32>
    %1241 = vector.shape_cast %1238 : vector<1x16xf32> to vector<1x1x16xf32>
    tpu.vector_store %arg9[%c0_675, %c5_676, %c0_677], %1241 {strides = array<i32>} : memref<1x8x16xf32, #tpu.memory_space<vmem>>, vector<1x1x16xf32>,
    %c90_678 = arith.constant 90 : index
    %c0_679 = arith.constant 0 : index
    %1242 = vector.load %arg10[%c90_678, %c0_679] : memref<180x20xf32, #tpu.memory_space<vmem>>, vector<81x20xf32>
    %c0_680 = arith.constant 0 : index
    %c0_681 = arith.constant 0 : index
    %1243 = vector.load %arg3[%c0_680, %c0_681] : memref<64x81xf32, #tpu.memory_space<vmem>>, vector<64x81xf32>
    %cst_682 = arith.constant dense<0.000000e+00> : vector<64x20xf32>
    %1244 = tpu.matmul %1243, %1242, %cst_682 {dimension_numbers = #tpu.dot_dimension_numbers<[1], [0], [0], [1], [0, 0, 1, 1], [], []>} : vector<64x81xf32>, vector<81x20xf32>, vector<64x20xf32> -> vector<64x20xf32>
    %c0_683 = arith.constant 0 : index
    %c0_684 = arith.constant 0 : index
    %1245 = vector.load %arg4[%c0_683, %c0_684] : memref<64x1xf32, #tpu.memory_space<vmem>>, vector<64x1xf32>
    %1246 = vector.broadcast %1245 : vector<64x1xf32> to vector<64x20xf32>
    %1247 = arith.addf %1244, %1246 : vector<64x20xf32>
    %cst_685 = arith.constant 0.000000e+00 : f32
    %1248 = vector.broadcast %cst_685 : f32 to vector<64x20xf32>
    %1249 = arith.maximumf %1247, %1248 : vector<64x20xf32>
    %c0_686 = arith.constant 0 : index
    %c0_687 = arith.constant 0 : index
    %1250 = vector.load %arg5[%c0_686, %c0_687] : memref<32x64xf32, #tpu.memory_space<vmem>>, vector<32x64xf32>
    %cst_688 = arith.constant dense<0.000000e+00> : vector<32x20xf32>
    %1251 = tpu.matmul %1250, %1249, %cst_688 {dimension_numbers = #tpu.dot_dimension_numbers<[1], [0], [0], [1], [0, 0, 1, 1], [], []>} : vector<32x64xf32>, vector<64x20xf32>, vector<32x20xf32> -> vector<32x20xf32>
    %c0_689 = arith.constant 0 : index
    %c0_690 = arith.constant 0 : index
    %1252 = vector.load %arg6[%c0_689, %c0_690] : memref<32x1xf32, #tpu.memory_space<vmem>>, vector<32x1xf32>
    %1253 = vector.broadcast %1252 : vector<32x1xf32> to vector<32x20xf32>
    %1254 = arith.addf %1251, %1253 : vector<32x20xf32>
    %cst_691 = arith.constant 0.000000e+00 : f32
    %1255 = vector.broadcast %cst_691 : f32 to vector<32x20xf32>
    %1256 = arith.maximumf %1254, %1255 : vector<32x20xf32>
    %c0_692 = arith.constant 0 : index
    %c0_693 = arith.constant 0 : index
    %1257 = vector.load %arg7[%c0_692, %c0_693] : memref<25x32xf32, #tpu.memory_space<vmem>>, vector<25x32xf32>
    %cst_694 = arith.constant dense<0.000000e+00> : vector<25x20xf32>
    %1258 = tpu.matmul %1257, %1256, %cst_694 {dimension_numbers = #tpu.dot_dimension_numbers<[1], [0], [0], [1], [0, 0, 1, 1], [], []>} : vector<25x32xf32>, vector<32x20xf32>, vector<25x20xf32> -> vector<25x20xf32>
    %c10_i32 = arith.constant 10 : i32
    %1259 = arith.addi %409, %c10_i32 : i32
    %c0_i32_695 = arith.constant 0 : i32
    %1260 = arith.cmpi sge, %1259, %c0_i32_695 : i32
    %c16_i32_696 = arith.constant 16 : i32
    %1261 = arith.cmpi slt, %1259, %c16_i32_696 : i32
    %1262 = arith.andi %1260, %1261 : i1
    %1263 = arith.extui %1262 : i1 to i32
    %1264 = arith.sitofp %1263 : i32 to f32
    %1265 = vector.broadcast %1264 : f32 to vector<1x20xf32>
    %1266 = arith.mulf %407, %1265 : vector<1x20xf32>
    %1267 = vector.broadcast %1266 : vector<1x20xf32> to vector<25x20xf32>
    %1268 = arith.mulf %1258, %1267 : vector<25x20xf32>
    %1269 = vector.extract_strided_slice %1268 {offsets = [15, 0], sizes = [1, 16], strides = [1, 1]} : vector<25x20xf32> to vector<1x16xf32>
    %1270 = vector.extract_strided_slice %1268 {offsets = [16, 1], sizes = [1, 16], strides = [1, 1]} : vector<25x20xf32> to vector<1x16xf32>
    %1271 = arith.addf %1269, %1270 : vector<1x16xf32>
    %1272 = vector.extract_strided_slice %1268 {offsets = [17, 2], sizes = [1, 16], strides = [1, 1]} : vector<25x20xf32> to vector<1x16xf32>
    %1273 = arith.addf %1271, %1272 : vector<1x16xf32>
    %1274 = vector.extract_strided_slice %1268 {offsets = [18, 3], sizes = [1, 16], strides = [1, 1]} : vector<25x20xf32> to vector<1x16xf32>
    %1275 = arith.addf %1273, %1274 : vector<1x16xf32>
    %1276 = vector.extract_strided_slice %1268 {offsets = [19, 4], sizes = [1, 16], strides = [1, 1]} : vector<25x20xf32> to vector<1x16xf32>
    %1277 = arith.addf %1275, %1276 : vector<1x16xf32>
    %c0_697 = arith.constant 0 : index
    %c7_698 = arith.constant 7 : index
    %c0_699 = arith.constant 0 : index
    %1278 = vector.load %arg9[%c0_697, %c7_698, %c0_699] : memref<1x8x16xf32, #tpu.memory_space<vmem>>, vector<1x1x16xf32>
    %1279 = vector.shape_cast %1278 : vector<1x1x16xf32> to vector<1x16xf32>
    %1280 = arith.addf %1279, %1277 : vector<1x16xf32>
    %c0_700 = arith.constant 0 : index
    %c7_701 = arith.constant 7 : index
    %c0_702 = arith.constant 0 : index
    %1281 = vector.load %arg9[%c0_700, %c7_701, %c0_702] : memref<1x8x16xf32, #tpu.memory_space<vmem>>, vector<1x1x16xf32>
    %1282 = vector.shape_cast %1281 : vector<1x1x16xf32> to vector<1x16xf32>
    %1283 = vector.shape_cast %1280 : vector<1x16xf32> to vector<1x1x16xf32>
    tpu.vector_store %arg9[%c0_700, %c7_701, %c0_702], %1283 {strides = array<i32>} : memref<1x8x16xf32, #tpu.memory_space<vmem>>, vector<1x1x16xf32>,
    %1284 = vector.extract_strided_slice %1268 {offsets = [20, 0], sizes = [1, 16], strides = [1, 1]} : vector<25x20xf32> to vector<1x16xf32>
    %1285 = vector.extract_strided_slice %1268 {offsets = [21, 1], sizes = [1, 16], strides = [1, 1]} : vector<25x20xf32> to vector<1x16xf32>
    %1286 = arith.addf %1284, %1285 : vector<1x16xf32>
    %1287 = vector.extract_strided_slice %1268 {offsets = [22, 2], sizes = [1, 16], strides = [1, 1]} : vector<25x20xf32> to vector<1x16xf32>
    %1288 = arith.addf %1286, %1287 : vector<1x16xf32>
    %1289 = vector.extract_strided_slice %1268 {offsets = [23, 3], sizes = [1, 16], strides = [1, 1]} : vector<25x20xf32> to vector<1x16xf32>
    %1290 = arith.addf %1288, %1289 : vector<1x16xf32>
    %1291 = vector.extract_strided_slice %1268 {offsets = [24, 4], sizes = [1, 16], strides = [1, 1]} : vector<25x20xf32> to vector<1x16xf32>
    %1292 = arith.addf %1290, %1291 : vector<1x16xf32>
    %c0_703 = arith.constant 0 : index
    %c6_704 = arith.constant 6 : index
    %c0_705 = arith.constant 0 : index
    %1293 = vector.load %arg9[%c0_703, %c6_704, %c0_705] : memref<1x8x16xf32, #tpu.memory_space<vmem>>, vector<1x1x16xf32>
    %1294 = vector.shape_cast %1293 : vector<1x1x16xf32> to vector<1x16xf32>
    %1295 = arith.addf %1294, %1292 : vector<1x16xf32>
    %c0_706 = arith.constant 0 : index
    %c6_707 = arith.constant 6 : index
    %c0_708 = arith.constant 0 : index
    %1296 = vector.load %arg9[%c0_706, %c6_707, %c0_708] : memref<1x8x16xf32, #tpu.memory_space<vmem>>, vector<1x1x16xf32>
    %1297 = vector.shape_cast %1296 : vector<1x1x16xf32> to vector<1x16xf32>
    %1298 = vector.shape_cast %1295 : vector<1x16xf32> to vector<1x1x16xf32>
    tpu.vector_store %arg9[%c0_706, %c6_707, %c0_708], %1298 {strides = array<i32>} : memref<1x8x16xf32, #tpu.memory_space<vmem>>, vector<1x1x16xf32>,
    %c99_709 = arith.constant 99 : index
    %c0_710 = arith.constant 0 : index
    %1299 = vector.load %arg10[%c99_709, %c0_710] : memref<180x20xf32, #tpu.memory_space<vmem>>, vector<81x20xf32>
    %c0_711 = arith.constant 0 : index
    %c0_712 = arith.constant 0 : index
    %1300 = vector.load %arg3[%c0_711, %c0_712] : memref<64x81xf32, #tpu.memory_space<vmem>>, vector<64x81xf32>
    %cst_713 = arith.constant dense<0.000000e+00> : vector<64x20xf32>
    %1301 = tpu.matmul %1300, %1299, %cst_713 {dimension_numbers = #tpu.dot_dimension_numbers<[1], [0], [0], [1], [0, 0, 1, 1], [], []>} : vector<64x81xf32>, vector<81x20xf32>, vector<64x20xf32> -> vector<64x20xf32>
    %c0_714 = arith.constant 0 : index
    %c0_715 = arith.constant 0 : index
    %1302 = vector.load %arg4[%c0_714, %c0_715] : memref<64x1xf32, #tpu.memory_space<vmem>>, vector<64x1xf32>
    %1303 = vector.broadcast %1302 : vector<64x1xf32> to vector<64x20xf32>
    %1304 = arith.addf %1301, %1303 : vector<64x20xf32>
    %cst_716 = arith.constant 0.000000e+00 : f32
    %1305 = vector.broadcast %cst_716 : f32 to vector<64x20xf32>
    %1306 = arith.maximumf %1304, %1305 : vector<64x20xf32>
    %c0_717 = arith.constant 0 : index
    %c0_718 = arith.constant 0 : index
    %1307 = vector.load %arg5[%c0_717, %c0_718] : memref<32x64xf32, #tpu.memory_space<vmem>>, vector<32x64xf32>
    %cst_719 = arith.constant dense<0.000000e+00> : vector<32x20xf32>
    %1308 = tpu.matmul %1307, %1306, %cst_719 {dimension_numbers = #tpu.dot_dimension_numbers<[1], [0], [0], [1], [0, 0, 1, 1], [], []>} : vector<32x64xf32>, vector<64x20xf32>, vector<32x20xf32> -> vector<32x20xf32>
    %c0_720 = arith.constant 0 : index
    %c0_721 = arith.constant 0 : index
    %1309 = vector.load %arg6[%c0_720, %c0_721] : memref<32x1xf32, #tpu.memory_space<vmem>>, vector<32x1xf32>
    %1310 = vector.broadcast %1309 : vector<32x1xf32> to vector<32x20xf32>
    %1311 = arith.addf %1308, %1310 : vector<32x20xf32>
    %cst_722 = arith.constant 0.000000e+00 : f32
    %1312 = vector.broadcast %cst_722 : f32 to vector<32x20xf32>
    %1313 = arith.maximumf %1311, %1312 : vector<32x20xf32>
    %c0_723 = arith.constant 0 : index
    %c0_724 = arith.constant 0 : index
    %1314 = vector.load %arg7[%c0_723, %c0_724] : memref<25x32xf32, #tpu.memory_space<vmem>>, vector<25x32xf32>
    %cst_725 = arith.constant dense<0.000000e+00> : vector<25x20xf32>
    %1315 = tpu.matmul %1314, %1313, %cst_725 {dimension_numbers = #tpu.dot_dimension_numbers<[1], [0], [0], [1], [0, 0, 1, 1], [], []>} : vector<25x32xf32>, vector<32x20xf32>, vector<25x20xf32> -> vector<25x20xf32>
    %c11_i32 = arith.constant 11 : i32
    %1316 = arith.addi %409, %c11_i32 : i32
    %c0_i32_726 = arith.constant 0 : i32
    %1317 = arith.cmpi sge, %1316, %c0_i32_726 : i32
    %c16_i32_727 = arith.constant 16 : i32
    %1318 = arith.cmpi slt, %1316, %c16_i32_727 : i32
    %1319 = arith.andi %1317, %1318 : i1
    %1320 = arith.extui %1319 : i1 to i32
    %1321 = arith.sitofp %1320 : i32 to f32
    %1322 = vector.broadcast %1321 : f32 to vector<1x20xf32>
    %1323 = arith.mulf %407, %1322 : vector<1x20xf32>
    %1324 = vector.broadcast %1323 : vector<1x20xf32> to vector<25x20xf32>
    %1325 = arith.mulf %1315, %1324 : vector<25x20xf32>
    %1326 = vector.extract_strided_slice %1325 {offsets = [20, 0], sizes = [1, 16], strides = [1, 1]} : vector<25x20xf32> to vector<1x16xf32>
    %1327 = vector.extract_strided_slice %1325 {offsets = [21, 1], sizes = [1, 16], strides = [1, 1]} : vector<25x20xf32> to vector<1x16xf32>
    %1328 = arith.addf %1326, %1327 : vector<1x16xf32>
    %1329 = vector.extract_strided_slice %1325 {offsets = [22, 2], sizes = [1, 16], strides = [1, 1]} : vector<25x20xf32> to vector<1x16xf32>
    %1330 = arith.addf %1328, %1329 : vector<1x16xf32>
    %1331 = vector.extract_strided_slice %1325 {offsets = [23, 3], sizes = [1, 16], strides = [1, 1]} : vector<25x20xf32> to vector<1x16xf32>
    %1332 = arith.addf %1330, %1331 : vector<1x16xf32>
    %1333 = vector.extract_strided_slice %1325 {offsets = [24, 4], sizes = [1, 16], strides = [1, 1]} : vector<25x20xf32> to vector<1x16xf32>
    %1334 = arith.addf %1332, %1333 : vector<1x16xf32>
    %c0_728 = arith.constant 0 : index
    %c7_729 = arith.constant 7 : index
    %c0_730 = arith.constant 0 : index
    %1335 = vector.load %arg9[%c0_728, %c7_729, %c0_730] : memref<1x8x16xf32, #tpu.memory_space<vmem>>, vector<1x1x16xf32>
    %1336 = vector.shape_cast %1335 : vector<1x1x16xf32> to vector<1x16xf32>
    %1337 = arith.addf %1336, %1334 : vector<1x16xf32>
    %c0_731 = arith.constant 0 : index
    %c7_732 = arith.constant 7 : index
    %c0_733 = arith.constant 0 : index
    %1338 = vector.load %arg9[%c0_731, %c7_732, %c0_733] : memref<1x8x16xf32, #tpu.memory_space<vmem>>, vector<1x1x16xf32>
    %1339 = vector.shape_cast %1338 : vector<1x1x16xf32> to vector<1x16xf32>
    %1340 = vector.shape_cast %1337 : vector<1x16xf32> to vector<1x1x16xf32>
    tpu.vector_store %arg9[%c0_731, %c7_732, %c0_733], %1340 {strides = array<i32>} : memref<1x8x16xf32, #tpu.memory_space<vmem>>, vector<1x1x16xf32>,
    return
  }
  func.func @transform_0(%arg0: i32, %arg1: i32) -> (i32, i32, i32, i32) {
    %c0_i32 = arith.constant 0 : i32
    %c0_i32_0 = arith.constant 0 : i32
    %c0_i32_1 = arith.constant 0 : i32
    return %arg0, %arg1, %c0_i32, %c0_i32_0 : i32, i32, i32, i32
  }
  func.func @transform_1(%arg0: i32, %arg1: i32) -> (i32, i32) {
    %c0_i32 = arith.constant 0 : i32
    %c0_i32_0 = arith.constant 0 : i32
    %c0_i32_1 = arith.constant 0 : i32
    return %c0_i32, %c0_i32_0 : i32, i32
  }
  func.func @transform_2(%arg0: i32, %arg1: i32) -> (i32, i32) {
    %c0_i32 = arith.constant 0 : i32
    %c0_i32_0 = arith.constant 0 : i32
    %c0_i32_1 = arith.constant 0 : i32
    return %c0_i32, %c0_i32_0 : i32, i32
  }
  func.func @transform_3(%arg0: i32, %arg1: i32) -> (i32, i32) {
    %c0_i32 = arith.constant 0 : i32
    %c0_i32_0 = arith.constant 0 : i32
    %c0_i32_1 = arith.constant 0 : i32
    return %c0_i32, %c0_i32_0 : i32, i32
  }
  func.func @transform_4(%arg0: i32, %arg1: i32) -> (i32, i32) {
    %c0_i32 = arith.constant 0 : i32
    %c0_i32_0 = arith.constant 0 : i32
    %c0_i32_1 = arith.constant 0 : i32
    return %c0_i32, %c0_i32_0 : i32, i32
  }
  func.func @transform_5(%arg0: i32, %arg1: i32) -> (i32, i32) {
    %c0_i32 = arith.constant 0 : i32
    %c0_i32_0 = arith.constant 0 : i32
    %c0_i32_1 = arith.constant 0 : i32
    return %c0_i32, %c0_i32_0 : i32, i32
  }
  func.func @transform_6(%arg0: i32, %arg1: i32) -> i32 {
    %c0_i32 = arith.constant 0 : i32
    %c0_i32_0 = arith.constant 0 : i32
    return %c0_i32 : i32
  }
  func.func @transform_7(%arg0: i32, %arg1: i32) -> (i32, i32, i32) {
    %c0_i32 = arith.constant 0 : i32
    %c0_i32_0 = arith.constant 0 : i32
    return %arg0, %arg1, %c0_i32 : i32, i32, i32
  }
}

</mosaic_0001>

<bundles_post_ra>
// kernel: srcnn_forward.1
= control target key start
LH: loop header
LB: loop body
LE: loop exit
PB: predicated region body
PF: predicated region fallthrough
CT: control target
= control target key end

     0   :  { %s8313_s0 = inlined_call_operand.vmem [shape: f32[2,2,20,28], index: 0, kind: input, shape index: {}]   ;;  %s8314_s1 = inlined_call_operand.vmem [shape: f32[64,81], index: 1, kind: input, shape index: {}]   ;;  %s8315_s2 = inlined_call_operand.vmem [shape: f32[64,1], index: 2, kind: input, shape index: {}]   ;;  %s8316_s3 = inlined_call_operand.vmem [shape: f32[32,64], index: 3, kind: input, shape index: {}]   ;;  %s8317_s4 = inlined_call_operand.vmem [shape: f32[32,1], index: 4, kind: input, shape index: {}]   ;;  %s8318_s5 = inlined_call_operand.vmem [shape: f32[25,32], index: 5, kind: input, shape index: {}]   ;;  %s8319_s6 = inlined_call_operand.<no memory space> [shape: f32[1], index: 6, kind: input, shape index: {}]   ;;  %s8320_s7 = inlined_call_operand.hbm [shape: f32[2,16,16], index: 7, kind: output, shape index: {}]  }
   0x1   :  { %12 = sst [smem:[#allocation3]] %s8319_s6 }
   0x2   :  { %13 = vsyncpa [#allocation5], 0 }
   0x3   :  { %15 = vsyncpa [#allocation5 + $0x1], 0  ;;  %s5696_s26 = smov 0   ;;  %s5698_s27 = smov 0  }
   0x4   :  { %s5700_s28 = smov 0   ;;  %s5702_s29 = smov 0  }
   0x5   :  { %s5704_s30 = smov 0   ;;  %s5706_s8 = smov 0  }
   0x6   :  { %s5708_s9 = smov 0   ;;  %s5710_s10 = smov 0  }
   0x7 LB: > { %s5228_s6 = sadd.s32 4294967295, %s5641_s10   ;;  %s5229_s11 = sadd.s32 4294967294, %s5641_s10   ;;  %s5641_s10 = sphi %s5710_s10, %s21_s10   ;;  %s5637_s9 = sphi %s5708_s9, %s8514_s9   ;;  %s5633_s8 = sphi %s5706_s8, %s8513_s8   ;;  %s5629_s30 = sphi %s5704_s30, %s8512_s30   ;;  %s5625_s29 = sphi %s5702_s29, %s8511_s29   ;;  %s5621_s28 = sphi %s5700_s28, %s8510_s28   ;;  %s5617_s27 = sphi %s5698_s27, %s8509_s27   ;;  %s5613_s26 = sphi %s5696_s26, %s8508_s26  }
   0x8   : > { %s30_s12 = sadd.s32 1, %s5633_s8  ;;  %s33_s13 = sadd.s32 1, %s5637_s9 }
   0x9   : > { %p31_p0 = scmp.ge.s32.totalorder %s30_s12, 2  ;;  %p206_p1 = scmp.ne.s32.totalorder %s5621_s28, %s5617_s27 }
   0xa   : > { %p207_p2 = scmp.eq.s32.totalorder %s5228_s6, 3  ;;  %p212_p5 = scmp.ne.s32.totalorder %s5617_s27, %s5613_s26 }
   0xb   : > { %s8516_s12 = smov (%p31_p0, %s30_s12), 0  ;;  %s8518_s13 = smov (!%p31_p0, %s33_s13), %s5637_s9 }
   0xc   : > { %s192_s14 = ssub.s32 %s5633_s8, %s8516_s12  ;;  %p5747_p3 = por %p207_p2, %p206_p1 }
   0xd   : > { %p35_p4 = scmp.ge.s32.totalorder %s8518_s13, 2  ;;  %p213_p6 = scmp.eq.s32.totalorder %s5229_s11, 3 }
   0xe   : > { %p5232_p7 = scmp.ge.s32.totalorder %s5641_s10, 1  ;;  %p261_p9 = scmp.lt.s32.totalorder %s5641_s10, 5 }
   0xf   : > { %s8520_s13 = smov (%p35_p4, %s8518_s13), 0  ;;  %p5756_p8 = por %p213_p6, %p212_p5 }
  0x10   : > { %8326 = sst [smem:[#allocation7_spill]] %s8520_s13  ;;  %s191_s17 = ssub.s32 %s5637_s9, %s8520_s13 }
  0x11   : > { %s196_s18 = sadd.s32 1, %s5621_s28  ;;  %s193_s19 = sor.u32 %s192_s14, %s191_s17 }
  0x12   : > { %p262_p10 = pnand %p5232_p7, %p261_p9  ;;  %p194_p11 = scmp.eq.s32.totalorder %s193_s19, 0 }
  0x14   : > { %s5765_s20 = scalar_select %p194_p11, %s5621_s28, %s196_s18  }
  0x15   : > { %265 = sbr.rel (%p262_p10) target bundleno = 1776 (0x6f0), region = 48 }
  0x1a   : > { %p297_p12 = scmp.lt.s32.totalorder %s5629_s30, 1  ;;  %p299_p13 = scmp.lt.s32.totalorder %s5625_s29, 1  ;;  %vm307_vm0 = vcmask 155648   ;;  %vm1113_vm1 = vcmask 1040384   ;;  %vm1088_vm2 = vcmask 662528   ;;  %vm1194_vm3 = vcmask 523264  }
  0x1b   : > { %s5643_s17 = smov 123   ;;  %s5644_s18 = smov 125   ;;  %vm1244_vm4 = vcmask 261120   ;;  %vm1019_vm8 = vcmask 130048   ;;  %vm1315_vm9 = vcmask 122880  }
  0x1c   : > { %s298_s21 = scalar_select %p297_p12, %s5629_s30, 1 }
  0x1d   : > { %s300_s22 = scalar_select %p299_p13, %s5625_s29, 1 }
  0x1e   : > { %s5460_s23 = smul.u32 6, %s298_s21  ;;  %s5645_s19 = smov 127  }
  0x1f   : > { %s5459_s24 = smul.u32 3, %s300_s22  ;;  %s5646_s21 = smov 122  }
  0x20   : > { %s5647_s22 = smov 124   ;;  %s5648_s13 = smov 126  }
  0x21   : > { %s303_s25 = sadd.s32 %s5460_s23, %s5459_s24  ;;  %s5649_s23 = smov 120  }
  0x22   : > { %s5234_s6 = sshll.u32 %s303_s25, 3  ;;  %s5650_s24 = smov 121  }
  0x23   : > { %s5774_s14 = scalar_lea.vmem %s8313_s0, %s5234_s6  ;;  %s8324_s11 = sand.u32 1, %s5617_s27  }
  0x24   : > { %v306_v0 = vld [vmem:[%s5774_s14] sm:$0x1]  ;;  %v342_v1 = vld [vmem:[%s5774_s14 + $0x1] sm:$0x1]  ;;  %v377_v2 = vld [vmem:[%s5774_s14 + $0x2] sm:$0x1] }
  0x25   : > { %326 = vrot.lane.b32.xlu2 %v306_v0, %s5643_s17  ;;  %318 = vrot.lane.b32.xlu1 %v306_v0, %s5644_s18  ;;  %308 = vst.msk [vmem:[#allocation2] sm:$0x1] %vm307_vm0, %v306_v0  ;;  %v412_v3 = vld [vmem:[%s5774_s14 + $0x3] sm:$0x1]  ;;  %v447_v4 = vld [vmem:[%s5774_s14 + $0x4] sm:$0x1] }
  0x26   : > { %310 = vrot.lane.b32.xlu0 %v306_v0, %s5645_s19  ;;  %343 = vst.msk [vmem:[#allocation2 + $0x9] sm:$0x1] %vm307_vm0, %v342_v1  ;;  %v482_v5 = vld [vmem:[%s5774_s14 + $0x5] sm:$0x1]  ;;  %v517_v7 = vld [vmem:[%s5774_s14 + $0x6] sm:$0x1] }
  0x27   : > { %378 = vst.msk [vmem:[#allocation2 + $0x12] sm:$0x1] %vm307_vm0, %v377_v2  ;;  %v5836_v10 = vld [vmem:[%s5774_s14 + $0x7] sm:$0x1]  ;;  %v587_v20 = vld [vmem:[%s5774_s14 + $0x8] sm:$0x1] }
  0x28   : > { %413 = vst.msk [vmem:[#allocation2 + $0x1b] sm:$0x1] %vm307_vm0, %v412_v3  ;;  %v622_v30 = vld [vmem:[%s5774_s14 + $0x9] sm:$0x1]  ;;  %v5901_v37 = vld [vmem:[%s5774_s14 + $0xa] sm:$0x1] }
  0x29   : > { %448 = vst.msk [vmem:[#allocation2 + $0x24] sm:$0x1] %vm307_vm0, %v447_v4  ;;  %v692_v47 = vld [vmem:[%s5774_s14 + $0xb] sm:$0x1]  ;;  %v727_v57 = vld [vmem:[%s5774_s14 + $0xc] sm:$0x1] }
  0x2a   : > { %483 = vst.msk [vmem:[#allocation2 + $0x2d] sm:$0x1] %vm307_vm0, %v482_v5 }
  0x2b   : > { %518 = vst.msk [vmem:[#allocation2 + $0x36] sm:$0x1] %vm307_vm0, %v517_v7 }
  0x2c   : > { %553 = vst.msk [vmem:[#allocation2 + $0x3f] sm:$0x1] %vm307_vm0, %v5836_v10 }
  0x2d   : > { %330 = vrot.lane.b32.xlu2 %v306_v0, %s5646_s21  ;;  %322 = vrot.lane.b32.xlu1 %v306_v0, %s5647_s22  ;;  %588 = vst.msk [vmem:[#allocation2 + $0x48] sm:$0x1] %vm307_vm0, %v587_v20 }
  0x2e   : > { %314 = vrot.lane.b32.xlu0 %v306_v0, %s5648_s13  ;;  %623 = vst.msk [vmem:[#allocation2 + $0x51] sm:$0x1] %vm307_vm0, %v622_v30 }
  0x2f   : > { %658 = vst.msk [vmem:[#allocation2 + $0x5a] sm:$0x1] %vm307_vm0, %v5901_v37 }
  0x30   : > { %693 = vst.msk [vmem:[#allocation2 + $0x63] sm:$0x1] %vm307_vm0, %v692_v47 }
  0x31   : > { %728 = vst.msk [vmem:[#allocation2 + $0x6c] sm:$0x1] %vm307_vm0, %v727_v57 }
  0x35   : > { %345 = vrot.lane.b32.xlu2 %v342_v1, %s5645_s19  ;;  %338 = vrot.lane.b32.xlu1 %v306_v0, %s5649_s23 }
  0x36   : > { %334 = vrot.lane.b32.xlu0 %v306_v0, %s5650_s24  ;;  %v5966_v0 = vld [vmem:[%s5774_s14 + $0xd] sm:$0x1] }
  0x37   : > { %763 = vst.msk [vmem:[#allocation2 + $0x75] sm:$0x1] %vm307_vm0, %v5966_v0 }
  0x3d   : > { %357 = vrot.lane.b32.xlu2 %v342_v1, %s5647_s22  ;;  %353 = vrot.lane.b32.xlu1 %v342_v1, %s5644_s18 }
  0x3e   : > { %349 = vrot.lane.b32.xlu0 %v342_v1, %s5648_s13 }
  0x45   : > { %369 = vrot.lane.b32.xlu2 %v342_v1, %s5650_s24  ;;  %365 = vrot.lane.b32.xlu1 %v342_v1, %s5646_s21 }
  0x46   : > { %361 = vrot.lane.b32.xlu0 %v342_v1, %s5643_s17 }
  0x4d   : > { %384 = vrot.lane.b32.xlu2 %v377_v2, %s5648_s13  ;;  %380 = vrot.lane.b32.xlu1 %v377_v2, %s5645_s19 }
  0x4e   : > { %373 = vrot.lane.b32.xlu0 %v342_v1, %s5649_s23 }
  0x55   : > { %396 = vrot.lane.b32.xlu2 %v377_v2, %s5643_s17  ;;  %392 = vrot.lane.b32.xlu1 %v377_v2, %s5647_s22 }
  0x56   : > { %388 = vrot.lane.b32.xlu0 %v377_v2, %s5644_s18 }
  0x5d   : > { %408 = vrot.lane.b32.xlu2 %v377_v2, %s5649_s23  ;;  %404 = vrot.lane.b32.xlu1 %v377_v2, %s5650_s24 }
  0x5e   : > { %400 = vrot.lane.b32.xlu0 %v377_v2, %s5646_s21 }
  0x65   : > { %423 = vrot.lane.b32.xlu2 %v412_v3, %s5644_s18  ;;  %419 = vrot.lane.b32.xlu1 %v412_v3, %s5648_s13 }
  0x66   : > { %415 = vrot.lane.b32.xlu0 %v412_v3, %s5645_s19 }
  0x6d   : > { %435 = vrot.lane.b32.xlu2 %v412_v3, %s5646_s21  ;;  %431 = vrot.lane.b32.xlu1 %v412_v3, %s5643_s17 }
  0x6e   : > { %427 = vrot.lane.b32.xlu0 %v412_v3, %s5647_s22 }
  0x75   : > { %450 = vrot.lane.b32.xlu2 %v447_v4, %s5645_s19  ;;  %443 = vrot.lane.b32.xlu1 %v412_v3, %s5649_s23 }
  0x76   : > { %439 = vrot.lane.b32.xlu0 %v412_v3, %s5650_s24 }
  0x7d   : > { %462 = vrot.lane.b32.xlu2 %v447_v4, %s5647_s22  ;;  %458 = vrot.lane.b32.xlu1 %v447_v4, %s5644_s18 }
  0x7e   : > { %454 = vrot.lane.b32.xlu0 %v447_v4, %s5648_s13 }
  0x7f   : > { %v327_v6 = vpop.permute.xlu2 %326 }
  0x80   : > { %329 = vst.msk [vmem:[#allocation2 + $0x5] sm:$0x1] %vm307_vm0, %v327_v6 }
  0x85   : > { %474 = vrot.lane.b32.xlu2 %v447_v4, %s5650_s24  ;;  %470 = vrot.lane.b32.xlu1 %v447_v4, %s5646_s21 }
  0x86   : > { %466 = vrot.lane.b32.xlu0 %v447_v4, %s5643_s17 }
  0x87   : > { %v331_v8 = vpop.permute.xlu2 %330 }
  0x88   : > { %333 = vst.msk [vmem:[#allocation2 + $0x6] sm:$0x1] %vm307_vm0, %v331_v8 }
  0x8d   : > { %489 = vrot.lane.b32.xlu2 %v482_v5, %s5648_s13  ;;  %485 = vrot.lane.b32.xlu1 %v482_v5, %s5645_s19 }
  0x8e   : > { %478 = vrot.lane.b32.xlu0 %v447_v4, %s5649_s23 }
  0x8f   : > { %v346_v9 = vpop.permute.xlu2 %345 }
  0x90   : > { %348 = vst.msk [vmem:[#allocation2 + $0xa] sm:$0x1] %vm307_vm0, %v346_v9 }
  0x95   : > { %501 = vrot.lane.b32.xlu2 %v482_v5, %s5643_s17  ;;  %497 = vrot.lane.b32.xlu1 %v482_v5, %s5647_s22 }
  0x96   : > { %493 = vrot.lane.b32.xlu0 %v482_v5, %s5644_s18 }
  0x97   : > { %v358_v11 = vpop.permute.xlu2 %357  ;;  %v319_v12 = vpop.permute.xlu1 %318 }
  0x98   : > { %360 = vst.msk [vmem:[#allocation2 + $0xd] sm:$0x1] %vm307_vm0, %v358_v11  ;;  %v311_v13 = vpop.permute.xlu0 %310 }
  0x99   : > { %321 = vst.msk [vmem:[#allocation2 + $0x3] sm:$0x1] %vm307_vm0, %v319_v12 }
  0x9a   : > { %313 = vst.msk [vmem:[#allocation2 + $0x1] sm:$0x1] %vm307_vm0, %v311_v13 }
  0x9d   : > { %513 = vrot.lane.b32.xlu2 %v482_v5, %s5649_s23  ;;  %509 = vrot.lane.b32.xlu1 %v482_v5, %s5650_s24 }
  0x9e   : > { %505 = vrot.lane.b32.xlu0 %v482_v5, %s5646_s21 }
  0x9f   : > { %v370_v14 = vpop.permute.xlu2 %369  ;;  %v323_v15 = vpop.permute.xlu1 %322 }
  0xa0   : > { %372 = vst.msk [vmem:[#allocation2 + $0x10] sm:$0x1] %vm307_vm0, %v370_v14  ;;  %v315_v16 = vpop.permute.xlu0 %314 }
  0xa1   : > { %325 = vst.msk [vmem:[#allocation2 + $0x4] sm:$0x1] %vm307_vm0, %v323_v15 }
  0xa2   : > { %317 = vst.msk [vmem:[#allocation2 + $0x2] sm:$0x1] %vm307_vm0, %v315_v16 }
  0xa5   : > { %528 = vrot.lane.b32.xlu2 %v517_v7, %s5644_s18  ;;  %524 = vrot.lane.b32.xlu1 %v517_v7, %s5648_s13 }
  0xa6   : > { %520 = vrot.lane.b32.xlu0 %v517_v7, %s5645_s19 }
  0xa7   : > { %v385_v17 = vpop.permute.xlu2 %384  ;;  %v339_v18 = vpop.permute.xlu1 %338 }
  0xa8   : > { %387 = vst.msk [vmem:[#allocation2 + $0x14] sm:$0x1] %vm307_vm0, %v385_v17  ;;  %v335_v19 = vpop.permute.xlu0 %334 }
  0xa9   : > { %341 = vst.msk [vmem:[#allocation2 + $0x8] sm:$0x1] %vm307_vm0, %v339_v18 }
  0xaa   : > { %337 = vst.msk [vmem:[#allocation2 + $0x7] sm:$0x1] %vm307_vm0, %v335_v19 }
  0xad   : > { %540 = vrot.lane.b32.xlu2 %v517_v7, %s5646_s21  ;;  %536 = vrot.lane.b32.xlu1 %v517_v7, %s5643_s17 }
  0xae   : > { %532 = vrot.lane.b32.xlu0 %v517_v7, %s5647_s22 }
  0xaf   : > { %v397_v21 = vpop.permute.xlu2 %396  ;;  %v354_v22 = vpop.permute.xlu1 %353 }
  0xb0   : > { %399 = vst.msk [vmem:[#allocation2 + $0x17] sm:$0x1] %vm307_vm0, %v397_v21  ;;  %v350_v23 = vpop.permute.xlu0 %349  ;;  %v6023_v21 = vld [vmem:[%s5774_s14 + $0xf] sm:$0x1] }
  0xb1   : > { %356 = vst.msk [vmem:[#allocation2 + $0xc] sm:$0x1] %vm307_vm0, %v354_v22 }
  0xb2   : > { %352 = vst.msk [vmem:[#allocation2 + $0xb] sm:$0x1] %vm307_vm0, %v350_v23 }
  0xb3   : > { %833 = vst.msk [vmem:[#allocation2 + $0x87] sm:$0x1] %vm307_vm0, %v6023_v21 }
  0xb5   : > { %555 = vrot.lane.b32.xlu2 %v5836_v10, %s5645_s19  ;;  %548 = vrot.lane.b32.xlu1 %v517_v7, %s5649_s23 }
  0xb6   : > { %544 = vrot.lane.b32.xlu0 %v517_v7, %s5650_s24 }
  0xb7   : > { %v409_v24 = vpop.permute.xlu2 %408  ;;  %v366_v25 = vpop.permute.xlu1 %365 }
  0xb8   : > { %411 = vst.msk [vmem:[#allocation2 + $0x1a] sm:$0x1] %vm307_vm0, %v409_v24  ;;  %v362_v26 = vpop.permute.xlu0 %361 }
  0xb9   : > { %368 = vst.msk [vmem:[#allocation2 + $0xf] sm:$0x1] %vm307_vm0, %v366_v25 }
  0xba   : > { %364 = vst.msk [vmem:[#allocation2 + $0xe] sm:$0x1] %vm307_vm0, %v362_v26 }
  0xbd   : > { %567 = vrot.lane.b32.xlu2 %v5836_v10, %s5647_s22  ;;  %563 = vrot.lane.b32.xlu1 %v5836_v10, %s5644_s18 }
  0xbe   : > { %559 = vrot.lane.b32.xlu0 %v5836_v10, %s5648_s13 }
  0xbf   : > { %v424_v27 = vpop.permute.xlu2 %423  ;;  %v381_v28 = vpop.permute.xlu1 %380 }
  0xc0   : > { %426 = vst.msk [vmem:[#allocation2 + $0x1e] sm:$0x1] %vm307_vm0, %v424_v27  ;;  %v374_v29 = vpop.permute.xlu0 %373 }
  0xc1   : > { %383 = vst.msk [vmem:[#allocation2 + $0x13] sm:$0x1] %vm307_vm0, %v381_v28  ;;  %v6044_v28 = vld [vmem:[%s5774_s14 + $0x10] sm:$0x1] }
  0xc2   : > { %376 = vst.msk [vmem:[#allocation2 + $0x11] sm:$0x1] %vm307_vm0, %v374_v29 }
  0xc3   : > { %868 = vst.msk [vmem:[#allocation2 + $0x90] sm:$0x1] %vm307_vm0, %v6044_v28 }
  0xc5   : > { %579 = vrot.lane.b32.xlu2 %v5836_v10, %s5650_s24  ;;  %575 = vrot.lane.b32.xlu1 %v5836_v10, %s5646_s21 }
  0xc6   : > { %571 = vrot.lane.b32.xlu0 %v5836_v10, %s5643_s17 }
  0xc7   : > { %v436_v31 = vpop.permute.xlu2 %435  ;;  %v393_v32 = vpop.permute.xlu1 %392 }
  0xc8   : > { %438 = vst.msk [vmem:[#allocation2 + $0x21] sm:$0x1] %vm307_vm0, %v436_v31  ;;  %v389_v33 = vpop.permute.xlu0 %388 }
  0xc9   : > { %395 = vst.msk [vmem:[#allocation2 + $0x16] sm:$0x1] %vm307_vm0, %v393_v32 }
  0xca   : > { %391 = vst.msk [vmem:[#allocation2 + $0x15] sm:$0x1] %vm307_vm0, %v389_v33 }
  0xcd   : > { %594 = vrot.lane.b32.xlu2 %v587_v20, %s5648_s13  ;;  %590 = vrot.lane.b32.xlu1 %v587_v20, %s5645_s19 }
  0xce   : > { %583 = vrot.lane.b32.xlu0 %v5836_v10, %s5649_s23  ;;  %v5989_v10 = vld [vmem:[%s5774_s14 + $0xe] sm:$0x1] }
  0xcf   : > { %v451_v34 = vpop.permute.xlu2 %450  ;;  %v405_v35 = vpop.permute.xlu1 %404  ;;  %798 = vst.msk [vmem:[#allocation2 + $0x7e] sm:$0x1] %vm307_vm0, %v5989_v10 }
  0xd0   : > { %453 = vst.msk [vmem:[#allocation2 + $0x25] sm:$0x1] %vm307_vm0, %v451_v34  ;;  %v401_v36 = vpop.permute.xlu0 %400 }
  0xd1   : > { %407 = vst.msk [vmem:[#allocation2 + $0x19] sm:$0x1] %vm307_vm0, %v405_v35 }
  0xd2   : > { %403 = vst.msk [vmem:[#allocation2 + $0x18] sm:$0x1] %vm307_vm0, %v401_v36 }
  0xd5   : > { %606 = vrot.lane.b32.xlu2 %v587_v20, %s5643_s17  ;;  %602 = vrot.lane.b32.xlu1 %v587_v20, %s5647_s22 }
  0xd6   : > { %598 = vrot.lane.b32.xlu0 %v587_v20, %s5644_s18 }
  0xd7   : > { %v463_v38 = vpop.permute.xlu2 %462  ;;  %v420_v39 = vpop.permute.xlu1 %419 }
  0xd8   : > { %465 = vst.msk [vmem:[#allocation2 + $0x28] sm:$0x1] %vm307_vm0, %v463_v38  ;;  %v416_v40 = vpop.permute.xlu0 %415 }
  0xd9   : > { %422 = vst.msk [vmem:[#allocation2 + $0x1d] sm:$0x1] %vm307_vm0, %v420_v39 }
  0xda   : > { %418 = vst.msk [vmem:[#allocation2 + $0x1c] sm:$0x1] %vm307_vm0, %v416_v40 }
  0xdd   : > { %618 = vrot.lane.b32.xlu2 %v587_v20, %s5649_s23  ;;  %614 = vrot.lane.b32.xlu1 %v587_v20, %s5650_s24 }
  0xde   : > { %610 = vrot.lane.b32.xlu0 %v587_v20, %s5646_s21 }
  0xdf   : > { %v475_v41 = vpop.permute.xlu2 %474  ;;  %v432_v42 = vpop.permute.xlu1 %431 }
  0xe0   : > { %477 = vst.msk [vmem:[#allocation2 + $0x2b] sm:$0x1] %vm307_vm0, %v475_v41  ;;  %v428_v43 = vpop.permute.xlu0 %427 }
  0xe1   : > { %434 = vst.msk [vmem:[#allocation2 + $0x20] sm:$0x1] %vm307_vm0, %v432_v42  ;;  %v1023_v42 = vld [vmem:[#allocation2 + $0x10] sm:$0xff] }
  0xe2   : > { %430 = vst.msk [vmem:[#allocation2 + $0x1f] sm:$0x1] %vm307_vm0, %v428_v43 }
  0xe5   : > { %633 = vrot.lane.b32.xlu2 %v622_v30, %s5644_s18  ;;  %629 = vrot.lane.b32.xlu1 %v622_v30, %s5648_s13 }
  0xe6   : > { %625 = vrot.lane.b32.xlu0 %v622_v30, %s5645_s19 }
  0xe7   : > { %v490_v44 = vpop.permute.xlu2 %489  ;;  %v444_v45 = vpop.permute.xlu1 %443 }
  0xe8   : > { %492 = vst.msk [vmem:[#allocation2 + $0x2f] sm:$0x1] %vm307_vm0, %v490_v44  ;;  %v440_v46 = vpop.permute.xlu0 %439 }
  0xe9   : > { %446 = vst.msk [vmem:[#allocation2 + $0x23] sm:$0x1] %vm307_vm0, %v444_v45  ;;  %v1024_v41 = vld [vmem:[#allocation2 + $0x18] sm:$0xff] }
  0xea   : > { %442 = vst.msk [vmem:[#allocation2 + $0x22] sm:$0x1] %vm307_vm0, %v440_v46  ;;  %v1022_v46 = vld [vmem:[#allocation2 + $0x8] sm:$0xff] }
  0xed   : > { %645 = vrot.lane.b32.xlu2 %v622_v30, %s5646_s21  ;;  %641 = vrot.lane.b32.xlu1 %v622_v30, %s5643_s17 }
  0xee   : > { %637 = vrot.lane.b32.xlu0 %v622_v30, %s5647_s22 }
  0xef   : > { %v502_v48 = vpop.permute.xlu2 %501  ;;  %v459_v49 = vpop.permute.xlu1 %458 }
  0xf0   : > { %504 = vst.msk [vmem:[#allocation2 + $0x32] sm:$0x1] %vm307_vm0, %v502_v48  ;;  %v455_v50 = vpop.permute.xlu0 %454  ;;  %v1021_v48 = vld [vmem:[#allocation2] sm:$0xff] }
  0xf1   : > { %461 = vst.msk [vmem:[#allocation2 + $0x27] sm:$0x1] %vm307_vm0, %v459_v49  ;;  %v6083_v49 = vld [vmem:[%s8314_s1] sm:$0xff] }
  0xf2   : > { %457 = vst.msk [vmem:[#allocation2 + $0x26] sm:$0x1] %vm307_vm0, %v455_v50 }
  0xf5   : > { %660 = vrot.lane.b32.xlu2 %v5901_v37, %s5645_s19  ;;  %653 = vrot.lane.b32.xlu1 %v622_v30, %s5649_s23 }
  0xf6   : > { %649 = vrot.lane.b32.xlu0 %v622_v30, %s5650_s24 }
  0xf7   : > { %v514_v51 = vpop.permute.xlu2 %513  ;;  %v471_v52 = vpop.permute.xlu1 %470 }
  0xf8   : > { %516 = vst.msk [vmem:[#allocation2 + $0x35] sm:$0x1] %vm307_vm0, %v514_v51  ;;  %v467_v53 = vpop.permute.xlu0 %466 }
  0xf9   : > { %473 = vst.msk [vmem:[#allocation2 + $0x2a] sm:$0x1] %vm307_vm0, %v471_v52  ;;  %v1025_v40 = vld [vmem:[#allocation2 + $0x20] sm:$0xff] }
  0xfa   : > { %469 = vst.msk [vmem:[#allocation2 + $0x29] sm:$0x1] %vm307_vm0, %v467_v53 }
  0xfd   : > { %672 = vrot.lane.b32.xlu2 %v5901_v37, %s5647_s22  ;;  %668 = vrot.lane.b32.xlu1 %v5901_v37, %s5644_s18 }
  0xfe   : > { %664 = vrot.lane.b32.xlu0 %v5901_v37, %s5648_s13 }
  0xff   : > { %v529_v54 = vpop.permute.xlu2 %528  ;;  %v486_v55 = vpop.permute.xlu1 %485 }
 0x100   : > { %531 = vst.msk [vmem:[#allocation2 + $0x39] sm:$0x1] %vm307_vm0, %v529_v54  ;;  %v479_v56 = vpop.permute.xlu0 %478 }
 0x101   : > { %488 = vst.msk [vmem:[#allocation2 + $0x2e] sm:$0x1] %vm307_vm0, %v486_v55 }
 0x102   : > { %481 = vst.msk [vmem:[#allocation2 + $0x2c] sm:$0x1] %vm307_vm0, %v479_v56 }
 0x105   : > { %684 = vrot.lane.b32.xlu2 %v5901_v37, %s5650_s24  ;;  %680 = vrot.lane.b32.xlu1 %v5901_v37, %s5646_s21 }
 0x106   : > { %676 = vrot.lane.b32.xlu0 %v5901_v37, %s5643_s17 }
 0x107   : > { %v541_v58 = vpop.permute.xlu2 %540  ;;  %v498_v59 = vpop.permute.xlu1 %497 }
 0x108   : > { %543 = vst.msk [vmem:[#allocation2 + $0x3c] sm:$0x1] %vm307_vm0, %v541_v58  ;;  %v494_v60 = vpop.permute.xlu0 %493 }
 0x109   : > { %500 = vst.msk [vmem:[#allocation2 + $0x31] sm:$0x1] %vm307_vm0, %v498_v59  ;;  %v1026_v39 = vld [vmem:[#allocation2 + $0x28] sm:$0xff] }
 0x10a   : > { %496 = vst.msk [vmem:[#allocation2 + $0x30] sm:$0x1] %vm307_vm0, %v494_v60 }
 0x10d   : > { %699 = vrot.lane.b32.xlu2 %v692_v47, %s5648_s13  ;;  %695 = vrot.lane.b32.xlu1 %v692_v47, %s5645_s19 }
 0x10e   : > { %688 = vrot.lane.b32.xlu0 %v5901_v37, %s5649_s23 }
 0x10f   : > { %v556_v61 = vpop.permute.xlu2 %555  ;;  %v510_v62 = vpop.permute.xlu1 %509 }
 0x110   : > { %558 = vst.msk [vmem:[#allocation2 + $0x40] sm:$0x1] %vm307_vm0, %v556_v61  ;;  %v506_v63 = vpop.permute.xlu0 %505 }
 0x111   : > { %512 = vst.msk [vmem:[#allocation2 + $0x34] sm:$0x1] %vm307_vm0, %v510_v62 }
 0x112   : > { %508 = vst.msk [vmem:[#allocation2 + $0x33] sm:$0x1] %vm307_vm0, %v506_v63  ;;  %v1321_v63 = vld [vmem:[#allocation2 + $0x29] sm:$0xff] }
 0x115   : > { %711 = vrot.lane.b32.xlu2 %v692_v47, %s5643_s17  ;;  %707 = vrot.lane.b32.xlu1 %v692_v47, %s5647_s22 }
 0x116   : > { %703 = vrot.lane.b32.xlu0 %v692_v47, %s5644_s18 }
 0x117   : > { %v568_v1 = vpop.permute.xlu2 %567  ;;  %v525_v2 = vpop.permute.xlu1 %524 }
 0x118   : > { %570 = vst.msk [vmem:[#allocation2 + $0x43] sm:$0x1] %vm307_vm0, %v568_v1  ;;  %v521_v3 = vpop.permute.xlu0 %520  ;;  %v6121_v1 = vld [vmem:[%s8314_s1 + $0x10] sm:$0xff] }
 0x119   : > { %527 = vst.msk [vmem:[#allocation2 + $0x38] sm:$0x1] %vm307_vm0, %v525_v2 }
 0x11a   : > { %523 = vst.msk [vmem:[#allocation2 + $0x37] sm:$0x1] %vm307_vm0, %v521_v3 }
 0x11d   : > { %723 = vrot.lane.b32.xlu2 %v692_v47, %s5649_s23  ;;  %719 = vrot.lane.b32.xlu1 %v692_v47, %s5650_s24 }
 0x11e   : > { %715 = vrot.lane.b32.xlu0 %v692_v47, %s5646_s21  ;;  %v6072_v47 = vld [vmem:[%s5774_s14 + $0x11] sm:$0x1] }
 0x11f   : > { %v580_v4 = vpop.permute.xlu2 %579  ;;  %v537_v5 = vpop.permute.xlu1 %536  ;;  %903 = vst.msk [vmem:[#allocation2 + $0x99] sm:$0x1] %vm307_vm0, %v6072_v47 }
 0x120   : > { %582 = vst.msk [vmem:[#allocation2 + $0x46] sm:$0x1] %vm307_vm0, %v580_v4  ;;  %v533_v6 = vpop.permute.xlu0 %532 }
 0x121   : > { %539 = vst.msk [vmem:[#allocation2 + $0x3b] sm:$0x1] %vm307_vm0, %v537_v5  ;;  %v1027_v35 = vld [vmem:[#allocation2 + $0x30] sm:$0xff]  ;;  %v1319_v5 = vld [vmem:[#allocation2 + $0x19] sm:$0xff] }
 0x122   : > { %535 = vst.msk [vmem:[#allocation2 + $0x3a] sm:$0x1] %vm307_vm0, %v533_v6  ;;  %v1322_v62 = vld [vmem:[#allocation2 + $0x31] sm:$0xff] }
 0x123   : > { %v1318_v6 = vld [vmem:[#allocation2 + $0x11] sm:$0xff] }
 0x125   : > { %738 = vrot.lane.b32.xlu2 %v727_v57, %s5644_s18  ;;  %734 = vrot.lane.b32.xlu1 %v727_v57, %s5648_s13 }
 0x126   : > { %730 = vrot.lane.b32.xlu0 %v727_v57, %s5645_s19 }
 0x127   : > { %v595_v7 = vpop.permute.xlu2 %594  ;;  %v549_v8 = vpop.permute.xlu1 %548 }
 0x128   : > { %597 = vst.msk [vmem:[#allocation2 + $0x4a] sm:$0x1] %vm307_vm0, %v595_v7  ;;  %v545_v9 = vpop.permute.xlu0 %544  ;;  %v1317_v7 = vld [vmem:[#allocation2 + $0x9] sm:$0xff] }
 0x129   : > { %551 = vst.msk [vmem:[#allocation2 + $0x3e] sm:$0x1] %vm307_vm0, %v549_v8 }
 0x12a   : > { %547 = vst.msk [vmem:[#allocation2 + $0x3d] sm:$0x1] %vm307_vm0, %v545_v9  ;;  %v6137_v9 = vld [vmem:[%s8314_s1 + $0x18] sm:$0xff] }
 0x12d   : > { %750 = vrot.lane.b32.xlu2 %v727_v57, %s5646_s21  ;;  %746 = vrot.lane.b32.xlu1 %v727_v57, %s5643_s17 }
 0x12e   : > { %742 = vrot.lane.b32.xlu0 %v727_v57, %s5647_s22 }
 0x12f   : > { %v607_v11 = vpop.permute.xlu2 %606  ;;  %v564_v12 = vpop.permute.xlu1 %563 }
 0x130   : > { %609 = vst.msk [vmem:[#allocation2 + $0x4d] sm:$0x1] %vm307_vm0, %v607_v11  ;;  %v560_v13 = vpop.permute.xlu0 %559 }
 0x131   : > { %566 = vst.msk [vmem:[#allocation2 + $0x42] sm:$0x1] %vm307_vm0, %v564_v12  ;;  %v1028_v34 = vld [vmem:[#allocation2 + $0x38] sm:$0xff] }
 0x132   : > { %562 = vst.msk [vmem:[#allocation2 + $0x41] sm:$0x1] %vm307_vm0, %v560_v13  ;;  %v1323_v61 = vld [vmem:[#allocation2 + $0x39] sm:$0xff] }
 0x135   : > { %765 = vrot.lane.b32.xlu2 %v5966_v0, %s5645_s19  ;;  %758 = vrot.lane.b32.xlu1 %v727_v57, %s5649_s23 }
 0x136   : > { %754 = vrot.lane.b32.xlu0 %v727_v57, %s5650_s24  ;;  %v6105_v57 = vld [vmem:[%s8314_s1 + $0x8] sm:$0xff] }
 0x137   : > { %v619_v14 = vpop.permute.xlu2 %618  ;;  %v576_v15 = vpop.permute.xlu1 %575 }
 0x138   : > { %621 = vst.msk [vmem:[#allocation2 + $0x50] sm:$0x1] %vm307_vm0, %v619_v14  ;;  %v572_v16 = vpop.permute.xlu0 %571  ;;  %v6161_v14 = vld [vmem:[%s8314_s1 + $0x20] sm:$0xff] }
 0x139   : > { %578 = vst.msk [vmem:[#allocation2 + $0x45] sm:$0x1] %vm307_vm0, %v576_v15 }
 0x13a   : > { %574 = vst.msk [vmem:[#allocation2 + $0x44] sm:$0x1] %vm307_vm0, %v572_v16 }
 0x13d   : > { %777 = vrot.lane.b32.xlu2 %v5966_v0, %s5647_s22  ;;  %773 = vrot.lane.b32.xlu1 %v5966_v0, %s5644_s18 }
 0x13e   : > { %769 = vrot.lane.b32.xlu0 %v5966_v0, %s5648_s13 }
 0x13f   : > { %v634_v17 = vpop.permute.xlu2 %633  ;;  %v591_v18 = vpop.permute.xlu1 %590  ;;  %v1031_v19 = vld [vmem:[#allocation2 + $0x50] sm:$0x1] }
 0x140   : > { %636 = vst.msk [vmem:[#allocation2 + $0x54] sm:$0x1] %vm307_vm0, %v634_v17  ;;  %v584_v20 = vpop.permute.xlu0 %583  ;;  %5238 = vmatpush.msk.msra.mxu0 %vm1113_vm1, %v1031_v19  ;;  %v6184_v19 = vld [vmem:[%s8314_s1 + $0x28] sm:$0xff] }
 0x141   : > { %593 = vst.msk [vmem:[#allocation2 + $0x49] sm:$0x1] %vm307_vm0, %v591_v18  ;;  %v6171_v18 = vld [vmem:[%s5774_s14 + $0x13] sm:$0x1] }
 0x142   : > { %586 = vst.msk [vmem:[#allocation2 + $0x47] sm:$0x1] %vm307_vm0, %v584_v20 }
 0x143   : > { %973 = vst.msk [vmem:[#allocation2 + $0xab] sm:$0x1] %vm307_vm0, %v6171_v18 }
 0x145   : > { %789 = vrot.lane.b32.xlu2 %v5966_v0, %s5650_s24  ;;  %785 = vrot.lane.b32.xlu1 %v5966_v0, %s5646_s21 }
 0x146   : > { %781 = vrot.lane.b32.xlu0 %v5966_v0, %s5643_s17 }
 0x147   : > { %v646_v22 = vpop.permute.xlu2 %645  ;;  %v603_v23 = vpop.permute.xlu1 %602 }
 0x148   : > { %648 = vst.msk [vmem:[#allocation2 + $0x57] sm:$0x1] %vm307_vm0, %v646_v22  ;;  %v599_v24 = vpop.permute.xlu0 %598 }
 0x149   : > { %605 = vst.msk [vmem:[#allocation2 + $0x4c] sm:$0x1] %vm307_vm0, %v603_v23  ;;  %v1029_v33 = vld [vmem:[#allocation2 + $0x40] sm:$0xff] }
 0x14a   : > { %601 = vst.msk [vmem:[#allocation2 + $0x4b] sm:$0x1] %vm307_vm0, %v599_v24  ;;  %v1324_v56 = vld [vmem:[#allocation2 + $0x41] sm:$0xff] }
 0x14d   : > { %804 = vrot.lane.b32.xlu2 %v5989_v10, %s5648_s13  ;;  %800 = vrot.lane.b32.xlu1 %v5989_v10, %s5645_s19 }
 0x14e   : > { %793 = vrot.lane.b32.xlu0 %v5966_v0, %s5649_s23  ;;  %v1320_v0 = vld [vmem:[#allocation2 + $0x21] sm:$0xff] }
 0x14f   : > { %v661_v25 = vpop.permute.xlu2 %660  ;;  %v615_v26 = vpop.permute.xlu1 %614 }
 0x150   : > { %663 = vst.msk [vmem:[#allocation2 + $0x5b] sm:$0x1] %vm307_vm0, %v661_v25  ;;  %v611_v27 = vpop.permute.xlu0 %610 }
 0x151   : > { %617 = vst.msk [vmem:[#allocation2 + $0x4f] sm:$0x1] %vm307_vm0, %v615_v26 }
 0x152   : > { %613 = vst.msk [vmem:[#allocation2 + $0x4e] sm:$0x1] %vm307_vm0, %v611_v27 }
 0x155   : > { %816 = vrot.lane.b32.xlu2 %v5989_v10, %s5643_s17  ;;  %812 = vrot.lane.b32.xlu1 %v5989_v10, %s5647_s22 }
 0x156   : > { %808 = vrot.lane.b32.xlu0 %v5989_v10, %s5644_s18 }
 0x157   : > { %v673_v29 = vpop.permute.xlu2 %672  ;;  %v630_v30 = vpop.permute.xlu1 %629 }
 0x158   : > { %675 = vst.msk [vmem:[#allocation2 + $0x5e] sm:$0x1] %vm307_vm0, %v673_v29  ;;  %v626_v31 = vpop.permute.xlu0 %625  ;;  %v6207_v29 = vld [vmem:[%s8314_s1 + $0x30] sm:$0xff] }
 0x159   : > { %632 = vst.msk [vmem:[#allocation2 + $0x53] sm:$0x1] %vm307_vm0, %v630_v30  ;;  %v1030_v32 = vld [vmem:[#allocation2 + $0x48] sm:$0xff] }
 0x15a   : > { %628 = vst.msk [vmem:[#allocation2 + $0x52] sm:$0x1] %vm307_vm0, %v626_v31  ;;  %1123 = vmatpush.msra.mxu0 %v1030_v32  ;;  %v1325_v55 = vld [vmem:[#allocation2 + $0x49] sm:$0xff]  ;;  %v1960_v32 = vld [vmem:[#allocation2 + $0x3b] sm:$0xff] }
 0x15b   : > { %v1961_v31 = vld [vmem:[#allocation2 + $0x43] sm:$0xff] }
 0x15c   : > { %1124 = vmatpush.msra.mxu0 %v1029_v33  ;;  %v1959_v33 = vld [vmem:[#allocation2 + $0x33] sm:$0xff] }
 0x15d   : > { %828 = vrot.lane.b32.xlu2 %v5989_v10, %s5649_s23  ;;  %824 = vrot.lane.b32.xlu1 %v5989_v10, %s5650_s24 }
 0x15e   : > { %1125 = vmatpush.msra.mxu0 %v1028_v34  ;;  %820 = vrot.lane.b32.xlu0 %v5989_v10, %s5646_s21  ;;  %v6140_v10 = vld [vmem:[%s5774_s14 + $0x12] sm:$0x1] }
 0x15f   : > { %v685_v36 = vpop.permute.xlu2 %684  ;;  %v642_v37 = vpop.permute.xlu1 %641  ;;  %938 = vst.msk [vmem:[#allocation2 + $0xa2] sm:$0x1] %vm307_vm0, %v6140_v10  ;;  %v1958_v34 = vld [vmem:[#allocation2 + $0x2b] sm:$0xff] }
 0x160   : > { %1126 = vmatpush.msra.mxu0 %v1027_v35  ;;  %687 = vst.msk [vmem:[#allocation2 + $0x61] sm:$0x1] %vm307_vm0, %v685_v36  ;;  %v638_v38 = vpop.permute.xlu0 %637 }
 0x161   : > { %644 = vst.msk [vmem:[#allocation2 + $0x56] sm:$0x1] %vm307_vm0, %v642_v37  ;;  %v1962_v26 = vld [vmem:[#allocation2 + $0x4b] sm:$0xff]  ;;  %v6225_v37 = vld [vmem:[%s8314_s1 + $0x38] sm:$0xff] }
 0x162   : > { %640 = vst.msk [vmem:[#allocation2 + $0x55] sm:$0x1] %vm307_vm0, %v638_v38  ;;  %1127 = vmatpush.msra.mxu0 %v1026_v39  ;;  %v1957_v39 = vld [vmem:[#allocation2 + $0x23] sm:$0xff] }
 0x164   : > { %1128 = vmatpush.msra.mxu0 %v1025_v40  ;;  %v1956_v40 = vld [vmem:[#allocation2 + $0x1b] sm:$0xff] }
 0x165   : > { %843 = vrot.lane.b32.xlu2 %v6023_v21, %s5644_s18  ;;  %839 = vrot.lane.b32.xlu1 %v6023_v21, %s5648_s13 }
 0x166   : > { %1129 = vmatpush.msra.mxu0 %v1024_v41  ;;  %835 = vrot.lane.b32.xlu0 %v6023_v21, %s5645_s19  ;;  %v5651_v41 = vmov 0  }
 0x167   : > { %v700_v43 = vpop.permute.xlu2 %699  ;;  %v654_v44 = vpop.permute.xlu1 %653  ;;  %5542 = vset.pattern.permute.xlu1 %v5651_v41  ;;  %5543 = vset.pattern.permute.xlu2 %v5651_v41 }
 0x168   : > { %1130 = vmatpush.msra.mxu0 %v1023_v42  ;;  %702 = vst.msk [vmem:[#allocation2 + $0x65] sm:$0x1] %vm307_vm0, %v700_v43  ;;  %v650_v45 = vpop.permute.xlu0 %649  ;;  %5544 = vset.pattern.permute.xlu0 %v5651_v41 }
 0x169   : > { %656 = vst.msk [vmem:[#allocation2 + $0x59] sm:$0x1] %vm307_vm0, %v654_v44 }
 0x16a   : > { %652 = vst.msk [vmem:[#allocation2 + $0x58] sm:$0x1] %vm307_vm0, %v650_v45  ;;  %1131 = vmatpush.msra.mxu0 %v1022_v46 }
 0x16c   : > { %1132 = vmatpush.msra.mxu0 %v1021_v48 }
 0x16d   : > { %855 = vrot.lane.b32.xlu2 %v6023_v21, %s5646_s21  ;;  %851 = vrot.lane.b32.xlu1 %v6023_v21, %s5643_s17 }
 0x16e   : > { %847 = vrot.lane.b32.xlu0 %v6023_v21, %s5647_s22  ;;  %5239 = vmatmul.msk.f32.vlgmr.msra.gmra.mxu0 %vm1088_vm2, %v6083_v49 }
 0x16f   : > { %v712_v50 = vpop.permute.xlu2 %711  ;;  %v669_v51 = vpop.permute.xlu1 %668 }
 0x170   : > { %714 = vst.msk [vmem:[#allocation2 + $0x68] sm:$0x1] %vm307_vm0, %v712_v50  ;;  %v665_v52 = vpop.permute.xlu0 %664  ;;  %v1327_v53 = vld [vmem:[#allocation2 + $0x59] sm:$0x1] }
 0x171   : > { %671 = vst.msk [vmem:[#allocation2 + $0x5d] sm:$0x1] %vm307_vm0, %v669_v51  ;;  %5256 = vmatpush.msk.msra.mxu3 %vm1113_vm1, %v1327_v53  ;;  %v6093_v54 = vld [vmem:[#allocation2 + $0x51] sm:$0xff] }
 0x172   : > { %667 = vst.msk [vmem:[#allocation2 + $0x5c] sm:$0x1] %vm307_vm0, %v665_v52  ;;  %v1963_v25 = vld [vmem:[#allocation2 + $0x53] sm:$0xff] }
 0x173   : > { %1417 = vmatpush.msra.mxu3 %v6093_v54 }
 0x175   : > { %1418 = vmatpush.msra.mxu3 %v1325_v55  ;;  %870 = vrot.lane.b32.xlu2 %v6044_v28, %s5645_s19 }
 0x176   : > { %863 = vrot.lane.b32.xlu1 %v6023_v21, %s5649_s23  ;;  %859 = vrot.lane.b32.xlu0 %v6023_v21, %s5650_s24 }
 0x177   : > { %1419 = vmatpush.msra.mxu3 %v1324_v56  ;;  %v724_v58 = vpop.permute.xlu2 %723  ;;  %v681_v59 = vpop.permute.xlu1 %680  ;;  %5240 = vmatmul.msk.f32.gmra.mxu0 %vm1088_vm2, %v6105_v57 }
 0x178   : > { %726 = vst.msk [vmem:[#allocation2 + $0x6b] sm:$0x1] %vm307_vm0, %v724_v58  ;;  %v677_v60 = vpop.permute.xlu0 %676  ;;  %v6280_v58 = vld [vmem:[%s8315_s2 + $0x8] sm:$0xff] }
 0x179   : > { %683 = vst.msk [vmem:[#allocation2 + $0x60] sm:$0x1] %vm307_vm0, %v681_v59  ;;  %1420 = vmatpush.msra.mxu3 %v1323_v61 }
 0x17a   : > { %679 = vst.msk [vmem:[#allocation2 + $0x5f] sm:$0x1] %vm307_vm0, %v677_v60  ;;  %v6285_v60 = vld [vmem:[%s8315_s2] sm:$0xff] }
 0x17b   : > { %1421 = vmatpush.msra.mxu3 %v1322_v62 }
 0x17d   : > { %1422 = vmatpush.msra.mxu3 %v1321_v63  ;;  %882 = vrot.lane.b32.xlu2 %v6044_v28, %s5647_s22 }
 0x17e   : > { %878 = vrot.lane.b32.xlu1 %v6044_v28, %s5644_s18  ;;  %874 = vrot.lane.b32.xlu0 %v6044_v28, %s5648_s13 }
 0x17f   : > { %1423 = vmatpush.msra.mxu3 %v1320_v0  ;;  %v739_v2 = vpop.permute.xlu2 %738  ;;  %v696_v3 = vpop.permute.xlu1 %695  ;;  %5241 = vmatmul.msk.f32.gmra.mxu0 %vm1088_vm2, %v6121_v1  ;;  %v1966_v8 = vld [vmem:[#allocation2 + $0x6b] sm:$0x1] }
 0x180   : > { %741 = vst.msk [vmem:[#allocation2 + $0x6f] sm:$0x1] %vm307_vm0, %v739_v2  ;;  %v689_v4 = vpop.permute.xlu0 %688 }
 0x181   : > { %698 = vst.msk [vmem:[#allocation2 + $0x64] sm:$0x1] %vm307_vm0, %v696_v3  ;;  %1424 = vmatpush.msra.mxu3 %v1319_v5  ;;  %v2694_v5 = vld [vmem:[#allocation2 + $0x55] sm:$0xff] }
 0x182   : > { %691 = vst.msk [vmem:[#allocation2 + $0x62] sm:$0x1] %vm307_vm0, %v689_v4  ;;  %v6299_v4 = vld [vmem:[%s8315_s2 + $0x20] sm:$0xff] }
 0x183   : > { %1425 = vmatpush.msra.mxu3 %v1318_v6  ;;  %v6304_v6 = vld [vmem:[%s8315_s2 + $0x18] sm:$0xff] }
 0x185   : > { %1426 = vmatpush.msra.mxu3 %v1317_v7  ;;  %894 = vrot.lane.b32.xlu2 %v6044_v28, %s5650_s24  ;;  %v6309_v7 = vld [vmem:[%s8315_s2 + $0x10] sm:$0xff] }
 0x186   : > { %890 = vrot.lane.b32.xlu1 %v6044_v28, %s5646_s21  ;;  %886 = vrot.lane.b32.xlu0 %v6044_v28, %s5643_s17 }
 0x187   : > { %v751_v11 = vpop.permute.xlu2 %750  ;;  %v708_v12 = vpop.permute.xlu1 %707  ;;  %5257 = vmatmul.msk.f32.vlgmr.msra.gmra.mxu3 %vm1088_vm2, %v6083_v49  ;;  %5242 = vmatmul.msk.f32.gmra.mxu0 %vm1088_vm2, %v6137_v9 }
 0x188   : > { %753 = vst.msk [vmem:[#allocation2 + $0x72] sm:$0x1] %vm307_vm0, %v751_v11  ;;  %v704_v13 = vpop.permute.xlu0 %703  ;;  %5292 = vmatpush.msk.msrb.mxu3 %vm1113_vm1, %v1966_v8  ;;  %v2693_v8 = vld [vmem:[#allocation2 + $0x4d] sm:$0xff] }
 0x189   : > { %710 = vst.msk [vmem:[#allocation2 + $0x67] sm:$0x1] %vm307_vm0, %v708_v12  ;;  %v1964_v24 = vld [vmem:[#allocation2 + $0x5b] sm:$0xff] }
 0x18a   : > { %706 = vst.msk [vmem:[#allocation2 + $0x66] sm:$0x1] %vm307_vm0, %v704_v13  ;;  %v2695_v3 = vld [vmem:[#allocation2 + $0x5d] sm:$0xff] }
 0x18d   : > { %909 = vrot.lane.b32.xlu2 %v6072_v47, %s5648_s13 }
 0x18e   : > { %905 = vrot.lane.b32.xlu1 %v6072_v47, %s5645_s19  ;;  %898 = vrot.lane.b32.xlu0 %v6044_v28, %s5649_s23 }
 0x18f   : > { %v766_v15 = vpop.permute.xlu2 %765  ;;  %v720_v16 = vpop.permute.xlu1 %719  ;;  %5258 = vmatmul.msk.f32.gmra.mxu3 %vm1088_vm2, %v6105_v57  ;;  %5243 = vmatmul.msk.f32.gmra.mxu0 %vm1088_vm2, %v6161_v14 }
 0x190   : > { %768 = vst.msk [vmem:[#allocation2 + $0x76] sm:$0x1] %vm307_vm0, %v766_v15  ;;  %v716_v17 = vpop.permute.xlu0 %715  ;;  %v2691_v15 = vld [vmem:[#allocation2 + $0x3d] sm:$0xff] }
 0x191   : > { %722 = vst.msk [vmem:[#allocation2 + $0x6a] sm:$0x1] %vm307_vm0, %v720_v16  ;;  %v6322_v16 = vld [vmem:[%s8315_s2 + $0x30] sm:$0xff] }
 0x192   : > { %718 = vst.msk [vmem:[#allocation2 + $0x69] sm:$0x1] %vm307_vm0, %v716_v17  ;;  %v2690_v17 = vld [vmem:[#allocation2 + $0x35] sm:$0xff] }
 0x195   : > { %921 = vrot.lane.b32.xlu2 %v6072_v47, %s5643_s17 }
 0x196   : > { %917 = vrot.lane.b32.xlu1 %v6072_v47, %s5647_s22  ;;  %913 = vrot.lane.b32.xlu0 %v6072_v47, %s5644_s18 }
 0x197   : > { %v778_v20 = vpop.permute.xlu2 %777  ;;  %v735_v21 = vpop.permute.xlu1 %734  ;;  %5259 = vmatmul.msk.f32.gmra.mxu3 %vm1088_vm2, %v6121_v1  ;;  %5244 = vmatmul.msk.f32.gmra.mxu0 %vm1088_vm2, %v6184_v19 }
 0x198   : > { %780 = vst.msk [vmem:[#allocation2 + $0x79] sm:$0x1] %vm307_vm0, %v778_v20  ;;  %v731_v22 = vpop.permute.xlu0 %730  ;;  %v6332_v20 = vld [vmem:[%s8315_s2 + $0x38] sm:$0xff] }
 0x199   : > { %737 = vst.msk [vmem:[#allocation2 + $0x6e] sm:$0x1] %vm307_vm0, %v735_v21  ;;  %v6192_v23 = vld [vmem:[#allocation2 + $0x63] sm:$0xff]  ;;  %v2689_v21 = vld [vmem:[#allocation2 + $0x2d] sm:$0xff] }
 0x19a   : > { %733 = vst.msk [vmem:[#allocation2 + $0x6d] sm:$0x1] %vm307_vm0, %v731_v22  ;;  %2056 = vmatpush.msrb.mxu3 %v6192_v23  ;;  %v2696_v62 = vld [vmem:[#allocation2 + $0x65] sm:$0xff] }
 0x19c   : > { %2057 = vmatpush.msrb.mxu3 %v1964_v24 }
 0x19d   : > { %933 = vrot.lane.b32.xlu2 %v6072_v47, %s5649_s23 }
 0x19e   : > { %2058 = vmatpush.msrb.mxu3 %v1963_v25  ;;  %929 = vrot.lane.b32.xlu1 %v6072_v47, %s5650_s24 }
 0x19f   : > { %925 = vrot.lane.b32.xlu0 %v6072_v47, %s5646_s21  ;;  %v790_v27 = vpop.permute.xlu2 %789  ;;  %v747_v28 = vpop.permute.xlu1 %746  ;;  %5260 = vmatmul.msk.f32.gmra.mxu3 %vm1088_vm2, %v6137_v9 }
 0x1a0   : > { %2059 = vmatpush.msrb.mxu3 %v1962_v26  ;;  %792 = vst.msk [vmem:[#allocation2 + $0x7c] sm:$0x1] %vm307_vm0, %v790_v27  ;;  %v743_v30 = vpop.permute.xlu0 %742  ;;  %5245 = vmatmul.msk.f32.gmra.mxu0 %vm1088_vm2, %v6207_v29  ;;  %v6345_v26 = vld [vmem:[%s8317_s4 + $0x8] sm:$0xff]  ;;  %v6350_v27 = vld [vmem:[%s8317_s4] sm:$0xff] }
 0x1a1   : > { %749 = vst.msk [vmem:[#allocation2 + $0x71] sm:$0x1] %vm307_vm0, %v747_v28  ;;  %v6355_v28 = vld [vmem:[%s8317_s4 + $0x10] sm:$0xff] }
 0x1a2   : > { %745 = vst.msk [vmem:[#allocation2 + $0x70] sm:$0x1] %vm307_vm0, %v743_v30  ;;  %2060 = vmatpush.msrb.mxu3 %v1961_v31 }
 0x1a4   : > { %2061 = vmatpush.msrb.mxu3 %v1960_v32 }
 0x1a5   : > { %948 = vrot.lane.b32.xlu2 %v6140_v10, %s5644_s18 }
 0x1a6   : > { %2062 = vmatpush.msrb.mxu3 %v1959_v33  ;;  %944 = vrot.lane.b32.xlu1 %v6140_v10, %s5648_s13  ;;  %v6368_v33 = vld [vmem:[%s8317_s4 + $0x18] sm:$0xff] }
 0x1a7   : > { %940 = vrot.lane.b32.xlu0 %v6140_v10, %s5645_s19  ;;  %v805_v35 = vpop.permute.xlu2 %804  ;;  %v759_v36 = vpop.permute.xlu1 %758  ;;  %5261 = vmatmul.msk.f32.gmra.mxu3 %vm1088_vm2, %v6161_v14 }
 0x1a8   : > { %2063 = vmatpush.msrb.mxu3 %v1958_v34  ;;  %807 = vst.msk [vmem:[#allocation2 + $0x80] sm:$0x1] %vm307_vm0, %v805_v35  ;;  %v755_v38 = vpop.permute.xlu0 %754  ;;  %5246 = vmatmul.msk.f32.gmra.mxu0 %vm1088_vm2, %v6225_v37 }
 0x1a9   : > { %761 = vst.msk [vmem:[#allocation2 + $0x74] sm:$0x1] %vm307_vm0, %v759_v36 }
 0x1aa   : > { %757 = vst.msk [vmem:[#allocation2 + $0x73] sm:$0x1] %vm307_vm0, %v755_v38  ;;  %2064 = vmatpush.msrb.mxu3 %v1957_v39 }
 0x1ac   : > { %2065 = vmatpush.msrb.mxu3 %v1956_v40 }
 0x1ad   : > { %960 = vrot.lane.b32.xlu2 %v6140_v10, %s5646_s21 }
 0x1ae   : > { %956 = vrot.lane.b32.xlu1 %v6140_v10, %s5643_s17 }
 0x1af   : > { %952 = vrot.lane.b32.xlu0 %v6140_v10, %s5647_s22  ;;  %v817_v42 = vpop.permute.xlu2 %816  ;;  %v774_v43 = vpop.permute.xlu1 %773  ;;  %5262 = vmatmul.msk.f32.gmra.mxu3 %vm1088_vm2, %v6184_v19 }
 0x1b0   : > { %819 = vst.msk [vmem:[#allocation2 + $0x83] sm:$0x1] %vm307_vm0, %v817_v42  ;;  %v770_v44 = vpop.permute.xlu0 %769 }
 0x1b1   : > { %776 = vst.msk [vmem:[#allocation2 + $0x78] sm:$0x1] %vm307_vm0, %v774_v43  ;;  %v2697_v61 = vld [vmem:[#allocation2 + $0x6d] sm:$0xff] }
 0x1b2   : > { %772 = vst.msk [vmem:[#allocation2 + $0x77] sm:$0x1] %vm307_vm0, %v770_v44 }
 0x1b5   : > { %975 = vrot.lane.b32.xlu2 %v6171_v18, %s5645_s19 }
 0x1b6   : > { %968 = vrot.lane.b32.xlu1 %v6140_v10, %s5649_s23 }
 0x1b7   : > { %964 = vrot.lane.b32.xlu0 %v6140_v10, %s5650_s24  ;;  %v829_v45 = vpop.permute.xlu2 %828  ;;  %v786_v46 = vpop.permute.xlu1 %785  ;;  %5263 = vmatmul.msk.f32.gmra.mxu3 %vm1088_vm2, %v6207_v29  ;;  %v2692_v10 = vld [vmem:[#allocation2 + $0x45] sm:$0xff] }
 0x1b8   : > { %831 = vst.msk [vmem:[#allocation2 + $0x86] sm:$0x1] %vm307_vm0, %v829_v45  ;;  %v782_v47 = vpop.permute.xlu0 %781  ;;  %v3445_v45 = vld [vmem:[#allocation2 + $0x6f] sm:$0xff] }
 0x1b9   : > { %788 = vst.msk [vmem:[#allocation2 + $0x7b] sm:$0x1] %vm307_vm0, %v786_v46  ;;  %v3444_v46 = vld [vmem:[#allocation2 + $0x67] sm:$0xff] }
 0x1ba   : > { %784 = vst.msk [vmem:[#allocation2 + $0x7a] sm:$0x1] %vm307_vm0, %v782_v47  ;;  %v3443_v47 = vld [vmem:[#allocation2 + $0x5f] sm:$0xff] }
 0x1bd   : > { %987 = vrot.lane.b32.xlu2 %v6171_v18, %s5647_s22 }
 0x1be   : > { %983 = vrot.lane.b32.xlu1 %v6171_v18, %s5644_s18 }
 0x1bf   : > { %979 = vrot.lane.b32.xlu0 %v6171_v18, %s5648_s13  ;;  %v844_v48 = vpop.permute.xlu2 %843  ;;  %v801_v50 = vpop.permute.xlu1 %800  ;;  %5264 = vmatmul.msk.f32.gmra.mxu3 %vm1088_vm2, %v6225_v37 }
 0x1c0   : > { %846 = vst.msk [vmem:[#allocation2 + $0x8a] sm:$0x1] %vm307_vm0, %v844_v48  ;;  %v794_v51 = vpop.permute.xlu0 %793  ;;  %v3442_v48 = vld [vmem:[#allocation2 + $0x57] sm:$0xff] }
 0x1c1   : > { %803 = vst.msk [vmem:[#allocation2 + $0x7f] sm:$0x1] %vm307_vm0, %v801_v50  ;;  %v2698_v59 = vld [vmem:[#allocation2 + $0x75] sm:$0xff] }
 0x1c2   : > { %796 = vst.msk [vmem:[#allocation2 + $0x7d] sm:$0x1] %vm307_vm0, %v794_v51 }
 0x1c5   : > { %999 = vrot.lane.b32.xlu2 %v6171_v18, %s5650_s24  ;;  %s6714_s24 = sshll.u32 %s5625_s29, 3 }
 0x1c6   : > { %995 = vrot.lane.b32.xlu1 %v6171_v18, %s5646_s21  ;;  %s5237_s21 = sadd.s32 4294967294, %s6714_s24  ;;  %p1887_p7 = scmp.ge.s32.totalorder %s6714_s24, 0 }
 0x1c7   : > { %991 = vrot.lane.b32.xlu0 %v6171_v18, %s5643_s17  ;;  %v856_v52 = vpop.permute.xlu2 %855  ;;  %v813_v53 = vpop.permute.xlu1 %812  ;;  %5293 = vmatmul.msk.f32.vlgmr.msrb.gmra.mxu3 %vm1088_vm2, %v6083_v49  ;;  %p1283_p0 = scmp.ge.s32.totalorder %s5237_s21, 0  ;;  %p1284_p1 = scmp.lt.s32.totalorder %s5237_s21, 16 }
 0x1c8   : > { %858 = vst.msk [vmem:[#allocation2 + $0x8d] sm:$0x1] %vm307_vm0, %v856_v52  ;;  %v809_v55 = vpop.permute.xlu0 %808  ;;  %s5233_s21 = sshll.u32 %s8324_s11, 3  ;;  %p1888_p9 = scmp.lt.s32.totalorder %s6714_s24, 16 }
 0x1c9   : > { %815 = vst.msk [vmem:[#allocation2 + $0x82] sm:$0x1] %vm307_vm0, %v813_v53  ;;  %v2699_v56 = vld [vmem:[#allocation2 + $0x7d] sm:$0x1]  ;;  %v3441_v53 = vld [vmem:[#allocation2 + $0x4f] sm:$0xff]  ;;  %p1285_p2 = pnand %p1284_p1, %p1283_p0  ;;  %s2216_s6 = sadd.s32 1, %s6714_s24 }
 0x1ca   : > { %811 = vst.msk [vmem:[#allocation2 + $0x81] sm:$0x1] %vm307_vm0, %v809_v55  ;;  %5328 = vmatpush.msk.msra.mxu3 %vm1113_vm1, %v2699_v56  ;;  %v3446_v41 = vld [vmem:[#allocation2 + $0x77] sm:$0xff]  ;;  %v3440_v55 = vld [vmem:[#allocation2 + $0x47] sm:$0xff]  ;;  %v3439_v56 = vld [vmem:[#allocation2 + $0x3f] sm:$0xff]  ;;  %p1889_p10 = pnand %p1888_p9, %p1887_p7  ;;  %p7632_p11 = scmp.ge.s32.totalorder %s2216_s6, 0 }
 0x1cb   : > { %s5255_s17 = scalar_select %p1285_p2, 0, 1 }
 0x1cc   : > { %2789 = vmatpush.msra.mxu3 %v2698_v59  ;;  %p7636_p12 = scmp.lt.s32.totalorder %s2216_s6, 16 }
 0x1cd   : > { %1055 = vperm.xlu2 %5543, %v6280_v58   ;;  %s1288_s14 = scvt.s32.f32 %s5255_s17  ;;  %s6961_s17 = scalar_lea.vmem [#allocation4], %s5233_s21 }
 0x1ce   : > { %2790 = vmatpush.msra.mxu3 %v2697_v61  ;;  %1050 = vperm.xlu1 %5542, %v6285_v60   ;;  %p2219_p13 = pnand %p7636_p12, %p7632_p11 }
 0x1cf   : > { %1003 = vrot.lane.b32.xlu0 %v6171_v18, %s5649_s23  ;;  %v871_v63 = vpop.permute.xlu2 %870  ;;  %v825_v0 = vpop.permute.xlu1 %824  ;;  %5294 = vmatmul.msk.f32.gmra.mxu3 %vm1088_vm2, %v6105_v57  ;;  %v6327_v18 = vld [vmem:[%s8315_s2 + $0x28] sm:$0xff]  ;;  %s1016_s23 = sld [smem:[#allocation3]] }
 0x1d0   : > { %2791 = vmatpush.msra.mxu3 %v2696_v62  ;;  %873 = vst.msk [vmem:[#allocation2 + $0x91] sm:$0x1] %vm307_vm0, %v871_v63  ;;  %v821_v2 = vpop.permute.xlu0 %820 }
 0x1d1   : > { %827 = vst.msk [vmem:[#allocation2 + $0x85] sm:$0x1] %vm307_vm0, %v825_v0 }
 0x1d2   : > { %823 = vst.msk [vmem:[#allocation2 + $0x84] sm:$0x1] %vm307_vm0, %v821_v2  ;;  %2792 = vmatpush.msra.mxu3 %v2695_v3 }
 0x1d4   : > { %2793 = vmatpush.msra.mxu3 %v2694_v5 }
 0x1d5   : > { %1070 = vperm.xlu2 %5543, %v6299_v4  }
 0x1d6   : > { %2794 = vmatpush.msra.mxu3 %v2693_v8  ;;  %1065 = vperm.xlu1 %5542, %v6304_v6  }
 0x1d7   : > { %1060 = vperm.xlu0 %5544, %v6309_v7   ;;  %v883_v11 = vpop.permute.xlu2 %882  ;;  %v840_v12 = vpop.permute.xlu1 %839  ;;  %5295 = vmatmul.msk.f32.gmra.mxu3 %vm1088_vm2, %v6121_v1 }
 0x1d8   : > { %2795 = vmatpush.msra.mxu3 %v2692_v10  ;;  %885 = vst.msk [vmem:[#allocation2 + $0x94] sm:$0x1] %vm307_vm0, %v883_v11  ;;  %v836_v13 = vpop.permute.xlu0 %835 }
 0x1d9   : > { %842 = vst.msk [vmem:[#allocation2 + $0x89] sm:$0x1] %vm307_vm0, %v840_v12  ;;  %v3447_v40 = vld [vmem:[#allocation2 + $0x7f] sm:$0xff] }
 0x1da   : > { %838 = vst.msk [vmem:[#allocation2 + $0x88] sm:$0x1] %vm307_vm0, %v836_v13  ;;  %2796 = vmatpush.msra.mxu3 %v2691_v15 }
 0x1dc   : > { %2797 = vmatpush.msra.mxu3 %v2690_v17 }
 0x1dd   : > { %1080 = vperm.xlu2 %5543, %v6322_v16  }
 0x1de   : > { %2798 = vmatpush.msra.mxu3 %v2689_v21  ;;  %1075 = vperm.xlu1 %5542, %v6327_v18  }
 0x1df   : > { %1085 = vperm.xlu0 %5544, %v6332_v20   ;;  %v895_v22 = vpop.permute.xlu2 %894  ;;  %v852_v24 = vpop.permute.xlu1 %851  ;;  %5296 = vmatmul.msk.f32.gmra.mxu3 %vm1088_vm2, %v6137_v9 }
 0x1e0   : > { %897 = vst.msk [vmem:[#allocation2 + $0x97] sm:$0x1] %vm307_vm0, %v895_v22  ;;  %v848_v25 = vpop.permute.xlu0 %847 }
 0x1e1   : > { %854 = vst.msk [vmem:[#allocation2 + $0x8c] sm:$0x1] %vm307_vm0, %v852_v24  ;;  %v4182_v17 = vld [vmem:[#allocation2 + $0x81] sm:$0xff] }
 0x1e2   : > { %850 = vst.msk [vmem:[#allocation2 + $0x8b] sm:$0x1] %vm307_vm0, %v848_v25  ;;  %v4181_v25 = vld [vmem:[#allocation2 + $0x79] sm:$0xff] }
 0x1e5   : > { %1181 = vperm.xlu2 %5543, %v6345_v26  }
 0x1e6   : > { %1176 = vperm.xlu1 %5542, %v6350_v27  }
 0x1e7   : > { %1186 = vperm.xlu0 %5544, %v6355_v28   ;;  %v910_v30 = vpop.permute.xlu2 %909  ;;  %5297 = vmatmul.msk.f32.gmra.mxu3 %vm1088_vm2, %v6161_v14 }
 0x1e8   : > { %912 = vst.msk [vmem:[#allocation2 + $0x9b] sm:$0x1] %vm307_vm0, %v910_v30  ;;  %v864_v31 = vpop.permute.xlu1 %863  ;;  %v860_v32 = vpop.permute.xlu0 %859  ;;  %v4180_v30 = vld [vmem:[#allocation2 + $0x71] sm:$0xff] }
 0x1e9   : > { %866 = vst.msk [vmem:[#allocation2 + $0x8f] sm:$0x1] %vm307_vm0, %v864_v31  ;;  %v4179_v31 = vld [vmem:[#allocation2 + $0x69] sm:$0xff] }
 0x1ea   : > { %862 = vst.msk [vmem:[#allocation2 + $0x8e] sm:$0x1] %vm307_vm0, %v860_v32  ;;  %v4178_v32 = vld [vmem:[#allocation2 + $0x61] sm:$0xff] }
 0x1eb   : > { %v6404_v0 = vpop.f32.mrf.mxu0 }
 0x1ed   : > { %1356 = vperm.xlu2 %5543, %v6309_v7  }
 0x1ee   : > { %1191 = vperm.xlu1 %5542, %v6368_v33  }
 0x1ef   : > { %1346 = vperm.xlu0 %5544, %v6285_v60   ;;  %v922_v34 = vpop.permute.xlu2 %921  ;;  %5298 = vmatmul.msk.f32.gmra.mxu3 %vm1088_vm2, %v6184_v19 }
 0x1f0   : > { %924 = vst.msk [vmem:[#allocation2 + $0x9e] sm:$0x1] %vm307_vm0, %v922_v34  ;;  %v879_v35 = vpop.permute.xlu1 %878  ;;  %v875_v36 = vpop.permute.xlu0 %874  ;;  %v3449_v38 = vld [vmem:[#allocation2 + $0x8f] sm:$0x1] }
 0x1f1   : > { %881 = vst.msk [vmem:[#allocation2 + $0x93] sm:$0x1] %vm307_vm0, %v879_v35  ;;  %5364 = vmatpush.msk.msrb.mxu3 %vm1113_vm1, %v3449_v38  ;;  %v3448_v39 = vld [vmem:[#allocation2 + $0x87] sm:$0xff]  ;;  %v4177_v35 = vld [vmem:[#allocation2 + $0x59] sm:$0xff] }
 0x1f2   : > { %877 = vst.msk [vmem:[#allocation2 + $0x92] sm:$0x1] %vm307_vm0, %v875_v36  ;;  %v4183_v15 = vld [vmem:[#allocation2 + $0x89] sm:$0xff] }
 0x1f3   : > { %3539 = vmatpush.msrb.mxu3 %v3448_v39 }
 0x1f4   : > { %v6415_v8 = vpop.f32.mrf.mxu0 }
 0x1f5   : > { %3540 = vmatpush.msrb.mxu3 %v3447_v40  ;;  %1371 = vperm.xlu2 %5543, %v6327_v18  }
 0x1f6   : > { %1351 = vperm.xlu1 %5542, %v6280_v58  }
 0x1f7   : > { %1361 = vperm.xlu0 %5544, %v6304_v6   ;;  %3541 = vmatpush.msrb.mxu3 %v3446_v41  ;;  %v934_v42 = vpop.permute.xlu2 %933 }
 0x1f8   : > { %936 = vst.msk [vmem:[#allocation2 + $0xa1] sm:$0x1] %vm307_vm0, %v934_v42  ;;  %v891_v43 = vpop.permute.xlu1 %890  ;;  %v887_v44 = vpop.permute.xlu0 %886  ;;  %5299 = vmatmul.msk.f32.gmra.mxu3 %vm1088_vm2, %v6207_v29 }
 0x1f9   : > { %893 = vst.msk [vmem:[#allocation2 + $0x96] sm:$0x1] %vm307_vm0, %v891_v43  ;;  %3542 = vmatpush.msrb.mxu3 %v3445_v45 }
 0x1fa   : > { %889 = vst.msk [vmem:[#allocation2 + $0x95] sm:$0x1] %vm307_vm0, %v887_v44 }
 0x1fb   : > { %3543 = vmatpush.msrb.mxu3 %v3444_v46 }
 0x1fd   : > { %3544 = vmatpush.msrb.mxu3 %v3443_v47  ;;  %1470 = vperm.xlu2 %5543, %v6350_v27  }
 0x1fe   : > { %1366 = vperm.xlu1 %5542, %v6299_v4  }
 0x1ff   : > { %1376 = vperm.xlu0 %5544, %v6322_v16   ;;  %3545 = vmatpush.msrb.mxu3 %v3442_v48  ;;  %v949_v50 = vpop.permute.xlu2 %948  ;;  %v4186_v59 = vld [vmem:[#allocation2 + $0xa1] sm:$0x1] }
 0x200   : > { %951 = vst.msk [vmem:[#allocation2 + $0xa5] sm:$0x1] %vm307_vm0, %v949_v50  ;;  %v906_v51 = vpop.permute.xlu1 %905  ;;  %v899_v52 = vpop.permute.xlu0 %898  ;;  %5300 = vmatmul.msk.f32.gmra.mxu3 %vm1088_vm2, %v6225_v37 }
 0x201   : > { %908 = vst.msk [vmem:[#allocation2 + $0x9a] sm:$0x1] %vm307_vm0, %v906_v51  ;;  %3546 = vmatpush.msrb.mxu3 %v3441_v53 }
 0x202   : > { %901 = vst.msk [vmem:[#allocation2 + $0x98] sm:$0x1] %vm307_vm0, %v899_v52 }
 0x203   : > { %3547 = vmatpush.msrb.mxu3 %v3440_v55 }
 0x205   : > { %3548 = vmatpush.msrb.mxu3 %v3439_v56  ;;  %1485 = vperm.xlu2 %5543, %v6368_v33  }
 0x206   : > { %1381 = vperm.xlu1 %5542, %v6332_v20  }
 0x207   : > { %1475 = vperm.xlu0 %5544, %v6345_v26   ;;  %v961_v61 = vpop.permute.xlu2 %960 }
 0x208   : > { %963 = vst.msk [vmem:[#allocation2 + $0xa8] sm:$0x1] %vm307_vm0, %v961_v61  ;;  %v918_v62 = vpop.permute.xlu1 %917  ;;  %v914_v63 = vpop.permute.xlu0 %913  ;;  %5329 = vmatmul.msk.f32.vlgmr.msra.gmra.mxu3 %vm1088_vm2, %v6083_v49 }
 0x209   : > { %920 = vst.msk [vmem:[#allocation2 + $0x9d] sm:$0x1] %vm307_vm0, %v918_v62  ;;  %5400 = vmatpush.msk.msra.mxu3 %vm1113_vm1, %v4186_v59  ;;  %v4184_v13 = vld [vmem:[#allocation2 + $0x91] sm:$0xff] }
 0x20a   : > { %916 = vst.msk [vmem:[#allocation2 + $0x9c] sm:$0x1] %vm307_vm0, %v914_v63  ;;  %v6467_v46 = vpop.f32.mrf.mxu3  ;;  %v4836_v62 = vld [vmem:[#allocation2 + $0x8b] sm:$0xff] }
 0x20d   : > { %1667 = vperm.xlu2 %5543, %v6309_v7  }
 0x20e   : > { %1480 = vperm.xlu1 %5542, %v6355_v28  }
 0x20f   : > { %1657 = vperm.xlu0 %5544, %v6285_v60   ;;  %v976_v2 = vpop.permute.xlu2 %975 }
 0x210   : > { %978 = vst.msk [vmem:[#allocation2 + $0xac] sm:$0x1] %vm307_vm0, %v976_v2  ;;  %v930_v3 = vpop.permute.xlu1 %929  ;;  %5330 = vmatmul.msk.f32.gmra.mxu3 %vm1088_vm2, %v6105_v57 }
 0x211   : > { %932 = vst.msk [vmem:[#allocation2 + $0xa0] sm:$0x1] %vm307_vm0, %v930_v3  ;;  %v926_v5 = vpop.permute.xlu0 %925  ;;  %v4835_v3 = vld [vmem:[#allocation2 + $0x83] sm:$0xff] }
 0x212   : > { %928 = vst.msk [vmem:[#allocation2 + $0x9f] sm:$0x1] %vm307_vm0, %v926_v5 }
 0x215   : > { %1682 = vperm.xlu2 %5543, %v6327_v18  }
 0x216   : > { %1662 = vperm.xlu1 %5542, %v6280_v58  }
 0x217   : > { %1672 = vperm.xlu0 %5544, %v6304_v6   ;;  %v988_v10 = vpop.permute.xlu2 %987 }
 0x218   : > { %990 = vst.msk [vmem:[#allocation2 + $0xaf] sm:$0x1] %vm307_vm0, %v988_v10  ;;  %v945_v11 = vpop.permute.xlu1 %944  ;;  %5331 = vmatmul.msk.f32.gmra.mxu3 %vm1088_vm2, %v6121_v1  ;;  %v6427_v1 = vpop.f32.mrf.mxu0 }
 0x219   : > { %947 = vst.msk [vmem:[#allocation2 + $0xa4] sm:$0x1] %vm307_vm0, %v945_v11  ;;  %v941_v57 = vpop.permute.xlu0 %940  ;;  %v4185_v12 = vld [vmem:[#allocation2 + $0x99] sm:$0xff] }
 0x21a   : > { %943 = vst.msk [vmem:[#allocation2 + $0xa3] sm:$0x1] %vm307_vm0, %v941_v57  ;;  %4276 = vmatpush.msra.mxu3 %v4185_v12  ;;  %v4838_v51 = vld [vmem:[#allocation2 + $0x9b] sm:$0xff] }
 0x21b   : > { %v4834_v11 = vld [vmem:[#allocation2 + $0x7b] sm:$0xff] }
 0x21c   : > { %4277 = vmatpush.msra.mxu3 %v4184_v13  ;;  %v4833_v13 = vld [vmem:[#allocation2 + $0x73] sm:$0xff] }
 0x21d   : > { %1781 = vperm.xlu2 %5543, %v6350_v27  }
 0x21e   : > { %4278 = vmatpush.msra.mxu3 %v4183_v15  ;;  %1677 = vperm.xlu1 %5542, %v6299_v4  }
 0x21f   : > { %1687 = vperm.xlu0 %5544, %v6322_v16   ;;  %v1000_v21 = vpop.permute.xlu2 %999 }
 0x220   : > { %4279 = vmatpush.msra.mxu3 %v4182_v17  ;;  %1002 = vst.msk [vmem:[#allocation2 + $0xb2] sm:$0x1] %vm307_vm0, %v1000_v21  ;;  %v957_v22 = vpop.permute.xlu1 %956  ;;  %v6440_v36 = vpop.f32.mrf.mxu0  ;;  %v4832_v21 = vld [vmem:[#allocation2 + $0x6b] sm:$0xff] }
 0x221   : > { %959 = vst.msk [vmem:[#allocation2 + $0xa7] sm:$0x1] %vm307_vm0, %v957_v22  ;;  %v953_v24 = vpop.permute.xlu0 %952  ;;  %5332 = vmatmul.msk.f32.gmra.mxu3 %vm1088_vm2, %v6137_v9 }
 0x222   : > { %955 = vst.msk [vmem:[#allocation2 + $0xa6] sm:$0x1] %vm307_vm0, %v953_v24  ;;  %4280 = vmatpush.msra.mxu3 %v4181_v25 }
 0x224   : > { %4281 = vmatpush.msra.mxu3 %v4180_v30 }
 0x225   : > { %1796 = vperm.xlu2 %5543, %v6368_v33  }
 0x226   : > { %4282 = vmatpush.msra.mxu3 %v4179_v31  ;;  %1692 = vperm.xlu1 %5542, %v6332_v20  }
 0x227   : > { %1786 = vperm.xlu0 %5544, %v6345_v26   ;;  %v1056_v41 = vpop.permute.xlu2 %1055 }
 0x228   : > { %4283 = vmatpush.msra.mxu3 %v4178_v32  ;;  %v969_v34 = vpop.permute.xlu1 %968  ;;  %v1138_v22 = vadd.f32 %v6415_v8, %v1056_v41  ;;  %v6489_v8 = vld [vmem:[%s8316_s3] sm:$0xff]  ;;  %v6519_v32 = vld [vmem:[%s8316_s3 + $0x18] sm:$0xff] }
 0x229   : > { %971 = vst.msk [vmem:[#allocation2 + $0xaa] sm:$0x1] %vm307_vm0, %v969_v34  ;;  %v965_v9 = vpop.permute.xlu0 %964  ;;  %5333 = vmatmul.msk.f32.gmra.mxu3 %vm1088_vm2, %v6161_v14  ;;  %v1146_v14 = vpop.f32.mrf.mxu0 }
 0x22a   : > { %967 = vst.msk [vmem:[#allocation2 + $0xa9] sm:$0x1] %vm307_vm0, %v965_v9  ;;  %4284 = vmatpush.msra.mxu3 %v4177_v35 }
 0x22c   : > { %4285 = vmatpush.msra.mxu3 %v6093_v54 }
 0x22d   : > { %1985 = vperm.xlu2 %5543, %v6285_v60  }
 0x22e   : > { %1791 = vperm.xlu1 %5542, %v6355_v28  }
 0x22f   : > { %1990 = vperm.xlu0 %5544, %v6280_v58  }
 0x230   : > { %v984_v38 = vpop.permute.xlu1 %983 }
 0x231   : > { %986 = vst.msk [vmem:[#allocation2 + $0xae] sm:$0x1] %vm307_vm0, %v984_v38  ;;  %v980_v39 = vpop.permute.xlu0 %979  ;;  %5334 = vmatmul.msk.f32.gmra.mxu3 %vm1088_vm2, %v6184_v19  ;;  %v1149_v19 = vpop.f32.mrf.mxu0  ;;  %v4839_v50 = vld [vmem:[#allocation2 + $0xa3] sm:$0xff] }
 0x232   : > { %982 = vst.msk [vmem:[#allocation2 + $0xad] sm:$0x1] %vm307_vm0, %v980_v39 }
 0x235   : > { %2000 = vperm.xlu2 %5543, %v6304_v6  }
 0x236   : > { %1995 = vperm.xlu1 %5542, %v6309_v7  }
 0x237   : > { %2005 = vperm.xlu0 %5544, %v6299_v4  }
 0x238   : > { %v996_v54 = vpop.permute.xlu1 %995 }
 0x239   : > { %998 = vst.msk [vmem:[#allocation2 + $0xb1] sm:$0x1] %vm307_vm0, %v996_v54  ;;  %v992_v40 = vpop.permute.xlu0 %991  ;;  %5335 = vmatmul.msk.f32.gmra.mxu3 %vm1088_vm2, %v6207_v29  ;;  %v1071_v29 = vpop.permute.xlu2 %1070 }
 0x23a   : > { %994 = vst.msk [vmem:[#allocation2 + $0xb0] sm:$0x1] %vm307_vm0, %v992_v40  ;;  %v1152_v44 = vpop.f32.mrf.mxu0  ;;  %v1147_v5 = vadd.f32 %v1146_v14, %v1071_v29 }
 0x23c   : > { %v1162_v17 = vmax.f32 %v1147_v5, 0.0 }
 0x23d   : > { %2015 = vperm.xlu2 %5543, %v6322_v16  }
 0x23e   : > { %2010 = vperm.xlu1 %5542, %v6327_v18  }
 0x23f   : > { %2020 = vperm.xlu0 %5544, %v6332_v20  }
 0x240   : > { %v1051_v42 = vpop.permute.xlu1 %1050 }
 0x241   : > { %v1004_v43 = vpop.permute.xlu0 %1003  ;;  %5336 = vmatmul.msk.f32.gmra.mxu3 %vm1088_vm2, %v6225_v37  ;;  %v4840_v37 = vld [vmem:[#allocation2 + $0xab] sm:$0xff]  ;;  %v1081_v53 = vpop.permute.xlu2 %1080  ;;  %v1135_v25 = vadd.f32 %v6404_v0, %v1051_v42 }
 0x242   : > { %1006 = vst.msk [vmem:[#allocation2 + $0xb3] sm:$0x1] %vm307_vm0, %v1004_v43  ;;  %v1155_v52 = vpop.f32.mrf.mxu0  ;;  %v1153_v59 = vadd.f32 %v1152_v44, %v1081_v53  ;;  %v6509_v0 = vld [vmem:[%s8316_s3 + $0x10] sm:$0xff] }
 0x243   : > { %v1158_v31 = vmax.f32 %v1135_v25, 0.0 }
 0x244   : > { %v1164_v10 = vmax.f32 %v1153_v59, 0.0 }
 0x245   : > { %2114 = vperm.xlu2 %5543, %v6345_v26  }
 0x246   : > { %2109 = vperm.xlu1 %5542, %v6350_v27  }
 0x247   : > { %2119 = vperm.xlu0 %5544, %v6355_v28  }
 0x248   : > { %v1066_v45 = vpop.permute.xlu1 %1065 }
 0x249   : > { %v1061_v47 = vpop.permute.xlu0 %1060  ;;  %5365 = vmatmul.msk.f32.vlgmr.msrb.gmra.mxu3 %vm1088_vm2, %v6083_v49  ;;  %v4841_v48 = vld [vmem:[#allocation2 + $0xb3] sm:$0x1]  ;;  %v1144_v57 = vadd.f32 %v6440_v36, %v1066_v45  ;;  %v1182_v38 = vpop.permute.xlu2 %1181 }
 0x24a   : > { %5436 = vmatpush.msk.msrb.mxu3 %vm1113_vm1, %v4841_v48  ;;  %v4837_v49 = vld [vmem:[#allocation2 + $0x93] sm:$0xff]  ;;  %v1141_v15 = vadd.f32 %v6427_v1, %v1061_v47  ;;  %v1159_v1 = vmax.f32 %v1138_v22, 0.0 }
 0x24b   : > { %v1161_v24 = vmax.f32 %v1144_v57, 0.0  ;;  %v6577_v22 = vld [vmem:[%s8314_s1 + $0x18] sm:$0xff] }
 0x24c   : > { %4931 = vmatpush.msrb.mxu3 %v4840_v37  ;;  %v1160_v30 = vmax.f32 %v1141_v15, 0.0 }
 0x24d   : > { %2343 = vperm.xlu2 %5543, %v6285_v60  }
 0x24e   : > { %4932 = vmatpush.msrb.mxu3 %v4839_v50  ;;  %2124 = vperm.xlu1 %5542, %v6368_v33  }
 0x24f   : > { %2348 = vperm.xlu0 %5544, %v6280_v58  }
 0x250   : > { %4933 = vmatpush.msrb.mxu3 %v4838_v51  ;;  %v1076_v55 = vpop.permute.xlu1 %1075 }
 0x251   : > { %v1086_v56 = vpop.permute.xlu0 %1085  ;;  %v1150_v63 = vadd.f32 %v1149_v19, %v1076_v55 }
 0x252   : > { %4934 = vmatpush.msrb.mxu3 %v4837_v49  ;;  %v1156_v61 = vadd.f32 %v1155_v52, %v1086_v56  ;;  %v6542_v52 = vld [vmem:[%s8318_s5] sm:$0xff]  ;;  %v6547_v56 = vld [vmem:[%s8314_s1 + $0x8] sm:$0xff] }
 0x253   : > { %v1163_v12 = vmax.f32 %v1150_v63, 0.0 }
 0x254   : > { %4935 = vmatpush.msrb.mxu3 %v4836_v62  ;;  %v1165_v2 = vmax.f32 %v1156_v61, 0.0 }
 0x255   : > { %2358 = vperm.xlu2 %5543, %v6304_v6  }
 0x256   : > { %1215 = vmatpush.msra.mxu1 %v1165_v2  ;;  %4936 = vmatpush.msrb.mxu3 %v4835_v3  ;;  %v6556_v3 = vld [vmem:[%s8318_s5 + $0x8] sm:$0xff] }
 0x257   : > { %2353 = vperm.xlu1 %5542, %v6309_v7   ;;  %2363 = vperm.xlu0 %5544, %v6299_v4  }
 0x258   : > { %1216 = vmatpush.msra.mxu1 %v1164_v10  ;;  %4937 = vmatpush.msrb.mxu3 %v4834_v11  ;;  %v6561_v11 = vld [vmem:[%s8314_s1 + $0x10] sm:$0xff] }
 0x259   : > { %v1187_v9 = vpop.permute.xlu0 %1186 }
 0x25a   : > { %1217 = vmatpush.msra.mxu1 %v1163_v12  ;;  %4938 = vmatpush.msrb.mxu3 %v4833_v13 }
 0x25c   : > { %1218 = vmatpush.msra.mxu1 %v1162_v17  ;;  %4939 = vmatpush.msrb.mxu3 %v4832_v21  ;;  %v6571_v17 = vld [vmem:[%s8318_s5 + $0x10] sm:$0xff]  ;;  %v1638_v21 = vld [vmem:[#allocation2 + $0x62] sm:$0x1] }
 0x25d   : > { %2373 = vperm.xlu2 %5543, %v6322_v16  }
 0x25e   : > { %1219 = vmatpush.msra.mxu1 %v1161_v24  ;;  %4940 = vmatpush.msrb.mxu3 %v6192_v23  ;;  %v6499_v23 = vld [vmem:[%s8316_s3 + $0x8] sm:$0xff]  ;;  %v1636_v24 = vld [vmem:[#allocation2 + $0x52] sm:$0xff] }
 0x25f   : > { %2368 = vperm.xlu1 %5542, %v6327_v18   ;;  %2378 = vperm.xlu0 %5544, %v6332_v20  }
 0x260   : > { %1220 = vmatpush.msra.mxu1 %v1160_v30  ;;  %v1635_v30 = vld [vmem:[#allocation2 + $0x4a] sm:$0xff] }
 0x262   : > { %1221 = vmatpush.msra.mxu1 %v1159_v1  ;;  %v1243_v1 = vld [vmem:[%s8318_s5 + $0x18] sm:$0x1] }
 0x264   : > { %1222 = vmatpush.msra.mxu1 %v1158_v31  ;;  %v1634_v31 = vld [vmem:[#allocation2 + $0x42] sm:$0xff] }
 0x265   : > { %5247 = vmatmul.msk.f32.vlgmr.msra.gmra.mxu1 %vm1194_vm3, %v6489_v8  ;;  %2472 = vperm.xlu2 %5543, %v6345_v26  }
 0x267   : > { %2467 = vperm.xlu1 %5542, %v6350_v27   ;;  %2477 = vperm.xlu0 %5544, %v6355_v28  }
 0x26d   : > { %5248 = vmatmul.msk.f32.gmra.mxu1 %vm1194_vm3, %v6499_v23  ;;  %2728 = vperm.xlu2 %5543, %v6309_v7  }
 0x26f   : > { %2482 = vperm.xlu1 %5542, %v6368_v33   ;;  %2718 = vperm.xlu0 %5544, %v6285_v60  }
 0x275   : > { %5249 = vmatmul.msk.f32.gmra.mxu1 %vm1194_vm3, %v6509_v0  ;;  %2743 = vperm.xlu2 %5543, %v6327_v18  }
 0x277   : > { %2723 = vperm.xlu1 %5542, %v6280_v58   ;;  %2733 = vperm.xlu0 %5544, %v6304_v6  }
 0x27d   : > { %5250 = vmatmul.msk.f32.gmra.mxu1 %vm1194_vm3, %v6519_v32  ;;  %2842 = vperm.xlu2 %5543, %v6350_v27  }
 0x27f   : > { %2738 = vperm.xlu1 %5542, %v6299_v4   ;;  %2748 = vperm.xlu0 %5544, %v6322_v16  }
 0x285   : > { %2857 = vperm.xlu2 %5543, %v6368_v33   ;;  %v1177_v33 = vpop.permute.xlu1 %1176 }
 0x287   : > { %2753 = vperm.xlu1 %5542, %v6332_v20   ;;  %2847 = vperm.xlu0 %5544, %v6345_v26   ;;  %v1431_v26 = vpop.f32.mrf.mxu3 }
 0x288   : > { %5366 = vmatmul.msk.f32.gmra.mxu3 %vm1088_vm2, %v6547_v56 }
 0x28d   : > { %3098 = vperm.xlu2 %5543, %v6280_v58   ;;  %v1192_v34 = vpop.permute.xlu1 %1191 }
 0x28f   : > { %2852 = vperm.xlu1 %5542, %v6355_v28   ;;  %3103 = vperm.xlu0 %5544, %v6309_v7   ;;  %v1434_v58 = vpop.f32.mrf.mxu3 }
 0x290   : > { %5367 = vmatmul.msk.f32.gmra.mxu3 %vm1088_vm2, %v6561_v11 }
 0x295   : > { %3123 = vperm.xlu2 %5543, %v6322_v16   ;;  %v1352_v35 = vpop.permute.xlu1 %1351 }
 0x296   : > { %v1432_v5 = vadd.f32 %v1431_v26, %v1352_v35  ;;  %v6594_v26 = vld [vmem:[%s8314_s1 + $0x20] sm:$0xff] }
 0x297   : > { %3093 = vperm.xlu1 %5542, %v6285_v60   ;;  %3118 = vperm.xlu0 %5544, %v6327_v18   ;;  %v1437_v28 = vpop.f32.mrf.mxu3  ;;  %v1347_v18 = vpop.permute.xlu0 %1346  ;;  %v1629_v35 = vld [vmem:[#allocation2 + $0x1a] sm:$0xff] }
 0x298   : > { %v1429_v57 = vadd.f32 %v6467_v46, %v1347_v18  ;;  %v1453_v13 = vmax.f32 %v1432_v5, 0.0  ;;  %v6581_v46 = vld [vmem:[#allocation2 + $0x5a] sm:$0xff]  ;;  %5368 = vmatmul.msk.f32.gmra.mxu3 %vm1088_vm2, %v6577_v22  ;;  %v2323_v18 = vld [vmem:[#allocation2 + $0x6c] sm:$0xff] }
 0x299   : > { %v3067_v5 = vld [vmem:[#allocation2 + $0x4e] sm:$0xff] }
 0x29a   : > { %v1452_v15 = vmax.f32 %v1429_v57, 0.0 }
 0x29d   : > { %3108 = vperm.xlu2 %5543, %v6304_v6   ;;  %v1367_v39 = vpop.permute.xlu1 %1366 }
 0x29f   : > { %3128 = vperm.xlu1 %5542, %v6332_v20   ;;  %3217 = vperm.xlu0 %5544, %v6350_v27   ;;  %v1440_v7 = vpop.f32.mrf.mxu3  ;;  %v1362_v14 = vpop.permute.xlu0 %1361 }
 0x2a0   : > { %v1357_v27 = vpop.permute.xlu2 %1356  ;;  %v1441_v49 = vadd.f32 %v1440_v7, %v1367_v39  ;;  %v1438_v61 = vadd.f32 %v1437_v28, %v1362_v14  ;;  %5369 = vmatmul.msk.f32.gmra.mxu3 %vm1088_vm2, %v6594_v26  ;;  %v1631_v28 = vld [vmem:[#allocation2 + $0x2a] sm:$0xff]  ;;  %v2320_v14 = vld [vmem:[#allocation2 + $0x54] sm:$0xff] }
 0x2a1   : > { %v1435_v63 = vadd.f32 %v1434_v58, %v1357_v27  ;;  %v1633_v58 = vld [vmem:[#allocation2 + $0x3a] sm:$0xff]  ;;  %v6604_v7 = vld [vmem:[%s8314_s1 + $0x28] sm:$0xff] }
 0x2a2   : > { %v1456_v2 = vmax.f32 %v1441_v49, 0.0  ;;  %v1455_v10 = vmax.f32 %v1438_v61, 0.0  ;;  %v2322_v39 = vld [vmem:[#allocation2 + $0x64] sm:$0xff]  ;;  %v2319_v27 = vld [vmem:[#allocation2 + $0x4c] sm:$0xff] }
 0x2a3   : > { %v1454_v12 = vmax.f32 %v1435_v63, 0.0  ;;  %v3071_v49 = vld [vmem:[#allocation2 + $0x6e] sm:$0xff]  ;;  %v3069_v63 = vld [vmem:[#allocation2 + $0x5e] sm:$0xff] }
 0x2a5   : > { %v1382_v42 = vpop.permute.xlu1 %1381 }
 0x2a7   : > { %3113 = vperm.xlu1 %5542, %v6299_v4   ;;  %v1443_v36 = vpop.f32.mrf.mxu3  ;;  %v1377_v45 = vpop.permute.xlu0 %1376 }
 0x2a8   : > { %v1372_v37 = vpop.permute.xlu2 %1371  ;;  %5370 = vmatmul.msk.f32.gmra.mxu3 %vm1088_vm2, %v6604_v7 }
 0x2a9   : > { %v1444_v53 = vadd.f32 %v1443_v36, %v1372_v37  ;;  %v2324_v36 = vld [vmem:[#allocation2 + $0x74] sm:$0x1] }
 0x2ab   : > { %v1457_v62 = vmax.f32 %v1444_v53, 0.0 }
 0x2af   : > { %v1446_v20 = vpop.f32.mrf.mxu3 }
 0x2b0   : > { %v1447_v50 = vadd.f32 %v1446_v20, %v1377_v45  ;;  %v6586_v25 = vpop.permute.xlu2 %1470  ;;  %v2321_v20 = vld [vmem:[#allocation2 + $0x5c] sm:$0xff] }
 0x2b2   : > { %v1458_v59 = vmax.f32 %v1447_v50, 0.0  ;;  %v3074_v50 = vld [vmem:[#allocation2 + $0x86] sm:$0x1] }
 0x2b7   : > { %v1449_v44 = vpop.f32.mrf.mxu3 }
 0x2b8   : > { %v1450_v47 = vadd.f32 %v1449_v44, %v1382_v42  ;;  %v6641_v42 = vpop.permute.xlu0 %1475  ;;  %v2314_v44 = vld [vmem:[#allocation2 + $0x24] sm:$0xff] }
 0x2ba   : > { %v1459_v55 = vmax.f32 %v1450_v47, 0.0 }
 0x2c0   : > { %v6658_v37 = vpop.permute.xlu0 %1657 }
 0x2c8   : > { %v6671_v61 = vpop.permute.xlu0 %1672 }
 0x2e2   : > { %v1224_v16 = vpop.f32.mrf.mxu1 }
 0x2e3   : > { %v1225_v43 = vadd.f32 %v1224_v16, %v1177_v33  ;;  %v1632_v33 = vld [vmem:[#allocation2 + $0x32] sm:$0xff]  ;;  %v1630_v16 = vld [vmem:[#allocation2 + $0x22] sm:$0xff] }
 0x2e5   : > { %v1236_v51 = vmax.f32 %v1225_v43, 0.0  ;;  %v2316_v43 = vld [vmem:[#allocation2 + $0x34] sm:$0xff] }
 0x2ea   : > { %v1227_v60 = vpop.f32.mrf.mxu1 }
 0x2eb   : > { %v1228_v41 = vadd.f32 %v1227_v60, %v1182_v38  ;;  %v1628_v60 = vld [vmem:[#allocation2 + $0x12] sm:$0xff] }
 0x2ed   : > { %v1237_v48 = vmax.f32 %v1228_v41, 0.0  ;;  %v2317_v41 = vld [vmem:[#allocation2 + $0x3c] sm:$0xff] }
 0x2f2   : > { %v1230_v6 = vpop.f32.mrf.mxu1 }
 0x2f3   : > { %v1231_v4 = vadd.f32 %v1230_v6, %v1187_v9  ;;  %v6606_v9 = vpop.f32.mrf.mxu3  ;;  %v6618_v6 = vld [vmem:[%s8314_s1 + $0x30] sm:$0xff] }
 0x2f4   : > { %5371 = vmatmul.msk.f32.gmra.mxu3 %vm1088_vm2, %v6618_v6 }
 0x2f5   : > { %v1238_v29 = vmax.f32 %v1231_v4, 0.0 }
 0x2fa   : > { %v1233_v54 = vpop.f32.mrf.mxu1 }
 0x2fb   : > { %v1234_v40 = vadd.f32 %v1233_v54, %v1192_v34  ;;  %v6599_v34 = vpop.permute.xlu2 %1485  ;;  %v6629_v54 = vld [vmem:[%s8314_s1 + $0x38] sm:$0xff] }
 0x2fc   : > { %5372 = vmatmul.msk.f32.gmra.mxu3 %vm1088_vm2, %v6629_v54 }
 0x2fd   : > { %v1239_v19 = vmax.f32 %v1234_v40, 0.0 }
 0x2ff   : > { %1269 = vmatpush.msra.mxu2 %v1239_v19  ;;  %v6639_v19 = vpop.permute.xlu1 %1480 }
 0x301   : > { %1270 = vmatpush.msra.mxu2 %v1238_v29  ;;  %v2315_v29 = vld [vmem:[#allocation2 + $0x2c] sm:$0xff] }
 0x303   : > { %1271 = vmatpush.msra.mxu2 %v1237_v48  ;;  %v6613_v38 = vpop.permute.xlu2 %1667 }
 0x305   : > { %1272 = vmatpush.msra.mxu2 %v1236_v51  ;;  %v3072_v51 = vld [vmem:[#allocation2 + $0x76] sm:$0xff] }
 0x306   : > { %5251 = vmatmul.msk.f32.vlgmr.msra.gmra.mxu2 %vm1244_vm4, %v6542_v52 }
 0x307   : > { %1508 = vmatpush.msrb.mxu2 %v1459_v55  ;;  %v6656_v48 = vpop.permute.xlu1 %1662 }
 0x309   : > { %1509 = vmatpush.msrb.mxu2 %v1458_v59 }
 0x30b   : > { %1510 = vmatpush.msrb.mxu2 %v1457_v62  ;;  %v6635_v4 = vpop.permute.xlu2 %1682  ;;  %v3070_v62 = vld [vmem:[#allocation2 + $0x66] sm:$0xff] }
 0x30d   : > { %1511 = vmatpush.msrb.mxu2 %v1456_v2  ;;  %v3068_v2 = vld [vmem:[#allocation2 + $0x56] sm:$0xff] }
 0x30e   : > { %5252 = vmatmul.msk.f32.gmra.mxu2 %vm1244_vm4, %v6556_v3 }
 0x30f   : > { %1512 = vmatpush.msrb.mxu2 %v1455_v10  ;;  %v6669_v59 = vpop.permute.xlu1 %1677 }
 0x311   : > { %1513 = vmatpush.msrb.mxu2 %v1454_v12  ;;  %v3066_v12 = vld [vmem:[#allocation2 + $0x46] sm:$0xff] }
 0x313   : > { %1514 = vmatpush.msrb.mxu2 %v1453_v13  ;;  %v6652_v45 = vpop.permute.xlu2 %1781 }
 0x314   : > { %8328 = vst [vmem:[#allocation8_spill] sm:$0xff] %v6652_v45 }
 0x315   : > { %1515 = vmatpush.msrb.mxu2 %v1452_v15  ;;  %v6687_v15 = vpop.permute.xlu0 %1687 }
 0x316   : > { %5253 = vmatmul.msk.f32.gmra.mxu2 %vm1244_vm4, %v6571_v17 }
 0x317   : > { %5274 = vmatpush.msk.msra.mxu2 %vm1113_vm1, %v1638_v21  ;;  %v6685_v13 = vpop.permute.xlu1 %1692  ;;  %v3065_v21 = vld [vmem:[#allocation2 + $0x3e] sm:$0xff] }
 0x319   : > { %1728 = vmatpush.msra.mxu2 %v6581_v46 }
 0x31b   : > { %1729 = vmatpush.msra.mxu2 %v1636_v24  ;;  %v6665_v53 = vpop.permute.xlu2 %1796  ;;  %v3064_v24 = vld [vmem:[#allocation2 + $0x36] sm:$0xff] }
 0x31c   : > { %8329 = vst [vmem:[#allocation9_spill] sm:$0xff] %v6665_v53 }
 0x31d   : > { %1730 = vmatpush.msra.mxu2 %v1635_v30 }
 0x31e   : > { %5254 = vmatmul.msk.f32.gmra.mxu2 %vm1244_vm4, %v1243_v1 }
 0x31f   : > { %1731 = vmatpush.msra.mxu2 %v1634_v31  ;;  %v6697_v31 = vpop.permute.xlu1 %1791 }
 0x320   : > { %8330 = vst [vmem:[#allocation10_spill] sm:$0xff] %v6697_v31 }
 0x321   : > { %1732 = vmatpush.msra.mxu2 %v1633_v58  ;;  %v6699_v58 = vpop.permute.xlu0 %1786 }
 0x322   : > { %8331 = vst [vmem:[#allocation11_spill] sm:$0xff] %v6699_v58  ;;  %v6837_v58 = vld [vmem:[%s8315_s2 + $0x18] sm:$0xff] }
 0x323   : > { %1733 = vmatpush.msra.mxu2 %v1632_v33  ;;  %v6677_v10 = vpop.permute.xlu2 %1985 }
 0x325   : > { %1734 = vmatpush.msra.mxu2 %v1631_v28 }
 0x326   : > { %5265 = vmatmul.msk.f32.vlgmr.msrb.gmra.mxu2 %vm1194_vm3, %v6489_v8  ;;  %v6620_v8 = vpop.f32.mrf.mxu3 }
 0x327   : > { %1735 = vmatpush.msra.mxu2 %v1630_v16  ;;  %v6709_v16 = vpop.permute.xlu1 %1995 }
 0x329   : > { %1736 = vmatpush.msra.mxu2 %v1629_v35  ;;  %v6711_v35 = vpop.permute.xlu0 %1990 }
 0x32b   : > { %1737 = vmatpush.msra.mxu2 %v1628_v60  ;;  %v6693_v30 = vpop.permute.xlu2 %2000 }
 0x32d   : > { %5310 = vmatpush.msk.msrb.mxu2 %vm1113_vm1, %v2324_v36 }
 0x32e   : > { %5266 = vmatmul.msk.f32.gmra.mxu2 %vm1194_vm3, %v6499_v23  ;;  %v2318_v23 = vld [vmem:[#allocation2 + $0x44] sm:$0xff]  ;;  %v6637_v40 = vpop.f32.mrf.mxu3 }
 0x32f   : > { %2414 = vmatpush.msrb.mxu2 %v2323_v18  ;;  %v1007_v18 = vlaneseq }
 0x331   : > { %2415 = vmatpush.msrb.mxu2 %v2322_v39  ;;  %v6725_v39 = vpop.permute.xlu1 %2010 }
 0x333   : > { %2416 = vmatpush.msrb.mxu2 %v2321_v20  ;;  %v6705_v33 = vpop.permute.xlu2 %2015  ;;  %v6727_v20 = vpop.permute.xlu0 %2005 }
 0x335   : > { %2417 = vmatpush.msrb.mxu2 %v2320_v14  ;;  %v1008_v14 = vand.u32 127, %v1007_v18 }
 0x336   : > { %5267 = vmatmul.msk.f32.gmra.mxu2 %vm1194_vm3, %v6509_v0  ;;  %v6646_v0 = vld [vmem:[%s8314_s1] sm:$0xff]  ;;  %v6654_v47 = vpop.f32.mrf.mxu3 }
 0x337   : > { %2418 = vmatpush.msrb.mxu2 %v2319_v27  ;;  %5401 = vmatmul.msk.f32.vlgmr.msra.gmra.mxu3 %vm1088_vm2, %v6646_v0  ;;  %vm1009_vm5 = vcmp.ge.s32.totalorder %v1008_v14, 2  ;;  %vm1010_vm6 = vcmp.lt.s32.totalorder %v1008_v14, 18 }
 0x338   : > { %vm1011_vm7 = vmand %vm1009_vm5, %vm1010_vm6 }
 0x339   : > { %2419 = vmatpush.msrb.mxu2 %v2318_v23 }
 0x33b   : > { %2420 = vmatpush.msrb.mxu2 %v2317_v41  ;;  %v6721_v60 = vpop.permute.xlu2 %2114  ;;  %v6741_v41 = vpop.permute.xlu1 %2109 }
 0x33c   : > { %8332 = vst [vmem:[#allocation12_spill] sm:$0xff] %v6721_v60 }
 0x33d   : > { %2421 = vmatpush.msrb.mxu2 %v2316_v43  ;;  %8336 = vst [vmem:[#allocation16_spill] sm:$0xff] %v6741_v41  ;;  %v6743_v43 = vpop.permute.xlu0 %2020  ;;  %v3816_v41 = vld [vmem:[#allocation2 + $0x58] sm:$0xff] }
 0x33e   : > { %5268 = vmatmul.msk.f32.gmra.mxu2 %vm1194_vm3, %v6519_v32  ;;  %v3073_v32 = vld [vmem:[#allocation2 + $0x7e] sm:$0xff]  ;;  %v6667_v55 = vpop.f32.mrf.mxu3 }
 0x33f   : > { %2422 = vmatpush.msrb.mxu2 %v2315_v29  ;;  %5402 = vmatmul.msk.f32.gmra.mxu3 %vm1088_vm2, %v6547_v56  ;;  %v5652_v29 = vmov 0.0  }
 0x341   : > { %2423 = vmatpush.msrb.mxu2 %v2314_v44  ;;  %v6745_v44 = vsel %vm1011_vm7, 1.0, %v5652_v29 }
 0x342   : > { %8337 = vst [vmem:[#allocation17_spill] sm:$0xff] %v6745_v44 }
 0x343   : > { %v6733_v27 = vpop.permute.xlu2 %2343 }
 0x344   : > { %8334 = vst [vmem:[#allocation14_spill] sm:$0xff] %v6733_v27 }
 0x346   : > { %5275 = vmatmul.msk.f32.vlgmr.msra.gmra.mxu2 %vm1088_vm2, %v6646_v0  ;;  %v6679_v57 = vpop.f32.mrf.mxu3 }
 0x347   : > { %5346 = vmatpush.msk.msra.mxu2 %vm1113_vm1, %v3074_v50  ;;  %5403 = vmatmul.msk.f32.gmra.mxu3 %vm1088_vm2, %v6561_v11  ;;  %v1289_v50 = vstv %s1288_s14  ;;  %s1576_s14 = sadd.s32 4294967295, %s6714_s24 }
 0x348   : > { %p1577_p4 = scmp.ge.s32.totalorder %s1576_s14, 0  ;;  %p1578_p5 = scmp.lt.s32.totalorder %s1576_s14, 16 }
 0x349   : > { %3164 = vmatpush.msra.mxu2 %v3073_v32  ;;  %v1290_v32 = vmul.f32 %v6745_v44, %v1289_v50  ;;  %v3821_v50 = vld [vmem:[#allocation2 + $0x80] sm:$0xff] }
 0x34a   : > { %p1579_p6 = pnand %p1578_p5, %p1577_p4 }
 0x34b   : > { %3165 = vmatpush.msra.mxu2 %v3072_v51  ;;  %v3824_v51 = vld [vmem:[#allocation2 + $0x98] sm:$0x1] }
 0x34c   : > { %s5273_s25 = scalar_select %p1579_p6, 0, 1 }
 0x34d   : > { %3166 = vmatpush.msra.mxu2 %v3071_v49  ;;  %v6752_v49 = vpop.permute.xlu2 %2358 }
 0x34e   : > { %5276 = vmatmul.msk.f32.gmra.mxu2 %vm1088_vm2, %v6547_v56  ;;  %v6695_v1 = vpop.f32.mrf.mxu3  ;;  %8338 = vst [vmem:[#allocation18_spill] sm:$0xff] %v6752_v49  ;;  %s1582_s11 = scvt.s32.f32 %s5273_s25 }
 0x34f   : > { %3167 = vmatpush.msra.mxu2 %v3070_v62  ;;  %5404 = vmatmul.msk.f32.gmra.mxu3 %vm1088_vm2, %v6577_v22  ;;  %s5291_s25 = scalar_select %p1889_p10, 0, 1 }
 0x351   : > { %3168 = vmatpush.msra.mxu2 %v3069_v63  ;;  %v3823_v63 = vld [vmem:[#allocation2 + $0x90] sm:$0xff] }
 0x353   : > { %3169 = vmatpush.msra.mxu2 %v3068_v2 }
 0x355   : > { %3170 = vmatpush.msra.mxu2 %v3067_v5  ;;  %v6757_v5 = vpop.permute.xlu1 %2124 }
 0x356   : > { %5277 = vmatmul.msk.f32.gmra.mxu2 %vm1088_vm2, %v6561_v11  ;;  %v6707_v28 = vpop.f32.mrf.mxu3  ;;  %8340 = vst [vmem:[#allocation20_spill] sm:$0xff] %v6757_v5  ;;  %v6802_v5 = vld [vmem:[%s8315_s2 + $0x20] sm:$0xff] }
 0x357   : > { %3171 = vmatpush.msra.mxu2 %v3066_v12  ;;  %5405 = vmatmul.msk.f32.gmra.mxu3 %vm1088_vm2, %v6594_v26 }
 0x359   : > { %3172 = vmatpush.msra.mxu2 %v3065_v21  ;;  %v6761_v21 = vpop.permute.xlu0 %2119 }
 0x35a   : > { %8341 = vst [vmem:[#allocation21_spill] sm:$0xff] %v6761_v21 }
 0x35b   : > { %3173 = vmatpush.msra.mxu2 %v3064_v24  ;;  %v3822_v24 = vld [vmem:[#allocation2 + $0x88] sm:$0xff] }
 0x35e   : > { %5278 = vmatmul.msk.f32.gmra.mxu2 %vm1088_vm2, %v6577_v22  ;;  %v6723_v36 = vpop.f32.mrf.mxu3 }
 0x35f   : > { %5406 = vmatmul.msk.f32.gmra.mxu3 %vm1088_vm2, %v6604_v7  ;;  %8333 = vst [vmem:[#allocation13_spill] sm:$0xff] %v6723_v36 }
 0x366   : > { %5279 = vmatmul.msk.f32.gmra.mxu2 %vm1088_vm2, %v6594_v26  ;;  %v6735_v23 = vpop.f32.mrf.mxu3 }
 0x367   : > { %5407 = vmatmul.msk.f32.gmra.mxu3 %vm1088_vm2, %v6618_v6  ;;  %8335 = vst [vmem:[#allocation15_spill] sm:$0xff] %v6735_v23 }
 0x36e   : > { %5280 = vmatmul.msk.f32.gmra.mxu2 %vm1088_vm2, %v6604_v7  ;;  %v6755_v62 = vpop.f32.mrf.mxu3 }
 0x36f   : > { %5408 = vmatmul.msk.f32.gmra.mxu3 %vm1088_vm2, %v6629_v54  ;;  %8339 = vst [vmem:[#allocation19_spill] sm:$0xff] %v6755_v62  ;;  %v6857_v62 = vld [vmem:[%s8315_s2] sm:$0xff] }
 0x376   : > { %5281 = vmatmul.msk.f32.gmra.mxu2 %vm1088_vm2, %v6618_v6 }
 0x377   : > { %5437 = vmatmul.msk.f32.vlgmr.msrb.gmra.mxu3 %vm1088_vm2, %v6646_v0 }
 0x37e   : > { %5282 = vmatmul.msk.f32.gmra.mxu2 %vm1088_vm2, %v6629_v54 }
 0x37f   : > { %5438 = vmatmul.msk.f32.gmra.mxu3 %vm1088_vm2, %v6547_v56 }
 0x386   : > { %5311 = vmatmul.msk.f32.vlgmr.msrb.gmra.mxu2 %vm1088_vm2, %v6646_v0 }
 0x387   : > { %5382 = vmatpush.msk.msrb.mxu2 %vm1113_vm1, %v3824_v51  ;;  %v3820_v51 = vld [vmem:[#allocation2 + $0x78] sm:$0xff]  ;;  %5439 = vmatmul.msk.f32.gmra.mxu3 %vm1088_vm2, %v6561_v11 }
 0x389   : > { %v1274_v2 = vpop.f32.mrf.mxu2  ;;  %3914 = vmatpush.msrb.mxu2 %v3823_v63 }
 0x38a   : > { %v6759_v12 = vmul.f32 %v1290_v32, %v1274_v2  ;;  %v3819_v32 = vld [vmem:[#allocation2 + $0x70] sm:$0xff]  ;;  %v6773_v2 = vpop.permute.xlu2 %2373 }
 0x38b   : > { %3915 = vmatpush.msrb.mxu2 %v3822_v24  ;;  %v6775_v24 = vpop.f32.mrf.mxu3 }
 0x38c   : > { %v1303_v18 = vrot.slane %v6759_v12, 3  ;;  %v1298_v14 = vrot.slane %v6759_v12, 2  ;;  %v1293_v29 = vrot.slane %v6759_v12, 1  ;;  %8342 = vst [vmem:[#allocation22_spill] sm:$0xff] %v6775_v24 }
 0x38d   : > { %3916 = vmatpush.msrb.mxu2 %v3821_v50  ;;  %v6780_v50 = vld [vmem:[%s8315_s2 + $0x38] sm:$0xff] }
 0x38e   : > { %1304 = vrot.lane.b32.xlu1 %v1303_v18, %s5644_s18  ;;  %5312 = vmatmul.msk.f32.gmra.mxu2 %vm1088_vm2, %v6547_v56  ;;  %v3818_v18 = vld [vmem:[#allocation2 + $0x68] sm:$0xff] }
 0x38f   : > { %1299 = vrot.lane.b32.xlu0 %v1298_v14, %s5648_s13  ;;  %3917 = vmatpush.msrb.mxu2 %v3820_v51  ;;  %v6782_v14 = vpop.permute.xlu1 %2353  ;;  %v6789_v51 = vpop.permute.xlu0 %2348 }
 0x390   : > { %1294 = vrot.lane.b32.xlu2 %v1293_v29, %s5645_s19  ;;  %8343 = vst [vmem:[#allocation23_spill] sm:$0xff] %v6782_v14  ;;  %v6787_v29 = vld [vmem:[%s8315_s2 + $0x28] sm:$0xff]  ;;  %5440 = vmatmul.msk.f32.gmra.mxu3 %vm1088_vm2, %v6577_v22 }
 0x391   : > { %v1277_v63 = vpop.f32.mrf.mxu2  ;;  %3918 = vmatpush.msrb.mxu2 %v3819_v32  ;;  %8344 = vst [vmem:[#allocation24_spill] sm:$0xff] %v6789_v51  ;;  %v1308_v32 = vrot.slane %v6759_v12, 4 }
 0x392   : > { %v3817_v63 = vld [vmem:[#allocation2 + $0x60] sm:$0xff]  ;;  %v6804_v21 = vpop.permute.xlu2 %2472 }
 0x393   : > { %3919 = vmatpush.msrb.mxu2 %v3818_v18  ;;  %v3815_v18 = vld [vmem:[#allocation2 + $0x50] sm:$0xff]  ;;  %8345 = vst [vmem:[#allocation25_spill] sm:$0xff] %v6804_v21  ;;  %v6832_v21 = vld [vmem:[%s8315_s2 + $0x8] sm:$0xff] }
 0x395   : > { %3920 = vmatpush.msrb.mxu2 %v3817_v63  ;;  %v3814_v63 = vld [vmem:[#allocation2 + $0x48] sm:$0xff] }
 0x396   : > { %3503 = vperm.xlu1 %5542, %v6780_v50   ;;  %5313 = vmatmul.msk.f32.gmra.mxu2 %vm1088_vm2, %v6561_v11 }
 0x397   : > { %3493 = vperm.xlu0 %5544, %v6787_v29   ;;  %3921 = vmatpush.msrb.mxu2 %v3816_v41  ;;  %v6809_v41 = vld [vmem:[%s8315_s2 + $0x10] sm:$0xff]  ;;  %v6821_v45 = vpop.permute.xlu0 %2363 }
 0x398   : > { %1309 = vrot.lane.b32.xlu2 %v1308_v32, %s5647_s22  ;;  %v6811_v32 = vpop.f32.mrf.mxu3  ;;  %8347 = vst [vmem:[#allocation27_spill] sm:$0xff] %v6821_v45  ;;  %5441 = vmatmul.msk.f32.gmra.mxu3 %vm1088_vm2, %v6594_v26  ;;  %v4527_v45 = vld [vmem:[#allocation2 + $0xaa] sm:$0x1] }
 0x399   : > { %3922 = vmatpush.msrb.mxu2 %v3815_v18  ;;  %v1279_v60 = vpop.f32.mrf.mxu2  ;;  %8346 = vst [vmem:[#allocation26_spill] sm:$0xff] %v6811_v32  ;;  %v6818_v18 = vpop.permute.xlu1 %2368 }
 0x39a   : > { %v6816_v60 = vld [vmem:[%s8315_s2 + $0x30] sm:$0xff]  ;;  %v6839_v53 = vpop.permute.xlu2 %2728 }
 0x39b   : > { %3923 = vmatpush.msrb.mxu2 %v3814_v63  ;;  %8348 = vst [vmem:[#allocation28_spill] sm:$0xff] %v6839_v53 }
 0x39e   : > { %3488 = vperm.xlu1 %5542, %v6802_v5   ;;  %5314 = vmatmul.msk.f32.gmra.mxu2 %vm1088_vm2, %v6577_v22 }
 0x39f   : > { %3478 = vperm.xlu0 %5544, %v6809_v41   ;;  %v6850_v36 = vpop.permute.xlu0 %2378 }
 0x3a0   : > { %3498 = vperm.xlu2 %5543, %v6816_v60   ;;  %v6842_v31 = vpop.f32.mrf.mxu3  ;;  %5442 = vmatmul.msk.f32.gmra.mxu3 %vm1088_vm2, %v6604_v7 }
 0x3a1   : > { %v1281_v63 = vpop.f32.mrf.mxu2  ;;  %8349 = vst [vmem:[#allocation29_spill] sm:$0xff] %v6842_v31 }
 0x3a2   : > { %v6847_v63 = vpop.permute.xlu1 %2467 }
 0x3a3   : > { %8350 = vst [vmem:[#allocation30_spill] sm:$0xff] %v6847_v63  ;;  %v6865_v63 = vpop.permute.xlu2 %2743 }
 0x3a4   : > { %8352 = vst [vmem:[#allocation32_spill] sm:$0xff] %v6865_v63 }
 0x3a6   : > { %3473 = vperm.xlu1 %5542, %v6832_v21   ;;  %5315 = vmatmul.msk.f32.gmra.mxu2 %vm1088_vm2, %v6594_v26 }
 0x3a7   : > { %3878 = vperm.xlu0 %5544, %v6780_v50   ;;  %v6872_v31 = vpop.permute.xlu0 %2477 }
 0x3a8   : > { %3483 = vperm.xlu2 %5543, %v6837_v58   ;;  %v6860_v53 = vpop.f32.mrf.mxu3  ;;  %5443 = vmatmul.msk.f32.gmra.mxu3 %vm1088_vm2, %v6618_v6  ;;  %8354 = vst [vmem:[#allocation34_spill] sm:$0xff] %v6872_v31 }
 0x3a9   : > { %v1517_v23 = vpop.f32.mrf.mxu2  ;;  %8351 = vst [vmem:[#allocation31_spill] sm:$0xff] %v6860_v53 }
 0x3aa   : > { %v6870_v24 = vpop.permute.xlu1 %2482 }
 0x3ab   : > { %8353 = vst [vmem:[#allocation33_spill] sm:$0xff] %v6870_v24  ;;  %v6883_v53 = vpop.permute.xlu2 %2842 }
 0x3ac   : > { %8356 = vst [vmem:[#allocation36_spill] sm:$0xff] %v6883_v53 }
 0x3ae   : > { %3873 = vperm.xlu1 %5542, %v6816_v60   ;;  %5316 = vmatmul.msk.f32.gmra.mxu2 %vm1088_vm2, %v6604_v7 }
 0x3af   : > { %3863 = vperm.xlu0 %5544, %v6802_v5   ;;  %v6887_v31 = vpop.permute.xlu0 %2718 }
 0x3b0   : > { %3468 = vperm.xlu2 %5543, %v6857_v62   ;;  %v6879_v63 = vpop.f32.mrf.mxu3  ;;  %5444 = vmatmul.msk.f32.gmra.mxu3 %vm1088_vm2, %v6629_v54  ;;  %8358 = vst [vmem:[#allocation38_spill] sm:$0xff] %v6887_v31 }
 0x3b1   : > { %v1520_v32 = vpop.f32.mrf.mxu2  ;;  %8355 = vst [vmem:[#allocation35_spill] sm:$0xff] %v6879_v63 }
 0x3b2   : > { %v6885_v27 = vpop.permute.xlu1 %2723  ;;  %v1521_v49 = vadd.f32 %v1520_v32, %v6641_v42  ;;  %v4525_v32 = vld [vmem:[#allocation2 + $0x9a] sm:$0xff] }
 0x3b3   : > { %8357 = vst [vmem:[#allocation37_spill] sm:$0xff] %v6885_v27  ;;  %v6895_v14 = vpop.permute.xlu2 %2857 }
 0x3b4   : > { %8359 = vst [vmem:[#allocation39_spill] sm:$0xff] %v6895_v14  ;;  %v1530_v42 = vmax.f32 %v1521_v49, 0.0  ;;  %v4524_v14 = vld [vmem:[#allocation2 + $0x92] sm:$0xff]  ;;  %v4521_v49 = vld [vmem:[#allocation2 + $0x7a] sm:$0xff] }
 0x3b6   : > { %3858 = vperm.xlu1 %5542, %v6837_v58   ;;  %5317 = vmatmul.msk.f32.gmra.mxu2 %vm1088_vm2, %v6618_v6 }
 0x3b7   : > { %3848 = vperm.xlu0 %5544, %v6832_v21   ;;  %v6901_v31 = vpop.permute.xlu0 %2733 }
 0x3b8   : > { %3868 = vperm.xlu2 %5543, %v6787_v29   ;;  %8360 = vst [vmem:[#allocation40_spill] sm:$0xff] %v6901_v31 }
 0x3b9   : > { %v1523_v24 = vpop.f32.mrf.mxu2 }
 0x3ba   : > { %v1524_v53 = vadd.f32 %v1523_v24, %v6639_v19  ;;  %v6898_v27 = vpop.permute.xlu1 %2738  ;;  %v4526_v24 = vld [vmem:[#allocation2 + $0xa2] sm:$0xff] }
 0x3bb   : > { %v6912_v31 = vpop.permute.xlu2 %3098 }
 0x3bc   : > { %v1531_v19 = vmax.f32 %v1524_v53, 0.0  ;;  %8361 = vst [vmem:[#allocation41_spill] sm:$0xff] %v6912_v31 }
 0x3be   : > { %3843 = vperm.xlu1 %5542, %v6857_v62   ;;  %5318 = vmatmul.msk.f32.gmra.mxu2 %vm1088_vm2, %v6629_v54 }
 0x3bf   : > { %4235 = vperm.xlu0 %5544, %v6816_v60   ;;  %v6920_v53 = vpop.permute.xlu0 %2748 }
 0x3c0   : > { %3853 = vperm.xlu2 %5543, %v6809_v41  }
 0x3c1   : > { %v1526_v63 = vpop.f32.mrf.mxu2 }
 0x3c2   : > { %v1527_v51 = vadd.f32 %v1526_v63, %v6599_v34  ;;  %v1518_v34 = vadd.f32 %v1517_v23, %v6586_v25  ;;  %v4523_v25 = vld [vmem:[#allocation2 + $0x8a] sm:$0xff]  ;;  %v4522_v23 = vld [vmem:[#allocation2 + $0x82] sm:$0xff] }
 0x3c4   : > { %v1532_v44 = vmax.f32 %v1527_v51, 0.0  ;;  %v1529_v63 = vmax.f32 %v1518_v34, 0.0  ;;  %v4519_v34 = vld [vmem:[#allocation2 + $0x6a] sm:$0xff] }
 0x3c6   : > { %4230 = vperm.xlu1 %5542, %v6787_v29   ;;  %5347 = vmatmul.msk.f32.vlgmr.msra.gmra.mxu2 %vm1088_vm2, %v6646_v0 }
 0x3c7   : > { %4220 = vperm.xlu0 %5544, %v6837_v58   ;;  %5418 = vmatpush.msk.msra.mxu2 %vm1113_vm1, %v4527_v45  ;;  %v6916_v45 = vpop.permute.xlu1 %2753 }
 0x3c8   : > { %4240 = vperm.xlu2 %5543, %v6780_v50   ;;  %1561 = vmatpush.msrb.mxu1 %v1532_v44 }
 0x3c9   : > { %4617 = vmatpush.msra.mxu2 %v4526_v24  ;;  %v6910_v51 = vpop.f32.mrf.mxu2  ;;  %v4518_v24 = vld [vmem:[#allocation2 + $0x62] sm:$0xff] }
 0x3ca   : > { %1562 = vmatpush.msrb.mxu1 %v1531_v19  ;;  %v6931_v19 = vpop.permute.xlu2 %3123 }
 0x3cb   : > { %4618 = vmatpush.msra.mxu2 %v4525_v32  ;;  %8363 = vst [vmem:[#allocation43_spill] sm:$0xff] %v6931_v19 }
 0x3cc   : > { %1563 = vmatpush.msrb.mxu1 %v1530_v42 }
 0x3cd   : > { %4619 = vmatpush.msra.mxu2 %v4524_v14  ;;  %v4520_v14 = vld [vmem:[#allocation2 + $0x72] sm:$0xff] }
 0x3ce   : > { %4215 = vperm.xlu1 %5542, %v6809_v41   ;;  %1564 = vmatpush.msrb.mxu1 %v1529_v63  ;;  %v6943_v63 = vpop.permute.xlu0 %2847 }
 0x3cf   : > { %4205 = vperm.xlu0 %5544, %v6857_v62   ;;  %5269 = vmatmul.msk.f32.vlgmr.msrb.gmra.mxu1 %vm1244_vm4, %v6542_v52  ;;  %v6928_v52 = vpop.f32.mrf.mxu3  ;;  %v6939_v42 = vpop.permute.xlu1 %2852  ;;  %8365 = vst [vmem:[#allocation45_spill] sm:$0xff] %v6943_v63 }
 0x3d0   : > { %4620 = vmatpush.msra.mxu2 %v4523_v25  ;;  %4225 = vperm.xlu2 %5543, %v6802_v5   ;;  %8362 = vst [vmem:[#allocation42_spill] sm:$0xff] %v6928_v52  ;;  %v1017_v25 = vstv %s1016_s23 }
 0x3d1   : > { %5348 = vmatmul.msk.f32.gmra.mxu2 %vm1088_vm2, %v6547_v56  ;;  %v6925_v44 = vpop.f32.mrf.mxu2  ;;  %8364 = vst [vmem:[#allocation44_spill] sm:$0xff] %v6939_v42 }
 0x3d2   : > { %4621 = vmatpush.msra.mxu2 %v4522_v23  ;;  %v6957_v23 = vpop.permute.xlu2 %3108  ;;  %1020 = vst.msk [vmem:[%s6961_s17] sm:$0xff] %vm1019_vm8, %v1017_v25  ;;  %v1536_v25 = vld [vmem:[%s8318_s5 + $0x18] sm:$0x1] }
 0x3d3   : > { %8367 = vst [vmem:[#allocation47_spill] sm:$0xff] %v6957_v23 }
 0x3d4   : > { %4622 = vmatpush.msra.mxu2 %v4521_v49 }
 0x3d6   : > { %4623 = vmatpush.msra.mxu2 %v4520_v14  ;;  %4581 = vperm.xlu1 %5542, %v6780_v50  }
 0x3d7   : > { %4571 = vperm.xlu0 %5544, %v6787_v29   ;;  %5270 = vmatmul.msk.f32.gmra.mxu1 %vm1244_vm4, %v6556_v3  ;;  %v6952_v3 = vpop.f32.mrf.mxu3  ;;  %v6964_v49 = vpop.permute.xlu1 %3093 }
 0x3d8   : > { %4624 = vmatpush.msra.mxu2 %v4519_v34  ;;  %4210 = vperm.xlu2 %5543, %v6832_v21   ;;  %8366 = vst [vmem:[#allocation46_spill] sm:$0xff] %v6952_v3 }
 0x3d9   : > { %5349 = vmatmul.msk.f32.gmra.mxu2 %vm1088_vm2, %v6561_v11  ;;  %v6941_v32 = vpop.f32.mrf.mxu2  ;;  %8368 = vst [vmem:[#allocation48_spill] sm:$0xff] %v6964_v49 }
 0x3da   : > { %4625 = vmatpush.msra.mxu2 %v4518_v24 }
 0x3dc   : > { %4626 = vmatpush.msra.mxu2 %v6581_v46 }
 0x3de   : > { %4566 = vperm.xlu1 %5542, %v6802_v5  }
 0x3df   : > { %4556 = vperm.xlu0 %5544, %v6809_v41   ;;  %5271 = vmatmul.msk.f32.gmra.mxu1 %vm1244_vm4, %v6571_v17  ;;  %v6966_v17 = vpop.permute.xlu0 %3103  ;;  %v6973_v24 = vpop.f32.mrf.mxu3 }
 0x3e0   : > { %4576 = vperm.xlu2 %5543, %v6816_v60   ;;  %8369 = vst [vmem:[#allocation49_spill] sm:$0xff] %v6966_v17  ;;  %v6975_v63 = vpop.permute.xlu1 %3128 }
 0x3e1   : > { %5350 = vmatmul.msk.f32.gmra.mxu2 %vm1088_vm2, %v6577_v22  ;;  %v6959_v46 = vpop.f32.mrf.mxu2  ;;  %8370 = vst [vmem:[#allocation50_spill] sm:$0xff] %v6973_v24 }
 0x3e2   : > { %8371 = vst [vmem:[#allocation51_spill] sm:$0xff] %v6975_v63  ;;  %v1313_v63 = vld [vmem:[%s6961_s17] sm:$0x1] }
 0x3e6   : > { %4551 = vperm.xlu1 %5542, %v6832_v21  }
 0x3e7   : > { %4895 = vperm.xlu0 %5544, %v6780_v50   ;;  %v6981_v42 = vpop.permute.xlu0 %3118  ;;  %5272 = vmatmul.msk.f32.gmra.mxu1 %vm1244_vm4, %v1536_v25  ;;  %v6988_v3 = vpop.f32.mrf.mxu3 }
 0x3e8   : > { %4561 = vperm.xlu2 %5543, %v6837_v58   ;;  %8372 = vst [vmem:[#allocation52_spill] sm:$0xff] %v6981_v42 }
 0x3e9   : > { %5351 = vmatmul.msk.f32.gmra.mxu2 %vm1088_vm2, %v6594_v26  ;;  %v1751_v34 = vpop.f32.mrf.mxu2  ;;  %8373 = vst [vmem:[#allocation53_spill] sm:$0xff] %v6988_v3  ;;  %v7004_v3 = vld [vmem:[%s8317_s4 + $0x10] sm:$0xff] }
 0x3ea   : > { %v1295_v14 = vpop.permute.xlu2 %1294 }
 0x3ee   : > { %4890 = vperm.xlu1 %5542, %v6816_v60   ;;  %v6992_v60 = vpop.permute.xlu1 %3113 }
 0x3ef   : > { %4880 = vperm.xlu0 %5544, %v6802_v5   ;;  %8374 = vst [vmem:[#allocation54_spill] sm:$0xff] %v6992_v60  ;;  %v6994_v24 = vpop.permute.xlu0 %3217 }
 0x3f0   : > { %4546 = vperm.xlu2 %5543, %v6857_v62   ;;  %8375 = vst [vmem:[#allocation55_spill] sm:$0xff] %v6994_v24  ;;  %v1297_v24 = vadd.f32 %v1295_v14, %v6759_v12 }
 0x3f1   : > { %5352 = vmatmul.msk.f32.gmra.mxu2 %vm1088_vm2, %v6604_v7  ;;  %v1754_v52 = vpop.f32.mrf.mxu2 }
 0x3f2   : > { %v1310_v50 = vpop.permute.xlu2 %1309  ;;  %v1755_v12 = vadd.f32 %v1754_v52, %v6635_v4 }
 0x3f6   : > { %4875 = vperm.xlu1 %5542, %v6837_v58   ;;  %v7009_v58 = vld [vmem:[%s8317_s4 + $0x8] sm:$0xff] }
 0x3f7   : > { %4870 = vperm.xlu0 %5544, %v6809_v41   ;;  %v7017_v41 = vpop.f32.mrf.mxu3 }
 0x3f8   : > { %4885 = vperm.xlu2 %5543, %v6787_v29   ;;  %v7015_v29 = vld [vmem:[%s8317_s4 + $0x18] sm:$0xff]  ;;  %8377 = vst [vmem:[#allocation57_spill] sm:$0xff] %v7017_v41 }
 0x3f9   : > { %5353 = vmatmul.msk.f32.gmra.mxu2 %vm1088_vm2, %v6618_v6  ;;  %v1757_v25 = vpop.f32.mrf.mxu2 }
 0x3fa   : > { %v6999_v5 = vpop.permute.xlu2 %3498  ;;  %v1758_v42 = vadd.f32 %v1757_v25, %v6687_v15 }
 0x3fb   : > { %8376 = vst [vmem:[#allocation56_spill] sm:$0xff] %v6999_v5 }
 0x3fe   : > { %3227 = vperm.xlu1 %5542, %v7004_v3  }
 0x3ff   : > { %3222 = vperm.xlu0 %5544, %v7009_v58   ;;  %v7035_v15 = vpop.f32.mrf.mxu3 }
 0x400   : > { %v1305_v5 = vpop.permute.xlu1 %1304  ;;  %3232 = vperm.xlu2 %5543, %v7015_v29  }
 0x401   : > { %5354 = vmatmul.msk.f32.gmra.mxu2 %vm1088_vm2, %v6629_v54  ;;  %v1300_v49 = vpop.permute.xlu0 %1299  ;;  %v1760_v23 = vpop.f32.mrf.mxu2 }
 0x402   : > { %v1302_v31 = vadd.f32 %v1300_v49, %v1297_v24  ;;  %v7024_v17 = vpop.permute.xlu2 %3483  ;;  %v1761_v60 = vadd.f32 %v1760_v23, %v6685_v13  ;;  %v1752_v49 = vadd.f32 %v1751_v34, %v6669_v59  ;;  %v1769_v24 = vmax.f32 %v1758_v42, 0.0 }
 0x403   : > { %8378 = vst [vmem:[#allocation58_spill] sm:$0xff] %v7024_v17 }
 0x404   : > { %v1307_v41 = vadd.f32 %v1305_v5, %v1302_v31  ;;  %v1770_v19 = vmax.f32 %v1761_v60, 0.0  ;;  %v1749_v31 = vadd.f32 %v6959_v46, %v6671_v61  ;;  %v1740_v61 = vadd.f32 %v6910_v51, %v6658_v37 }
 0x405   : > { %v2086_v37 = vadd.f32 %v6695_v1, %v6705_v33  ;;  %v2080_v33 = vadd.f32 %v6667_v55, %v6727_v20  ;;  %v2074_v55 = vadd.f32 %v6637_v40, %v6709_v16  ;;  %v2068_v40 = vadd.f32 %v6606_v9, %v6677_v10  ;;  %v7137_v9 = vld [vmem:[%s8316_s3 + $0x10] sm:$0xff] }
 0x406   : > { %v1312_v14 = vadd.f32 %v1310_v50, %v1307_v41  ;;  %4860 = vperm.xlu1 %5542, %v6857_v62   ;;  %1819 = vmatpush.msra.mxu1 %v1770_v19  ;;  %v1768_v62 = vmax.f32 %v1755_v12, 0.0  ;;  %v1746_v19 = vadd.f32 %v6941_v32, %v6613_v38  ;;  %v1766_v42 = vmax.f32 %v1749_v31, 0.0 }
 0x407   : > { %3602 = vperm.xlu0 %5544, %v7004_v3   ;;  %v1763_v51 = vmax.f32 %v1740_v61, 0.0  ;;  %v2097_v1 = vmax.f32 %v2086_v37, 0.0  ;;  %v2095_v20 = vmax.f32 %v2080_v33, 0.0  ;;  %v2093_v16 = vmax.f32 %v2074_v55, 0.0 }
 0x408   : > { %v1314_v17 = vadd.f32 %v1313_v63, %v1312_v14  ;;  %v7033_v13 = vpop.permute.xlu1 %3503  ;;  %4865 = vperm.xlu2 %5543, %v6832_v21   ;;  %1820 = vmatpush.msra.mxu1 %v1769_v24  ;;  %v1767_v21 = vmax.f32 %v1752_v49, 0.0  ;;  %v1765_v63 = vmax.f32 %v1746_v19, 0.0  ;;  %v2091_v24 = vmax.f32 %v2068_v40, 0.0  ;;  %v7155_v19 = vld [vmem:[%s8316_s3 + $0x18] sm:$0xff]  ;;  %v8381_v40 = vld [vmem:[#allocation17_spill] sm:$0xff] }
 0x409   : > { %5383 = vmatmul.msk.f32.vlgmr.msrb.gmra.mxu2 %vm1088_vm2, %v6646_v0  ;;  %v7040_v4 = vpop.permute.xlu0 %3493  ;;  %v7048_v52 = vpop.f32.mrf.mxu2  ;;  %v1743_v0 = vadd.f32 %v6925_v44, %v6656_v48  ;;  %v2089_v48 = vadd.f32 %v6707_v28, %v6743_v43  ;;  %v7083_v28 = vld [vmem:[%s8317_s4] sm:$0xff]  ;;  %v2083_v43 = vadd.f32 %v6679_v57, %v6725_v39  ;;  %v2077_v39 = vadd.f32 %v6654_v47, %v6693_v30 }
 0x40a   : > { %1316 = vst.msk [vmem:[%s6961_s17] sm:$0x1] %vm1315_vm9, %v1314_v17  ;;  %v7046_v59 = vpop.permute.xlu2 %3468  ;;  %1821 = vmatpush.msra.mxu1 %v1768_v62  ;;  %v7073_v17 = vpop.f32.mrf.mxu3  ;;  %v2071_v47 = vadd.f32 %v6620_v8, %v6711_v35 }
 0x40b   : > { %v1764_v44 = vmax.f32 %v1743_v0, 0.0  ;;  %v2098_v34 = vmax.f32 %v2089_v48, 0.0  ;;  %v2096_v60 = vmax.f32 %v2083_v43, 0.0  ;;  %v2094_v41 = vmax.f32 %v2077_v39, 0.0  ;;  %v8379_v39 = vld [vmem:[#allocation27_spill] sm:$0xff] }
 0x40c   : > { %1822 = vmatpush.msra.mxu1 %v1767_v21  ;;  %v2092_v35 = vmax.f32 %v2071_v47, 0.0 }
 0x40e   : > { %3597 = vperm.xlu1 %5542, %v7009_v58   ;;  %1823 = vmatpush.msra.mxu1 %v1766_v42 }
 0x40f   : > { %3982 = vperm.xlu0 %5544, %v7015_v29  }
 0x410   : > { %v7058_v23 = vpop.permute.xlu1 %3488  ;;  %3607 = vperm.xlu2 %5543, %v7015_v29   ;;  %1824 = vmatpush.msra.mxu1 %v1765_v63 }
 0x411   : > { %5384 = vmatmul.msk.f32.gmra.mxu2 %vm1088_vm2, %v6547_v56  ;;  %v7063_v38 = vpop.permute.xlu0 %3478  ;;  %v7069_v46 = vpop.f32.mrf.mxu2  ;;  %v7078_v56 = vld [vmem:[%s8316_s3] sm:$0xff] }
 0x412   : > { %v7067_v32 = vpop.permute.xlu2 %3868  ;;  %1825 = vmatpush.msra.mxu1 %v1764_v44  ;;  %v7115_v30 = vpop.f32.mrf.mxu3 }
 0x414   : > { %1826 = vmatpush.msra.mxu1 %v1763_v51 }
 0x415   : > { %5283 = vmatmul.msk.f32.vlgmr.msra.gmra.mxu1 %vm1194_vm3, %v7078_v56 }
 0x416   : > { %3977 = vperm.xlu1 %5542, %v7004_v3   ;;  %2147 = vmatpush.msrb.mxu1 %v2098_v34 }
 0x417   : > { %3967 = vperm.xlu0 %5544, %v7083_v28  }
 0x418   : > { %v7093_v50 = vpop.permute.xlu1 %3473  ;;  %3592 = vperm.xlu2 %5543, %v7083_v28   ;;  %2148 = vmatpush.msrb.mxu1 %v2097_v1 }
 0x419   : > { %5385 = vmatmul.msk.f32.gmra.mxu2 %vm1088_vm2, %v6561_v11  ;;  %v7098_v57 = vpop.permute.xlu0 %3878  ;;  %v7104_v25 = vpop.f32.mrf.mxu2  ;;  %v7111_v11 = vld [vmem:[%s8316_s3 + $0x8] sm:$0xff] }
 0x41a   : > { %v7102_v5 = vpop.permute.xlu2 %3853  ;;  %2149 = vmatpush.msrb.mxu1 %v2096_v60 }
 0x41c   : > { %2150 = vmatpush.msrb.mxu1 %v2095_v20  ;;  %v8380_v20 = vld [vmem:[#allocation18_spill] sm:$0xff] }
 0x41d   : > { %5284 = vmatmul.msk.f32.gmra.mxu1 %vm1194_vm3, %v7111_v11 }
 0x41e   : > { %4344 = vperm.xlu1 %5542, %v7015_v29   ;;  %2151 = vmatpush.msrb.mxu1 %v2094_v41 }
 0x41f   : > { %4334 = vperm.xlu0 %5544, %v7009_v58  }
 0x420   : > { %v7123_v12 = vpop.permute.xlu1 %3873  ;;  %3972 = vperm.xlu2 %5543, %v7009_v58   ;;  %2152 = vmatpush.msrb.mxu1 %v2093_v16 }
 0x421   : > { %5386 = vmatmul.msk.f32.gmra.mxu2 %vm1088_vm2, %v6577_v22  ;;  %v7128_v8 = vpop.permute.xlu0 %3863  ;;  %v7130_v14 = vpop.f32.mrf.mxu2 }
 0x422   : > { %v7132_v49 = vpop.permute.xlu2 %4240  ;;  %2153 = vmatpush.msrb.mxu1 %v2092_v35  ;;  %v7143_v22 = vpop.f32.mrf.mxu3 }
 0x424   : > { %2154 = vmatpush.msrb.mxu1 %v2091_v24 }
 0x425   : > { %5285 = vmatmul.msk.f32.gmra.mxu1 %vm1194_vm3, %v7137_v9 }
 0x426   : > { %4329 = vperm.xlu1 %5542, %v7083_v28  }
 0x427   : > { %4680 = vperm.xlu0 %5544, %v7004_v3  }
 0x428   : > { %v7145_v10 = vpop.permute.xlu1 %3858  ;;  %4339 = vperm.xlu2 %5543, %v7004_v3  }
 0x429   : > { %5387 = vmatmul.msk.f32.gmra.mxu2 %vm1088_vm2, %v6594_v26  ;;  %v7150_v31 = vpop.permute.xlu0 %3848  ;;  %v2437_v62 = vpop.f32.mrf.mxu2 }
 0x42a   : > { %v7157_v21 = vpop.permute.xlu2 %4225  ;;  %v7170_v42 = vpop.f32.mrf.mxu3  ;;  %v2438_v60 = vadd.f32 %v2437_v62, %v8379_v39  ;;  %v8383_v62 = vld [vmem:[#allocation23_spill] sm:$0xff] }
 0x42c   : > { %v2453_v24 = vmax.f32 %v2438_v60, 0.0  ;;  %v8386_v60 = vld [vmem:[#allocation14_spill] sm:$0xff] }
 0x42d   : > { %5286 = vmatmul.msk.f32.gmra.mxu1 %vm1194_vm3, %v7155_v19 }
 0x42e   : > { %4675 = vperm.xlu1 %5542, %v7009_v58  }
 0x42f   : > { %4999 = vperm.xlu0 %5544, %v7015_v29  }
 0x430   : > { %v7163_v0 = vpop.permute.xlu1 %3843  ;;  %4685 = vperm.xlu2 %5543, %v7015_v29  }
 0x431   : > { %5388 = vmatmul.msk.f32.gmra.mxu2 %vm1088_vm2, %v6604_v7  ;;  %v7168_v26 = vpop.permute.xlu0 %4235  ;;  %v2440_v61 = vpop.f32.mrf.mxu2 }
 0x432   : > { %v7174_v63 = vpop.permute.xlu2 %4210  ;;  %v2441_v33 = vadd.f32 %v2440_v61, %v6818_v18  ;;  %v2435_v18 = vadd.f32 %v7130_v14, %v8380_v20  ;;  %v2432_v61 = vadd.f32 %v7104_v25, %v8383_v62  ;;  %v4529_v14 = vld [vmem:[%s8314_s1 + $0x8] sm:$0xff] }
 0x434   : > { %v2454_v41 = vmax.f32 %v2441_v33, 0.0  ;;  %v2451_v20 = vmax.f32 %v2432_v61, 0.0 }
 0x435   : > { %5301 = vmatmul.msk.f32.vlgmr.msrb.gmra.mxu1 %vm1194_vm3, %v7078_v56 }
 0x436   : > { %4994 = vperm.xlu1 %5542, %v7004_v3   ;;  %v7186_v3 = vpop.f32.mrf.mxu3 }
 0x437   : > { %4984 = vperm.xlu0 %5544, %v7083_v28  }
 0x438   : > { %v7179_v29 = vpop.permute.xlu1 %4230  ;;  %4670 = vperm.xlu2 %5543, %v7083_v28  }
 0x439   : > { %5389 = vmatmul.msk.f32.gmra.mxu2 %vm1088_vm2, %v6618_v6  ;;  %v7184_v7 = vpop.permute.xlu0 %4220  ;;  %v2443_v48 = vpop.f32.mrf.mxu2 }
 0x43a   : > { %v7192_v37 = vpop.permute.xlu2 %4576  ;;  %v2444_v43 = vadd.f32 %v2443_v48, %v6773_v2 }
 0x43c   : > { %v2455_v55 = vmax.f32 %v2444_v43, 0.0  ;;  %v8384_v43 = vld [vmem:[#allocation24_spill] sm:$0xff] }
 0x43d   : > { %5302 = vmatmul.msk.f32.gmra.mxu1 %vm1194_vm3, %v7111_v11 }
 0x43e   : > { %v7201_v1 = vpop.f32.mrf.mxu3 }
 0x440   : > { %v7190_v44 = vpop.permute.xlu1 %4215  ;;  %4989 = vperm.xlu2 %5543, %v7009_v58   ;;  %v4528_v58 = vld [vmem:[%s8314_s1] sm:$0xff] }
 0x441   : > { %5390 = vmatmul.msk.f32.gmra.mxu2 %vm1088_vm2, %v6629_v54  ;;  %v7197_v6 = vpop.permute.xlu0 %4205  ;;  %v2446_v51 = vpop.f32.mrf.mxu2  ;;  %v1583_v54 = vstv %s1582_s11  ;;  %s1892_s11 = scvt.s32.f32 %s5291_s25 }
 0x442   : > { %v2447_v28 = vadd.f32 %v2446_v51, %v6850_v36  ;;  %v1584_v16 = vmul.f32 %v8381_v40, %v1583_v54  ;;  %v7220_v35 = vpop.permute.xlu2 %4561  ;;  %v2452_v51 = vmax.f32 %v2435_v18, 0.0  ;;  %v8388_v18 = vld [vmem:[#allocation35_spill] sm:$0xff] }
 0x443   : > { %8382 = vst [vmem:[#allocation27_spill] sm:$0xff] %v7220_v35 }
 0x444   : > { %v2456_v34 = vmax.f32 %v2447_v28, 0.0 }
 0x445   : > { %5303 = vmatmul.msk.f32.gmra.mxu1 %vm1194_vm3, %v7137_v9 }
 0x446   : > { %2505 = vmatpush.msra.mxu1 %v2456_v34  ;;  %v2429_v34 = vadd.f32 %v7069_v46, %v8384_v43  ;;  %v7233_v33 = vpop.f32.mrf.mxu3 }
 0x448   : > { %v7210_v36 = vpop.permute.xlu1 %4581  ;;  %2506 = vmatpush.msra.mxu1 %v2455_v55  ;;  %v2426_v55 = vadd.f32 %v7048_v52, %v8386_v60  ;;  %v8389_v52 = vld [vmem:[#allocation31_spill] sm:$0xff] }
 0x449   : > { %5419 = vmatmul.msk.f32.vlgmr.msra.gmra.mxu2 %vm1088_vm2, %v4528_v58  ;;  %v7213_v2 = vpop.permute.xlu0 %4571  ;;  %v7217_v47 = vpop.f32.mrf.mxu2  ;;  %v2819_v61 = vadd.f32 %v8389_v52, %v6920_v53 }
 0x44a   : > { %2507 = vmatpush.msra.mxu1 %v2454_v41  ;;  %v2822_v41 = vadd.f32 %v8388_v18, %v6916_v45 }
 0x44c   : > { %v1566_v48 = vpop.f32.mrf.mxu1  ;;  %2508 = vmatpush.msra.mxu1 %v2453_v24  ;;  %v2450_v24 = vmax.f32 %v2429_v34, 0.0  ;;  %v8391_v34 = vld [vmem:[#allocation32_spill] sm:$0xff]  ;;  %v2831_v60 = vmax.f32 %v2822_v41, 0.0 }
 0x44d   : > { %v7224_v28 = vmul.f32 %v1584_v16, %v1566_v48  ;;  %5304 = vmatmul.msk.f32.gmra.mxu1 %vm1194_vm3, %v7155_v19  ;;  %v2449_v48 = vmax.f32 %v2426_v55, 0.0 }
 0x44e   : > { %2509 = vmatpush.msra.mxu1 %v2452_v51  ;;  %v7254_v51 = vpop.permute.xlu2 %4546 }
 0x44f   : > { %v1593_v25 = vrot.slane %v7224_v28, 2  ;;  %v1588_v58 = vrot.slane %v7224_v28, 1  ;;  %v1598_v39 = vrot.slane %v7224_v28, 3  ;;  %8390 = vst [vmem:[#allocation24_spill] sm:$0xff] %v7254_v51  ;;  %v1603_v45 = vrot.slane %v7224_v28, 4  ;;  %v8419_v51 = vld [vmem:[#allocation54_spill] sm:$0xff] }
 0x450   : > { %v7237_v54 = vpop.permute.xlu1 %4566  ;;  %2510 = vmatpush.msra.mxu1 %v2451_v20 }
 0x451   : > { %8385 = vst [vmem:[#allocation18_spill] sm:$0xff] %v7237_v54  ;;  %5420 = vmatmul.msk.f32.gmra.mxu2 %vm1088_vm2, %v4529_v14  ;;  %v7243_v46 = vpop.permute.xlu0 %4556  ;;  %1594 = vrot.lane.b32.xlu1 %v1593_v25, %s5648_s13  ;;  %v4530_v25 = vld [vmem:[%s8314_s1 + $0x10] sm:$0xff] }
 0x452   : > { %8387 = vst [vmem:[#allocation23_spill] sm:$0xff] %v7243_v46  ;;  %1589 = vrot.lane.b32.xlu0 %v1588_v58, %s5645_s19  ;;  %1599 = vrot.lane.b32.xlu2 %v1598_v39, %s5644_s18  ;;  %v8392_v58 = vld [vmem:[#allocation29_spill] sm:$0xff] }
 0x453   : > { %2511 = vmatpush.msra.mxu1 %v2450_v24  ;;  %v2816_v39 = vadd.f32 %v8392_v58, %v8391_v34  ;;  %v2830_v24 = vmax.f32 %v2819_v61, 0.0  ;;  %v8398_v61 = vld [vmem:[#allocation28_spill] sm:$0xff]  ;;  %v8399_v58 = vld [vmem:[#allocation19_spill] sm:$0xff] }
 0x454   : > { %v7250_v62 = vpop.f32.mrf.mxu2  ;;  %v1569_v14 = vpop.f32.mrf.mxu1 }
 0x455   : > { %v1586_v43 = vmul.f32 %v1584_v16, %v1569_v14  ;;  %2512 = vmatpush.msra.mxu1 %v2449_v48  ;;  %v8394_v16 = vld [vmem:[#allocation26_spill] sm:$0xff]  ;;  %v7271_v14 = vpop.f32.mrf.mxu3  ;;  %v2829_v41 = vmax.f32 %v2816_v39, 0.0  ;;  %v8396_v48 = vld [vmem:[#allocation40_spill] sm:$0xff]  ;;  %v8401_v39 = vld [vmem:[#allocation15_spill] sm:$0xff] }
 0x456   : > { %5319 = vmatmul.msk.f32.vlgmr.msra.gmra.mxu1 %vm1194_vm3, %v7078_v56  ;;  %v2813_v55 = vadd.f32 %v8394_v16, %v6898_v27 }
 0x457   : > { %v1612_v20 = vrot.slane %v1586_v43, 3  ;;  %v1617_v18 = vrot.slane %v1586_v43, 4  ;;  %2880 = vmatpush.msrb.mxu1 %v2831_v60  ;;  %v8397_v43 = vld [vmem:[#allocation22_spill] sm:$0xff] }
 0x458   : > { %v7264_v53 = vpop.permute.xlu1 %4551  ;;  %v2810_v34 = vadd.f32 %v8397_v43, %v8396_v48  ;;  %v2828_v60 = vmax.f32 %v2813_v55, 0.0  ;;  %v7287_v48 = vpop.permute.xlu2 %4885  ;;  %v8404_v55 = vld [vmem:[#allocation38_spill] sm:$0xff] }
 0x459   : > { %8393 = vst [vmem:[#allocation14_spill] sm:$0xff] %v7264_v53  ;;  %5421 = vmatmul.msk.f32.gmra.mxu2 %vm1088_vm2, %v4530_v25  ;;  %v7269_v52 = vpop.permute.xlu0 %4895  ;;  %1613 = vrot.lane.b32.xlu1 %v1612_v20, %s5644_s18  ;;  %v2807_v25 = vadd.f32 %v8399_v58, %v8398_v61  ;;  %v8400_v20 = vld [vmem:[#allocation37_spill] sm:$0xff] }
 0x45a   : > { %8395 = vst [vmem:[#allocation35_spill] sm:$0xff] %v7269_v52  ;;  %1604 = vrot.lane.b32.xlu0 %v1603_v45, %s5647_s22  ;;  %2881 = vmatpush.msrb.mxu1 %v2830_v24  ;;  %v4531_v45 = vld [vmem:[%s8314_s1 + $0x18] sm:$0xff]  ;;  %v2804_v40 = vadd.f32 %v8401_v39, %v8400_v20  ;;  %v2827_v52 = vmax.f32 %v2810_v34, 0.0  ;;  %v4532_v20 = vld [vmem:[%s8314_s1 + $0x20] sm:$0xff] }
 0x45b   : > { %1618 = vrot.lane.b32.xlu2 %v1617_v18, %s5647_s22  ;;  %8402 = vst [vmem:[#allocation31_spill] sm:$0xff] %v7287_v48  ;;  %v2826_v24 = vmax.f32 %v2807_v25, 0.0 }
 0x45c   : > { %v7278_v27 = vpop.f32.mrf.mxu2  ;;  %2882 = vmatpush.msrb.mxu1 %v2829_v41  ;;  %v1572_v16 = vpop.f32.mrf.mxu1  ;;  %v8405_v41 = vld [vmem:[#allocation13_spill] sm:$0xff]  ;;  %v2825_v61 = vmax.f32 %v2804_v40, 0.0 }
 0x45d   : > { %v2801_v43 = vadd.f32 %v8405_v41, %v8404_v55  ;;  %v7298_v34 = vpop.f32.mrf.mxu3  ;;  %v4533_v55 = vld [vmem:[%s8314_s1 + $0x28] sm:$0xff] }
 0x45e   : > { %2883 = vmatpush.msrb.mxu1 %v2828_v60 }
 0x45f   : > { %5320 = vmatmul.msk.f32.gmra.mxu1 %vm1194_vm3, %v7111_v11  ;;  %v2824_v60 = vmax.f32 %v2801_v43, 0.0 }
 0x460   : > { %v7291_v18 = vpop.permute.xlu1 %4890  ;;  %2884 = vmatpush.msrb.mxu1 %v2827_v52  ;;  %v7307_v25 = vpop.permute.xlu2 %3232 }
 0x461   : > { %8403 = vst [vmem:[#allocation32_spill] sm:$0xff] %v7291_v18  ;;  %5422 = vmatmul.msk.f32.gmra.mxu2 %vm1088_vm2, %v4531_v45  ;;  %v7296_v58 = vpop.permute.xlu0 %4880 }
 0x462   : > { %2885 = vmatpush.msrb.mxu1 %v2826_v24  ;;  %8406 = vst [vmem:[#allocation29_spill] sm:$0xff] %v7296_v58  ;;  %v8416_v58 = vld [vmem:[#allocation43_spill] sm:$0xff] }
 0x463   : > { %8408 = vst [vmem:[#allocation40_spill] sm:$0xff] %v7307_v25 }
 0x464   : > { %v3184_v16 = vpop.f32.mrf.mxu2  ;;  %2886 = vmatpush.msrb.mxu1 %v2825_v61  ;;  %v1574_v45 = vpop.f32.mrf.mxu1 }
 0x465   : > { %v7312_v24 = vpop.f32.mrf.mxu3 }
 0x466   : > { %2887 = vmatpush.msrb.mxu1 %v2824_v60  ;;  %v4534_v60 = vld [vmem:[%s8314_s1 + $0x30] sm:$0xff] }
 0x467   : > { %5321 = vmatmul.msk.f32.gmra.mxu1 %vm1194_vm3, %v7137_v9 }
 0x468   : > { %v7305_v52 = vpop.permute.xlu1 %4875  ;;  %v7322_v43 = vpop.permute.xlu2 %4865 }
 0x469   : > { %8407 = vst [vmem:[#allocation26_spill] sm:$0xff] %v7305_v52  ;;  %5423 = vmatmul.msk.f32.gmra.mxu2 %vm1088_vm2, %v4532_v20  ;;  %v7310_v39 = vpop.permute.xlu0 %4870 }
 0x46a   : > { %8409 = vst [vmem:[#allocation22_spill] sm:$0xff] %v7310_v39 }
 0x46b   : > { %8411 = vst [vmem:[#allocation19_spill] sm:$0xff] %v7322_v43  ;;  %v4535_v43 = vld [vmem:[%s8314_s1 + $0x38] sm:$0xff] }
 0x46c   : > { %v3187_v40 = vpop.f32.mrf.mxu2 }
 0x46d   : > { %v4942_v45 = vpop.f32.mrf.mxu3  ;;  %v3188_v53 = vadd.f32 %v3187_v40, %v8419_v51 }
 0x46f   : > { %5322 = vmatmul.msk.f32.gmra.mxu1 %vm1194_vm3, %v7155_v19 }
 0x470   : > { %v7319_v41 = vpop.permute.xlu1 %3227 }
 0x471   : > { %8410 = vst [vmem:[#allocation28_spill] sm:$0xff] %v7319_v41  ;;  %5424 = vmatmul.msk.f32.gmra.mxu2 %vm1088_vm2, %v4533_v55  ;;  %v7327_v20 = vpop.permute.xlu0 %3222  ;;  %v7334_v55 = vpop.permute.xlu2 %3607 }
 0x472   : > { %8412 = vst [vmem:[#allocation37_spill] sm:$0xff] %v7327_v20 }
 0x473   : > { %8414 = vst [vmem:[#allocation38_spill] sm:$0xff] %v7334_v55 }
 0x474   : > { %v3190_v61 = vpop.f32.mrf.mxu2 }
 0x477   : > { %5337 = vmatmul.msk.f32.vlgmr.msrb.gmra.mxu1 %vm1194_vm3, %v7078_v56 }
 0x478   : > { %v4861_v25 = vpop.permute.xlu1 %4860 }
 0x479   : > { %5425 = vmatmul.msk.f32.gmra.mxu2 %vm1088_vm2, %v4534_v60  ;;  %v7332_v39 = vadd.f32 %v4942_v45, %v4861_v25  ;;  %v7341_v20 = vpop.permute.xlu0 %3602  ;;  %v8417_v60 = vld [vmem:[#allocation51_spill] sm:$0xff]  ;;  %v7346_v45 = vpop.permute.xlu2 %3592 }
 0x47a   : > { %8415 = vst [vmem:[#allocation13_spill] sm:$0xff] %v7341_v20 }
 0x47b   : > { %8413 = vst [vmem:[#allocation15_spill] sm:$0xff] %v7332_v39  ;;  %v8418_v39 = vld [vmem:[#allocation52_spill] sm:$0xff] }
 0x47c   : > { %v3193_v41 = vpop.f32.mrf.mxu2  ;;  %v3191_v55 = vadd.f32 %v3190_v61, %v8418_v39  ;;  %v3203_v61 = vmax.f32 %v3188_v53, 0.0 }
 0x47d   : > { %v3194_v48 = vadd.f32 %v3193_v41, %v8416_v58  ;;  %v8421_v41 = vld [vmem:[#allocation49_spill] sm:$0xff] }
 0x47e   : > { %v3204_v54 = vmax.f32 %v3191_v55, 0.0  ;;  %v3182_v39 = vadd.f32 %v7278_v27, %v8421_v41  ;;  %v3572_v27 = vadd.f32 %v7115_v30, %v7033_v13  ;;  %v8424_v55 = vld [vmem:[#allocation56_spill] sm:$0xff]  ;;  %v8425_v30 = vld [vmem:[#allocation57_spill] sm:$0xff] }
 0x47f   : > { %5338 = vmatmul.msk.f32.gmra.mxu1 %vm1194_vm3, %v7111_v11  ;;  %v3205_v46 = vmax.f32 %v3194_v48, 0.0 }
 0x480   : > { %v7352_v35 = vpop.permute.xlu1 %3597  ;;  %v3201_v40 = vmax.f32 %v3182_v39, 0.0  ;;  %v3566_v39 = vadd.f32 %v7035_v15, %v7040_v4  ;;  %v8429_v4 = vld [vmem:[#allocation50_spill] sm:$0xff] }
 0x481   : > { %5426 = vmatmul.msk.f32.gmra.mxu2 %vm1088_vm2, %v4535_v43  ;;  %v8420_v43 = vld [vmem:[#allocation47_spill] sm:$0xff]  ;;  %v7355_v58 = vpop.permute.xlu0 %3982 }
 0x482   : > { %v3185_v20 = vadd.f32 %v3184_v16, %v8420_v43 }
 0x484   : > { %v3196_v52 = vpop.f32.mrf.mxu2  ;;  %v3202_v48 = vmax.f32 %v3185_v20, 0.0 }
 0x485   : > { %v3197_v25 = vadd.f32 %v3196_v52, %v8417_v60  ;;  %v8422_v60 = vld [vmem:[#allocation41_spill] sm:$0xff] }
 0x486   : > { %v3179_v51 = vadd.f32 %v7250_v62, %v8422_v60  ;;  %v8426_v60 = vld [vmem:[#allocation58_spill] sm:$0xff] }
 0x487   : > { %v3206_v18 = vmax.f32 %v3197_v25, 0.0  ;;  %5339 = vmatmul.msk.f32.gmra.mxu1 %vm1194_vm3, %v7137_v9  ;;  %v3569_v25 = vadd.f32 %v7073_v17, %v8424_v55 }
 0x488   : > { %v3200_v53 = vmax.f32 %v3179_v51, 0.0  ;;  %v8427_v51 = vld [vmem:[#allocation53_spill] sm:$0xff] }
 0x489   : > { %3255 = vmatpush.msra.mxu1 %v3206_v18  ;;  %v8423_v18 = vld [vmem:[#allocation48_spill] sm:$0xff]  ;;  %v7377_v41 = vpop.permute.xlu0 %3967  ;;  %v3580_v13 = vmax.f32 %v3569_v25, 0.0  ;;  %v3560_v17 = vadd.f32 %v8427_v51, %v8426_v60 }
 0x48a   : > { %v3176_v16 = vadd.f32 %v7217_v47, %v8423_v18  ;;  %v3581_v47 = vmax.f32 %v3572_v27, 0.0  ;;  %v3557_v27 = vadd.f32 %v8429_v4, %v7063_v38 }
 0x48b   : > { %3256 = vmatpush.msra.mxu1 %v3205_v46  ;;  %v7367_v46 = vpop.permute.xlu2 %3972  ;;  %v3577_v55 = vmax.f32 %v3560_v17, 0.0 }
 0x48c   : > { %v7357_v52 = vpop.f32.mrf.mxu2  ;;  %v3199_v43 = vmax.f32 %v3176_v16, 0.0 }
 0x48d   : > { %3257 = vmatpush.msra.mxu1 %v3204_v54  ;;  %v7371_v54 = vpop.permute.xlu1 %3977 }
 0x48f   : > { %3258 = vmatpush.msra.mxu1 %v3203_v61  ;;  %v3563_v61 = vadd.f32 %v8425_v30, %v7058_v23  ;;  %v8431_v23 = vld [vmem:[#allocation46_spill] sm:$0xff] }
 0x490   : > { %5340 = vmatmul.msk.f32.gmra.mxu1 %vm1194_vm3, %v7155_v19  ;;  %v3554_v25 = vadd.f32 %v8431_v23, %v7093_v50 }
 0x491   : > { %3259 = vmatpush.msra.mxu1 %v3202_v48  ;;  %v3579_v48 = vmax.f32 %v3566_v39, 0.0  ;;  %v3578_v15 = vmax.f32 %v3563_v61, 0.0 }
 0x492   : > { %v1828_v20 = vpop.f32.mrf.mxu1  ;;  %v3575_v30 = vmax.f32 %v3554_v25, 0.0  ;;  %v8440_v25 = vld [vmem:[#allocation11_spill] sm:$0xff] }
 0x493   : > { %3260 = vmatpush.msra.mxu1 %v3201_v40  ;;  %v7387_v18 = vpop.permute.xlu2 %4339 }
 0x494   : > { %v7373_v62 = vpop.f32.mrf.mxu2  ;;  %8428 = vst [vmem:[#allocation43_spill] sm:$0xff] %v7387_v18 }
 0x495   : > { %3261 = vmatpush.msra.mxu1 %v3200_v53  ;;  %v7393_v53 = vpop.permute.xlu1 %4344 }
 0x496   : > { %8430 = vst [vmem:[#allocation51_spill] sm:$0xff] %v7393_v53 }
 0x497   : > { %3262 = vmatpush.msra.mxu1 %v3199_v43  ;;  %v7397_v43 = vpop.permute.xlu0 %4334 }
 0x498   : > { %5355 = vmatmul.msk.f32.vlgmr.msra.gmra.mxu1 %vm1194_vm3, %v7078_v56  ;;  %8432 = vst [vmem:[#allocation52_spill] sm:$0xff] %v7397_v43  ;;  %v1608_v43 = vld [vmem:[%s6961_s17 + $0x1] sm:$0x1] }
 0x499   : > { %3630 = vmatpush.msrb.mxu1 %v3581_v47  ;;  %v8433_v47 = vld [vmem:[#allocation42_spill] sm:$0xff] }
 0x49a   : > { %v1831_v40 = vpop.f32.mrf.mxu1  ;;  %v3551_v39 = vadd.f32 %v8433_v47, %v7046_v59 }
 0x49b   : > { %3631 = vmatpush.msrb.mxu1 %v3580_v13  ;;  %v3576_v13 = vmax.f32 %v3557_v27, 0.0  ;;  %v7403_v51 = vpop.permute.xlu2 %4685  ;;  %v8438_v27 = vld [vmem:[#allocation9_spill] sm:$0xff]  ;;  %v1832_v47 = vadd.f32 %v1831_v40, %v8440_v25  ;;  %v7428_v40 = vld [vmem:[%s8318_s5] sm:$0xff] }
 0x49c   : > { %v7389_v16 = vpop.f32.mrf.mxu2  ;;  %v3574_v60 = vmax.f32 %v3551_v39, 0.0  ;;  %8434 = vst [vmem:[#allocation54_spill] sm:$0xff] %v7403_v51 }
 0x49d   : > { %3632 = vmatpush.msrb.mxu1 %v3579_v48  ;;  %v7405_v50 = vpop.permute.xlu1 %4329 }
 0x49e   : > { %8435 = vst [vmem:[#allocation47_spill] sm:$0xff] %v7405_v50 }
 0x49f   : > { %3633 = vmatpush.msrb.mxu1 %v3578_v15  ;;  %v7409_v17 = vpop.permute.xlu0 %4680  ;;  %v8437_v15 = vld [vmem:[#allocation10_spill] sm:$0xff] }
 0x4a0   : > { %5356 = vmatmul.msk.f32.gmra.mxu1 %vm1194_vm3, %v7111_v11  ;;  %8436 = vst [vmem:[#allocation49_spill] sm:$0xff] %v7409_v17 }
 0x4a1   : > { %3634 = vmatpush.msrb.mxu1 %v3577_v55 }
 0x4a2   : > { %v1834_v61 = vpop.f32.mrf.mxu1 }
 0x4a3   : > { %3635 = vmatpush.msrb.mxu1 %v3576_v13  ;;  %v1835_v4 = vadd.f32 %v1834_v61, %v8437_v15  ;;  %v7413_v23 = vpop.permute.xlu2 %4670  ;;  %v8441_v13 = vld [vmem:[#allocation8_spill] sm:$0xff]  ;;  %v1841_v61 = vmax.f32 %v1832_v47, 0.0 }
 0x4a4   : > { %v3934_v38 = vpop.f32.mrf.mxu2  ;;  %8439 = vst [vmem:[#allocation41_spill] sm:$0xff] %v7413_v23  ;;  %v7443_v47 = vld [vmem:[%s8318_s5 + $0x8] sm:$0xff] }
 0x4a5   : > { %3636 = vmatpush.msrb.mxu1 %v3575_v30  ;;  %v1829_v30 = vadd.f32 %v1828_v20, %v8441_v13  ;;  %v1842_v51 = vmax.f32 %v1835_v4, 0.0 }
 0x4a7   : > { %3637 = vmatpush.msrb.mxu1 %v3574_v60  ;;  %v7419_v60 = vpop.permute.xlu1 %4675  ;;  %v7421_v17 = vpop.permute.xlu0 %4999 }
 0x4a8   : > { %5357 = vmatmul.msk.f32.gmra.mxu1 %vm1194_vm3, %v7137_v9  ;;  %8442 = vst [vmem:[#allocation48_spill] sm:$0xff] %v7419_v60 }
 0x4a9   : > { %8443 = vst [vmem:[#allocation56_spill] sm:$0xff] %v7421_v17  ;;  %v7454_v17 = vld [vmem:[%s8318_s5 + $0x10] sm:$0xff] }
 0x4aa   : > { %v1837_v59 = vpop.f32.mrf.mxu1 }
 0x4ab   : > { %v1838_v55 = vadd.f32 %v1837_v59, %v8438_v27  ;;  %v1840_v27 = vmax.f32 %v1829_v30, 0.0  ;;  %v7434_v20 = vpop.permute.xlu2 %4989 }
 0x4ac   : > { %v3937_v48 = vpop.f32.mrf.mxu2  ;;  %8444 = vst [vmem:[#allocation57_spill] sm:$0xff] %v7434_v20 }
 0x4ad   : > { %v1843_v39 = vmax.f32 %v1838_v55, 0.0 }
 0x4af   : > { %1872 = vmatpush.msrb.mxu0 %v1843_v39  ;;  %v7438_v25 = vpop.permute.xlu0 %4984 }
 0x4b0   : > { %5358 = vmatmul.msk.f32.gmra.mxu1 %vm1194_vm3, %v7155_v19  ;;  %8446 = vst [vmem:[#allocation53_spill] sm:$0xff] %v7438_v25 }
 0x4b1   : > { %1873 = vmatpush.msrb.mxu0 %v1842_v51  ;;  %v7436_v51 = vpop.permute.xlu1 %4994 }
 0x4b2   : > { %v7423_v59 = vpop.f32.mrf.mxu1  ;;  %8445 = vst [vmem:[#allocation58_spill] sm:$0xff] %v7436_v51 }
 0x4b3   : > { %1874 = vmatpush.msrb.mxu0 %v1841_v61  ;;  %v1600_v39 = vpop.permute.xlu2 %1599 }
 0x4b4   : > { %v3940_v15 = vpop.f32.mrf.mxu2 }
 0x4b5   : > { %1875 = vmatpush.msrb.mxu0 %v1840_v27  ;;  %v3941_v23 = vadd.f32 %v3940_v15, %v7067_v32 }
 0x4b6   : > { %5287 = vmatmul.msk.f32.vlgmr.msrb.gmra.mxu0 %vm1244_vm4, %v7428_v40 }
 0x4b8   : > { %5373 = vmatmul.msk.f32.vlgmr.msrb.gmra.mxu1 %vm1194_vm3, %v7078_v56 }
 0x4ba   : > { %v2159_v55 = vpop.f32.mrf.mxu1 }
 0x4bc   : > { %v3943_v4 = vpop.f32.mrf.mxu2 }
 0x4bd   : > { %v3944_v61 = vadd.f32 %v3943_v4, %v7123_v12  ;;  %v3935_v4 = vadd.f32 %v3934_v38, %v7145_v10  ;;  %v8447_v10 = vld [vmem:[#allocation21_spill] sm:$0xff] }
 0x4be   : > { %5288 = vmatmul.msk.f32.gmra.mxu0 %vm1244_vm4, %v7443_v47 }
 0x4bf   : > { %v3955_v12 = vmax.f32 %v3944_v61, 0.0 }
 0x4c0   : > { %5374 = vmatmul.msk.f32.gmra.mxu1 %vm1194_vm3, %v7111_v11 }
 0x4c2   : > { %v2162_v25 = vpop.f32.mrf.mxu1 }
 0x4c3   : > { %v1595_v30 = vpop.permute.xlu1 %1594  ;;  %v2163_v38 = vadd.f32 %v2162_v25, %v8447_v10 }
 0x4c4   : > { %v3946_v13 = vpop.f32.mrf.mxu2  ;;  %v1590_v20 = vpop.permute.xlu0 %1589 }
 0x4c5   : > { %v3947_v27 = vadd.f32 %v3946_v13, %v7098_v57  ;;  %v1592_v51 = vadd.f32 %v1590_v20, %v7224_v28  ;;  %v3938_v57 = vadd.f32 %v3937_v48, %v7128_v8  ;;  %v3954_v13 = vmax.f32 %v3941_v23, 0.0  ;;  %v1619_v28 = vpop.permute.xlu2 %1618  ;;  %v1847_v8 = vld [vmem:[%s8318_s5 + $0x18] sm:$0x1]  ;;  %v8448_v23 = vld [vmem:[#allocation20_spill] sm:$0xff] }
 0x4c6   : > { %5289 = vmatmul.msk.f32.gmra.mxu0 %vm1244_vm4, %v7454_v17 }
 0x4c7   : > { %v3956_v60 = vmax.f32 %v3947_v27, 0.0  ;;  %v1597_v50 = vadd.f32 %v1595_v30, %v1592_v51  ;;  %v3932_v51 = vadd.f32 %v7389_v16, %v7102_v5  ;;  %v3953_v30 = vmax.f32 %v3938_v57, 0.0 }
 0x4c8   : > { %5375 = vmatmul.msk.f32.gmra.mxu1 %vm1194_vm3, %v7137_v9  ;;  %v3952_v5 = vmax.f32 %v3935_v4, 0.0 }
 0x4c9   : > { %4005 = vmatpush.msra.mxu1 %v3956_v60  ;;  %v1602_v20 = vadd.f32 %v1600_v39, %v1597_v50  ;;  %v3929_v39 = vadd.f32 %v7373_v62, %v7150_v31  ;;  %v3951_v25 = vmax.f32 %v3932_v51, 0.0  ;;  %v8450_v31 = vld [vmem:[#allocation16_spill] sm:$0xff] }
 0x4ca   : > { %v2165_v18 = vpop.f32.mrf.mxu1  ;;  %v2157_v62 = vadd.f32 %v7423_v59, %v8450_v31  ;;  %v4306_v59 = vadd.f32 %v7298_v34, %v7168_v26 }
 0x4cb   : > { %4006 = vmatpush.msra.mxu1 %v3955_v12  ;;  %v1614_v15 = vpop.permute.xlu1 %1613  ;;  %v2166_v60 = vadd.f32 %v2165_v18, %v8448_v23  ;;  %v3926_v18 = vadd.f32 %v7357_v52, %v7163_v0  ;;  %v3950_v4 = vmax.f32 %v3929_v39, 0.0 }
 0x4cc   : > { %v7464_v32 = vpop.f32.mrf.mxu2  ;;  %v1605_v27 = vpop.permute.xlu0 %1604  ;;  %v1616_v53 = vadd.f32 %v1614_v15, %v1597_v50  ;;  %v8449_v50 = vld [vmem:[#allocation12_spill] sm:$0xff]  ;;  %v4317_v26 = vmax.f32 %v4306_v59, 0.0 }
 0x4cd   : > { %4007 = vmatpush.msra.mxu1 %v3954_v13  ;;  %v1607_v48 = vadd.f32 %v1605_v27, %v1602_v20  ;;  %v2160_v61 = vadd.f32 %v2159_v55, %v8449_v50  ;;  %v2171_v12 = vmax.f32 %v2166_v60, 0.0  ;;  %v4309_v55 = vadd.f32 %v7312_v24, %v7132_v49  ;;  %v7489_v20 = vpop.f32.mrf.mxu3  ;;  %v2175_v50 = vld [vmem:[%s8318_s5 + $0x18] sm:$0x1] }
 0x4ce   : > { %v1621_v16 = vadd.f32 %v1619_v28, %v1616_v53  ;;  %5290 = vmatmul.msk.f32.gmra.mxu0 %vm1244_vm4, %v1847_v8  ;;  %v2170_v53 = vmax.f32 %v2163_v38, 0.0  ;;  %v3949_v15 = vmax.f32 %v3926_v18, 0.0  ;;  %v4303_v24 = vadd.f32 %v7271_v14, %v7179_v29 }
 0x4cf   : > { %4008 = vmatpush.msra.mxu1 %v3953_v30  ;;  %v1609_v57 = vadd.f32 %v1608_v43, %v1607_v48  ;;  %v1622_v43 = vld [vmem:[%s6961_s17] sm:$0x1]  ;;  %2200 = vmatpush.msra.mxu0 %v2171_v12  ;;  %v2169_v0 = vmax.f32 %v2160_v61, 0.0  ;;  %v2168_v30 = vmax.f32 %v2157_v62, 0.0  ;;  %v4318_v49 = vmax.f32 %v4309_v55, 0.0  ;;  %v8453_v61 = vld [vmem:[#allocation25_spill] sm:$0xff] }
 0x4d0   : > { %5376 = vmatmul.msk.f32.gmra.mxu1 %vm1194_vm3, %v7155_v19  ;;  %v1624_v13 = vrot.slane %v1621_v16, 5  ;;  %v4300_v27 = vadd.f32 %v7233_v33, %v7157_v21  ;;  %v4316_v34 = vmax.f32 %v4303_v24, 0.0  ;;  %v4297_v8 = vadd.f32 %v7201_v1, %v7184_v7 }
 0x4d1   : > { %4009 = vmatpush.msra.mxu1 %v3952_v5  ;;  %1610 = vst.msk [vmem:[%s6961_s17 + $0x1] sm:$0x1] %vm1315_vm9, %v1609_v57  ;;  %2201 = vmatpush.msra.mxu0 %v2170_v53  ;;  %v4294_v14 = vadd.f32 %v7186_v3, %v7190_v44  ;;  %v4291_v21 = vadd.f32 %v7170_v42, %v7174_v63  ;;  %v8452_v5 = vld [vmem:[#allocation33_spill] sm:$0xff] }
 0x4d2   : > { %v1626_v28 = vadd.f32 %v1624_v13, %v1622_v43  ;;  %v4315_v29 = vmax.f32 %v4300_v27, 0.0  ;;  %v4314_v33 = vmax.f32 %v4297_v8, 0.0  ;;  %v4288_v1 = vadd.f32 %v7143_v22, %v7197_v6  ;;  %v8451_v6 = vld [vmem:[#allocation34_spill] sm:$0xff] }
 0x4d3   : > { %4010 = vmatpush.msra.mxu1 %v3951_v25  ;;  %v2514_v51 = vpop.f32.mrf.mxu1  ;;  %2202 = vmatpush.msra.mxu0 %v2169_v0  ;;  %v4313_v7 = vmax.f32 %v4294_v14, 0.0  ;;  %v4312_v3 = vmax.f32 %v4291_v21, 0.0  ;;  %v8454_v25 = vld [vmem:[#allocation30_spill] sm:$0xff] }
 0x4d4   : > { %v7491_v52 = vpop.f32.mrf.mxu2  ;;  %1627 = vst.msk [vmem:[%s6961_s17] sm:$0x1] %vm1315_vm9, %v1626_v28  ;;  %v4311_v23 = vmax.f32 %v4288_v1, 0.0  ;;  %v2515_v13 = vadd.f32 %v2514_v51, %v8454_v25  ;;  %v8459_v1 = vld [vmem:[#allocation39_spill] sm:$0xff] }
 0x4d5   : > { %4011 = vmatpush.msra.mxu1 %v3950_v4  ;;  %2203 = vmatpush.msra.mxu0 %v2168_v30  ;;  %v7511_v48 = vpop.f32.mrf.mxu3 }
 0x4d6   : > { %5305 = vmatmul.msk.f32.vlgmr.msra.gmra.mxu0 %vm1244_vm4, %v7428_v40  ;;  %v2526_v55 = vmax.f32 %v2515_v13, 0.0 }
 0x4d7   : > { %4012 = vmatpush.msra.mxu1 %v3949_v15 }
 0x4d8   : > { %5391 = vmatmul.msk.f32.vlgmr.msra.gmra.mxu1 %vm1194_vm3, %v7078_v56 }
 0x4d9   : > { %4367 = vmatpush.msrb.mxu1 %v4318_v49 }
 0x4db   : > { %4368 = vmatpush.msrb.mxu1 %v4317_v26  ;;  %v8455_v26 = vld [vmem:[#allocation18_spill] sm:$0xff] }
 0x4dc   : > { %v7507_v10 = vpop.f32.mrf.mxu2  ;;  %v2517_v38 = vpop.f32.mrf.mxu1 }
 0x4dd   : > { %4369 = vmatpush.msrb.mxu1 %v4316_v34  ;;  %v7521_v42 = vpop.f32.mrf.mxu3  ;;  %v2518_v57 = vadd.f32 %v2517_v38, %v8453_v61  ;;  %v8463_v61 = vld [vmem:[#allocation36_spill] sm:$0xff] }
 0x4de   : > { %5306 = vmatmul.msk.f32.gmra.mxu0 %vm1244_vm4, %v7443_v47 }
 0x4df   : > { %4370 = vmatpush.msrb.mxu1 %v4315_v29  ;;  %v2527_v62 = vmax.f32 %v2518_v57, 0.0  ;;  %v8456_v29 = vld [vmem:[#allocation27_spill] sm:$0xff] }
 0x4e0   : > { %5392 = vmatmul.msk.f32.gmra.mxu1 %vm1194_vm3, %v7111_v11 }
 0x4e1   : > { %4371 = vmatpush.msrb.mxu1 %v4314_v33  ;;  %v8458_v33 = vld [vmem:[#allocation44_spill] sm:$0xff] }
 0x4e3   : > { %4372 = vmatpush.msrb.mxu1 %v4313_v7 }
 0x4e4   : > { %v4637_v44 = vpop.f32.mrf.mxu2  ;;  %v2520_v60 = vpop.f32.mrf.mxu1 }
 0x4e5   : > { %4373 = vmatpush.msrb.mxu1 %v4312_v3  ;;  %v2521_v39 = vadd.f32 %v2520_v60, %v8451_v6  ;;  %v7536_v18 = vpop.f32.mrf.mxu3  ;;  %v4638_v14 = vadd.f32 %v4637_v44, %v8456_v29  ;;  %v8460_v60 = vld [vmem:[#allocation14_spill] sm:$0xff]  ;;  %v8461_v6 = vld [vmem:[#allocation45_spill] sm:$0xff] }
 0x4e6   : > { %5307 = vmatmul.msk.f32.gmra.mxu0 %vm1244_vm4, %v7454_v17 }
 0x4e7   : > { %4374 = vmatpush.msrb.mxu1 %v4311_v23  ;;  %v2528_v31 = vmax.f32 %v2521_v39, 0.0  ;;  %v2533_v23 = vld [vmem:[%s8318_s5 + $0x18] sm:$0x1]  ;;  %v4655_v44 = vmax.f32 %v4638_v14, 0.0 }
 0x4e8   : > { %5393 = vmatmul.msk.f32.gmra.mxu1 %vm1194_vm3, %v7137_v9 }
 0x4ec   : > { %v4640_v22 = vpop.f32.mrf.mxu2  ;;  %v2523_v63 = vpop.f32.mrf.mxu1 }
 0x4ed   : > { %v2524_v16 = vadd.f32 %v2523_v63, %v8452_v5  ;;  %v4957_v4 = vpop.f32.mrf.mxu3  ;;  %v4641_v34 = vadd.f32 %v4640_v22, %v8455_v26  ;;  %v4632_v22 = vadd.f32 %v7491_v52, %v8460_v60  ;;  %v8462_v5 = vld [vmem:[#allocation24_spill] sm:$0xff]  ;;  %v8464_v52 = vld [vmem:[#allocation35_spill] sm:$0xff]  ;;  %v8469_v26 = vld [vmem:[#allocation22_spill] sm:$0xff] }
 0x4ee   : > { %5308 = vmatmul.msk.f32.gmra.mxu0 %vm1244_vm4, %v2175_v50 }
 0x4ef   : > { %v2529_v12 = vmax.f32 %v2524_v16, 0.0  ;;  %v4656_v21 = vmax.f32 %v4641_v34, 0.0  ;;  %v4629_v16 = vadd.f32 %v7464_v32, %v8462_v5  ;;  %v4653_v13 = vmax.f32 %v4632_v22, 0.0  ;;  %v4974_v5 = vld [vmem:[%s8316_s3] sm:$0xff] }
 0x4f0   : > { %5394 = vmatmul.msk.f32.gmra.mxu1 %vm1194_vm3, %v7155_v19  ;;  %v4949_v34 = vadd.f32 %v7511_v48, %v8469_v26  ;;  %v8471_v48 = vld [vmem:[#allocation15_spill] sm:$0xff] }
 0x4f1   : > { %2558 = vmatpush.msrb.mxu0 %v2529_v12 }
 0x4f3   : > { %2559 = vmatpush.msrb.mxu0 %v2528_v31 }
 0x4f4   : > { %v4643_v53 = vpop.f32.mrf.mxu2  ;;  %v2889_v43 = vpop.f32.mrf.mxu1 }
 0x4f5   : > { %2560 = vmatpush.msrb.mxu0 %v2527_v62  ;;  %v4960_v49 = vpop.f32.mrf.mxu3  ;;  %v4644_v24 = vadd.f32 %v4643_v53, %v7213_v2  ;;  %v2890_v57 = vadd.f32 %v2889_v43, %v8463_v61  ;;  %v8465_v62 = vld [vmem:[#allocation32_spill] sm:$0xff] }
 0x4f6   : > { %v4961_v53 = vadd.f32 %v4960_v49, %v8465_v62 }
 0x4f7   : > { %2561 = vmatpush.msrb.mxu0 %v2526_v55  ;;  %v4652_v55 = vmax.f32 %v4629_v16, 0.0  ;;  %v2901_v32 = vmax.f32 %v2890_v57, 0.0 }
 0x4f8   : > { %5409 = vmatmul.msk.f32.vlgmr.msrb.gmra.mxu1 %vm1194_vm3, %v7078_v56  ;;  %5323 = vmatmul.msk.f32.vlgmr.msrb.gmra.mxu0 %vm1244_vm4, %v7428_v40  ;;  %v4972_v43 = vmax.f32 %v4961_v53, 0.0 }
 0x4fc   : > { %v4646_v28 = vpop.f32.mrf.mxu2  ;;  %v2892_v0 = vpop.f32.mrf.mxu1 }
 0x4fd   : > { %v4647_v15 = vadd.f32 %v4646_v28, %v7192_v37  ;;  %v4657_v37 = vmax.f32 %v4644_v24, 0.0  ;;  %v4963_v63 = vpop.f32.mrf.mxu3  ;;  %v2893_v39 = vadd.f32 %v2892_v0, %v8461_v6  ;;  %v8466_v0 = vld [vmem:[#allocation31_spill] sm:$0xff]  ;;  %v8468_v24 = vld [vmem:[#allocation26_spill] sm:$0xff] }
 0x4fe   : > { %v4964_v25 = vadd.f32 %v4963_v63, %v8464_v52 }
 0x4ff   : > { %v4658_v8 = vmax.f32 %v4647_v15, 0.0  ;;  %v2902_v31 = vmax.f32 %v2893_v39, 0.0 }
 0x500   : > { %5410 = vmatmul.msk.f32.gmra.mxu1 %vm1194_vm3, %v7111_v11  ;;  %5324 = vmatmul.msk.f32.gmra.mxu0 %vm1244_vm4, %v7443_v47  ;;  %v4973_v15 = vmax.f32 %v4964_v25, 0.0  ;;  %v4975_v25 = vld [vmem:[%s8316_s3 + $0x8] sm:$0xff] }
 0x504   : > { %v4649_v59 = vpop.f32.mrf.mxu2  ;;  %v2895_v30 = vpop.f32.mrf.mxu1 }
 0x505   : > { %v4650_v51 = vadd.f32 %v4649_v59, %v7210_v36  ;;  %v8457_v36 = vld [vmem:[#allocation23_spill] sm:$0xff]  ;;  %v2896_v7 = vadd.f32 %v2895_v30, %v8458_v33  ;;  %v4958_v59 = vadd.f32 %v4957_v4, %v8466_v0  ;;  %v4952_v4 = vadd.f32 %v7521_v42, %v8468_v24  ;;  %v2908_v33 = vld [vmem:[%s8318_s5 + $0x18] sm:$0x1] }
 0x506   : > { %v4635_v38 = vadd.f32 %v7507_v10, %v8457_v36  ;;  %v8480_v24 = vld [vmem:[#allocation38_spill] sm:$0xff] }
 0x507   : > { %v4659_v27 = vmax.f32 %v4650_v51, 0.0  ;;  %v2903_v12 = vmax.f32 %v2896_v7, 0.0  ;;  %v8467_v51 = vld [vmem:[#allocation29_spill] sm:$0xff]  ;;  %v4971_v49 = vmax.f32 %v4958_v59, 0.0  ;;  %v4969_v14 = vmax.f32 %v4952_v4, 0.0 }
 0x508   : > { %5411 = vmatmul.msk.f32.gmra.mxu1 %vm1194_vm3, %v7137_v9  ;;  %5325 = vmatmul.msk.f32.gmra.mxu0 %vm1244_vm4, %v7454_v17  ;;  %v4654_v50 = vmax.f32 %v4635_v38, 0.0  ;;  %v4955_v30 = vadd.f32 %v7536_v18, %v8467_v51  ;;  %v4968_v18 = vmax.f32 %v4949_v34, 0.0  ;;  %v1893_v7 = vstv %s1892_s11  ;;  %s5309_s11 = scalar_select %p2219_p13, 0, 1  ;;  %v4977_v51 = vld [vmem:[%s8316_s3 + $0x18] sm:$0xff] }
 0x509   : > { %4708 = vmatpush.msra.mxu1 %v4659_v27 }
 0x50a   : > { %v4970_v27 = vmax.f32 %v4955_v30, 0.0  ;;  %s2222_s6 = scvt.s32.f32 %s5309_s11  ;;  %v8479_v30 = vld [vmem:[#allocation13_spill] sm:$0xff]  ;;  %s2575_s11 = sadd.s32 2, %s6714_s24 }
 0x50b   : > { %4709 = vmatpush.msra.mxu1 %v4658_v8  ;;  %v8470_v8 = vld [vmem:[#allocation19_spill] sm:$0xff]  ;;  %p7686_p0 = scmp.ge.s32.totalorder %s2575_s11, 0  ;;  %p2577_p1 = scmp.lt.s32.totalorder %s2575_s11, 16 }
 0x50c   : > { %v4946_v29 = vadd.f32 %v7489_v20, %v8470_v8  ;;  %v8472_v20 = vld [vmem:[#allocation28_spill] sm:$0xff]  ;;  %s2950_s11 = sadd.s32 3, %s6714_s24 }
 0x50d   : > { %v2898_v2 = vpop.f32.mrf.mxu1  ;;  %4710 = vmatpush.msra.mxu1 %v4657_v37  ;;  %v4966_v37 = vmax.f32 %v8471_v48, 0.0  ;;  %p2578_p2 = pnand %p2577_p1, %p7686_p0  ;;  %p7736_p4 = scmp.ge.s32.totalorder %s2950_s11, 0 }
 0x50e   : > { %v2899_v3 = vadd.f32 %v2898_v2, %v8459_v1  ;;  %v4967_v42 = vmax.f32 %v4946_v29, 0.0  ;;  %v8474_v1 = vld [vmem:[#allocation37_spill] sm:$0xff]  ;;  %p2952_p5 = scmp.lt.s32.totalorder %s2950_s11, 16  ;;  %s3325_s11 = sadd.s32 4, %s6714_s24 }
 0x50f   : > { %4711 = vmatpush.msra.mxu1 %v4656_v21  ;;  %v8473_v21 = vld [vmem:[#allocation40_spill] sm:$0xff]  ;;  %s5327_s23 = scalar_select %p2578_p2, 0, 1 }
 0x510   : > { %v2904_v10 = vmax.f32 %v2899_v3, 0.0  ;;  %5412 = vmatmul.msk.f32.gmra.mxu1 %vm1194_vm3, %v7155_v19  ;;  %5326 = vmatmul.msk.f32.gmra.mxu0 %vm1244_vm4, %v2533_v23  ;;  %p2953_p6 = pnand %p2952_p5, %p7736_p4  ;;  %p7793_p7 = scmp.ge.s32.totalorder %s3325_s11, 0 }
 0x511   : > { %4712 = vmatpush.msra.mxu1 %v4655_v44  ;;  %v8476_v44 = vld [vmem:[#allocation17_spill] sm:$0xff]  ;;  %s2581_s21 = scvt.s32.f32 %s5327_s23  ;;  %p3327_p9 = scmp.lt.s32.totalorder %s3325_s11, 16 }
 0x512   : > { %2933 = vmatpush.msra.mxu0 %v2904_v10  ;;  %v1894_v63 = vmul.f32 %v8476_v44, %v1893_v7  ;;  %s5345_s23 = scalar_select %p2953_p6, 0, 1 }
 0x513   : > { %4713 = vmatpush.msra.mxu1 %v4654_v50  ;;  %p3328_p10 = pnand %p3327_p9, %p7793_p7  ;;  %s4436_s11 = sadd.s32 7, %s6714_s24 }
 0x514   : > { %2934 = vmatpush.msra.mxu0 %v2903_v12  ;;  %p8041_p4 = scmp.ge.s32.totalorder %s4436_s11, 0  ;;  %p8045_p5 = scmp.lt.s32.totalorder %s4436_s11, 16 }
 0x515   : > { %v3264_v28 = vpop.f32.mrf.mxu1  ;;  %4714 = vmatpush.msra.mxu1 %v4653_v13 }
 0x516   : > { %2935 = vmatpush.msra.mxu0 %v2902_v31  ;;  %p4439_p6 = pnand %p8045_p5, %p8041_p4 }
 0x517   : > { %4715 = vmatpush.msra.mxu1 %v4652_v55 }
 0x518   : > { %2936 = vmatpush.msra.mxu0 %v2901_v32  ;;  %5427 = vmatmul.msk.f32.vlgmr.msra.gmra.mxu1 %vm1194_vm3, %v7078_v56  ;;  %v4976_v32 = vld [vmem:[%s8316_s3 + $0x10] sm:$0xff] }
 0x519   : > { %5022 = vmatpush.msrb.mxu1 %v4973_v15  ;;  %5341 = vmatmul.msk.f32.vlgmr.msra.gmra.mxu0 %vm1244_vm4, %v7428_v40 }
 0x51b   : > { %5023 = vmatpush.msrb.mxu1 %v4972_v43 }
 0x51d   : > { %5024 = vmatpush.msrb.mxu1 %v4971_v49  ;;  %v3267_v56 = vpop.f32.mrf.mxu1 }
 0x51e   : > { %v3268_v3 = vadd.f32 %v3267_v56, %v8474_v1  ;;  %v2223_v56 = vstv %s2222_s6 }
 0x51f   : > { %5025 = vmatpush.msrb.mxu1 %v4970_v27  ;;  %v3283_v27 = vld [vmem:[%s8318_s5 + $0x18] sm:$0x1] }
 0x520   : > { %5428 = vmatmul.msk.f32.gmra.mxu1 %vm1194_vm3, %v7111_v11  ;;  %v3277_v6 = vmax.f32 %v3268_v3, 0.0 }
 0x521   : > { %5026 = vmatpush.msrb.mxu1 %v4969_v14  ;;  %5342 = vmatmul.msk.f32.gmra.mxu0 %vm1244_vm4, %v7443_v47  ;;  %v2224_v14 = vmul.f32 %v8476_v44, %v2223_v56 }
 0x523   : > { %5027 = vmatpush.msrb.mxu1 %v4968_v18 }
 0x525   : > { %5028 = vmatpush.msrb.mxu1 %v4967_v42  ;;  %v3270_v36 = vpop.f32.mrf.mxu1 }
 0x526   : > { %v3271_v38 = vadd.f32 %v3270_v36, %v8472_v20 }
 0x527   : > { %5029 = vmatpush.msrb.mxu1 %v4966_v37 }
 0x528   : > { %5429 = vmatmul.msk.f32.gmra.mxu1 %vm1194_vm3, %v7137_v9  ;;  %v8475_v9 = vld [vmem:[#allocation55_spill] sm:$0xff]  ;;  %v3278_v22 = vmax.f32 %v3271_v38, 0.0 }
 0x529   : > { %5343 = vmatmul.msk.f32.gmra.mxu0 %vm1244_vm4, %v7454_v17  ;;  %v3265_v60 = vadd.f32 %v3264_v28, %v8475_v9 }
 0x52b   : > { %v3276_v16 = vmax.f32 %v3265_v60, 0.0 }
 0x52d   : > { %v3273_v11 = vpop.f32.mrf.mxu1 }
 0x52e   : > { %v3274_v2 = vadd.f32 %v3273_v11, %v8473_v21 }
 0x530   : > { %v3279_v23 = vmax.f32 %v3274_v2, 0.0  ;;  %5430 = vmatmul.msk.f32.gmra.mxu1 %vm1194_vm3, %v7155_v19 }
 0x531   : > { %5344 = vmatmul.msk.f32.gmra.mxu0 %vm1244_vm4, %v2908_v33 }
 0x532   : > { %3308 = vmatpush.msrb.mxu0 %v3279_v23 }
 0x533   : > { %v1877_v10 = vpop.f32.mrf.mxu0 }
 0x534   : > { %3309 = vmatpush.msrb.mxu0 %v3278_v22  ;;  %v7612_v50 = vmul.f32 %v1894_v63, %v1877_v10 }
 0x535   : > { %v3639_v39 = vpop.f32.mrf.mxu1 }
 0x536   : > { %3310 = vmatpush.msrb.mxu0 %v3277_v6  ;;  %v1903_v19 = vrot.slane %v7612_v50, 2  ;;  %v1898_v61 = vrot.slane %v7612_v50, 1  ;;  %v1908_v57 = vrot.slane %v7612_v50, 3  ;;  %v1913_v31 = vrot.slane %v7612_v50, 4 }
 0x537   : > { %v3640_v8 = vadd.f32 %v3639_v39, %v7346_v45 }
 0x538   : > { %3311 = vmatpush.msrb.mxu0 %v3276_v16  ;;  %5445 = vmatmul.msk.f32.vlgmr.msrb.gmra.mxu1 %vm1194_vm3, %v4974_v5  ;;  %v3658_v5 = vld [vmem:[%s8318_s5 + $0x18] sm:$0x1] }
 0x539   : > { %5359 = vmatmul.msk.f32.vlgmr.msrb.gmra.mxu0 %vm1244_vm4, %v7428_v40  ;;  %1904 = vrot.lane.b32.xlu1 %v1903_v19, %s5648_s13  ;;  %v3651_v48 = vmax.f32 %v3640_v8, 0.0  ;;  %v8483_v8 = vld [vmem:[#allocation43_spill] sm:$0xff] }
 0x53a   : > { %1899 = vrot.lane.b32.xlu0 %v1898_v61, %s5645_s19  ;;  %1909 = vrot.lane.b32.xlu2 %v1908_v57, %s5644_s18  ;;  %v2582_v61 = vstv %s2581_s21  ;;  %s2956_s21 = scvt.s32.f32 %s5345_s23 }
 0x53b   : > { %v1880_v52 = vpop.f32.mrf.mxu0  ;;  %s5363_s23 = scalar_select %p3328_p10, 0, 1 }
 0x53c   : > { %v7627_v13 = vmul.f32 %v1894_v63, %v1880_v52 }
 0x53d   : > { %v3642_v12 = vpop.f32.mrf.mxu1 }
 0x53e   : > { %v1922_v62 = vrot.slane %v7627_v13, 3  ;;  %v1927_v53 = vrot.slane %v7627_v13, 4  ;;  %v1938_v0 = vrot.slane %v7627_v13, 1  ;;  %v1943_v59 = vrot.slane %v7627_v13, 2 }
 0x53f   : > { %v3643_v26 = vadd.f32 %v3642_v12, %v7352_v35 }
 0x540   : > { %5446 = vmatmul.msk.f32.gmra.mxu1 %vm1194_vm3, %v4975_v25 }
 0x541   : > { %5360 = vmatmul.msk.f32.gmra.mxu0 %vm1244_vm4, %v7443_v47  ;;  %1923 = vrot.lane.b32.xlu1 %v1922_v62, %s5644_s18  ;;  %v3652_v18 = vmax.f32 %v3643_v26, 0.0 }
 0x542   : > { %1914 = vrot.lane.b32.xlu0 %v1913_v31, %s5647_s22  ;;  %1928 = vrot.lane.b32.xlu2 %v1927_v53, %s5647_s22 }
 0x543   : > { %v1883_v28 = vpop.f32.mrf.mxu0 }
 0x545   : > { %v3645_v55 = vpop.f32.mrf.mxu1 }
 0x546   : > { %v3646_v49 = vadd.f32 %v3645_v55, %v8479_v30 }
 0x548   : > { %5447 = vmatmul.msk.f32.gmra.mxu1 %vm1194_vm3, %v4976_v32  ;;  %v3653_v29 = vmax.f32 %v3646_v49, 0.0 }
 0x549   : > { %5361 = vmatmul.msk.f32.gmra.mxu0 %vm1244_vm4, %v7454_v17  ;;  %1944 = vrot.lane.b32.xlu1 %v1943_v59, %s5648_s13 }
 0x54a   : > { %1939 = vrot.lane.b32.xlu0 %v1938_v0, %s5645_s19 }
 0x54b   : > { %v1885_v43 = vpop.f32.mrf.mxu0 }
 0x54d   : > { %v3648_v15 = vpop.f32.mrf.mxu1 }
 0x54e   : > { %v3649_v4 = vadd.f32 %v3648_v15, %v8480_v24 }
 0x550   : > { %v3654_v34 = vmax.f32 %v3649_v4, 0.0  ;;  %5448 = vmatmul.msk.f32.gmra.mxu1 %vm1194_vm3, %v4977_v51 }
 0x551   : > { %5362 = vmatmul.msk.f32.gmra.mxu0 %vm1244_vm4, %v3283_v27 }
 0x552   : > { %3683 = vmatpush.msra.mxu0 %v3654_v34 }
 0x553   : > { %v2205_v37 = vpop.f32.mrf.mxu0 }
 0x554   : > { %3684 = vmatpush.msra.mxu0 %v3653_v29  ;;  %v7673_v35 = vmul.f32 %v2224_v14, %v2205_v37  ;;  %v8485_v37 = vld [vmem:[#allocation52_spill] sm:$0xff] }
 0x555   : > { %v4014_v42 = vpop.f32.mrf.mxu1 }
 0x556   : > { %3685 = vmatpush.msra.mxu0 %v3652_v18  ;;  %v2239_v36 = vrot.slane %v7673_v35, 3  ;;  %v2234_v45 = vrot.slane %v7673_v35, 2  ;;  %v2229_v11 = vrot.slane %v7673_v35, 1  ;;  %v2244_v7 = vrot.slane %v7673_v35, 4 }
 0x557   : > { %v4015_v52 = vadd.f32 %v4014_v42, %v7377_v41 }
 0x558   : > { %3686 = vmatpush.msra.mxu0 %v3651_v48  ;;  %2240 = vrot.lane.b32.xlu1 %v2239_v36, %s5644_s18  ;;  %v4033_v48 = vld [vmem:[%s8318_s5 + $0x18] sm:$0x1] }
 0x559   : > { %5377 = vmatmul.msk.f32.vlgmr.msra.gmra.mxu0 %vm1244_vm4, %v7428_v40  ;;  %2235 = vrot.lane.b32.xlu0 %v2234_v45, %s5648_s13  ;;  %v4026_v62 = vmax.f32 %v4015_v52, 0.0 }
 0x55a   : > { %2230 = vrot.lane.b32.xlu2 %v2229_v11, %s5645_s19  ;;  %v2957_v11 = vstv %s2956_s21  ;;  %s3331_s21 = scvt.s32.f32 %s5363_s23  ;;  %s3700_s23 = sadd.s32 5, %s6714_s24 }
 0x55b   : > { %v2208_v38 = vpop.f32.mrf.mxu0  ;;  %p7873_p11 = scmp.ge.s32.totalorder %s3700_s23, 0  ;;  %p7877_p12 = scmp.lt.s32.totalorder %s3700_s23, 16 }
 0x55c   : > { %v7684_v21 = vmul.f32 %v2224_v14, %v2208_v38 }
 0x55d   : > { %v4017_v20 = vpop.f32.mrf.mxu1  ;;  %p3703_p13 = pnand %p7877_p12, %p7873_p11 }
 0x55e   : > { %v2258_v2 = vrot.slane %v7684_v21, 4  ;;  %v2253_v33 = vrot.slane %v7684_v21, 3  ;;  %v2274_v9 = vrot.slane %v7684_v21, 2  ;;  %v2269_v22 = vrot.slane %v7684_v21, 1 }
 0x55f   : > { %v4018_v16 = vadd.f32 %v4017_v20, %v7367_v46 }
 0x560   : > { %2259 = vrot.lane.b32.xlu1 %v2258_v2, %s5647_s22  ;;  %v8486_v2 = vld [vmem:[#allocation47_spill] sm:$0xff] }
 0x561   : > { %5378 = vmatmul.msk.f32.gmra.mxu0 %vm1244_vm4, %v7443_v47  ;;  %2254 = vrot.lane.b32.xlu0 %v2253_v33, %s5644_s18  ;;  %v4027_v31 = vmax.f32 %v4018_v16, 0.0 }
 0x562   : > { %2245 = vrot.lane.b32.xlu2 %v2244_v7, %s5647_s22 }
 0x563   : > { %v2211_v3 = vpop.f32.mrf.mxu0 }
 0x564   : > { %v2227_v23 = vmul.f32 %v2224_v14, %v2211_v3  ;;  %v8484_v14 = vld [vmem:[#allocation51_spill] sm:$0xff]  ;;  %v7775_v3 = vmul.f32 %v8476_v44, %v2957_v11 }
 0x565   : > { %v4020_v1 = vpop.f32.mrf.mxu1  ;;  %v1918_v11 = vld [vmem:[%s6961_s17 + $0x2] sm:$0x1] }
 0x566   : > { %v2288_v60 = vrot.slane %v2227_v23, 1  ;;  %v4021_v6 = vadd.f32 %v4020_v1, %v7371_v54  ;;  %v2298_v57 = vrot.slane %v2227_v23, 3  ;;  %v2303_v12 = vrot.slane %v2227_v23, 4 }
 0x567   : > { %v2293_v54 = vrot.slane %v2227_v23, 2 }
 0x568   : > { %2289 = vrot.lane.b32.xlu1 %v2288_v60, %s5645_s19  ;;  %v4028_v25 = vmax.f32 %v4021_v6, 0.0 }
 0x569   : > { %5379 = vmatmul.msk.f32.gmra.mxu0 %vm1244_vm4, %v7454_v17  ;;  %2275 = vrot.lane.b32.xlu0 %v2274_v9, %s5648_s13 }
 0x56a   : > { %2270 = vrot.lane.b32.xlu2 %v2269_v22, %s5645_s19 }
 0x56b   : > { %v2214_v10 = vpop.f32.mrf.mxu0 }
 0x56d   : > { %v4023_v63 = vpop.f32.mrf.mxu1 }
 0x56e   : > { %v4024_v39 = vadd.f32 %v4023_v63, %v7355_v58  ;;  %v7718_v58 = vmul.f32 %v8476_v44, %v2582_v61 }
 0x570   : > { %v4029_v19 = vmax.f32 %v4024_v39, 0.0  ;;  %2304 = vrot.lane.b32.xlu1 %v2303_v12, %s5647_s22 }
 0x571   : > { %5380 = vmatmul.msk.f32.gmra.mxu0 %vm1244_vm4, %v3658_v5  ;;  %2299 = vrot.lane.b32.xlu0 %v2298_v57, %s5644_s18 }
 0x572   : > { %4058 = vmatpush.msrb.mxu0 %v4029_v19  ;;  %2294 = vrot.lane.b32.xlu2 %v2293_v54, %s5648_s13 }
 0x574   : > { %4059 = vmatpush.msrb.mxu0 %v4028_v25 }
 0x575   : > { %v4376_v46 = vpop.f32.mrf.mxu1  ;;  %v2563_v53 = vpop.f32.mrf.mxu0 }
 0x576   : > { %4060 = vmatpush.msrb.mxu0 %v4027_v31  ;;  %v7722_v41 = vmul.f32 %v7718_v58, %v2563_v53  ;;  %v4377_v33 = vadd.f32 %v4376_v46, %v8486_v2 }
 0x578   : > { %4061 = vmatpush.msrb.mxu0 %v4026_v62  ;;  %v2599_v55 = vrot.slane %v7722_v41, 3  ;;  %v2594_v28 = vrot.slane %v7722_v41, 2  ;;  %v2589_v32 = vrot.slane %v7722_v41, 1  ;;  %v2604_v30 = vrot.slane %v7722_v41, 4 }
 0x579   : > { %5395 = vmatmul.msk.f32.vlgmr.msrb.gmra.mxu0 %vm1244_vm4, %v7428_v40  ;;  %v4388_v60 = vmax.f32 %v4377_v33, 0.0 }
 0x57a   : > { %2600 = vrot.lane.b32.xlu1 %v2599_v55, %s5644_s18  ;;  %2595 = vrot.lane.b32.xlu0 %v2594_v28, %s5648_s13 }
 0x57b   : > { %2590 = vrot.lane.b32.xlu2 %v2589_v32, %s5645_s19  ;;  %v8488_v32 = vld [vmem:[#allocation49_spill] sm:$0xff] }
 0x57d   : > { %v4379_v0 = vpop.f32.mrf.mxu1  ;;  %v2566_v59 = vpop.f32.mrf.mxu0 }
 0x57e   : > { %v7734_v15 = vmul.f32 %v7718_v58, %v2566_v59  ;;  %v4380_v36 = vadd.f32 %v4379_v0, %v8485_v37  ;;  %v8489_v59 = vld [vmem:[#allocation54_spill] sm:$0xff] }
 0x580   : > { %v2618_v43 = vrot.slane %v7734_v15, 4  ;;  %v2613_v51 = vrot.slane %v7734_v15, 3  ;;  %v2634_v27 = vrot.slane %v7734_v15, 2  ;;  %v2629_v34 = vrot.slane %v7734_v15, 1 }
 0x581   : > { %5396 = vmatmul.msk.f32.gmra.mxu0 %vm1244_vm4, %v7443_v47  ;;  %v4389_v23 = vmax.f32 %v4380_v36, 0.0 }
 0x582   : > { %2619 = vrot.lane.b32.xlu1 %v2618_v43, %s5647_s22  ;;  %2614 = vrot.lane.b32.xlu0 %v2613_v51, %s5644_s18 }
 0x583   : > { %2605 = vrot.lane.b32.xlu2 %v2604_v30, %s5647_s22 }
 0x585   : > { %v4382_v49 = vpop.f32.mrf.mxu1  ;;  %v2569_v24 = vpop.f32.mrf.mxu0 }
 0x586   : > { %v7751_v4 = vmul.f32 %v7718_v58, %v2569_v24  ;;  %v4383_v29 = vadd.f32 %v4382_v49, %v8483_v8  ;;  %v4395_v49 = vld [vmem:[%s8318_s5 + $0x18] sm:$0x1] }
 0x588   : > { %v2648_v26 = vrot.slane %v7751_v4, 1  ;;  %v2658_v20 = vrot.slane %v7751_v4, 3  ;;  %v2663_v38 = vrot.slane %v7751_v4, 4  ;;  %v4390_v7 = vmax.f32 %v4383_v29, 0.0  ;;  %v8491_v29 = vld [vmem:[#allocation41_spill] sm:$0xff] }
 0x589   : > { %5397 = vmatmul.msk.f32.gmra.mxu0 %vm1244_vm4, %v7454_v17  ;;  %v2653_v1 = vrot.slane %v7751_v4, 2 }
 0x58a   : > { %2635 = vrot.lane.b32.xlu0 %v2634_v27, %s5648_s13  ;;  %2649 = vrot.lane.b32.xlu1 %v2648_v26, %s5645_s19  ;;  %v8490_v27 = vld [vmem:[#allocation48_spill] sm:$0xff] }
 0x58b   : > { %2630 = vrot.lane.b32.xlu2 %v2629_v34, %s5645_s19 }
 0x58d   : > { %v4385_v56 = vpop.f32.mrf.mxu1  ;;  %v2572_v42 = vpop.f32.mrf.mxu0 }
 0x58e   : > { %v4386_v18 = vadd.f32 %v4385_v56, %v8484_v14  ;;  %v2587_v22 = vmul.f32 %v7718_v58, %v2572_v42  ;;  %v3332_v56 = vstv %s3331_s21  ;;  %s5381_s21 = scalar_select %p3703_p13, 0, 1 }
 0x58f   : > { %v7833_v37 = vmul.f32 %v8476_v44, %v3332_v56 }
 0x590   : > { %v4391_v45 = vmax.f32 %v4386_v18, 0.0  ;;  %v2678_v5 = vrot.slane %v2587_v22, 4  ;;  %s3706_s14 = scvt.s32.f32 %s5381_s21  ;;  %s4075_s21 = sadd.s32 6, %s6714_s24 }
 0x591   : > { %5398 = vmatmul.msk.f32.gmra.mxu0 %vm1244_vm4, %v4033_v48  ;;  %p7960_p0 = scmp.ge.s32.totalorder %s4075_s21, 0  ;;  %p7964_p1 = scmp.lt.s32.totalorder %s4075_s21, 16 }
 0x592   : > { %4420 = vmatpush.msra.mxu0 %v4391_v45  ;;  %2659 = vrot.lane.b32.xlu0 %v2658_v20, %s5644_s18  ;;  %s5417_s21 = scalar_select %p4439_p6, 0, 1 }
 0x593   : > { %2664 = vrot.lane.b32.xlu1 %v2663_v38, %s5647_s22  ;;  %2654 = vrot.lane.b32.xlu2 %v2653_v1, %s5648_s13  ;;  %p4078_p2 = pnand %p7964_p1, %p7960_p0 }
 0x594   : > { %4421 = vmatpush.msra.mxu0 %v4390_v7  ;;  %v1910_v25 = vpop.permute.xlu2 %1909 }
 0x595   : > { %v4717_v9 = vpop.f32.mrf.mxu1  ;;  %s5399_s23 = scalar_select %p4078_p2, 0, 1 }
 0x596   : > { %v2938_v63 = vpop.f32.mrf.mxu0  ;;  %4422 = vmatpush.msra.mxu0 %v4389_v23  ;;  %v4718_v14 = vadd.f32 %v4717_v9, %v8491_v29 }
 0x597   : > { %v7780_v6 = vmul.f32 %v7775_v3, %v2938_v63  ;;  %s4081_s25 = scvt.s32.f32 %s5399_s23 }
 0x598   : > { %4423 = vmatpush.msra.mxu0 %v4388_v60  ;;  %v4729_v1 = vmax.f32 %v4718_v14, 0.0  ;;  %v8495_v14 = vld [vmem:[#allocation56_spill] sm:$0xff] }
 0x599   : > { %5413 = vmatmul.msk.f32.vlgmr.msra.gmra.mxu0 %vm1244_vm4, %v7428_v40  ;;  %v2969_v39 = vrot.slane %v7780_v6, 2  ;;  %v2964_v10 = vrot.slane %v7780_v6, 1  ;;  %v2979_v57 = vrot.slane %v7780_v6, 4  ;;  %v2974_v52 = vrot.slane %v7780_v6, 3 }
 0x59b   : > { %2970 = vrot.lane.b32.xlu1 %v2969_v39, %s5648_s13  ;;  %2965 = vrot.lane.b32.xlu0 %v2964_v10, %s5645_s19 }
 0x59c   : > { %2679 = vrot.lane.b32.xlu2 %v2678_v5, %s5647_s22  ;;  %v1929_v51 = vpop.permute.xlu2 %1928  ;;  %v1932_v5 = vld [vmem:[%s6961_s17 + $0x1] sm:$0x1] }
 0x59d   : > { %v4720_v16 = vpop.f32.mrf.mxu1 }
 0x59e   : > { %v2941_v19 = vpop.f32.mrf.mxu0  ;;  %v4721_v26 = vadd.f32 %v4720_v16, %v8490_v27 }
 0x59f   : > { %v7791_v61 = vmul.f32 %v7775_v3, %v2941_v19 }
 0x5a0   : > { %v4730_v36 = vmax.f32 %v4721_v26, 0.0 }
 0x5a1   : > { %5414 = vmatmul.msk.f32.gmra.mxu0 %vm1244_vm4, %v7443_v47  ;;  %v2988_v12 = vrot.slane %v7791_v61, 3  ;;  %v3004_v47 = vrot.slane %v7791_v61, 1  ;;  %v3009_v31 = vrot.slane %v7791_v61, 2  ;;  %v2993_v46 = vrot.slane %v7791_v61, 4 }
 0x5a3   : > { %2980 = vrot.lane.b32.xlu0 %v2979_v57, %s5647_s22  ;;  %2989 = vrot.lane.b32.xlu1 %v2988_v12, %s5644_s18 }
 0x5a4   : > { %2975 = vrot.lane.b32.xlu2 %v2974_v52, %s5644_s18 }
 0x5a5   : > { %v4723_v54 = vpop.f32.mrf.mxu1 }
 0x5a6   : > { %v2944_v58 = vpop.f32.mrf.mxu0  ;;  %v4724_v0 = vadd.f32 %v4723_v54, %v8488_v32 }
 0x5a7   : > { %v7816_v55 = vmul.f32 %v7775_v3, %v2944_v58 }
 0x5a8   : > { %v4731_v18 = vmax.f32 %v4724_v0, 0.0  ;;  %v1950_v0 = vld [vmem:[%s6961_s17] sm:$0x1] }
 0x5a9   : > { %5415 = vmatmul.msk.f32.gmra.mxu0 %vm1244_vm4, %v7454_v17  ;;  %v3028_v8 = vrot.slane %v7816_v55, 2  ;;  %v3023_v42 = vrot.slane %v7816_v55, 1  ;;  %v3038_v16 = vrot.slane %v7816_v55, 4 }
 0x5ab   : > { %3005 = vrot.lane.b32.xlu0 %v3004_v47, %s5645_s19  ;;  %3010 = vrot.lane.b32.xlu1 %v3009_v31, %s5648_s13  ;;  %v1905_v62 = vpop.permute.xlu1 %1904  ;;  %v5545_v31 = vld [vmem:[%s8318_s5 + $0x8] sm:$0xff] }
 0x5ac   : > { %2994 = vrot.lane.b32.xlu2 %v2993_v46, %s5647_s22  ;;  %v1900_v53 = vpop.permute.xlu0 %1899 }
 0x5ad   : > { %v4726_v28 = vpop.f32.mrf.mxu1  ;;  %v1902_v17 = vadd.f32 %v1900_v53, %v7612_v50  ;;  %v3033_v50 = vrot.slane %v7816_v55, 3 }
 0x5ae   : > { %v4727_v43 = vadd.f32 %v4726_v28, %v8489_v59  ;;  %v2947_v30 = vpop.f32.mrf.mxu0 }
 0x5af   : > { %v1907_v24 = vadd.f32 %v1905_v62, %v1902_v17  ;;  %v2962_v38 = vmul.f32 %v7775_v3, %v2947_v30  ;;  %v5546_v30 = vld [vmem:[%s8318_s5 + $0x10] sm:$0xff] }
 0x5b0   : > { %v4732_v34 = vmax.f32 %v4727_v43, 0.0 }
 0x5b1   : > { %5416 = vmatmul.msk.f32.gmra.mxu0 %vm1244_vm4, %v4395_v49  ;;  %v1912_v48 = vadd.f32 %v1910_v25, %v1907_v24  ;;  %v3053_v39 = vrot.slane %v2962_v38, 4 }
 0x5b2   : > { %4761 = vmatpush.msrb.mxu0 %v4732_v34 }
 0x5b3   : > { %3034 = vrot.lane.b32.xlu1 %v3033_v50, %s5644_s18  ;;  %3029 = vrot.lane.b32.xlu0 %v3028_v8, %s5648_s13  ;;  %v1924_v20 = vpop.permute.xlu1 %1923  ;;  %v8494_v8 = vld [vmem:[#allocation58_spill] sm:$0xff] }
 0x5b4   : > { %3024 = vrot.lane.b32.xlu2 %v3023_v42, %s5645_s19  ;;  %4762 = vmatpush.msrb.mxu0 %v4731_v18  ;;  %v1915_v45 = vpop.permute.xlu0 %1914  ;;  %v1926_v7 = vadd.f32 %v1924_v20, %v1907_v24  ;;  %v2231_v23 = vpop.permute.xlu2 %2230 }
 0x5b5   : > { %v7838_v2 = vpop.f32.mrf.mxu1  ;;  %v1917_v33 = vadd.f32 %v1915_v45, %v1912_v48  ;;  %v2233_v26 = vadd.f32 %v2231_v23, %v7673_v35  ;;  %v8497_v23 = vld [vmem:[#allocation53_spill] sm:$0xff] }
 0x5b6   : > { %v3313_v9 = vpop.f32.mrf.mxu0  ;;  %4763 = vmatpush.msrb.mxu0 %v4730_v36  ;;  %v1931_v22 = vadd.f32 %v1929_v51, %v1926_v7  ;;  %v4736_v36 = vld [vmem:[%s8318_s5 + $0x18] sm:$0x1] }
 0x5b7   : > { %v1919_v60 = vadd.f32 %v1918_v11, %v1917_v33  ;;  %v7841_v63 = vmul.f32 %v7833_v37, %v3313_v9  ;;  %v8496_v11 = vld [vmem:[#allocation57_spill] sm:$0xff]  ;;  %v5032_v9 = vadd.f32 %v7838_v2, %v8497_v23 }
 0x5b8   : > { %4764 = vmatpush.msrb.mxu0 %v4729_v1  ;;  %v1934_v3 = vrot.slane %v1931_v22, 5  ;;  %v2249_v22 = vld [vmem:[%s6961_s17 + $0x3] sm:$0x1] }
 0x5b9   : > { %1920 = vst.msk [vmem:[%s6961_s17 + $0x2] sm:$0x1] %vm1315_vm9, %v1919_v60  ;;  %5431 = vmatmul.msk.f32.vlgmr.msrb.gmra.mxu0 %vm1244_vm4, %v7428_v40  ;;  %v3339_v10 = vrot.slane %v7841_v63, 1  ;;  %v3354_v46 = vrot.slane %v7841_v63, 4  ;;  %v3349_v62 = vrot.slane %v7841_v63, 3  ;;  %v3344_v53 = vrot.slane %v7841_v63, 2 }
 0x5ba   : > { %v1936_v19 = vadd.f32 %v1934_v3, %v1932_v5 }
 0x5bb   : > { %3340 = vrot.lane.b32.xlu1 %v3339_v10, %s5645_s19  ;;  %3054 = vrot.lane.b32.xlu0 %v3053_v39, %s5647_s22  ;;  %v1945_v40 = vpop.permute.xlu1 %1944 }
 0x5bc   : > { %3039 = vrot.lane.b32.xlu2 %v3038_v16, %s5647_s22  ;;  %v1940_v57 = vpop.permute.xlu0 %1939  ;;  %1937 = vst.msk [vmem:[%s6961_s17 + $0x1] sm:$0x1] %vm1315_vm9, %v1936_v19  ;;  %v2246_v25 = vpop.permute.xlu2 %2245  ;;  %v5043_v19 = vmax.f32 %v5032_v9, 0.0 }
 0x5bd   : > { %v5034_v12 = vpop.f32.mrf.mxu1  ;;  %v1942_v52 = vadd.f32 %v1940_v57, %v7627_v13 }
 0x5be   : > { %v3316_v54 = vpop.f32.mrf.mxu0 }
 0x5bf   : > { %v1947_v58 = vadd.f32 %v1945_v40, %v1942_v52  ;;  %v7868_v28 = vmul.f32 %v7833_v37, %v3316_v54  ;;  %v3707_v52 = vstv %s3706_s14  ;;  %v5047_v40 = vld [vmem:[%s8318_s5] sm:$0xff]  ;;  %s4442_s14 = scvt.s32.f32 %s5417_s21 }
 0x5c1   : > { %v1948_v47 = vadd.f32 %v1947_v58, %v1924_v20  ;;  %5432 = vmatmul.msk.f32.gmra.mxu0 %vm1244_vm4, %v5545_v31  ;;  %v3379_v49 = vrot.slane %v7868_v28, 1  ;;  %v3368_v24 = vrot.slane %v7868_v28, 4  ;;  %v3363_v27 = vrot.slane %v7868_v28, 3 }
 0x5c2   : > { %v5035_v20 = vadd.f32 %v5034_v12, %v8496_v11  ;;  %v3384_v39 = vrot.slane %v7868_v28, 2 }
 0x5c3   : > { %v1949_v13 = vadd.f32 %v1948_v47, %v1929_v51  ;;  %3355 = vrot.lane.b32.xlu1 %v3354_v46, %s5647_s22  ;;  %3350 = vrot.lane.b32.xlu0 %v3349_v62, %s5644_s18 }
 0x5c4   : > { %3345 = vrot.lane.b32.xlu2 %v3344_v53, %s5648_s13  ;;  %v7871_v59 = vpop.permute.xlu2 %2270  ;;  %v5044_v10 = vmax.f32 %v5035_v20, 0.0  ;;  %v2263_v53 = vld [vmem:[%s6961_s17 + $0x2] sm:$0x1] }
 0x5c5   : > { %v1952_v17 = vrot.slane %v1949_v13, 2  ;;  %v5037_v32 = vpop.f32.mrf.mxu1  ;;  %v2273_v13 = vadd.f32 %v7871_v59, %v7684_v21 }
 0x5c6   : > { %v3319_v43 = vpop.f32.mrf.mxu0  ;;  %v5038_v29 = vadd.f32 %v5037_v32, %v8494_v8 }
 0x5c7   : > { %v1954_v51 = vadd.f32 %v1952_v17, %v1950_v0  ;;  %v7899_v34 = vmul.f32 %v7833_v37, %v3319_v43 }
 0x5c8   : > { %v5045_v60 = vmax.f32 %v5038_v29, 0.0 }
 0x5c9   : > { %1955 = vst.msk [vmem:[%s6961_s17] sm:$0x1] %vm1315_vm9, %v1954_v51  ;;  %5433 = vmatmul.msk.f32.gmra.mxu0 %vm1244_vm4, %v5546_v30  ;;  %v3403_v7 = vrot.slane %v7899_v34, 2  ;;  %v3398_v1 = vrot.slane %v7899_v34, 1  ;;  %v3413_v31 = vrot.slane %v7899_v34, 4  ;;  %v3408_v46 = vrot.slane %v7899_v34, 3 }
 0x5ca   : > { %v2241_v50 = vpop.permute.xlu1 %2240  ;;  %v5048_v30 = vld [vmem:[%s8318_s5 + $0x8] sm:$0xff] }
 0x5cb   : > { %3380 = vrot.lane.b32.xlu1 %v3379_v49, %s5645_s19  ;;  %3369 = vrot.lane.b32.xlu0 %v3368_v24, %s5647_s22  ;;  %v2236_v42 = vpop.permute.xlu0 %2235 }
 0x5cc   : > { %3364 = vrot.lane.b32.xlu2 %v3363_v27, %s5644_s18  ;;  %v7903_v48 = vpop.permute.xlu2 %2294  ;;  %v2238_v45 = vadd.f32 %v2236_v42, %v2233_v26  ;;  %v2281_v42 = vld [vmem:[%s6961_s17 + $0x1] sm:$0x1] }
 0x5cd   : > { %v5040_v56 = vpop.f32.mrf.mxu1 }
 0x5ce   : > { %v5041_v18 = vadd.f32 %v5040_v56, %v8495_v14  ;;  %v3322_v35 = vpop.f32.mrf.mxu0  ;;  %v2243_v33 = vadd.f32 %v2241_v50, %v2238_v45 }
 0x5cf   : > { %v3337_v16 = vmul.f32 %v7833_v37, %v3322_v35  ;;  %v7928_v37 = vmul.f32 %v8476_v44, %v3707_v52  ;;  %v5049_v35 = vld [vmem:[%s8318_s5 + $0x10] sm:$0xff]  ;;  %v2609_v52 = vld [vmem:[%s6961_s17 + $0x4] sm:$0x1] }
 0x5d0   : > { %v5046_v38 = vmax.f32 %v5041_v18, 0.0  ;;  %v2248_v3 = vadd.f32 %v2246_v25, %v2243_v33  ;;  %v2308_v9 = vld [vmem:[%s6961_s17] sm:$0x1] }
 0x5d1   : > { %5434 = vmatmul.msk.f32.gmra.mxu0 %vm1244_vm4, %v4736_v36  ;;  %v3428_v58 = vrot.slane %v3337_v16, 4  ;;  %v5050_v16 = vld [vmem:[%s8318_s5 + $0x18] sm:$0x1] }
 0x5d2   : > { %5075 = vmatpush.msra.mxu0 %v5046_v38  ;;  %v2250_v5 = vadd.f32 %v2249_v22, %v2248_v3  ;;  %v2260_v2 = vpop.permute.xlu1 %2259 }
 0x5d3   : > { %3404 = vrot.lane.b32.xlu1 %v3403_v7, %s5648_s13  ;;  %3399 = vrot.lane.b32.xlu0 %v3398_v1, %s5645_s19  ;;  %v2255_v57 = vpop.permute.xlu0 %2254 }
 0x5d4   : > { %3385 = vrot.lane.b32.xlu2 %v3384_v39, %s5648_s13  ;;  %5076 = vmatpush.msra.mxu0 %v5045_v60  ;;  %2251 = vst.msk [vmem:[%s6961_s17 + $0x3] sm:$0x1] %vm1315_vm9, %v2250_v5  ;;  %v2257_v25 = vadd.f32 %v2255_v57, %v2238_v45 }
 0x5d5   : > { %v7920_v12 = vpop.permute.xlu2 %2590 }
 0x5d6   : > { %5077 = vmatpush.msra.mxu0 %v5044_v10  ;;  %v3688_v54 = vpop.f32.mrf.mxu0  ;;  %v2262_v47 = vadd.f32 %v2260_v2, %v2257_v25  ;;  %v2593_v60 = vadd.f32 %v7920_v12, %v7722_v41 }
 0x5d7   : > { %v7940_v32 = vmul.f32 %v7928_v37, %v3688_v54 }
 0x5d8   : > { %5078 = vmatpush.msra.mxu0 %v5043_v19  ;;  %v2265_v62 = vrot.slane %v2262_v47, 5  ;;  %v4082_v47 = vstv %s4081_s25  ;;  %s4777_s25 = sadd.s32 8, %s6714_s24 }
 0x5d9   : > { %5449 = vmatmul.msk.f32.vlgmr.msra.gmra.mxu0 %vm1244_vm4, %v5047_v40  ;;  %v3724_v59 = vrot.slane %v7940_v32, 3  ;;  %v3719_v56 = vrot.slane %v7940_v32, 2  ;;  %v3714_v50 = vrot.slane %v7940_v32, 1  ;;  %v3729_v1 = vrot.slane %v7940_v32, 4  ;;  %p8100_p7 = scmp.ge.s32.totalorder %s4777_s25, 0  ;;  %p8104_p9 = scmp.lt.s32.totalorder %s4777_s25, 16 }
 0x5da   : > { %v2267_v17 = vadd.f32 %v2265_v62, %v2263_v53  ;;  %v2290_v0 = vpop.permute.xlu1 %2289 }
 0x5db   : > { %3429 = vrot.lane.b32.xlu1 %v3428_v58, %s5647_s22  ;;  %3414 = vrot.lane.b32.xlu0 %v3413_v31, %s5647_s22  ;;  %v2276_v43 = vpop.permute.xlu0 %2275  ;;  %v2292_v26 = vadd.f32 %v2290_v0, %v7684_v21  ;;  %p4780_p10 = pnand %p8104_p9, %p8100_p7 }
 0x5dc   : > { %3409 = vrot.lane.b32.xlu2 %v3408_v46, %s5644_s18  ;;  %2268 = vst.msk [vmem:[%s6961_s17 + $0x2] sm:$0x1] %vm1315_vm9, %v2267_v17  ;;  %v2278_v49 = vadd.f32 %v2276_v43, %v2273_v13  ;;  %v8007_v13 = vmul.f32 %v8476_v44, %v4082_v47 }
 0x5dd   : > { %v2606_v51 = vpop.permute.xlu2 %2605  ;;  %v2297_v14 = vadd.f32 %v7903_v48, %v2292_v26  ;;  %s5435_s23 = scalar_select %p4780_p10, 0, 1 }
 0x5de   : > { %v3691_v24 = vpop.f32.mrf.mxu0  ;;  %v2279_v27 = vadd.f32 %v2278_v49, %v2255_v57  ;;  %v2623_v49 = vld [vmem:[%s6961_s17 + $0x3] sm:$0x1] }
 0x5df   : > { %v7957_v21 = vmul.f32 %v7928_v37, %v3691_v24  ;;  %s4783_s21 = scvt.s32.f32 %s5435_s23 }
 0x5e0   : > { %v2280_v8 = vadd.f32 %v2279_v27, %v2260_v2 }
 0x5e1   : > { %5450 = vmatmul.msk.f32.gmra.mxu0 %vm1244_vm4, %v5048_v30  ;;  %v3743_v33 = vrot.slane %v7957_v21, 4  ;;  %v3738_v7 = vrot.slane %v7957_v21, 3  ;;  %v3759_v12 = vrot.slane %v7957_v21, 2  ;;  %v3754_v40 = vrot.slane %v7957_v21, 1 }
 0x5e2   : > { %v2283_v29 = vrot.slane %v2280_v8, 2  ;;  %v2305_v18 = vpop.permute.xlu1 %2304 }
 0x5e3   : > { %3725 = vrot.lane.b32.xlu1 %v3724_v59, %s5644_s18  ;;  %3720 = vrot.lane.b32.xlu0 %v3719_v56, %s5648_s13  ;;  %v2300_v36 = vpop.permute.xlu0 %2299 }
 0x5e4   : > { %3715 = vrot.lane.b32.xlu2 %v3714_v50, %s5645_s19  ;;  %v2285_v48 = vadd.f32 %v2283_v29, %v2281_v42  ;;  %v2302_v11 = vadd.f32 %v2300_v36, %v2297_v14 }
 0x5e5   : > { %v2631_v45 = vpop.permute.xlu2 %2630 }
 0x5e6   : > { %v3694_v20 = vpop.f32.mrf.mxu0  ;;  %2286 = vst.msk [vmem:[%s6961_s17 + $0x1] sm:$0x1] %vm1315_vm9, %v2285_v48  ;;  %v2307_v38 = vadd.f32 %v2305_v18, %v2302_v11  ;;  %v2633_v27 = vadd.f32 %v2631_v45, %v7734_v15 }
 0x5e7   : > { %v7989_v39 = vmul.f32 %v7928_v37, %v3694_v20 }
 0x5e8   : > { %v2310_v23 = vrot.slane %v2307_v38, 7 }
 0x5e9   : > { %5451 = vmatmul.msk.f32.gmra.mxu0 %vm1244_vm4, %v5049_v35  ;;  %v3773_v41 = vrot.slane %v7989_v39, 1  ;;  %v3788_v0 = vrot.slane %v7989_v39, 4  ;;  %v3783_v43 = vrot.slane %v7989_v39, 3 }
 0x5ea   : > { %v2312_v22 = vadd.f32 %v2310_v23, %v2308_v9 }
 0x5eb   : > { %3744 = vrot.lane.b32.xlu1 %v3743_v33, %s5647_s22  ;;  %3739 = vrot.lane.b32.xlu0 %v3738_v7, %s5644_s18 }
 0x5ec   : > { %3730 = vrot.lane.b32.xlu2 %v3729_v1, %s5647_s22  ;;  %v2601_v3 = vpop.permute.xlu1 %2600  ;;  %v2596_v10 = vpop.permute.xlu0 %2595  ;;  %2313 = vst.msk [vmem:[%s6961_s17] sm:$0x1] %vm1315_vm9, %v2312_v22  ;;  %v2641_v1 = vld [vmem:[%s6961_s17 + $0x2] sm:$0x1] }
 0x5ed   : > { %v2655_v5 = vpop.permute.xlu2 %2654  ;;  %v2598_v2 = vadd.f32 %v2596_v10, %v2593_v60 }
 0x5ee   : > { %v3697_v19 = vpop.f32.mrf.mxu0 }
 0x5ef   : > { %v2603_v57 = vadd.f32 %v2601_v3, %v2598_v2  ;;  %v3712_v56 = vmul.f32 %v7928_v37, %v3697_v19 }
 0x5f1   : > { %5452 = vmatmul.msk.f32.gmra.mxu0 %vm1244_vm4, %v5050_v16  ;;  %v2608_v25 = vadd.f32 %v2606_v51, %v2603_v57  ;;  %v3778_v51 = vrot.slane %v7989_v39, 2  ;;  %v3803_v48 = vrot.slane %v3712_v56, 4 }
 0x5f3   : > { %3774 = vrot.lane.b32.xlu1 %v3773_v41, %s5645_s19  ;;  %3760 = vrot.lane.b32.xlu0 %v3759_v12, %s5648_s13  ;;  %v2610_v54 = vadd.f32 %v2609_v52, %v2608_v25  ;;  %v2683_v41 = vld [vmem:[%s6961_s17] sm:$0x1]  ;;  %v2668_v12 = vld [vmem:[%s6961_s17 + $0x1] sm:$0x1] }
 0x5f4   : > { %3755 = vrot.lane.b32.xlu2 %v3754_v40, %s5645_s19  ;;  %v2620_v58 = vpop.permute.xlu1 %2619  ;;  %v2615_v31 = vpop.permute.xlu0 %2614 }
 0x5f5   : > { %2611 = vst.msk [vmem:[%s6961_s17 + $0x4] sm:$0x1] %vm1315_vm9, %v2610_v54  ;;  %v2617_v62 = vadd.f32 %v2615_v31, %v2598_v2 }
 0x5f6   : > { %v2680_v46 = vpop.permute.xlu2 %2679  ;;  %v4063_v53 = vpop.f32.mrf.mxu0 }
 0x5f7   : > { %v2622_v17 = vadd.f32 %v2620_v58, %v2617_v62  ;;  %v8016_v24 = vmul.f32 %v8007_v13, %v4063_v53 }
 0x5f9   : > { %v2625_v30 = vrot.slane %v2622_v17, 5  ;;  %v4089_v18 = vrot.slane %v8016_v24, 1  ;;  %v4094_v42 = vrot.slane %v8016_v24, 2 }
 0x5fb   : > { %3789 = vrot.lane.b32.xlu1 %v3788_v0, %s5647_s22  ;;  %3784 = vrot.lane.b32.xlu0 %v3783_v43, %s5644_s18  ;;  %v2627_v26 = vadd.f32 %v2625_v30, %v2623_v49 }
 0x5fc   : > { %3779 = vrot.lane.b32.xlu2 %v3778_v51, %s5648_s13  ;;  %v2650_v59 = vpop.permute.xlu1 %2649  ;;  %v2636_v50 = vpop.permute.xlu0 %2635  ;;  %v2984_v51 = vld [vmem:[%s6961_s17 + $0x5] sm:$0x1] }
 0x5fd   : > { %2628 = vst.msk [vmem:[%s6961_s17 + $0x3] sm:$0x1] %vm1315_vm9, %v2627_v26  ;;  %v2638_v29 = vadd.f32 %v2636_v50, %v2633_v27  ;;  %v2652_v35 = vadd.f32 %v2650_v59, %v7734_v15  ;;  %v2674_v45 = vadd.f32 %v2650_v59, %v7751_v4 }
 0x5fe   : > { %v2976_v8 = vpop.permute.xlu2 %2975  ;;  %v4066_v14 = vpop.f32.mrf.mxu0 }
 0x5ff   : > { %v2639_v36 = vadd.f32 %v2638_v29, %v2615_v31  ;;  %v8031_v20 = vmul.f32 %v8007_v13, %v4066_v14  ;;  %v2657_v38 = vadd.f32 %v2655_v5, %v2652_v35  ;;  %v2675_v33 = vadd.f32 %v2674_v45, %v2655_v5 }
 0x600   : > { %v4443_v29 = vstv %s4442_s14  ;;  %s5090_s14 = sadd.s32 9, %s6714_s24 }
 0x601   : > { %v2640_v11 = vadd.f32 %v2639_v36, %v2620_v58  ;;  %v4116_v16 = vrot.slane %v8031_v20, 1  ;;  %v4105_v5 = vrot.slane %v8031_v20, 4  ;;  %v4100_v2 = vrot.slane %v8031_v20, 3  ;;  %p8170_p11 = scmp.ge.s32.totalorder %s5090_s14, 0  ;;  %p8174_p12 = scmp.lt.s32.totalorder %s5090_s14, 16 }
 0x602   : > { %v4121_v17 = vrot.slane %v8031_v20, 2  ;;  %s8506_s14 = sand.u32 1, %s5617_s27  }
 0x603   : > { %4095 = vrot.lane.b32.xlu1 %v4094_v42, %s5648_s13  ;;  %4090 = vrot.lane.b32.xlu0 %v4089_v18, %s5645_s19  ;;  %v2643_v37 = vrot.slane %v2640_v11, 2  ;;  %v2998_v18 = vld [vmem:[%s6961_s17 + $0x4] sm:$0x1]  ;;  %v4444_v42 = vmul.f32 %v8476_v44, %v4443_v29  ;;  %p5093_p13 = pnand %p8174_p12, %p8170_p11  ;;  %s5130_s25 = scalar_lea.sflag [#allocation5], %s8506_s14 }
 0x604   : > { %3804 = vrot.lane.b32.xlu2 %v3803_v48, %s5647_s22  ;;  %v2660_v15 = vpop.permute.xlu0 %2659 }
 0x605   : > { %v2665_v7 = vpop.permute.xlu1 %2664  ;;  %v2645_v4 = vadd.f32 %v2643_v37, %v2641_v1  ;;  %v2662_v9 = vadd.f32 %v2660_v15, %v2657_v38  ;;  %v2676_v60 = vadd.f32 %v2675_v33, %v2660_v15  ;;  %s5453_s24 = scalar_select %p5093_p13, 0, 1 }
 0x606   : > { %v8034_v23 = vpop.permute.xlu2 %2994  ;;  %v4069_v22 = vpop.f32.mrf.mxu0 }
 0x607   : > { %2646 = vst.msk [vmem:[%s6961_s17 + $0x2] sm:$0x1] %vm1315_vm9, %v2645_v4  ;;  %v2682_v3 = vadd.f32 %v2680_v46, %v2676_v60  ;;  %v2667_v10 = vadd.f32 %v2665_v7, %v2662_v9  ;;  %v8056_v25 = vmul.f32 %v8007_v13, %v4069_v22  ;;  %s5096_s6 = scvt.s32.f32 %s5453_s24 }
 0x609   : > { %v2685_v19 = vrot.slane %v2682_v3, 4  ;;  %v2670_v57 = vrot.slane %v2667_v10, 7  ;;  %v4135_v53 = vrot.slane %v8056_v25, 1  ;;  %v4140_v50 = vrot.slane %v8056_v25, 2 }
 0x60a   : > { %v4145_v33 = vrot.slane %v8056_v25, 3 }
 0x60b   : > { %4117 = vrot.lane.b32.xlu1 %v4116_v16, %s5645_s19  ;;  %4106 = vrot.lane.b32.xlu0 %v4105_v5, %s5647_s22  ;;  %v2687_v52 = vadd.f32 %v2685_v19, %v2683_v41  ;;  %v2672_v40 = vadd.f32 %v2670_v57, %v2668_v12  ;;  %v3016_v19 = vld [vmem:[%s6961_s17 + $0x3] sm:$0x1] }
 0x60c   : > { %4101 = vrot.lane.b32.xlu2 %v4100_v2, %s5644_s18 }
 0x60d   : > { %v2971_v54 = vpop.permute.xlu1 %2970  ;;  %v2966_v58 = vpop.permute.xlu0 %2965  ;;  %2688 = vst.msk [vmem:[%s6961_s17] sm:$0x1] %vm1315_vm9, %v2687_v52 }
 0x60e   : > { %v3025_v47 = vpop.permute.xlu2 %3024  ;;  %v2968_v31 = vadd.f32 %v2966_v58, %v7780_v6  ;;  %v8065_v46 = vpop.f32.mrf.mxu0  ;;  %2673 = vst.msk [vmem:[%s6961_s17 + $0x1] sm:$0x1] %vm1315_vm9, %v2672_v40  ;;  %v3043_v58 = vld [vmem:[%s6961_s17 + $0x2] sm:$0x1] }
 0x60f   : > { %v3027_v4 = vadd.f32 %v3025_v47, %v7791_v61  ;;  %v3049_v10 = vadd.f32 %v3025_v47, %v7816_v55 }
 0x610   : > { %v2973_v62 = vadd.f32 %v2971_v54, %v2968_v31 }
 0x612   : > { %v2978_v0 = vadd.f32 %v2976_v8, %v2973_v62 }
 0x613   : > { %4136 = vrot.lane.b32.xlu1 %v4135_v53, %s5645_s19  ;;  %4122 = vrot.lane.b32.xlu0 %v4121_v17, %s5648_s13 }
 0x615   : > { %v2990_v43 = vpop.permute.xlu1 %2989  ;;  %v2981_v6 = vpop.permute.xlu0 %2980 }
 0x616   : > { %v2992_v30 = vadd.f32 %v2990_v43, %v2973_v62  ;;  %v3040_v49 = vpop.permute.xlu2 %3039  ;;  %v2983_v27 = vadd.f32 %v2981_v6, %v2978_v0  ;;  %v4425_v26 = vpop.f32.mrf.mxu0 }
 0x618   : > { %v2997_v59 = vadd.f32 %v8034_v23, %v2992_v30  ;;  %v2985_v56 = vadd.f32 %v2984_v51, %v2983_v27 }
 0x61a   : > { %v3000_v14 = vrot.slane %v2997_v59, 5  ;;  %2986 = vst.msk [vmem:[%s6961_s17 + $0x5] sm:$0x1] %vm1315_vm9, %v2985_v56  ;;  %v4087_v59 = vmul.f32 %v8007_v13, %v8065_v46 }
 0x61b   : > { %4141 = vrot.lane.b32.xlu1 %v4140_v50, %s5648_s13 }
 0x61c   : > { %v3002_v8 = vadd.f32 %v3000_v14, %v2998_v18  ;;  %v3359_v18 = vld [vmem:[%s6961_s17 + $0x6] sm:$0x1] }
 0x61d   : > { %v3011_v36 = vpop.permute.xlu1 %3010  ;;  %v3006_v35 = vpop.permute.xlu0 %3005 }
 0x61e   : > { %3003 = vst.msk [vmem:[%s6961_s17 + $0x4] sm:$0x1] %vm1315_vm9, %v3002_v8  ;;  %v3346_v45 = vpop.permute.xlu2 %3345  ;;  %v3008_v48 = vadd.f32 %v3006_v35, %v7791_v61  ;;  %v4427_v11 = vpop.f32.mrf.mxu0  ;;  %v4150_v61 = vrot.slane %v8056_v25, 4  ;;  %v4165_v8 = vrot.slane %v4087_v59, 4 }
 0x61f   : > { %v8084_v37 = vmul.f32 %v4444_v42, %v4427_v11 }
 0x620   : > { %v3013_v38 = vadd.f32 %v3011_v36, %v3008_v48  ;;  %v4784_v36 = vstv %s4783_s21 }
 0x621   : > { %v4449_v7 = vrot.slane %v8084_v37, 1  ;;  %v4464_v1 = vrot.slane %v8084_v37, 4  ;;  %v4459_v55 = vrot.slane %v8084_v37, 3  ;;  %v4454_v30 = vrot.slane %v8084_v37, 2 }
 0x622   : > { %v3014_v15 = vadd.f32 %v3013_v38, %v2990_v43  ;;  %v8139_v13 = vmul.f32 %v8476_v44, %v4784_v36 }
 0x623   : > { %4146 = vrot.lane.b32.xlu1 %v4145_v33, %s5644_s18  ;;  %4450 = vrot.lane.b32.xlu2 %v4449_v7, %s5645_s19 }
 0x624   : > { %4465 = vrot.lane.b32.xlu0 %v4464_v1, %s5647_s22  ;;  %v3015_v9 = vadd.f32 %v3014_v15, %v8034_v23 }
 0x625   : > { %v3035_v60 = vpop.permute.xlu1 %3034  ;;  %v3030_v22 = vpop.permute.xlu0 %3029 }
 0x626   : > { %v8094_v3 = vpop.permute.xlu2 %3364  ;;  %v3018_v16 = vrot.slane %v3015_v9, 2  ;;  %v3032_v5 = vadd.f32 %v3030_v22, %v3027_v4  ;;  %v4430_v2 = vpop.f32.mrf.mxu0  ;;  %v3050_v12 = vadd.f32 %v3049_v10, %v3030_v22 }
 0x627   : > { %v8118_v47 = vmul.f32 %v4444_v42, %v4430_v2 }
 0x628   : > { %v3020_v57 = vadd.f32 %v3018_v16, %v3016_v19  ;;  %v3037_v41 = vadd.f32 %v3035_v60, %v3032_v5  ;;  %v3051_v54 = vadd.f32 %v3050_v12, %v3035_v60  ;;  %v3373_v60 = vld [vmem:[%s6961_s17 + $0x5] sm:$0x1]  ;;  %v3391_v12 = vld [vmem:[%s6961_s17 + $0x4] sm:$0x1] }
 0x629   : > { %v4476_v27 = vrot.slane %v8118_v47, 1  ;;  %v4481_v48 = vrot.slane %v8118_v47, 2  ;;  %v4486_v10 = vrot.slane %v8118_v47, 3 }
 0x62a   : > { %3021 = vst.msk [vmem:[%s6961_s17 + $0x3] sm:$0x1] %vm1315_vm9, %v3020_v57  ;;  %v3042_v23 = vadd.f32 %v3040_v49, %v3037_v41  ;;  %v3058_v49 = vld [vmem:[%s6961_s17 + $0x1] sm:$0x1] }
 0x62b   : > { %4151 = vrot.lane.b32.xlu1 %v4150_v61, %s5647_s22  ;;  %4460 = vrot.lane.b32.xlu2 %v4459_v55, %s5644_s18 }
 0x62c   : > { %v3045_v52 = vrot.slane %v3042_v23, 7 }
 0x62d   : > { %v3341_v40 = vpop.permute.xlu1 %3340  ;;  %v3055_v31 = vpop.permute.xlu0 %3054 }
 0x62e   : > { %v3047_v62 = vadd.f32 %v3045_v52, %v3043_v58  ;;  %v3057_v53 = vadd.f32 %v3055_v31, %v3051_v54  ;;  %v4433_v17 = vpop.f32.mrf.mxu0  ;;  %v3386_v0 = vpop.permute.xlu2 %3385  ;;  %v3343_v6 = vadd.f32 %v3341_v40, %v7841_v63  ;;  %v4491_v31 = vrot.slane %v8118_v47, 4 }
 0x62f   : > { %v8120_v43 = vmul.f32 %v4444_v42, %v4433_v17 }
 0x630   : > { %3048 = vst.msk [vmem:[%s6961_s17 + $0x2] sm:$0x1] %vm1315_vm9, %v3047_v62  ;;  %v3060_v51 = vrot.slane %v3057_v53, 4  ;;  %v3348_v63 = vadd.f32 %v3346_v45, %v3343_v6 }
 0x631   : > { %v3418_v59 = vld [vmem:[%s6961_s17 + $0x3] sm:$0x1] }
 0x632   : > { %v3062_v26 = vadd.f32 %v3060_v51, %v3058_v49  ;;  %v3367_v45 = vadd.f32 %v8094_v3, %v3348_v63 }
 0x633   : > { %4455 = vrot.lane.b32.xlu1 %v4454_v30, %s5648_s13  ;;  %4477 = vrot.lane.b32.xlu2 %v4476_v27, %s5645_s19 }
 0x634   : > { %3063 = vst.msk [vmem:[%s6961_s17 + $0x1] sm:$0x1] %vm1315_vm9, %v3062_v26 }
 0x635   : > { %v3356_v56 = vpop.permute.xlu1 %3355  ;;  %v3351_v50 = vpop.permute.xlu0 %3350 }
 0x636   : > { %v3353_v29 = vadd.f32 %v3351_v50, %v3348_v63  ;;  %v4766_v14 = vpop.f32.mrf.mxu0  ;;  %v3410_v35 = vpop.permute.xlu2 %3409 }
 0x637   : > { %v3433_v49 = vld [vmem:[%s6961_s17 + $0x2] sm:$0x1] }
 0x638   : > { %v3358_v42 = vadd.f32 %v3356_v56, %v3353_v29 }
 0x63a   : > { %v3360_v11 = vadd.f32 %v3359_v18, %v3358_v42 }
 0x63b   : > { %4166 = vrot.lane.b32.xlu1 %v4165_v8, %s5647_s22  ;;  %4482 = vrot.lane.b32.xlu2 %v4481_v48, %s5648_s13 }
 0x63c   : > { %3361 = vst.msk [vmem:[%s6961_s17 + $0x6] sm:$0x1] %vm1315_vm9, %v3360_v11 }
 0x63d   : > { %v3381_v46 = vpop.permute.xlu1 %3380  ;;  %v3370_v33 = vpop.permute.xlu0 %3369 }
 0x63e   : > { %v3383_v38 = vadd.f32 %v3381_v46, %v7868_v28  ;;  %v3372_v7 = vadd.f32 %v3370_v33, %v3367_v45  ;;  %v4768_v1 = vpop.f32.mrf.mxu0  ;;  %v3716_v2 = vpop.permute.xlu2 %3715 }
 0x63f   : > { %v8146_v4 = vmul.f32 %v8139_v13, %v4768_v1  ;;  %v3718_v50 = vadd.f32 %v3716_v2, %v7940_v32  ;;  %v5097_v1 = vstv %s5096_s6 }
 0x640   : > { %v3388_v15 = vadd.f32 %v3386_v0, %v3383_v38  ;;  %v3375_v9 = vrot.slane %v3372_v7, 5 }
 0x642   : > { %v3389_v22 = vadd.f32 %v3388_v15, %v8094_v3  ;;  %v3377_v16 = vadd.f32 %v3375_v9, %v3373_v60 }
 0x643   : > { %4487 = vrot.lane.b32.xlu2 %v4486_v10, %s5644_s18  ;;  %v5098_v10 = vmul.f32 %v8476_v44, %v5097_v1 }
 0x644   : > { %v3390_v5 = vadd.f32 %v3389_v22, %v3370_v33  ;;  %3378 = vst.msk [vmem:[%s6961_s17 + $0x5] sm:$0x1] %vm1315_vm9, %v3377_v16  ;;  %v3748_v22 = vld [vmem:[%s6961_s17 + $0x6] sm:$0x1] }
 0x645   : > { %v3405_v19 = vpop.permute.xlu1 %3404  ;;  %v3400_v41 = vpop.permute.xlu0 %3399 }
 0x646   : > { %v3393_v57 = vrot.slane %v3390_v5, 2  ;;  %v3402_v61 = vadd.f32 %v3400_v41, %v7868_v28  ;;  %v3424_v55 = vadd.f32 %v3400_v41, %v7899_v34  ;;  %v4771_v23 = vpop.f32.mrf.mxu0  ;;  %v3731_v53 = vpop.permute.xlu2 %3730 }
 0x647   : > { %v8158_v52 = vmul.f32 %v8139_v13, %v4771_v23 }
 0x648   : > { %v3395_v3 = vadd.f32 %v3393_v57, %v3391_v12  ;;  %v3407_v40 = vadd.f32 %v3405_v19, %v3402_v61  ;;  %v3425_v54 = vadd.f32 %v3424_v55, %v3405_v19 }
 0x649   : > { %v4790_v58 = vrot.slane %v8158_v52, 1  ;;  %v4795_v56 = vrot.slane %v8158_v52, 2  ;;  %v4800_v48 = vrot.slane %v8158_v52, 3  ;;  %v4805_v15 = vrot.slane %v8158_v52, 4 }
 0x64a   : > { %3396 = vst.msk [vmem:[%s6961_s17 + $0x4] sm:$0x1] %vm1315_vm9, %v3395_v3  ;;  %v3426_v28 = vadd.f32 %v3425_v54, %v3410_v35  ;;  %v3412_v62 = vadd.f32 %v3410_v35, %v3407_v40  ;;  %v3734_v35 = vld [vmem:[%s6961_s17 + $0x7] sm:$0x1] }
 0x64b   : > { %4791 = vrot.lane.b32.xlu0 %v4790_v58, %s5645_s19  ;;  %4492 = vrot.lane.b32.xlu2 %v4491_v31, %s5647_s22 }
 0x64d   : > { %v3430_v34 = vpop.permute.xlu1 %3429  ;;  %v3415_v0 = vpop.permute.xlu0 %3414 }
 0x64e   : > { %v3432_v17 = vadd.f32 %v3430_v34, %v3426_v28  ;;  %v3417_v6 = vadd.f32 %v3415_v0, %v3412_v62  ;;  %v8167_v51 = vpop.f32.mrf.mxu0  ;;  %v3756_v42 = vpop.permute.xlu2 %3755  ;;  %v3766_v62 = vld [vmem:[%s6961_s17 + $0x5] sm:$0x1] }
 0x64f   : > { %v3758_v16 = vadd.f32 %v3756_v42, %v7957_v21  ;;  %v4788_v34 = vmul.f32 %v8139_v13, %v8167_v51 }
 0x650   : > { %v3435_v30 = vrot.slane %v3432_v17, 4  ;;  %v3420_v27 = vrot.slane %v3417_v6, 7 }
 0x652   : > { %v3437_v26 = vadd.f32 %v3435_v30, %v3433_v49  ;;  %v3422_v63 = vadd.f32 %v3420_v27, %v3418_v59  ;;  %v4820_v59 = vrot.slane %v4788_v34, 4 }
 0x653   : > { %4796 = vrot.lane.b32.xlu0 %v4795_v56, %s5648_s13 }
 0x654   : > { %3438 = vst.msk [vmem:[%s6961_s17 + $0x2] sm:$0x1] %vm1315_vm9, %v3437_v26 }
 0x655   : > { %3423 = vst.msk [vmem:[%s6961_s17 + $0x3] sm:$0x1] %vm1315_vm9, %v3422_v63  ;;  %v3726_v29 = vpop.permute.xlu1 %3725  ;;  %v3721_v14 = vpop.permute.xlu0 %3720  ;;  %v4506_v63 = vrot.slane %v8120_v43, 4 }
 0x656   : > { %v3723_v18 = vadd.f32 %v3721_v14, %v3718_v50  ;;  %v5080_v8 = vpop.f32.mrf.mxu0  ;;  %v3780_v9 = vpop.permute.xlu2 %3779  ;;  %v3793_v50 = vld [vmem:[%s6961_s17 + $0x4] sm:$0x1] }
 0x658   : > { %v3728_v36 = vadd.f32 %v3726_v29, %v3723_v18 }
 0x65a   : > { %v3733_v11 = vadd.f32 %v3731_v53, %v3728_v36 }
 0x65b   : > { %4801 = vrot.lane.b32.xlu0 %v4800_v48, %s5644_s18 }
 0x65c   : > { %v3735_v32 = vadd.f32 %v3734_v35, %v3733_v11  ;;  %v3808_v29 = vld [vmem:[%s6961_s17 + $0x3] sm:$0x1] }
 0x65d   : > { %v3745_v46 = vpop.permute.xlu1 %3744  ;;  %v3740_v45 = vpop.permute.xlu0 %3739 }
 0x65e   : > { %3736 = vst.msk [vmem:[%s6961_s17 + $0x7] sm:$0x1] %vm1315_vm9, %v3735_v32  ;;  %v3742_v38 = vadd.f32 %v3740_v45, %v3723_v18  ;;  %v5082_v33 = vpop.f32.mrf.mxu0  ;;  %v3805_v58 = vpop.permute.xlu2 %3804 }
 0x660   : > { %v3747_v7 = vadd.f32 %v3745_v46, %v3742_v38 }
 0x662   : > { %v3750_v60 = vrot.slane %v3747_v7, 5 }
 0x663   : > { %4806 = vrot.lane.b32.xlu0 %v4805_v15, %s5647_s22 }
 0x664   : > { %v3752_v5 = vadd.f32 %v3750_v60, %v3748_v22 }
 0x665   : > { %v3775_v2 = vpop.permute.xlu1 %3774  ;;  %v3761_v19 = vpop.permute.xlu0 %3760  ;;  %v4110_v33 = vld [vmem:[%s6961_s17 + $0x7] sm:$0x1] }
 0x666   : > { %3753 = vst.msk [vmem:[%s6961_s17 + $0x6] sm:$0x1] %vm1315_vm9, %v3752_v5  ;;  %v3763_v57 = vadd.f32 %v3761_v19, %v3758_v16  ;;  %v5084_v41 = vpop.f32.mrf.mxu0  ;;  %v3777_v61 = vadd.f32 %v3775_v2, %v7957_v21  ;;  %v3799_v55 = vadd.f32 %v3775_v2, %v7989_v39  ;;  %v4102_v36 = vpop.permute.xlu2 %4101 }
 0x667   : > { %v8202_v12 = vmul.f32 %v5098_v10, %v5084_v41 }
 0x668   : > { %v3764_v23 = vadd.f32 %v3763_v57, %v3740_v45  ;;  %v3782_v28 = vadd.f32 %v3780_v9, %v3777_v61  ;;  %v3800_v21 = vadd.f32 %v3799_v55, %v3780_v9 }
 0x669   : > { %v5102_v3 = vrot.slane %v8202_v12, 1  ;;  %v5112_v44 = vrot.slane %v8202_v12, 3  ;;  %v5107_v40 = vrot.slane %v8202_v12, 2 }
 0x66a   : > { %v3765_v54 = vadd.f32 %v3764_v23, %v3745_v46 }
 0x66b   : > { %5103 = vrot.lane.b32.xlu1 %v5102_v3, %s5645_s19  ;;  %5113 = vrot.lane.b32.xlu0 %v5112_v44, %s5644_s18  ;;  %s5455_s18 = sshll.u32 %s5629_s30, 1 }
 0x66c   : > { %v3768_v31 = vrot.slane %v3765_v54, 2  ;;  %5108 = vrot.lane.b32.xlu2 %v5107_v40, %s5648_s13  ;;  %s5140_s19 = sadd.s32 %s5625_s29, %s5455_s18  ;;  %s5144_s29 = sshll.u32 %s6961_s17, 4  ;;  %s5145_s29 = int_to_ptr.vmem [resolvable:$true] %s5144_s29 }
 0x66d   : > { %v3790_v39 = vpop.permute.xlu1 %3789  ;;  %v3785_v53 = vpop.permute.xlu0 %3784  ;;  %v4128_v2 = vld [vmem:[%s6961_s17 + $0x6] sm:$0x1] }
 0x66e   : > { %v3770_v17 = vadd.f32 %v3768_v31, %v3766_v62  ;;  %v3787_v0 = vadd.f32 %v3785_v53, %v3782_v28  ;;  %v3801_v6 = vadd.f32 %v3800_v21, %v3785_v53  ;;  %v5087_v30 = vpop.f32.mrf.mxu0 }
 0x66f   : > { %v5100_v49 = vmul.f32 %v5098_v10, %v5087_v30 }
 0x670   : > { %3771 = vst.msk [vmem:[%s6961_s17 + $0x5] sm:$0x1] %vm1315_vm9, %v3770_v17  ;;  %v3792_v27 = vadd.f32 %v3790_v39, %v3787_v0  ;;  %v3807_v26 = vadd.f32 %v3805_v58, %v3801_v6 }
 0x671   : > { %v5118_v56 = vrot.slane %v5100_v49, 4 }
 0x672   : > { %v3795_v13 = vrot.slane %v3792_v27, 7  ;;  %v3810_v51 = vrot.slane %v3807_v26, 4 }
 0x673   : > { %5119 = vrot.lane.b32.xlu1 %v5118_v56, %s5647_s22  ;;  %4821 = vrot.lane.b32.xlu0 %v4820_v59, %s5647_s22 }
 0x674   : > { %v3797_v14 = vadd.f32 %v3795_v13, %v3793_v50  ;;  %v3812_v18 = vadd.f32 %v3810_v51, %v3808_v29  ;;  %4507 = vrot.lane.b32.xlu2 %v4506_v63, %s5647_s22  ;;  %s5456_s22 = sshll.u32 %s5140_s19, 3  ;;  %s5567_s19 = scalar_lea.hbm %s8320_s7, 32 }
 0x675   : > { %v4096_v8 = vpop.permute.xlu1 %4095  ;;  %v4091_v42 = vpop.permute.xlu0 %4090  ;;  %s5142_s23 = scalar_lea.hbm %s8320_s7, %s5456_s22 }
 0x676   : > { %3798 = vst.msk [vmem:[%s6961_s17 + $0x4] sm:$0x1] %vm1315_vm9, %v3797_v14  ;;  %v4093_v43 = vadd.f32 %v4091_v42, %v8016_v24  ;;  %s5146_s21 = sshll.u32 %s5142_s23, 4  ;;  %s5147_s21 = int_to_ptr.hbm [resolvable:$true] %s5146_s21 }
 0x677   : > { %3813 = vst.msk [vmem:[%s6961_s17 + $0x3] sm:$0x1] %vm1315_vm9, %v3812_v18  ;;  %v4155_v28 = vld [vmem:[%s6961_s17 + $0x5] sm:$0x1]  ;;  %s5561_s11 = sshra.s32 %s5147_s21, 4  ;;  %s5562_s11 = int_to_ptr.hbm [resolvable:$true] %s5561_s11 }
 0x678   : > { %v4098_v35 = vadd.f32 %v4096_v8, %v4093_v43  ;;  %s5563_s24 = scalar_lea.hbm %s5562_s11, 8  ;;  %p5568_p4 = scmp.lt.s32.totalorder %s5562_s11, %s8320_s7 }
 0x679   : > { %p5564_p0 = scmp.ne.s32.totalorder %s5562_s11, %s5563_s24  ;;  %p5569_p5 = scmp.lt.s32.totalorder %s5567_s19, %s5563_s24 }
 0x67a   : > { %v4104_v48 = vadd.f32 %v4102_v36, %v4098_v35 }
 0x67b   : > { %p5565_p1 = pnand %p5564_p0, %p5747_p3  ;;  %p5570_p6 = por %p5569_p5, %p5568_p4 }
 0x67d   : > { %v4118_v11 = vpop.permute.xlu1 %4117  ;;  %v4107_v32 = vpop.permute.xlu0 %4106  ;;  %v4170_v18 = vld [vmem:[%s6961_s17 + $0x4] sm:$0x1]  ;;  %p5566_p2 = pneg %p5565_p1 }
 0x67e   : > { %v4451_v46 = vpop.permute.xlu2 %4450  ;;  %v4109_v45 = vadd.f32 %v4107_v32, %v4104_v48  ;;  %v4120_v1 = vadd.f32 %v4118_v11, %v8031_v20 }
 0x67f   : > { %v4453_v34 = vadd.f32 %v4451_v46, %v8084_v37  ;;  %p5571_p7 = pnand %p5570_p6, %p5566_p2 }
 0x680   : > { %v4112_v38 = vrot.slane %v4109_v45, 5 }
 0x682   : > { %v4114_v7 = vadd.f32 %v4112_v38, %v4110_v33 }
 0x684   : > { %4115 = vst.msk [vmem:[%s6961_s17 + $0x7] sm:$0x1] %vm1315_vm9, %v4114_v7 }
 0x685   : > { %v4137_v15 = vpop.permute.xlu1 %4136  ;;  %v4123_v9 = vpop.permute.xlu0 %4122 }
 0x686   : > { %v4461_v24 = vpop.permute.xlu2 %4460  ;;  %v4125_v60 = vadd.f32 %v4123_v9, %v4120_v1  ;;  %v4139_v55 = vadd.f32 %v4137_v15, %v8031_v20  ;;  %v4161_v6 = vadd.f32 %v4137_v15, %v8056_v25 }
 0x688   : > { %v4126_v22 = vadd.f32 %v4125_v60, %v4102_v36 }
 0x68a   : > { %v4127_v10 = vadd.f32 %v4126_v22, %v4107_v32 }
 0x68b   : > { %v4469_v51 = vld [vmem:[%s6961_s17 + $0x7] sm:$0x1] }
 0x68c   : > { %v4130_v16 = vrot.slane %v4127_v10, 2 }
 0x68d   : > { %v4142_v5 = vpop.permute.xlu1 %4141 }
 0x68e   : > { %v4478_v19 = vpop.permute.xlu2 %4477  ;;  %v4132_v57 = vadd.f32 %v4130_v16, %v4128_v2  ;;  %v4144_v23 = vadd.f32 %v4142_v5, %v4139_v55  ;;  %v4162_v26 = vadd.f32 %v4161_v6, %v4142_v5 }
 0x68f   : > { %v4480_v31 = vadd.f32 %v4478_v19, %v8084_v37  ;;  %v4502_v35 = vadd.f32 %v4478_v19, %v8118_v47 }
 0x690   : > { %4133 = vst.msk [vmem:[%s6961_s17 + $0x6] sm:$0x1] %vm1315_vm9, %v4132_v57 }
 0x695   : > { %v4147_v41 = vpop.permute.xlu1 %4146 }
 0x696   : > { %v4483_v61 = vpop.permute.xlu2 %4482  ;;  %v4149_v3 = vadd.f32 %v4147_v41, %v4144_v23  ;;  %v4466_v27 = vpop.permute.xlu0 %4465  ;;  %v4163_v63 = vadd.f32 %v4162_v26, %v4147_v41 }
 0x697   : > { %v4485_v39 = vadd.f32 %v4483_v61, %v4480_v31  ;;  %v4496_v59 = vld [vmem:[%s6961_s17 + $0x6] sm:$0x1]  ;;  %v4503_v48 = vadd.f32 %v4502_v35, %v4483_v61 }
 0x69d   : > { %v4152_v44 = vpop.permute.xlu1 %4151 }
 0x69e   : > { %v4154_v40 = vadd.f32 %v4152_v44, %v4149_v3  ;;  %v4488_v54 = vpop.permute.xlu2 %4487 }
 0x69f   : > { %v4490_v62 = vadd.f32 %v4488_v54, %v4485_v39  ;;  %v4504_v11 = vadd.f32 %v4503_v48, %v4488_v54 }
 0x6a0   : > { %v4157_v58 = vrot.slane %v4154_v40, 7 }
 0x6a2   : > { %v4159_v21 = vadd.f32 %v4157_v58, %v4155_v28 }
 0x6a4   : > { %4160 = vst.msk [vmem:[%s6961_s17 + $0x5] sm:$0x1] %vm1315_vm9, %v4159_v21 }
 0x6a5   : > { %v4456_v20 = vpop.permute.xlu1 %4455 }
 0x6a6   : > { %v4458_v53 = vadd.f32 %v4456_v20, %v4453_v34  ;;  %v4493_v17 = vpop.permute.xlu2 %4492 }
 0x6a7   : > { %v4495_v0 = vadd.f32 %v4493_v17, %v4490_v62 }
 0x6a8   : > { %v4463_v30 = vadd.f32 %v4461_v24, %v4458_v53 }
 0x6a9   : > { %v4498_v49 = vrot.slane %v4495_v0, 7 }
 0x6aa   : > { %v4468_v37 = vadd.f32 %v4466_v27, %v4463_v30 }
 0x6ab   : > { %v4500_v56 = vadd.f32 %v4498_v49, %v4496_v59  ;;  %v4511_v1 = vld [vmem:[%s6961_s17 + $0x5] sm:$0x1] }
 0x6ac   : > { %v4471_v13 = vrot.slane %v4468_v37, 2 }
 0x6ad   : > { %4501 = vst.msk [vmem:[%s6961_s17 + $0x6] sm:$0x1] %vm1315_vm9, %v4500_v56  ;;  %v4167_v50 = vpop.permute.xlu1 %4166 }
 0x6ae   : > { %v4473_v29 = vadd.f32 %v4471_v13, %v4469_v51  ;;  %v4169_v14 = vadd.f32 %v4167_v50, %v4163_v63 }
 0x6b0   : > { %4474 = vst.msk [vmem:[%s6961_s17 + $0x7] sm:$0x1] %vm1315_vm9, %v4473_v29  ;;  %v4172_v25 = vrot.slane %v4169_v14, 4 }
 0x6b2   : > { %v4174_v8 = vadd.f32 %v4172_v25, %v4170_v18 }
 0x6b4   : > { %4175 = vst.msk [vmem:[%s6961_s17 + $0x4] sm:$0x1] %vm1315_vm9, %v4174_v8  ;;  %v4825_v54 = vld [vmem:[%s6961_s17 + $0x6] sm:$0x1] }
 0x6b7   : > { %v4810_v22 = vld [vmem:[%s6961_s17 + $0x7] sm:$0x1] }
 0x6bd   : > { %v4792_v42 = vpop.permute.xlu0 %4791 }
 0x6be   : > { %v4794_v38 = vadd.f32 %v4792_v42, %v8146_v4  ;;  %v4816_v2 = vadd.f32 %v4792_v42, %v8158_v52 }
 0x6c5   : > { %v4797_v36 = vpop.permute.xlu0 %4796 }
 0x6c6   : > { %v5109_v43 = vpop.permute.xlu2 %5108  ;;  %v4799_v7 = vadd.f32 %v4797_v36, %v4794_v38  ;;  %v4817_v57 = vadd.f32 %v4816_v2, %v4797_v36 }
 0x6cd   : > { %v4802_v32 = vpop.permute.xlu0 %4801 }
 0x6ce   : > { %v4508_v46 = vpop.permute.xlu2 %4507  ;;  %v4804_v9 = vadd.f32 %v4802_v32, %v4799_v7  ;;  %v4818_v41 = vadd.f32 %v4817_v57, %v4802_v32 }
 0x6cf   : > { %v4510_v45 = vadd.f32 %v4508_v46, %v4504_v11 }
 0x6d1   : > { %v4513_v33 = vrot.slane %v4510_v45, 4 }
 0x6d3   : > { %v4515_v15 = vadd.f32 %v4513_v33, %v4511_v1 }
 0x6d5   : > { %4516 = vst.msk [vmem:[%s6961_s17 + $0x5] sm:$0x1] %vm1315_vm9, %v4515_v15  ;;  %v4807_v24 = vpop.permute.xlu0 %4806 }
 0x6d6   : > { %v4809_v47 = vadd.f32 %v4807_v24, %v4804_v9 }
 0x6d8   : > { %v4812_v60 = vrot.slane %v4809_v47, 7 }
 0x6da   : > { %v4814_v10 = vadd.f32 %v4812_v60, %v4810_v22 }
 0x6dc   : > { %4815 = vst.msk [vmem:[%s6961_s17 + $0x7] sm:$0x1] %vm1315_vm9, %v4814_v10 }
 0x6dd   : > { %v5104_v16 = vpop.permute.xlu1 %5103  ;;  %v5114_v5 = vpop.permute.xlu0 %5113 }
 0x6de   : > { %v5106_v4 = vadd.f32 %v5104_v16, %v8202_v12 }
 0x6e0   : > { %v5111_v19 = vadd.f32 %v5109_v43, %v5106_v4 }
 0x6e2   : > { %v5116_v61 = vadd.f32 %v5114_v5, %v5111_v19 }
 0x6e3   : > { %v5123_v52 = vld [vmem:[%s6961_s17 + $0x7] sm:$0x1] }
 0x6e5   : > { %v5120_v55 = vpop.permute.xlu1 %5119  ;;  %v4822_v23 = vpop.permute.xlu0 %4821 }
 0x6e6   : > { %v5122_v12 = vadd.f32 %v5120_v55, %v5116_v61  ;;  %v4824_v3 = vadd.f32 %v4822_v23, %v4818_v41 }
 0x6e8   : > { %v5125_v44 = vrot.slane %v5122_v12, 4  ;;  %v4827_v40 = vrot.slane %v4824_v3, 4 }
 0x6ea   : > { %v5127_v58 = vadd.f32 %v5125_v44, %v5123_v52  ;;  %v4829_v31 = vadd.f32 %v4827_v40, %v4825_v54 }
 0x6ec   : > { %5128 = vst.msk [vmem:[%s6961_s17 + $0x7] sm:$0x1] %vm1315_vm9, %v5127_v58 }
 0x6ed   : > { %4830 = vst.msk [vmem:[%s6961_s17 + $0x6] sm:$0x1] %vm1315_vm9, %v4829_v31 }
 0x6ee   : > { %5574 = shalt.err (!%p5571_p7)
}
 0x6ef   : > { %5461 = dma.vmem_to_hbm [thread:$0]  (%p5747_p3), %s5145_s29, 128, %s5147_s21, %s5130_s25  }
 0x6f0 PF: > { %p5467_p9 = scmp.ge.s32.totalorder %s5641_s10, 2  ;;  %s5158_s17 = sand.u32 1, %s5613_s26  }
 0x6f1   : > { %s5159_s13 = scalar_lea.sflag [#allocation5], %s5158_s17 }
 0x6f2   : > { %p5464_p10 = pnand %p5467_p9, %p5756_p8 }
 0x6f4   : > { %p5465_p11 = pneg %p5464_p10 }
 0x6f6   : > { %5608 = dma.done.wait (%p5465_p11), %s5159_s13, 128  }
 0x6f7   : > { %5610 = vsyncadd (%p5465_p11), %s5159_s13, 4294967168  ;;  %s21_s10 = sadd.s32 1, %s5641_s10   ;;  %s8507_s15 = sld [smem:[#allocation7_spill]] }
 0x6f8   : > { %p18_p12 = scmp.ge.s32.totalorder %s21_s10, 6   ;;  %s8508_s26 = smov %s5617_s27 }
 0x6f9   : > { %s8509_s27 = smov %s5621_s28  ;;  %s8510_s28 = smov %s5765_s20 }
 0x6fa   : > { %s8511_s29 = smov %s5633_s8  ;;  %s8512_s30 = smov %s5637_s9 }
 0x6fb   : > { %s8513_s8 = smov %s8516_s12  ;;  %20 = sbr.rel (!%p18_p12) target bundleno = 7 (0x7), region = 83 }
 0x6fd   : > { %s8514_s9 = smov %s8507_s15 }
 0x700   :  { %5165 = vsyncpa [#allocation5], 1 }
 0x701   :  { %5167 = vsyncpa [#allocation5 + $0x1], 1 }

</bundles_post_ra>
